<compile_context>
chip_gen: v5e
topology: v5e:2x2
jax: 0.10.0
libtpu: 0.0.40
codegen_flags: <defaults>
</compile_context>

<pallas_src>
import functools

import jax
import jax.numpy as jnp
from jax.experimental import pallas as pl
from jax.experimental.pallas import tpu as pltpu


# Row layout of the packed per-channel-vector table (13, Cmax).
_VEC_NAMES = ("b1a", "g1a", "be1a", "b1b", "g1b", "be1b",
              "b2a", "g2a", "be2a", "b2b", "g2b", "be2b", "b_lin")
_ROW = {name: i for i, name in enumerate(_VEC_NAMES)}
_WEIGHT_NAMES = ("w1a", "w1b", "w2a", "w2b", "w_lin", "vec")


# --------------------------------- kernel ------------------------------------

def _downblock_kernel(x_ref, t_ref,
                      w1a_ref, w1b_ref, w2a_ref, w2b_ref, wl_ref, vec_ref,
                      o_ref,
                      pad_ref, col_ref):
    f32 = jnp.float32
    NB, H, W2, C2 = x_ref.shape
    Cin = C2 // 2
    H2 = H // 2
    HW = H2 * W2
    Cout = w2b_ref.shape[-1]

    def vrow(name, c):                              # (1, c) slice of the packed table
        r = _ROW[name]
        return vec_ref[r:r + 1, :c].astype(f32)

    def silu(v):
        return v * (1.0 / (1.0 + jnp.exp(-v)))

    # Zero the padded plane once per grid step; every conv rewrites only the
    # interior, so the 1-px zero border is preserved across all four convs.
    pad_ref[...] = jnp.zeros(pad_ref.shape, f32)

    def conv3x3(x_seq, w_ref, bias_name, Ci, Co):
        """3x3 'same' conv, stride 1, as a single im2col matmul (M = NB*HW)."""
        pad_ref[:, 1:H2 + 1, 1:W2 + 1, :Ci] = x_seq.reshape(NB, H2, W2, Ci)
        k = 0
        for dy in range(3):                         # pack 9 shifted taps into the slab
            for dx in range(3):
                col_ref[:, :, :, k * Ci:(k + 1) * Ci] = \
                    pad_ref[:, dy:dy + H2, dx:dx + W2, :Ci]
                k += 1
        cmat = col_ref[:, :, :, :9 * Ci].reshape(NB * HW, 9 * Ci)
        y = jnp.dot(cmat, w_ref[...].astype(f32), preferred_element_type=f32)
        y = y + vrow(bias_name, Co)
        return y.reshape(NB, HW, Co)

    def group_norm(x_seq, gamma_name, beta_name, C, groups=8, eps=1e-5):
        """GroupNorm(8) per image, two-pass (numerically safe) variance."""
        cs = C // groups

        def gavg(per_channel):                      # (NB, C) -> (NB, 1, C)
            g = jnp.mean(per_channel.reshape(NB, groups, cs), axis=-1, keepdims=True)
            return jnp.broadcast_to(g, (NB, groups, cs)).reshape(NB, 1, C)

        gm = gavg(jnp.mean(x_seq, axis=1))          # group mean per channel
        d = x_seq - gm
        gv = gavg(jnp.mean(d * d, axis=1))          # biased group variance (PyTorch GN)
        inv = jax.lax.rsqrt(gv + eps)
        return d * inv * vrow(gamma_name, C) + vrow(beta_name, C)

    # ---------------- MaxPool2d(2, 2), fully in-kernel ------------------------
    # x_ref last dim is [w-even channels | w-odd channels] (wrapper reshape).
    xv = x_ref[...].astype(f32)                          # (NB, H, W2, 2*Cin)
    xw = jnp.maximum(xv[..., :Cin], xv[..., Cin:])       # max over W-pairs
    xw = xw.reshape(NB * H2, 2, W2, Cin)                 # leading-dim regroup only
    xm = jnp.maximum(xw[:, 0], xw[:, 1])                 # max over H-pairs
    xm = xm.reshape(NB, HW, Cin)                         # (NB, H2*W2, Cin)

    # ---------------- ResBlock 1 (Cin -> Cin, residual=True) ------------------
    h = conv3x3(xm, w1a_ref, "b1a", Cin, Cin)
    h = silu(group_norm(h, "g1a", "be1a", Cin))
    h = conv3x3(h, w1b_ref, "b1b", Cin, Cin)
    h = group_norm(h, "g1b", "be1b", Cin)
    x1 = xm + h

    # ---------------- ResBlock 2 (Cin -> Cout) --------------------------------
    h = conv3x3(x1, w2a_ref, "b2a", Cin, Cout)
    h = silu(group_norm(h, "g2a", "be2a", Cout))
    h = conv3x3(h, w2b_ref, "b2b", Cout, Cout)
    x2 = group_norm(h, "g2b", "be2b", Cout)

    # ---------------- time embedding: Linear(SiLU(t)), broadcast --------------
    tv = silu(t_ref[...].astype(f32))                                   # (NB, T)
    te = jnp.dot(tv, wl_ref[...].astype(f32),
                 preferred_element_type=f32) + vrow("b_lin", Cout)      # (NB, Cout)

    o_ref[...] = (x2 + te[:, None, :]).astype(o_ref.dtype)


# -------------------------------- wrapper ------------------------------------

def prepare_params(params):
    """One-time parameter repack (outside the jitted hot path):
       * HWIO conv weights -> im2col matrices (9*Cin, Cout), row-major (dy,dx,ci)
       * the 13 per-channel vectors -> one (13, Cmax) table (one small DMA)."""
    Cin = params["w1a"].shape[2]
    Cout = params["w2b"].shape[3]
    Cmax = max(Cin, Cout)

    prepared = {
        "w1a": params["w1a"].reshape(9 * Cin, Cin),
        "w1b": params["w1b"].reshape(9 * Cin, Cin),
        "w2a": params["w2a"].reshape(9 * Cin, Cout),
        "w2b": params["w2b"].reshape(9 * Cout, Cout),
        "w_lin": params["w_lin"],
    }
    vec = jnp.zeros((len(_VEC_NAMES), Cmax), jnp.float32)
    for name, row in _ROW.items():
        v = params[name].reshape(-1).astype(jnp.float32)
        vec = vec.at[row, :v.shape[0]].set(v)
    prepared["vec"] = vec
    return prepared


@functools.partial(jax.jit, static_argnames=("batch_block",))
def downblock_forward(x_nchw, t, prepared, batch_block=None):
    N, Cin, H, W = x_nchw.shape
    H2, W2 = H // 2, W // 2
    HW = H2 * W2
    Cout = prepared["w2b"].shape[-1]
    Cmax = max(Cin, Cout)
    T = t.shape[-1]

    # batch_block=None folds the whole batch into one grid step (M = N*H2*W2 rows
    # per conv matmul).  On v7x set batch_block=N//2 so the "parallel" batch-block
    # axis shards across the 2 TensorCores.
    NB = N if batch_block is None else batch_block
    assert N % NB == 0, "batch_block must divide the batch size"

    # Layout glue (one fused XLA pass): NCHW -> NHWC, then fold each horizontal
    # 2x2-pool pair into the channel axis (free reshape).  The max-pool itself
    # runs inside the kernel.
    xr = jnp.transpose(x_nchw, (0, 2, 3, 1)).reshape(N, H, W2, 2 * Cin)

    def full_spec(shape):
        nd = len(shape)
        return pl.BlockSpec(shape, lambda n, _nd=nd: (0,) * _nd)

    in_specs = ([pl.BlockSpec((NB, H, W2, 2 * Cin), lambda n: (n, 0, 0, 0)),
                 pl.BlockSpec((NB, T), lambda n: (n, 0))]
                + [full_spec(prepared[k].shape) for k in _WEIGHT_NAMES])
    out_spec = pl.BlockSpec((NB, HW, Cout), lambda n: (n, 0, 0))

    out_flat = pl.pallas_call(
        _downblock_kernel,
        out_shape=jax.ShapeDtypeStruct((N, HW, Cout), x_nchw.dtype),
        grid=(N // NB,),
        in_specs=in_specs,
        out_specs=out_spec,
        scratch_shapes=[
            pltpu.VMEM((NB, H2 + 2, W2 + 2, Cmax), jnp.float32),   # padded conv plane
            pltpu.VMEM((NB, H2, W2, 9 * Cmax), jnp.float32),       # shared im2col slab
        ],
        compiler_params=pltpu.CompilerParams(
            dimension_semantics=("parallel",)),
    )(xr, t, *[prepared[k] for k in _WEIGHT_NAMES])

    # NHWC (flattened spatial) -> PyTorch NCHW
    return jnp.transpose(out_flat.reshape(N, H2, W2, Cout), (0, 3, 1, 2))


# ------------------------ deterministic parameter init ------------------------

def make_params(key, inp_ch, out_ch, t_emb_dim):
    ks = iter(jax.random.split(key, 24))

    def w(shape, scale=0.1):
        return scale * jax.random.normal(next(ks), shape, jnp.float32)

    return dict(
        # ResBlock 1 (inp_ch -> inp_ch), conv weights stored HWIO
        w1a=w((3, 3, inp_ch, inp_ch)), b1a=w((1, inp_ch)),
        g1a=1.0 + w((1, inp_ch)), be1a=w((1, inp_ch)),
        w1b=w((3, 3, inp_ch, inp_ch)), b1b=w((1, inp_ch)),
        g1b=1.0 + w((1, inp_ch)), be1b=w((1, inp_ch)),
        # ResBlock 2 (inp_ch -> out_ch)
        w2a=w((3, 3, inp_ch, out_ch)), b2a=w((1, out_ch)),
        g2a=1.0 + w((1, out_ch)), be2a=w((1, out_ch)),
        w2b=w((3, 3, out_ch, out_ch)), b2b=w((1, out_ch)),
        g2b=1.0 + w((1, out_ch)), be2b=w((1, out_ch)),
        # t-embedding Linear (stored as (T, Cout), i.e. W^T of the torch Linear)
        w_lin=w((t_emb_dim, out_ch)), b_lin=w((1, out_ch)),
    )


# --------------------------- pure-JAX reference -------------------------------

def ref_forward(x_nchw, t, p):
    def conv(x, w_hwio, b):
        w_oihw = jnp.transpose(w_hwio, (3, 2, 0, 1))
        y = jax.lax.conv_general_dilated(
            x, w_oihw, window_strides=(1, 1), padding=((1, 1), (1, 1)),
            dimension_numbers=("NCHW", "OIHW", "NCHW"))
        return y + b.reshape(1, -1, 1, 1)

    def gn(x, gamma, beta, G=8, eps=1e-5):
        N, C, H, W = x.shape
        xg = x.reshape(N, G, C // G, H, W)
        mean = xg.mean(axis=(2, 3, 4), keepdims=True)
        var = ((xg - mean) ** 2).mean(axis=(2, 3, 4), keepdims=True)
        xn = ((xg - mean) / jnp.sqrt(var + eps)).reshape(N, C, H, W)
        return xn * gamma.reshape(1, -1, 1, 1) + beta.reshape(1, -1, 1, 1)

    def silu(x):
        return x * (1.0 / (1.0 + jnp.exp(-x)))

    N, C, H, W = x_nchw.shape
    xm = x_nchw.reshape(N, C, H // 2, 2, W // 2, 2).max(axis=(3, 5))
    h = conv(xm, p["w1a"], p["b1a"]); h = silu(gn(h, p["g1a"], p["be1a"]))
    h = conv(h, p["w1b"], p["b1b"]); h = gn(h, p["g1b"], p["be1b"])
    x1 = xm + h
    h = conv(x1, p["w2a"], p["b2a"]); h = silu(gn(h, p["g2a"], p["be2a"]))
    h = conv(h, p["w2b"], p["b2b"]); x2 = gn(h, p["g2b"], p["be2b"])
    te = silu(t) @ p["w_lin"] + p["b_lin"].reshape(1, -1)
    return x2 + te[:, :, None, None]


# ----------------------------------- main -------------------------------------

if __name__ == "__main__":
    N, Cin, H, W = 2, 8, 16, 16       # inp_ch=8 (divisible by GN groups=8)
    Cout, T = 16, 32                  # out_ch=16, t_emb_dim=32 (small)

    key = jax.random.PRNGKey(0)
    kx, kt, kp = jax.random.split(key, 3)
    x = jax.random.normal(kx, (N, Cin, H, W), jnp.float32)   # PyTorch NCHW input
    t = jax.random.normal(kt, (N, T), jnp.float32)
    params = make_params(kp, Cin, Cout, T)
    prepared = prepare_params(params)                        # one-time repack

    out = downblock_forward(x, t, prepared)
    out = jax.block_until_ready(out)

    assert out.shape == (N, Cout, H // 2, W // 2), out.shape
    ref = ref_forward(x, t, params)
    if not jnp.allclose(out, ref, rtol=2e-2, atol=2e-2):
        raise AssertionError(
            f"mismatch vs reference, max abs err = {jnp.max(jnp.abs(out - ref))}")
    print("KERNEL_OK")
</pallas_src>

<mosaic_0001>
module attributes {stable_mosaic.version = 11 : i64} {
  func.func @_downblock_kernel(%arg0: i32, %arg1: memref<2x16x8x16xf32, #tpu.memory_space<vmem>>, %arg2: memref<2x32xf32, #tpu.memory_space<vmem>>, %arg3: memref<72x8xf32, #tpu.memory_space<vmem>>, %arg4: memref<72x8xf32, #tpu.memory_space<vmem>>, %arg5: memref<72x16xf32, #tpu.memory_space<vmem>>, %arg6: memref<144x16xf32, #tpu.memory_space<vmem>>, %arg7: memref<32x16xf32, #tpu.memory_space<vmem>>, %arg8: memref<13x16xf32, #tpu.memory_space<vmem>>, %arg9: memref<2x64x16xf32, #tpu.memory_space<vmem>>, %arg10: memref<2x10x10x16xf32, #tpu.memory_space<vmem>>, %arg11: memref<2x8x8x144xf32, #tpu.memory_space<vmem>>) attributes {dimension_semantics = [#tpu.dimension_semantics<parallel>], iteration_bounds = array<i64: 1>, scalar_prefetch = 0 : i64, scratch_operands = 2 : i64, tpu.core_type = #tpu.core_type<tc>, window_params = [{transform_indices = @transform_0, window_bounds = array<i64: 2, 16, 8, 16>}, {transform_indices = @transform_1, window_bounds = array<i64: 2, 32>}, {pipeline_mode = #tpu.pipeline_mode<synchronous>, transform_indices = @transform_2, window_bounds = array<i64: 72, 8>}, {pipeline_mode = #tpu.pipeline_mode<synchronous>, transform_indices = @transform_3, window_bounds = array<i64: 72, 8>}, {pipeline_mode = #tpu.pipeline_mode<synchronous>, transform_indices = @transform_4, window_bounds = array<i64: 72, 16>}, {pipeline_mode = #tpu.pipeline_mode<synchronous>, transform_indices = @transform_5, window_bounds = array<i64: 144, 16>}, {pipeline_mode = #tpu.pipeline_mode<synchronous>, transform_indices = @transform_6, window_bounds = array<i64: 32, 16>}, {pipeline_mode = #tpu.pipeline_mode<synchronous>, transform_indices = @transform_7, window_bounds = array<i64: 13, 16>}, {transform_indices = @transform_8, window_bounds = array<i64: 2, 64, 16>}]} {
    %cst = arith.constant 0.000000e+00 : f32
    %0 = vector.broadcast %cst : f32 to vector<2x10x10x16xf32>
    %c0 = arith.constant 0 : index
    %c0_0 = arith.constant 0 : index
    %c0_1 = arith.constant 0 : index
    %c0_2 = arith.constant 0 : index
    %1 = vector.load %arg10[%c0, %c0_0, %c0_1, %c0_2] : memref<2x10x10x16xf32, #tpu.memory_space<vmem>>, vector<2x10x10x16xf32>
    tpu.vector_store %arg10[%c0, %c0_0, %c0_1, %c0_2], %0 {strides = array<i32>} : memref<2x10x10x16xf32, #tpu.memory_space<vmem>>, vector<2x10x10x16xf32>,
    %c0_3 = arith.constant 0 : index
    %c0_4 = arith.constant 0 : index
    %c0_5 = arith.constant 0 : index
    %c0_6 = arith.constant 0 : index
    %2 = vector.load %arg1[%c0_3, %c0_4, %c0_5, %c0_6] : memref<2x16x8x16xf32, #tpu.memory_space<vmem>>, vector<2x16x8x16xf32>
    %3 = vector.extract_strided_slice %2 {offsets = [0, 0, 0, 0], sizes = [2, 16, 8, 8], strides = [1, 1, 1, 1]} : vector<2x16x8x16xf32> to vector<2x16x8x8xf32>
    %4 = vector.extract_strided_slice %2 {offsets = [0, 0, 0, 8], sizes = [2, 16, 8, 8], strides = [1, 1, 1, 1]} : vector<2x16x8x16xf32> to vector<2x16x8x8xf32>
    %5 = arith.maximumf %3, %4 : vector<2x16x8x8xf32>
    %6 = vector.shape_cast %5 : vector<2x16x8x8xf32> to vector<16x2x8x8xf32>
    %7 = vector.extract_strided_slice %6 {offsets = [0, 0, 0, 0], sizes = [16, 1, 8, 8], strides = [1, 1, 1, 1]} : vector<16x2x8x8xf32> to vector<16x1x8x8xf32>
    %8 = vector.shape_cast %7 : vector<16x1x8x8xf32> to vector<16x8x8xf32>
    %9 = vector.extract_strided_slice %6 {offsets = [0, 1, 0, 0], sizes = [16, 1, 8, 8], strides = [1, 1, 1, 1]} : vector<16x2x8x8xf32> to vector<16x1x8x8xf32>
    %10 = vector.shape_cast %9 : vector<16x1x8x8xf32> to vector<16x8x8xf32>
    %11 = arith.maximumf %8, %10 : vector<16x8x8xf32>
    %12 = vector.shape_cast %11 : vector<16x8x8xf32> to vector<2x64x8xf32>
    %13 = vector.shape_cast %12 : vector<2x64x8xf32> to vector<2x8x8x8xf32>
    %c0_7 = arith.constant 0 : index
    %c1 = arith.constant 1 : index
    %c1_8 = arith.constant 1 : index
    %c0_9 = arith.constant 0 : index
    %14 = vector.load %arg10[%c0_7, %c1, %c1_8, %c0_9] : memref<2x10x10x16xf32, #tpu.memory_space<vmem>>, vector<2x8x8x8xf32>
    tpu.vector_store %arg10[%c0_7, %c1, %c1_8, %c0_9], %13 {strides = array<i32>} : memref<2x10x10x16xf32, #tpu.memory_space<vmem>>, vector<2x8x8x8xf32>,
    %c0_10 = arith.constant 0 : index
    %c0_11 = arith.constant 0 : index
    %c0_12 = arith.constant 0 : index
    %c0_13 = arith.constant 0 : index
    %15 = vector.load %arg10[%c0_10, %c0_11, %c0_12, %c0_13] : memref<2x10x10x16xf32, #tpu.memory_space<vmem>>, vector<2x8x8x8xf32>
    %c0_14 = arith.constant 0 : index
    %c0_15 = arith.constant 0 : index
    %c0_16 = arith.constant 0 : index
    %c0_17 = arith.constant 0 : index
    %16 = vector.load %arg11[%c0_14, %c0_15, %c0_16, %c0_17] : memref<2x8x8x144xf32, #tpu.memory_space<vmem>>, vector<2x8x8x8xf32>
    tpu.vector_store %arg11[%c0_14, %c0_15, %c0_16, %c0_17], %15 {strides = array<i32>} : memref<2x8x8x144xf32, #tpu.memory_space<vmem>>, vector<2x8x8x8xf32>,
    %c0_18 = arith.constant 0 : index
    %c0_19 = arith.constant 0 : index
    %c1_20 = arith.constant 1 : index
    %c0_21 = arith.constant 0 : index
    %17 = vector.load %arg10[%c0_18, %c0_19, %c1_20, %c0_21] : memref<2x10x10x16xf32, #tpu.memory_space<vmem>>, vector<2x8x8x8xf32>
    %c0_22 = arith.constant 0 : index
    %c0_23 = arith.constant 0 : index
    %c0_24 = arith.constant 0 : index
    %c8 = arith.constant 8 : index
    %18 = vector.load %arg11[%c0_22, %c0_23, %c0_24, %c8] : memref<2x8x8x144xf32, #tpu.memory_space<vmem>>, vector<2x8x8x8xf32>
    tpu.vector_store %arg11[%c0_22, %c0_23, %c0_24, %c8], %17 {strides = array<i32>} : memref<2x8x8x144xf32, #tpu.memory_space<vmem>>, vector<2x8x8x8xf32>,
    %c0_25 = arith.constant 0 : index
    %c0_26 = arith.constant 0 : index
    %c2 = arith.constant 2 : index
    %c0_27 = arith.constant 0 : index
    %19 = vector.load %arg10[%c0_25, %c0_26, %c2, %c0_27] : memref<2x10x10x16xf32, #tpu.memory_space<vmem>>, vector<2x8x8x8xf32>
    %c0_28 = arith.constant 0 : index
    %c0_29 = arith.constant 0 : index
    %c0_30 = arith.constant 0 : index
    %c16 = arith.constant 16 : index
    %20 = vector.load %arg11[%c0_28, %c0_29, %c0_30, %c16] : memref<2x8x8x144xf32, #tpu.memory_space<vmem>>, vector<2x8x8x8xf32>
    tpu.vector_store %arg11[%c0_28, %c0_29, %c0_30, %c16], %19 {strides = array<i32>} : memref<2x8x8x144xf32, #tpu.memory_space<vmem>>, vector<2x8x8x8xf32>,
    %c0_31 = arith.constant 0 : index
    %c1_32 = arith.constant 1 : index
    %c0_33 = arith.constant 0 : index
    %c0_34 = arith.constant 0 : index
    %21 = vector.load %arg10[%c0_31, %c1_32, %c0_33, %c0_34] : memref<2x10x10x16xf32, #tpu.memory_space<vmem>>, vector<2x8x8x8xf32>
    %c0_35 = arith.constant 0 : index
    %c0_36 = arith.constant 0 : index
    %c0_37 = arith.constant 0 : index
    %c24 = arith.constant 24 : index
    %22 = vector.load %arg11[%c0_35, %c0_36, %c0_37, %c24] : memref<2x8x8x144xf32, #tpu.memory_space<vmem>>, vector<2x8x8x8xf32>
    tpu.vector_store %arg11[%c0_35, %c0_36, %c0_37, %c24], %21 {strides = array<i32>} : memref<2x8x8x144xf32, #tpu.memory_space<vmem>>, vector<2x8x8x8xf32>,
    %c0_38 = arith.constant 0 : index
    %c1_39 = arith.constant 1 : index
    %c1_40 = arith.constant 1 : index
    %c0_41 = arith.constant 0 : index
    %23 = vector.load %arg10[%c0_38, %c1_39, %c1_40, %c0_41] : memref<2x10x10x16xf32, #tpu.memory_space<vmem>>, vector<2x8x8x8xf32>
    %c0_42 = arith.constant 0 : index
    %c0_43 = arith.constant 0 : index
    %c0_44 = arith.constant 0 : index
    %c32 = arith.constant 32 : index
    %24 = vector.load %arg11[%c0_42, %c0_43, %c0_44, %c32] : memref<2x8x8x144xf32, #tpu.memory_space<vmem>>, vector<2x8x8x8xf32>
    tpu.vector_store %arg11[%c0_42, %c0_43, %c0_44, %c32], %23 {strides = array<i32>} : memref<2x8x8x144xf32, #tpu.memory_space<vmem>>, vector<2x8x8x8xf32>,
    %c0_45 = arith.constant 0 : index
    %c1_46 = arith.constant 1 : index
    %c2_47 = arith.constant 2 : index
    %c0_48 = arith.constant 0 : index
    %25 = vector.load %arg10[%c0_45, %c1_46, %c2_47, %c0_48] : memref<2x10x10x16xf32, #tpu.memory_space<vmem>>, vector<2x8x8x8xf32>
    %c0_49 = arith.constant 0 : index
    %c0_50 = arith.constant 0 : index
    %c0_51 = arith.constant 0 : index
    %c40 = arith.constant 40 : index
    %26 = vector.load %arg11[%c0_49, %c0_50, %c0_51, %c40] : memref<2x8x8x144xf32, #tpu.memory_space<vmem>>, vector<2x8x8x8xf32>
    tpu.vector_store %arg11[%c0_49, %c0_50, %c0_51, %c40], %25 {strides = array<i32>} : memref<2x8x8x144xf32, #tpu.memory_space<vmem>>, vector<2x8x8x8xf32>,
    %c0_52 = arith.constant 0 : index
    %c2_53 = arith.constant 2 : index
    %c0_54 = arith.constant 0 : index
    %c0_55 = arith.constant 0 : index
    %27 = vector.load %arg10[%c0_52, %c2_53, %c0_54, %c0_55] : memref<2x10x10x16xf32, #tpu.memory_space<vmem>>, vector<2x8x8x8xf32>
    %c0_56 = arith.constant 0 : index
    %c0_57 = arith.constant 0 : index
    %c0_58 = arith.constant 0 : index
    %c48 = arith.constant 48 : index
    %28 = vector.load %arg11[%c0_56, %c0_57, %c0_58, %c48] : memref<2x8x8x144xf32, #tpu.memory_space<vmem>>, vector<2x8x8x8xf32>
    tpu.vector_store %arg11[%c0_56, %c0_57, %c0_58, %c48], %27 {strides = array<i32>} : memref<2x8x8x144xf32, #tpu.memory_space<vmem>>, vector<2x8x8x8xf32>,
    %c0_59 = arith.constant 0 : index
    %c2_60 = arith.constant 2 : index
    %c1_61 = arith.constant 1 : index
    %c0_62 = arith.constant 0 : index
    %29 = vector.load %arg10[%c0_59, %c2_60, %c1_61, %c0_62] : memref<2x10x10x16xf32, #tpu.memory_space<vmem>>, vector<2x8x8x8xf32>
    %c0_63 = arith.constant 0 : index
    %c0_64 = arith.constant 0 : index
    %c0_65 = arith.constant 0 : index
    %c56 = arith.constant 56 : index
    %30 = vector.load %arg11[%c0_63, %c0_64, %c0_65, %c56] : memref<2x8x8x144xf32, #tpu.memory_space<vmem>>, vector<2x8x8x8xf32>
    tpu.vector_store %arg11[%c0_63, %c0_64, %c0_65, %c56], %29 {strides = array<i32>} : memref<2x8x8x144xf32, #tpu.memory_space<vmem>>, vector<2x8x8x8xf32>,
    %c0_66 = arith.constant 0 : index
    %c2_67 = arith.constant 2 : index
    %c2_68 = arith.constant 2 : index
    %c0_69 = arith.constant 0 : index
    %31 = vector.load %arg10[%c0_66, %c2_67, %c2_68, %c0_69] : memref<2x10x10x16xf32, #tpu.memory_space<vmem>>, vector<2x8x8x8xf32>
    %c0_70 = arith.constant 0 : index
    %c0_71 = arith.constant 0 : index
    %c0_72 = arith.constant 0 : index
    %c64 = arith.constant 64 : index
    %32 = vector.load %arg11[%c0_70, %c0_71, %c0_72, %c64] : memref<2x8x8x144xf32, #tpu.memory_space<vmem>>, vector<2x8x8x8xf32>
    tpu.vector_store %arg11[%c0_70, %c0_71, %c0_72, %c64], %31 {strides = array<i32>} : memref<2x8x8x144xf32, #tpu.memory_space<vmem>>, vector<2x8x8x8xf32>,
    %c0_73 = arith.constant 0 : index
    %c0_74 = arith.constant 0 : index
    %c0_75 = arith.constant 0 : index
    %c0_76 = arith.constant 0 : index
    %33 = vector.load %arg11[%c0_73, %c0_74, %c0_75, %c0_76] : memref<2x8x8x144xf32, #tpu.memory_space<vmem>>, vector<2x8x8x72xf32>
    %34 = vector.shape_cast %33 : vector<2x8x8x72xf32> to vector<128x72xf32>
    %c0_77 = arith.constant 0 : index
    %c0_78 = arith.constant 0 : index
    %35 = vector.load %arg3[%c0_77, %c0_78] : memref<72x8xf32, #tpu.memory_space<vmem>>, vector<72x8xf32>
    %cst_79 = arith.constant dense<0.000000e+00> : vector<128x8xf32>
    %36 = tpu.matmul %34, %35, %cst_79 {dimension_numbers = #tpu.dot_dimension_numbers<[1], [0], [0], [1], [0, 0, 1, 1], [], []>} : vector<128x72xf32>, vector<72x8xf32>, vector<128x8xf32> -> vector<128x8xf32>
    %c0_80 = arith.constant 0 : index
    %c0_81 = arith.constant 0 : index
    %37 = vector.load %arg8[%c0_80, %c0_81] : memref<13x16xf32, #tpu.memory_space<vmem>>, vector<1x8xf32>
    %38 = vector.broadcast %37 : vector<1x8xf32> to vector<128x8xf32>
    %39 = arith.addf %36, %38 : vector<128x8xf32>
    %40 = vector.shape_cast %39 : vector<128x8xf32> to vector<2x64x8xf32>
    %cst_82 = arith.constant dense<0.000000e+00> : vector<2x8xf32>
    %41 = vector.multi_reduction <add>, %40, %cst_82 [1] : vector<2x64x8xf32> to vector<2x8xf32>
    %cst_83 = arith.constant 6.400000e+01 : f32
    %42 = vector.broadcast %cst_83 : f32 to vector<2x8xf32>
    %43 = arith.divf %41, %42 : vector<2x8xf32>
    %44 = vector.shape_cast %43 : vector<2x8xf32> to vector<2x8x1xf32>
    %cst_84 = arith.constant dense<0.000000e+00> : vector<2x8xf32>
    %45 = vector.multi_reduction <add>, %44, %cst_84 [2] : vector<2x8x1xf32> to vector<2x8xf32>
    %46 = vector.shape_cast %45 : vector<2x8xf32> to vector<2x8x1xf32>
    %cst_85 = arith.constant 1.000000e+00 : f32
    %47 = vector.broadcast %cst_85 : f32 to vector<2x8x1xf32>
    %48 = arith.divf %46, %47 : vector<2x8x1xf32>
    %49 = vector.shape_cast %48 : vector<2x8x1xf32> to vector<2x1x8xf32>
    %50 = vector.broadcast %49 : vector<2x1x8xf32> to vector<2x64x8xf32>
    %51 = arith.subf %40, %50 : vector<2x64x8xf32>
    %52 = arith.mulf %51, %51 : vector<2x64x8xf32>
    %cst_86 = arith.constant dense<0.000000e+00> : vector<2x8xf32>
    %53 = vector.multi_reduction <add>, %52, %cst_86 [1] : vector<2x64x8xf32> to vector<2x8xf32>
    %cst_87 = arith.constant 6.400000e+01 : f32
    %54 = vector.broadcast %cst_87 : f32 to vector<2x8xf32>
    %55 = arith.divf %53, %54 : vector<2x8xf32>
    %56 = vector.shape_cast %55 : vector<2x8xf32> to vector<2x8x1xf32>
    %cst_88 = arith.constant dense<0.000000e+00> : vector<2x8xf32>
    %57 = vector.multi_reduction <add>, %56, %cst_88 [2] : vector<2x8x1xf32> to vector<2x8xf32>
    %58 = vector.shape_cast %57 : vector<2x8xf32> to vector<2x8x1xf32>
    %cst_89 = arith.constant 1.000000e+00 : f32
    %59 = vector.broadcast %cst_89 : f32 to vector<2x8x1xf32>
    %60 = arith.divf %58, %59 : vector<2x8x1xf32>
    %61 = vector.shape_cast %60 : vector<2x8x1xf32> to vector<2x1x8xf32>
    %cst_90 = arith.constant 9.99999974E-6 : f32
    %62 = vector.broadcast %cst_90 : f32 to vector<2x1x8xf32>
    %63 = arith.addf %61, %62 : vector<2x1x8xf32>
    %64 = math.rsqrt %63 : vector<2x1x8xf32>
    %65 = vector.broadcast %64 : vector<2x1x8xf32> to vector<2x64x8xf32>
    %66 = arith.mulf %51, %65 : vector<2x64x8xf32>
    %c1_91 = arith.constant 1 : index
    %c0_92 = arith.constant 0 : index
    %67 = vector.load %arg8[%c1_91, %c0_92] : memref<13x16xf32, #tpu.memory_space<vmem>>, vector<1x8xf32>
    %68 = vector.shape_cast %67 : vector<1x8xf32> to vector<1x1x8xf32>
    %69 = vector.broadcast %68 : vector<1x1x8xf32> to vector<2x64x8xf32>
    %70 = arith.mulf %66, %69 : vector<2x64x8xf32>
    %c2_93 = arith.constant 2 : index
    %c0_94 = arith.constant 0 : index
    %71 = vector.load %arg8[%c2_93, %c0_94] : memref<13x16xf32, #tpu.memory_space<vmem>>, vector<1x8xf32>
    %72 = vector.shape_cast %71 : vector<1x8xf32> to vector<1x1x8xf32>
    %73 = vector.broadcast %72 : vector<1x1x8xf32> to vector<2x64x8xf32>
    %74 = arith.addf %70, %73 : vector<2x64x8xf32>
    %cst_95 = arith.constant 0.000000e+00 : f32
    %75 = vector.broadcast %cst_95 : f32 to vector<2x64x8xf32>
    %76 = arith.subf %75, %74 : vector<2x64x8xf32>
    %77 = math.exp %76 : vector<2x64x8xf32>
    %cst_96 = arith.constant 1.000000e+00 : f32
    %78 = vector.broadcast %cst_96 : f32 to vector<2x64x8xf32>
    %79 = arith.addf %78, %77 : vector<2x64x8xf32>
    %cst_97 = arith.constant 1.000000e+00 : f32
    %80 = vector.broadcast %cst_97 : f32 to vector<2x64x8xf32>
    %81 = arith.divf %80, %79 : vector<2x64x8xf32>
    %82 = arith.mulf %74, %81 : vector<2x64x8xf32>
    %83 = vector.shape_cast %82 : vector<2x64x8xf32> to vector<2x8x8x8xf32>
    %c0_98 = arith.constant 0 : index
    %c1_99 = arith.constant 1 : index
    %c1_100 = arith.constant 1 : index
    %c0_101 = arith.constant 0 : index
    %84 = vector.load %arg10[%c0_98, %c1_99, %c1_100, %c0_101] : memref<2x10x10x16xf32, #tpu.memory_space<vmem>>, vector<2x8x8x8xf32>
    tpu.vector_store %arg10[%c0_98, %c1_99, %c1_100, %c0_101], %83 {strides = array<i32>} : memref<2x10x10x16xf32, #tpu.memory_space<vmem>>, vector<2x8x8x8xf32>,
    %c0_102 = arith.constant 0 : index
    %c0_103 = arith.constant 0 : index
    %c0_104 = arith.constant 0 : index
    %c0_105 = arith.constant 0 : index
    %85 = vector.load %arg10[%c0_102, %c0_103, %c0_104, %c0_105] : memref<2x10x10x16xf32, #tpu.memory_space<vmem>>, vector<2x8x8x8xf32>
    %c0_106 = arith.constant 0 : index
    %c0_107 = arith.constant 0 : index
    %c0_108 = arith.constant 0 : index
    %c0_109 = arith.constant 0 : index
    %86 = vector.load %arg11[%c0_106, %c0_107, %c0_108, %c0_109] : memref<2x8x8x144xf32, #tpu.memory_space<vmem>>, vector<2x8x8x8xf32>
    tpu.vector_store %arg11[%c0_106, %c0_107, %c0_108, %c0_109], %85 {strides = array<i32>} : memref<2x8x8x144xf32, #tpu.memory_space<vmem>>, vector<2x8x8x8xf32>,
    %c0_110 = arith.constant 0 : index
    %c0_111 = arith.constant 0 : index
    %c1_112 = arith.constant 1 : index
    %c0_113 = arith.constant 0 : index
    %87 = vector.load %arg10[%c0_110, %c0_111, %c1_112, %c0_113] : memref<2x10x10x16xf32, #tpu.memory_space<vmem>>, vector<2x8x8x8xf32>
    %c0_114 = arith.constant 0 : index
    %c0_115 = arith.constant 0 : index
    %c0_116 = arith.constant 0 : index
    %c8_117 = arith.constant 8 : index
    %88 = vector.load %arg11[%c0_114, %c0_115, %c0_116, %c8_117] : memref<2x8x8x144xf32, #tpu.memory_space<vmem>>, vector<2x8x8x8xf32>
    tpu.vector_store %arg11[%c0_114, %c0_115, %c0_116, %c8_117], %87 {strides = array<i32>} : memref<2x8x8x144xf32, #tpu.memory_space<vmem>>, vector<2x8x8x8xf32>,
    %c0_118 = arith.constant 0 : index
    %c0_119 = arith.constant 0 : index
    %c2_120 = arith.constant 2 : index
    %c0_121 = arith.constant 0 : index
    %89 = vector.load %arg10[%c0_118, %c0_119, %c2_120, %c0_121] : memref<2x10x10x16xf32, #tpu.memory_space<vmem>>, vector<2x8x8x8xf32>
    %c0_122 = arith.constant 0 : index
    %c0_123 = arith.constant 0 : index
    %c0_124 = arith.constant 0 : index
    %c16_125 = arith.constant 16 : index
    %90 = vector.load %arg11[%c0_122, %c0_123, %c0_124, %c16_125] : memref<2x8x8x144xf32, #tpu.memory_space<vmem>>, vector<2x8x8x8xf32>
    tpu.vector_store %arg11[%c0_122, %c0_123, %c0_124, %c16_125], %89 {strides = array<i32>} : memref<2x8x8x144xf32, #tpu.memory_space<vmem>>, vector<2x8x8x8xf32>,
    %c0_126 = arith.constant 0 : index
    %c1_127 = arith.constant 1 : index
    %c0_128 = arith.constant 0 : index
    %c0_129 = arith.constant 0 : index
    %91 = vector.load %arg10[%c0_126, %c1_127, %c0_128, %c0_129] : memref<2x10x10x16xf32, #tpu.memory_space<vmem>>, vector<2x8x8x8xf32>
    %c0_130 = arith.constant 0 : index
    %c0_131 = arith.constant 0 : index
    %c0_132 = arith.constant 0 : index
    %c24_133 = arith.constant 24 : index
    %92 = vector.load %arg11[%c0_130, %c0_131, %c0_132, %c24_133] : memref<2x8x8x144xf32, #tpu.memory_space<vmem>>, vector<2x8x8x8xf32>
    tpu.vector_store %arg11[%c0_130, %c0_131, %c0_132, %c24_133], %91 {strides = array<i32>} : memref<2x8x8x144xf32, #tpu.memory_space<vmem>>, vector<2x8x8x8xf32>,
    %c0_134 = arith.constant 0 : index
    %c1_135 = arith.constant 1 : index
    %c1_136 = arith.constant 1 : index
    %c0_137 = arith.constant 0 : index
    %93 = vector.load %arg10[%c0_134, %c1_135, %c1_136, %c0_137] : memref<2x10x10x16xf32, #tpu.memory_space<vmem>>, vector<2x8x8x8xf32>
    %c0_138 = arith.constant 0 : index
    %c0_139 = arith.constant 0 : index
    %c0_140 = arith.constant 0 : index
    %c32_141 = arith.constant 32 : index
    %94 = vector.load %arg11[%c0_138, %c0_139, %c0_140, %c32_141] : memref<2x8x8x144xf32, #tpu.memory_space<vmem>>, vector<2x8x8x8xf32>
    tpu.vector_store %arg11[%c0_138, %c0_139, %c0_140, %c32_141], %93 {strides = array<i32>} : memref<2x8x8x144xf32, #tpu.memory_space<vmem>>, vector<2x8x8x8xf32>,
    %c0_142 = arith.constant 0 : index
    %c1_143 = arith.constant 1 : index
    %c2_144 = arith.constant 2 : index
    %c0_145 = arith.constant 0 : index
    %95 = vector.load %arg10[%c0_142, %c1_143, %c2_144, %c0_145] : memref<2x10x10x16xf32, #tpu.memory_space<vmem>>, vector<2x8x8x8xf32>
    %c0_146 = arith.constant 0 : index
    %c0_147 = arith.constant 0 : index
    %c0_148 = arith.constant 0 : index
    %c40_149 = arith.constant 40 : index
    %96 = vector.load %arg11[%c0_146, %c0_147, %c0_148, %c40_149] : memref<2x8x8x144xf32, #tpu.memory_space<vmem>>, vector<2x8x8x8xf32>
    tpu.vector_store %arg11[%c0_146, %c0_147, %c0_148, %c40_149], %95 {strides = array<i32>} : memref<2x8x8x144xf32, #tpu.memory_space<vmem>>, vector<2x8x8x8xf32>,
    %c0_150 = arith.constant 0 : index
    %c2_151 = arith.constant 2 : index
    %c0_152 = arith.constant 0 : index
    %c0_153 = arith.constant 0 : index
    %97 = vector.load %arg10[%c0_150, %c2_151, %c0_152, %c0_153] : memref<2x10x10x16xf32, #tpu.memory_space<vmem>>, vector<2x8x8x8xf32>
    %c0_154 = arith.constant 0 : index
    %c0_155 = arith.constant 0 : index
    %c0_156 = arith.constant 0 : index
    %c48_157 = arith.constant 48 : index
    %98 = vector.load %arg11[%c0_154, %c0_155, %c0_156, %c48_157] : memref<2x8x8x144xf32, #tpu.memory_space<vmem>>, vector<2x8x8x8xf32>
    tpu.vector_store %arg11[%c0_154, %c0_155, %c0_156, %c48_157], %97 {strides = array<i32>} : memref<2x8x8x144xf32, #tpu.memory_space<vmem>>, vector<2x8x8x8xf32>,
    %c0_158 = arith.constant 0 : index
    %c2_159 = arith.constant 2 : index
    %c1_160 = arith.constant 1 : index
    %c0_161 = arith.constant 0 : index
    %99 = vector.load %arg10[%c0_158, %c2_159, %c1_160, %c0_161] : memref<2x10x10x16xf32, #tpu.memory_space<vmem>>, vector<2x8x8x8xf32>
    %c0_162 = arith.constant 0 : index
    %c0_163 = arith.constant 0 : index
    %c0_164 = arith.constant 0 : index
    %c56_165 = arith.constant 56 : index
    %100 = vector.load %arg11[%c0_162, %c0_163, %c0_164, %c56_165] : memref<2x8x8x144xf32, #tpu.memory_space<vmem>>, vector<2x8x8x8xf32>
    tpu.vector_store %arg11[%c0_162, %c0_163, %c0_164, %c56_165], %99 {strides = array<i32>} : memref<2x8x8x144xf32, #tpu.memory_space<vmem>>, vector<2x8x8x8xf32>,
    %c0_166 = arith.constant 0 : index
    %c2_167 = arith.constant 2 : index
    %c2_168 = arith.constant 2 : index
    %c0_169 = arith.constant 0 : index
    %101 = vector.load %arg10[%c0_166, %c2_167, %c2_168, %c0_169] : memref<2x10x10x16xf32, #tpu.memory_space<vmem>>, vector<2x8x8x8xf32>
    %c0_170 = arith.constant 0 : index
    %c0_171 = arith.constant 0 : index
    %c0_172 = arith.constant 0 : index
    %c64_173 = arith.constant 64 : index
    %102 = vector.load %arg11[%c0_170, %c0_171, %c0_172, %c64_173] : memref<2x8x8x144xf32, #tpu.memory_space<vmem>>, vector<2x8x8x8xf32>
    tpu.vector_store %arg11[%c0_170, %c0_171, %c0_172, %c64_173], %101 {strides = array<i32>} : memref<2x8x8x144xf32, #tpu.memory_space<vmem>>, vector<2x8x8x8xf32>,
    %c0_174 = arith.constant 0 : index
    %c0_175 = arith.constant 0 : index
    %c0_176 = arith.constant 0 : index
    %c0_177 = arith.constant 0 : index
    %103 = vector.load %arg11[%c0_174, %c0_175, %c0_176, %c0_177] : memref<2x8x8x144xf32, #tpu.memory_space<vmem>>, vector<2x8x8x72xf32>
    %104 = vector.shape_cast %103 : vector<2x8x8x72xf32> to vector<128x72xf32>
    %c0_178 = arith.constant 0 : index
    %c0_179 = arith.constant 0 : index
    %105 = vector.load %arg4[%c0_178, %c0_179] : memref<72x8xf32, #tpu.memory_space<vmem>>, vector<72x8xf32>
    %cst_180 = arith.constant dense<0.000000e+00> : vector<128x8xf32>
    %106 = tpu.matmul %104, %105, %cst_180 {dimension_numbers = #tpu.dot_dimension_numbers<[1], [0], [0], [1], [0, 0, 1, 1], [], []>} : vector<128x72xf32>, vector<72x8xf32>, vector<128x8xf32> -> vector<128x8xf32>
    %c3 = arith.constant 3 : index
    %c0_181 = arith.constant 0 : index
    %107 = vector.load %arg8[%c3, %c0_181] : memref<13x16xf32, #tpu.memory_space<vmem>>, vector<1x8xf32>
    %108 = vector.broadcast %107 : vector<1x8xf32> to vector<128x8xf32>
    %109 = arith.addf %106, %108 : vector<128x8xf32>
    %110 = vector.shape_cast %109 : vector<128x8xf32> to vector<2x64x8xf32>
    %cst_182 = arith.constant dense<0.000000e+00> : vector<2x8xf32>
    %111 = vector.multi_reduction <add>, %110, %cst_182 [1] : vector<2x64x8xf32> to vector<2x8xf32>
    %cst_183 = arith.constant 6.400000e+01 : f32
    %112 = vector.broadcast %cst_183 : f32 to vector<2x8xf32>
    %113 = arith.divf %111, %112 : vector<2x8xf32>
    %114 = vector.shape_cast %113 : vector<2x8xf32> to vector<2x8x1xf32>
    %cst_184 = arith.constant dense<0.000000e+00> : vector<2x8xf32>
    %115 = vector.multi_reduction <add>, %114, %cst_184 [2] : vector<2x8x1xf32> to vector<2x8xf32>
    %116 = vector.shape_cast %115 : vector<2x8xf32> to vector<2x8x1xf32>
    %cst_185 = arith.constant 1.000000e+00 : f32
    %117 = vector.broadcast %cst_185 : f32 to vector<2x8x1xf32>
    %118 = arith.divf %116, %117 : vector<2x8x1xf32>
    %119 = vector.shape_cast %118 : vector<2x8x1xf32> to vector<2x1x8xf32>
    %120 = vector.broadcast %119 : vector<2x1x8xf32> to vector<2x64x8xf32>
    %121 = arith.subf %110, %120 : vector<2x64x8xf32>
    %122 = arith.mulf %121, %121 : vector<2x64x8xf32>
    %cst_186 = arith.constant dense<0.000000e+00> : vector<2x8xf32>
    %123 = vector.multi_reduction <add>, %122, %cst_186 [1] : vector<2x64x8xf32> to vector<2x8xf32>
    %cst_187 = arith.constant 6.400000e+01 : f32
    %124 = vector.broadcast %cst_187 : f32 to vector<2x8xf32>
    %125 = arith.divf %123, %124 : vector<2x8xf32>
    %126 = vector.shape_cast %125 : vector<2x8xf32> to vector<2x8x1xf32>
    %cst_188 = arith.constant dense<0.000000e+00> : vector<2x8xf32>
    %127 = vector.multi_reduction <add>, %126, %cst_188 [2] : vector<2x8x1xf32> to vector<2x8xf32>
    %128 = vector.shape_cast %127 : vector<2x8xf32> to vector<2x8x1xf32>
    %cst_189 = arith.constant 1.000000e+00 : f32
    %129 = vector.broadcast %cst_189 : f32 to vector<2x8x1xf32>
    %130 = arith.divf %128, %129 : vector<2x8x1xf32>
    %131 = vector.shape_cast %130 : vector<2x8x1xf32> to vector<2x1x8xf32>
    %cst_190 = arith.constant 9.99999974E-6 : f32
    %132 = vector.broadcast %cst_190 : f32 to vector<2x1x8xf32>
    %133 = arith.addf %131, %132 : vector<2x1x8xf32>
    %134 = math.rsqrt %133 : vector<2x1x8xf32>
    %135 = vector.broadcast %134 : vector<2x1x8xf32> to vector<2x64x8xf32>
    %136 = arith.mulf %121, %135 : vector<2x64x8xf32>
    %c4 = arith.constant 4 : index
    %c0_191 = arith.constant 0 : index
    %137 = vector.load %arg8[%c4, %c0_191] : memref<13x16xf32, #tpu.memory_space<vmem>>, vector<1x8xf32>
    %138 = vector.shape_cast %137 : vector<1x8xf32> to vector<1x1x8xf32>
    %139 = vector.broadcast %138 : vector<1x1x8xf32> to vector<2x64x8xf32>
    %140 = arith.mulf %136, %139 : vector<2x64x8xf32>
    %c5 = arith.constant 5 : index
    %c0_192 = arith.constant 0 : index
    %141 = vector.load %arg8[%c5, %c0_192] : memref<13x16xf32, #tpu.memory_space<vmem>>, vector<1x8xf32>
    %142 = vector.shape_cast %141 : vector<1x8xf32> to vector<1x1x8xf32>
    %143 = vector.broadcast %142 : vector<1x1x8xf32> to vector<2x64x8xf32>
    %144 = arith.addf %140, %143 : vector<2x64x8xf32>
    %145 = arith.addf %12, %144 : vector<2x64x8xf32>
    %146 = vector.shape_cast %145 : vector<2x64x8xf32> to vector<2x8x8x8xf32>
    %c0_193 = arith.constant 0 : index
    %c1_194 = arith.constant 1 : index
    %c1_195 = arith.constant 1 : index
    %c0_196 = arith.constant 0 : index
    %147 = vector.load %arg10[%c0_193, %c1_194, %c1_195, %c0_196] : memref<2x10x10x16xf32, #tpu.memory_space<vmem>>, vector<2x8x8x8xf32>
    tpu.vector_store %arg10[%c0_193, %c1_194, %c1_195, %c0_196], %146 {strides = array<i32>} : memref<2x10x10x16xf32, #tpu.memory_space<vmem>>, vector<2x8x8x8xf32>,
    %c0_197 = arith.constant 0 : index
    %c0_198 = arith.constant 0 : index
    %c0_199 = arith.constant 0 : index
    %c0_200 = arith.constant 0 : index
    %148 = vector.load %arg10[%c0_197, %c0_198, %c0_199, %c0_200] : memref<2x10x10x16xf32, #tpu.memory_space<vmem>>, vector<2x8x8x8xf32>
    %c0_201 = arith.constant 0 : index
    %c0_202 = arith.constant 0 : index
    %c0_203 = arith.constant 0 : index
    %c0_204 = arith.constant 0 : index
    %149 = vector.load %arg11[%c0_201, %c0_202, %c0_203, %c0_204] : memref<2x8x8x144xf32, #tpu.memory_space<vmem>>, vector<2x8x8x8xf32>
    tpu.vector_store %arg11[%c0_201, %c0_202, %c0_203, %c0_204], %148 {strides = array<i32>} : memref<2x8x8x144xf32, #tpu.memory_space<vmem>>, vector<2x8x8x8xf32>,
    %c0_205 = arith.constant 0 : index
    %c0_206 = arith.constant 0 : index
    %c1_207 = arith.constant 1 : index
    %c0_208 = arith.constant 0 : index
    %150 = vector.load %arg10[%c0_205, %c0_206, %c1_207, %c0_208] : memref<2x10x10x16xf32, #tpu.memory_space<vmem>>, vector<2x8x8x8xf32>
    %c0_209 = arith.constant 0 : index
    %c0_210 = arith.constant 0 : index
    %c0_211 = arith.constant 0 : index
    %c8_212 = arith.constant 8 : index
    %151 = vector.load %arg11[%c0_209, %c0_210, %c0_211, %c8_212] : memref<2x8x8x144xf32, #tpu.memory_space<vmem>>, vector<2x8x8x8xf32>
    tpu.vector_store %arg11[%c0_209, %c0_210, %c0_211, %c8_212], %150 {strides = array<i32>} : memref<2x8x8x144xf32, #tpu.memory_space<vmem>>, vector<2x8x8x8xf32>,
    %c0_213 = arith.constant 0 : index
    %c0_214 = arith.constant 0 : index
    %c2_215 = arith.constant 2 : index
    %c0_216 = arith.constant 0 : index
    %152 = vector.load %arg10[%c0_213, %c0_214, %c2_215, %c0_216] : memref<2x10x10x16xf32, #tpu.memory_space<vmem>>, vector<2x8x8x8xf32>
    %c0_217 = arith.constant 0 : index
    %c0_218 = arith.constant 0 : index
    %c0_219 = arith.constant 0 : index
    %c16_220 = arith.constant 16 : index
    %153 = vector.load %arg11[%c0_217, %c0_218, %c0_219, %c16_220] : memref<2x8x8x144xf32, #tpu.memory_space<vmem>>, vector<2x8x8x8xf32>
    tpu.vector_store %arg11[%c0_217, %c0_218, %c0_219, %c16_220], %152 {strides = array<i32>} : memref<2x8x8x144xf32, #tpu.memory_space<vmem>>, vector<2x8x8x8xf32>,
    %c0_221 = arith.constant 0 : index
    %c1_222 = arith.constant 1 : index
    %c0_223 = arith.constant 0 : index
    %c0_224 = arith.constant 0 : index
    %154 = vector.load %arg10[%c0_221, %c1_222, %c0_223, %c0_224] : memref<2x10x10x16xf32, #tpu.memory_space<vmem>>, vector<2x8x8x8xf32>
    %c0_225 = arith.constant 0 : index
    %c0_226 = arith.constant 0 : index
    %c0_227 = arith.constant 0 : index
    %c24_228 = arith.constant 24 : index
    %155 = vector.load %arg11[%c0_225, %c0_226, %c0_227, %c24_228] : memref<2x8x8x144xf32, #tpu.memory_space<vmem>>, vector<2x8x8x8xf32>
    tpu.vector_store %arg11[%c0_225, %c0_226, %c0_227, %c24_228], %154 {strides = array<i32>} : memref<2x8x8x144xf32, #tpu.memory_space<vmem>>, vector<2x8x8x8xf32>,
    %c0_229 = arith.constant 0 : index
    %c1_230 = arith.constant 1 : index
    %c1_231 = arith.constant 1 : index
    %c0_232 = arith.constant 0 : index
    %156 = vector.load %arg10[%c0_229, %c1_230, %c1_231, %c0_232] : memref<2x10x10x16xf32, #tpu.memory_space<vmem>>, vector<2x8x8x8xf32>
    %c0_233 = arith.constant 0 : index
    %c0_234 = arith.constant 0 : index
    %c0_235 = arith.constant 0 : index
    %c32_236 = arith.constant 32 : index
    %157 = vector.load %arg11[%c0_233, %c0_234, %c0_235, %c32_236] : memref<2x8x8x144xf32, #tpu.memory_space<vmem>>, vector<2x8x8x8xf32>
    tpu.vector_store %arg11[%c0_233, %c0_234, %c0_235, %c32_236], %156 {strides = array<i32>} : memref<2x8x8x144xf32, #tpu.memory_space<vmem>>, vector<2x8x8x8xf32>,
    %c0_237 = arith.constant 0 : index
    %c1_238 = arith.constant 1 : index
    %c2_239 = arith.constant 2 : index
    %c0_240 = arith.constant 0 : index
    %158 = vector.load %arg10[%c0_237, %c1_238, %c2_239, %c0_240] : memref<2x10x10x16xf32, #tpu.memory_space<vmem>>, vector<2x8x8x8xf32>
    %c0_241 = arith.constant 0 : index
    %c0_242 = arith.constant 0 : index
    %c0_243 = arith.constant 0 : index
    %c40_244 = arith.constant 40 : index
    %159 = vector.load %arg11[%c0_241, %c0_242, %c0_243, %c40_244] : memref<2x8x8x144xf32, #tpu.memory_space<vmem>>, vector<2x8x8x8xf32>
    tpu.vector_store %arg11[%c0_241, %c0_242, %c0_243, %c40_244], %158 {strides = array<i32>} : memref<2x8x8x144xf32, #tpu.memory_space<vmem>>, vector<2x8x8x8xf32>,
    %c0_245 = arith.constant 0 : index
    %c2_246 = arith.constant 2 : index
    %c0_247 = arith.constant 0 : index
    %c0_248 = arith.constant 0 : index
    %160 = vector.load %arg10[%c0_245, %c2_246, %c0_247, %c0_248] : memref<2x10x10x16xf32, #tpu.memory_space<vmem>>, vector<2x8x8x8xf32>
    %c0_249 = arith.constant 0 : index
    %c0_250 = arith.constant 0 : index
    %c0_251 = arith.constant 0 : index
    %c48_252 = arith.constant 48 : index
    %161 = vector.load %arg11[%c0_249, %c0_250, %c0_251, %c48_252] : memref<2x8x8x144xf32, #tpu.memory_space<vmem>>, vector<2x8x8x8xf32>
    tpu.vector_store %arg11[%c0_249, %c0_250, %c0_251, %c48_252], %160 {strides = array<i32>} : memref<2x8x8x144xf32, #tpu.memory_space<vmem>>, vector<2x8x8x8xf32>,
    %c0_253 = arith.constant 0 : index
    %c2_254 = arith.constant 2 : index
    %c1_255 = arith.constant 1 : index
    %c0_256 = arith.constant 0 : index
    %162 = vector.load %arg10[%c0_253, %c2_254, %c1_255, %c0_256] : memref<2x10x10x16xf32, #tpu.memory_space<vmem>>, vector<2x8x8x8xf32>
    %c0_257 = arith.constant 0 : index
    %c0_258 = arith.constant 0 : index
    %c0_259 = arith.constant 0 : index
    %c56_260 = arith.constant 56 : index
    %163 = vector.load %arg11[%c0_257, %c0_258, %c0_259, %c56_260] : memref<2x8x8x144xf32, #tpu.memory_space<vmem>>, vector<2x8x8x8xf32>
    tpu.vector_store %arg11[%c0_257, %c0_258, %c0_259, %c56_260], %162 {strides = array<i32>} : memref<2x8x8x144xf32, #tpu.memory_space<vmem>>, vector<2x8x8x8xf32>,
    %c0_261 = arith.constant 0 : index
    %c2_262 = arith.constant 2 : index
    %c2_263 = arith.constant 2 : index
    %c0_264 = arith.constant 0 : index
    %164 = vector.load %arg10[%c0_261, %c2_262, %c2_263, %c0_264] : memref<2x10x10x16xf32, #tpu.memory_space<vmem>>, vector<2x8x8x8xf32>
    %c0_265 = arith.constant 0 : index
    %c0_266 = arith.constant 0 : index
    %c0_267 = arith.constant 0 : index
    %c64_268 = arith.constant 64 : index
    %165 = vector.load %arg11[%c0_265, %c0_266, %c0_267, %c64_268] : memref<2x8x8x144xf32, #tpu.memory_space<vmem>>, vector<2x8x8x8xf32>
    tpu.vector_store %arg11[%c0_265, %c0_266, %c0_267, %c64_268], %164 {strides = array<i32>} : memref<2x8x8x144xf32, #tpu.memory_space<vmem>>, vector<2x8x8x8xf32>,
    %c0_269 = arith.constant 0 : index
    %c0_270 = arith.constant 0 : index
    %c0_271 = arith.constant 0 : index
    %c0_272 = arith.constant 0 : index
    %166 = vector.load %arg11[%c0_269, %c0_270, %c0_271, %c0_272] : memref<2x8x8x144xf32, #tpu.memory_space<vmem>>, vector<2x8x8x72xf32>
    %167 = vector.shape_cast %166 : vector<2x8x8x72xf32> to vector<128x72xf32>
    %c0_273 = arith.constant 0 : index
    %c0_274 = arith.constant 0 : index
    %168 = vector.load %arg5[%c0_273, %c0_274] : memref<72x16xf32, #tpu.memory_space<vmem>>, vector<72x16xf32>
    %cst_275 = arith.constant dense<0.000000e+00> : vector<128x16xf32>
    %169 = tpu.matmul %167, %168, %cst_275 {dimension_numbers = #tpu.dot_dimension_numbers<[1], [0], [0], [1], [0, 0, 1, 1], [], []>} : vector<128x72xf32>, vector<72x16xf32>, vector<128x16xf32> -> vector<128x16xf32>
    %c6 = arith.constant 6 : index
    %c0_276 = arith.constant 0 : index
    %170 = vector.load %arg8[%c6, %c0_276] : memref<13x16xf32, #tpu.memory_space<vmem>>, vector<1x16xf32>
    %171 = vector.broadcast %170 : vector<1x16xf32> to vector<128x16xf32>
    %172 = arith.addf %169, %171 : vector<128x16xf32>
    %173 = vector.shape_cast %172 : vector<128x16xf32> to vector<2x64x16xf32>
    %cst_277 = arith.constant dense<0.000000e+00> : vector<2x16xf32>
    %174 = vector.multi_reduction <add>, %173, %cst_277 [1] : vector<2x64x16xf32> to vector<2x16xf32>
    %cst_278 = arith.constant 6.400000e+01 : f32
    %175 = vector.broadcast %cst_278 : f32 to vector<2x16xf32>
    %176 = arith.divf %174, %175 : vector<2x16xf32>
    %177 = vector.shape_cast %176 : vector<2x16xf32> to vector<2x8x2xf32>
    %cst_279 = arith.constant dense<0.000000e+00> : vector<2x8xf32>
    %178 = vector.multi_reduction <add>, %177, %cst_279 [2] : vector<2x8x2xf32> to vector<2x8xf32>
    %179 = vector.shape_cast %178 : vector<2x8xf32> to vector<2x8x1xf32>
    %cst_280 = arith.constant 2.000000e+00 : f32
    %180 = vector.broadcast %cst_280 : f32 to vector<2x8x1xf32>
    %181 = arith.divf %179, %180 : vector<2x8x1xf32>
    %182 = vector.shape_cast %181 : vector<2x8x1xf32> to vector<2x8x1xf32>
    %183 = vector.broadcast %182 : vector<2x8x1xf32> to vector<2x8x2xf32>
    %184 = vector.shape_cast %183 : vector<2x8x2xf32> to vector<2x1x16xf32>
    %185 = vector.broadcast %184 : vector<2x1x16xf32> to vector<2x64x16xf32>
    %186 = arith.subf %173, %185 : vector<2x64x16xf32>
    %187 = arith.mulf %186, %186 : vector<2x64x16xf32>
    %cst_281 = arith.constant dense<0.000000e+00> : vector<2x16xf32>
    %188 = vector.multi_reduction <add>, %187, %cst_281 [1] : vector<2x64x16xf32> to vector<2x16xf32>
    %cst_282 = arith.constant 6.400000e+01 : f32
    %189 = vector.broadcast %cst_282 : f32 to vector<2x16xf32>
    %190 = arith.divf %188, %189 : vector<2x16xf32>
    %191 = vector.shape_cast %190 : vector<2x16xf32> to vector<2x8x2xf32>
    %cst_283 = arith.constant dense<0.000000e+00> : vector<2x8xf32>
    %192 = vector.multi_reduction <add>, %191, %cst_283 [2] : vector<2x8x2xf32> to vector<2x8xf32>
    %193 = vector.shape_cast %192 : vector<2x8xf32> to vector<2x8x1xf32>
    %cst_284 = arith.constant 2.000000e+00 : f32
    %194 = vector.broadcast %cst_284 : f32 to vector<2x8x1xf32>
    %195 = arith.divf %193, %194 : vector<2x8x1xf32>
    %196 = vector.shape_cast %195 : vector<2x8x1xf32> to vector<2x8x1xf32>
    %197 = vector.broadcast %196 : vector<2x8x1xf32> to vector<2x8x2xf32>
    %198 = vector.shape_cast %197 : vector<2x8x2xf32> to vector<2x1x16xf32>
    %cst_285 = arith.constant 9.99999974E-6 : f32
    %199 = vector.broadcast %cst_285 : f32 to vector<2x1x16xf32>
    %200 = arith.addf %198, %199 : vector<2x1x16xf32>
    %201 = math.rsqrt %200 : vector<2x1x16xf32>
    %202 = vector.broadcast %201 : vector<2x1x16xf32> to vector<2x64x16xf32>
    %203 = arith.mulf %186, %202 : vector<2x64x16xf32>
    %c7 = arith.constant 7 : index
    %c0_286 = arith.constant 0 : index
    %204 = vector.load %arg8[%c7, %c0_286] : memref<13x16xf32, #tpu.memory_space<vmem>>, vector<1x16xf32>
    %205 = vector.shape_cast %204 : vector<1x16xf32> to vector<1x1x16xf32>
    %206 = vector.broadcast %205 : vector<1x1x16xf32> to vector<2x64x16xf32>
    %207 = arith.mulf %203, %206 : vector<2x64x16xf32>
    %c8_287 = arith.constant 8 : index
    %c0_288 = arith.constant 0 : index
    %208 = vector.load %arg8[%c8_287, %c0_288] : memref<13x16xf32, #tpu.memory_space<vmem>>, vector<1x16xf32>
    %209 = vector.shape_cast %208 : vector<1x16xf32> to vector<1x1x16xf32>
    %210 = vector.broadcast %209 : vector<1x1x16xf32> to vector<2x64x16xf32>
    %211 = arith.addf %207, %210 : vector<2x64x16xf32>
    %cst_289 = arith.constant 0.000000e+00 : f32
    %212 = vector.broadcast %cst_289 : f32 to vector<2x64x16xf32>
    %213 = arith.subf %212, %211 : vector<2x64x16xf32>
    %214 = math.exp %213 : vector<2x64x16xf32>
    %cst_290 = arith.constant 1.000000e+00 : f32
    %215 = vector.broadcast %cst_290 : f32 to vector<2x64x16xf32>
    %216 = arith.addf %215, %214 : vector<2x64x16xf32>
    %cst_291 = arith.constant 1.000000e+00 : f32
    %217 = vector.broadcast %cst_291 : f32 to vector<2x64x16xf32>
    %218 = arith.divf %217, %216 : vector<2x64x16xf32>
    %219 = arith.mulf %211, %218 : vector<2x64x16xf32>
    %220 = vector.shape_cast %219 : vector<2x64x16xf32> to vector<2x8x8x16xf32>
    %c0_292 = arith.constant 0 : index
    %c1_293 = arith.constant 1 : index
    %c1_294 = arith.constant 1 : index
    %c0_295 = arith.constant 0 : index
    %221 = vector.load %arg10[%c0_292, %c1_293, %c1_294, %c0_295] : memref<2x10x10x16xf32, #tpu.memory_space<vmem>>, vector<2x8x8x16xf32>
    tpu.vector_store %arg10[%c0_292, %c1_293, %c1_294, %c0_295], %220 {strides = array<i32>} : memref<2x10x10x16xf32, #tpu.memory_space<vmem>>, vector<2x8x8x16xf32>,
    %c0_296 = arith.constant 0 : index
    %c0_297 = arith.constant 0 : index
    %c0_298 = arith.constant 0 : index
    %c0_299 = arith.constant 0 : index
    %222 = vector.load %arg10[%c0_296, %c0_297, %c0_298, %c0_299] : memref<2x10x10x16xf32, #tpu.memory_space<vmem>>, vector<2x8x8x16xf32>
    %c0_300 = arith.constant 0 : index
    %c0_301 = arith.constant 0 : index
    %c0_302 = arith.constant 0 : index
    %c0_303 = arith.constant 0 : index
    %223 = vector.load %arg11[%c0_300, %c0_301, %c0_302, %c0_303] : memref<2x8x8x144xf32, #tpu.memory_space<vmem>>, vector<2x8x8x16xf32>
    tpu.vector_store %arg11[%c0_300, %c0_301, %c0_302, %c0_303], %222 {strides = array<i32>} : memref<2x8x8x144xf32, #tpu.memory_space<vmem>>, vector<2x8x8x16xf32>,
    %c0_304 = arith.constant 0 : index
    %c0_305 = arith.constant 0 : index
    %c1_306 = arith.constant 1 : index
    %c0_307 = arith.constant 0 : index
    %224 = vector.load %arg10[%c0_304, %c0_305, %c1_306, %c0_307] : memref<2x10x10x16xf32, #tpu.memory_space<vmem>>, vector<2x8x8x16xf32>
    %c0_308 = arith.constant 0 : index
    %c0_309 = arith.constant 0 : index
    %c0_310 = arith.constant 0 : index
    %c16_311 = arith.constant 16 : index
    %225 = vector.load %arg11[%c0_308, %c0_309, %c0_310, %c16_311] : memref<2x8x8x144xf32, #tpu.memory_space<vmem>>, vector<2x8x8x16xf32>
    tpu.vector_store %arg11[%c0_308, %c0_309, %c0_310, %c16_311], %224 {strides = array<i32>} : memref<2x8x8x144xf32, #tpu.memory_space<vmem>>, vector<2x8x8x16xf32>,
    %c0_312 = arith.constant 0 : index
    %c0_313 = arith.constant 0 : index
    %c2_314 = arith.constant 2 : index
    %c0_315 = arith.constant 0 : index
    %226 = vector.load %arg10[%c0_312, %c0_313, %c2_314, %c0_315] : memref<2x10x10x16xf32, #tpu.memory_space<vmem>>, vector<2x8x8x16xf32>
    %c0_316 = arith.constant 0 : index
    %c0_317 = arith.constant 0 : index
    %c0_318 = arith.constant 0 : index
    %c32_319 = arith.constant 32 : index
    %227 = vector.load %arg11[%c0_316, %c0_317, %c0_318, %c32_319] : memref<2x8x8x144xf32, #tpu.memory_space<vmem>>, vector<2x8x8x16xf32>
    tpu.vector_store %arg11[%c0_316, %c0_317, %c0_318, %c32_319], %226 {strides = array<i32>} : memref<2x8x8x144xf32, #tpu.memory_space<vmem>>, vector<2x8x8x16xf32>,
    %c0_320 = arith.constant 0 : index
    %c1_321 = arith.constant 1 : index
    %c0_322 = arith.constant 0 : index
    %c0_323 = arith.constant 0 : index
    %228 = vector.load %arg10[%c0_320, %c1_321, %c0_322, %c0_323] : memref<2x10x10x16xf32, #tpu.memory_space<vmem>>, vector<2x8x8x16xf32>
    %c0_324 = arith.constant 0 : index
    %c0_325 = arith.constant 0 : index
    %c0_326 = arith.constant 0 : index
    %c48_327 = arith.constant 48 : index
    %229 = vector.load %arg11[%c0_324, %c0_325, %c0_326, %c48_327] : memref<2x8x8x144xf32, #tpu.memory_space<vmem>>, vector<2x8x8x16xf32>
    tpu.vector_store %arg11[%c0_324, %c0_325, %c0_326, %c48_327], %228 {strides = array<i32>} : memref<2x8x8x144xf32, #tpu.memory_space<vmem>>, vector<2x8x8x16xf32>,
    %c0_328 = arith.constant 0 : index
    %c1_329 = arith.constant 1 : index
    %c1_330 = arith.constant 1 : index
    %c0_331 = arith.constant 0 : index
    %230 = vector.load %arg10[%c0_328, %c1_329, %c1_330, %c0_331] : memref<2x10x10x16xf32, #tpu.memory_space<vmem>>, vector<2x8x8x16xf32>
    %c0_332 = arith.constant 0 : index
    %c0_333 = arith.constant 0 : index
    %c0_334 = arith.constant 0 : index
    %c64_335 = arith.constant 64 : index
    %231 = vector.load %arg11[%c0_332, %c0_333, %c0_334, %c64_335] : memref<2x8x8x144xf32, #tpu.memory_space<vmem>>, vector<2x8x8x16xf32>
    tpu.vector_store %arg11[%c0_332, %c0_333, %c0_334, %c64_335], %230 {strides = array<i32>} : memref<2x8x8x144xf32, #tpu.memory_space<vmem>>, vector<2x8x8x16xf32>,
    %c0_336 = arith.constant 0 : index
    %c1_337 = arith.constant 1 : index
    %c2_338 = arith.constant 2 : index
    %c0_339 = arith.constant 0 : index
    %232 = vector.load %arg10[%c0_336, %c1_337, %c2_338, %c0_339] : memref<2x10x10x16xf32, #tpu.memory_space<vmem>>, vector<2x8x8x16xf32>
    %c0_340 = arith.constant 0 : index
    %c0_341 = arith.constant 0 : index
    %c0_342 = arith.constant 0 : index
    %c80 = arith.constant 80 : index
    %233 = vector.load %arg11[%c0_340, %c0_341, %c0_342, %c80] : memref<2x8x8x144xf32, #tpu.memory_space<vmem>>, vector<2x8x8x16xf32>
    tpu.vector_store %arg11[%c0_340, %c0_341, %c0_342, %c80], %232 {strides = array<i32>} : memref<2x8x8x144xf32, #tpu.memory_space<vmem>>, vector<2x8x8x16xf32>,
    %c0_343 = arith.constant 0 : index
    %c2_344 = arith.constant 2 : index
    %c0_345 = arith.constant 0 : index
    %c0_346 = arith.constant 0 : index
    %234 = vector.load %arg10[%c0_343, %c2_344, %c0_345, %c0_346] : memref<2x10x10x16xf32, #tpu.memory_space<vmem>>, vector<2x8x8x16xf32>
    %c0_347 = arith.constant 0 : index
    %c0_348 = arith.constant 0 : index
    %c0_349 = arith.constant 0 : index
    %c96 = arith.constant 96 : index
    %235 = vector.load %arg11[%c0_347, %c0_348, %c0_349, %c96] : memref<2x8x8x144xf32, #tpu.memory_space<vmem>>, vector<2x8x8x16xf32>
    tpu.vector_store %arg11[%c0_347, %c0_348, %c0_349, %c96], %234 {strides = array<i32>} : memref<2x8x8x144xf32, #tpu.memory_space<vmem>>, vector<2x8x8x16xf32>,
    %c0_350 = arith.constant 0 : index
    %c2_351 = arith.constant 2 : index
    %c1_352 = arith.constant 1 : index
    %c0_353 = arith.constant 0 : index
    %236 = vector.load %arg10[%c0_350, %c2_351, %c1_352, %c0_353] : memref<2x10x10x16xf32, #tpu.memory_space<vmem>>, vector<2x8x8x16xf32>
    %c0_354 = arith.constant 0 : index
    %c0_355 = arith.constant 0 : index
    %c0_356 = arith.constant 0 : index
    %c112 = arith.constant 112 : index
    %237 = vector.load %arg11[%c0_354, %c0_355, %c0_356, %c112] : memref<2x8x8x144xf32, #tpu.memory_space<vmem>>, vector<2x8x8x16xf32>
    tpu.vector_store %arg11[%c0_354, %c0_355, %c0_356, %c112], %236 {strides = array<i32>} : memref<2x8x8x144xf32, #tpu.memory_space<vmem>>, vector<2x8x8x16xf32>,
    %c0_357 = arith.constant 0 : index
    %c2_358 = arith.constant 2 : index
    %c2_359 = arith.constant 2 : index
    %c0_360 = arith.constant 0 : index
    %238 = vector.load %arg10[%c0_357, %c2_358, %c2_359, %c0_360] : memref<2x10x10x16xf32, #tpu.memory_space<vmem>>, vector<2x8x8x16xf32>
    %c0_361 = arith.constant 0 : index
    %c0_362 = arith.constant 0 : index
    %c0_363 = arith.constant 0 : index
    %c128 = arith.constant 128 : index
    %239 = vector.load %arg11[%c0_361, %c0_362, %c0_363, %c128] : memref<2x8x8x144xf32, #tpu.memory_space<vmem>>, vector<2x8x8x16xf32>
    tpu.vector_store %arg11[%c0_361, %c0_362, %c0_363, %c128], %238 {strides = array<i32>} : memref<2x8x8x144xf32, #tpu.memory_space<vmem>>, vector<2x8x8x16xf32>,
    %c0_364 = arith.constant 0 : index
    %c0_365 = arith.constant 0 : index
    %c0_366 = arith.constant 0 : index
    %c0_367 = arith.constant 0 : index
    %240 = vector.load %arg11[%c0_364, %c0_365, %c0_366, %c0_367] : memref<2x8x8x144xf32, #tpu.memory_space<vmem>>, vector<2x8x8x144xf32>
    %241 = vector.shape_cast %240 : vector<2x8x8x144xf32> to vector<128x144xf32>
    %c0_368 = arith.constant 0 : index
    %c0_369 = arith.constant 0 : index
    %242 = vector.load %arg6[%c0_368, %c0_369] : memref<144x16xf32, #tpu.memory_space<vmem>>, vector<144x16xf32>
    %cst_370 = arith.constant dense<0.000000e+00> : vector<128x16xf32>
    %243 = tpu.matmul %241, %242, %cst_370 {dimension_numbers = #tpu.dot_dimension_numbers<[1], [0], [0], [1], [0, 0, 1, 1], [], []>} : vector<128x144xf32>, vector<144x16xf32>, vector<128x16xf32> -> vector<128x16xf32>
    %c9 = arith.constant 9 : index
    %c0_371 = arith.constant 0 : index
    %244 = vector.load %arg8[%c9, %c0_371] : memref<13x16xf32, #tpu.memory_space<vmem>>, vector<1x16xf32>
    %245 = vector.broadcast %244 : vector<1x16xf32> to vector<128x16xf32>
    %246 = arith.addf %243, %245 : vector<128x16xf32>
    %247 = vector.shape_cast %246 : vector<128x16xf32> to vector<2x64x16xf32>
    %cst_372 = arith.constant dense<0.000000e+00> : vector<2x16xf32>
    %248 = vector.multi_reduction <add>, %247, %cst_372 [1] : vector<2x64x16xf32> to vector<2x16xf32>
    %cst_373 = arith.constant 6.400000e+01 : f32
    %249 = vector.broadcast %cst_373 : f32 to vector<2x16xf32>
    %250 = arith.divf %248, %249 : vector<2x16xf32>
    %251 = vector.shape_cast %250 : vector<2x16xf32> to vector<2x8x2xf32>
    %cst_374 = arith.constant dense<0.000000e+00> : vector<2x8xf32>
    %252 = vector.multi_reduction <add>, %251, %cst_374 [2] : vector<2x8x2xf32> to vector<2x8xf32>
    %253 = vector.shape_cast %252 : vector<2x8xf32> to vector<2x8x1xf32>
    %cst_375 = arith.constant 2.000000e+00 : f32
    %254 = vector.broadcast %cst_375 : f32 to vector<2x8x1xf32>
    %255 = arith.divf %253, %254 : vector<2x8x1xf32>
    %256 = vector.shape_cast %255 : vector<2x8x1xf32> to vector<2x8x1xf32>
    %257 = vector.broadcast %256 : vector<2x8x1xf32> to vector<2x8x2xf32>
    %258 = vector.shape_cast %257 : vector<2x8x2xf32> to vector<2x1x16xf32>
    %259 = vector.broadcast %258 : vector<2x1x16xf32> to vector<2x64x16xf32>
    %260 = arith.subf %247, %259 : vector<2x64x16xf32>
    %261 = arith.mulf %260, %260 : vector<2x64x16xf32>
    %cst_376 = arith.constant dense<0.000000e+00> : vector<2x16xf32>
    %262 = vector.multi_reduction <add>, %261, %cst_376 [1] : vector<2x64x16xf32> to vector<2x16xf32>
    %cst_377 = arith.constant 6.400000e+01 : f32
    %263 = vector.broadcast %cst_377 : f32 to vector<2x16xf32>
    %264 = arith.divf %262, %263 : vector<2x16xf32>
    %265 = vector.shape_cast %264 : vector<2x16xf32> to vector<2x8x2xf32>
    %cst_378 = arith.constant dense<0.000000e+00> : vector<2x8xf32>
    %266 = vector.multi_reduction <add>, %265, %cst_378 [2] : vector<2x8x2xf32> to vector<2x8xf32>
    %267 = vector.shape_cast %266 : vector<2x8xf32> to vector<2x8x1xf32>
    %cst_379 = arith.constant 2.000000e+00 : f32
    %268 = vector.broadcast %cst_379 : f32 to vector<2x8x1xf32>
    %269 = arith.divf %267, %268 : vector<2x8x1xf32>
    %270 = vector.shape_cast %269 : vector<2x8x1xf32> to vector<2x8x1xf32>
    %271 = vector.broadcast %270 : vector<2x8x1xf32> to vector<2x8x2xf32>
    %272 = vector.shape_cast %271 : vector<2x8x2xf32> to vector<2x1x16xf32>
    %cst_380 = arith.constant 9.99999974E-6 : f32
    %273 = vector.broadcast %cst_380 : f32 to vector<2x1x16xf32>
    %274 = arith.addf %272, %273 : vector<2x1x16xf32>
    %275 = math.rsqrt %274 : vector<2x1x16xf32>
    %276 = vector.broadcast %275 : vector<2x1x16xf32> to vector<2x64x16xf32>
    %277 = arith.mulf %260, %276 : vector<2x64x16xf32>
    %c10 = arith.constant 10 : index
    %c0_381 = arith.constant 0 : index
    %278 = vector.load %arg8[%c10, %c0_381] : memref<13x16xf32, #tpu.memory_space<vmem>>, vector<1x16xf32>
    %279 = vector.shape_cast %278 : vector<1x16xf32> to vector<1x1x16xf32>
    %280 = vector.broadcast %279 : vector<1x1x16xf32> to vector<2x64x16xf32>
    %281 = arith.mulf %277, %280 : vector<2x64x16xf32>
    %c11 = arith.constant 11 : index
    %c0_382 = arith.constant 0 : index
    %282 = vector.load %arg8[%c11, %c0_382] : memref<13x16xf32, #tpu.memory_space<vmem>>, vector<1x16xf32>
    %283 = vector.shape_cast %282 : vector<1x16xf32> to vector<1x1x16xf32>
    %284 = vector.broadcast %283 : vector<1x1x16xf32> to vector<2x64x16xf32>
    %285 = arith.addf %281, %284 : vector<2x64x16xf32>
    %c0_383 = arith.constant 0 : index
    %c0_384 = arith.constant 0 : index
    %286 = vector.load %arg2[%c0_383, %c0_384] : memref<2x32xf32, #tpu.memory_space<vmem>>, vector<2x32xf32>
    %cst_385 = arith.constant 0.000000e+00 : f32
    %287 = vector.broadcast %cst_385 : f32 to vector<2x32xf32>
    %288 = arith.subf %287, %286 : vector<2x32xf32>
    %289 = math.exp %288 : vector<2x32xf32>
    %cst_386 = arith.constant 1.000000e+00 : f32
    %290 = vector.broadcast %cst_386 : f32 to vector<2x32xf32>
    %291 = arith.addf %290, %289 : vector<2x32xf32>
    %cst_387 = arith.constant 1.000000e+00 : f32
    %292 = vector.broadcast %cst_387 : f32 to vector<2x32xf32>
    %293 = arith.divf %292, %291 : vector<2x32xf32>
    %294 = arith.mulf %286, %293 : vector<2x32xf32>
    %c0_388 = arith.constant 0 : index
    %c0_389 = arith.constant 0 : index
    %295 = vector.load %arg7[%c0_388, %c0_389] : memref<32x16xf32, #tpu.memory_space<vmem>>, vector<32x16xf32>
    %cst_390 = arith.constant dense<0.000000e+00> : vector<2x16xf32>
    %296 = tpu.matmul %294, %295, %cst_390 {dimension_numbers = #tpu.dot_dimension_numbers<[1], [0], [0], [1], [0, 0, 1, 1], [], []>} : vector<2x32xf32>, vector<32x16xf32>, vector<2x16xf32> -> vector<2x16xf32>
    %c12 = arith.constant 12 : index
    %c0_391 = arith.constant 0 : index
    %297 = vector.load %arg8[%c12, %c0_391] : memref<13x16xf32, #tpu.memory_space<vmem>>, vector<1x16xf32>
    %298 = vector.broadcast %297 : vector<1x16xf32> to vector<2x16xf32>
    %299 = arith.addf %296, %298 : vector<2x16xf32>
    %300 = vector.shape_cast %299 : vector<2x16xf32> to vector<2x1x16xf32>
    %301 = vector.broadcast %300 : vector<2x1x16xf32> to vector<2x64x16xf32>
    %302 = arith.addf %285, %301 : vector<2x64x16xf32>
    %c0_392 = arith.constant 0 : index
    %c0_393 = arith.constant 0 : index
    %c0_394 = arith.constant 0 : index
    %303 = vector.load %arg9[%c0_392, %c0_393, %c0_394] : memref<2x64x16xf32, #tpu.memory_space<vmem>>, vector<2x64x16xf32>
    tpu.vector_store %arg9[%c0_392, %c0_393, %c0_394], %302 {strides = array<i32>} : memref<2x64x16xf32, #tpu.memory_space<vmem>>, vector<2x64x16xf32>,
    return
  }
  func.func @transform_0(%arg0: i32) -> (i32, i32, i32, i32) {
    %c0_i32 = arith.constant 0 : i32
    %c0_i32_0 = arith.constant 0 : i32
    %c0_i32_1 = arith.constant 0 : i32
    %c0_i32_2 = arith.constant 0 : i32
    return %arg0, %c0_i32, %c0_i32_0, %c0_i32_1 : i32, i32, i32, i32
  }
  func.func @transform_1(%arg0: i32) -> (i32, i32) {
    %c0_i32 = arith.constant 0 : i32
    %c0_i32_0 = arith.constant 0 : i32
    return %arg0, %c0_i32 : i32, i32
  }
  func.func @transform_2(%arg0: i32) -> (i32, i32) {
    %c0_i32 = arith.constant 0 : i32
    %c0_i32_0 = arith.constant 0 : i32
    %c0_i32_1 = arith.constant 0 : i32
    return %c0_i32, %c0_i32_0 : i32, i32
  }
  func.func @transform_3(%arg0: i32) -> (i32, i32) {
    %c0_i32 = arith.constant 0 : i32
    %c0_i32_0 = arith.constant 0 : i32
    %c0_i32_1 = arith.constant 0 : i32
    return %c0_i32, %c0_i32_0 : i32, i32
  }
  func.func @transform_4(%arg0: i32) -> (i32, i32) {
    %c0_i32 = arith.constant 0 : i32
    %c0_i32_0 = arith.constant 0 : i32
    %c0_i32_1 = arith.constant 0 : i32
    return %c0_i32, %c0_i32_0 : i32, i32
  }
  func.func @transform_5(%arg0: i32) -> (i32, i32) {
    %c0_i32 = arith.constant 0 : i32
    %c0_i32_0 = arith.constant 0 : i32
    %c0_i32_1 = arith.constant 0 : i32
    return %c0_i32, %c0_i32_0 : i32, i32
  }
  func.func @transform_6(%arg0: i32) -> (i32, i32) {
    %c0_i32 = arith.constant 0 : i32
    %c0_i32_0 = arith.constant 0 : i32
    %c0_i32_1 = arith.constant 0 : i32
    return %c0_i32, %c0_i32_0 : i32, i32
  }
  func.func @transform_7(%arg0: i32) -> (i32, i32) {
    %c0_i32 = arith.constant 0 : i32
    %c0_i32_0 = arith.constant 0 : i32
    %c0_i32_1 = arith.constant 0 : i32
    return %c0_i32, %c0_i32_0 : i32, i32
  }
  func.func @transform_8(%arg0: i32) -> (i32, i32, i32) {
    %c0_i32 = arith.constant 0 : i32
    %c0_i32_0 = arith.constant 0 : i32
    %c0_i32_1 = arith.constant 0 : i32
    return %arg0, %c0_i32, %c0_i32_0 : i32, i32, i32
  }
}

</mosaic_0001>

<bundles_post_ra>
// kernel: downblock_forward.1
= control target key start
LH: loop header
LB: loop body
LE: loop exit
PB: predicated region body
PF: predicated region fallthrough
CT: control target
= control target key end

     0   :  { %s7032_s9 = smov 120   ;;  %vm11443_vm0 = vcmask 130048   ;;  %vm32_vm1 = vcmask 123904   ;;  %v7033_v3 = vmov 0.0   ;;  %s11434_s0 = inlined_call_operand.vmem [shape: f32[2,16,8,16], index: 0, kind: input, shape index: {}]   ;;  %s11435_s1 = inlined_call_operand.vmem [shape: f32[2,32], index: 1, kind: input, shape index: {}]   ;;  %s11436_s2 = inlined_call_operand.vmem [shape: f32[72,8], index: 2, kind: input, shape index: {}]   ;;  %s11437_s3 = inlined_call_operand.vmem [shape: f32[72,8], index: 3, kind: input, shape index: {}]   ;;  %s11438_s4 = inlined_call_operand.vmem [shape: f32[72,16], index: 4, kind: input, shape index: {}]   ;;  %s11439_s5 = inlined_call_operand.vmem [shape: f32[144,16], index: 5, kind: input, shape index: {}]   ;;  %s11440_s6 = inlined_call_operand.vmem [shape: f32[32,16], index: 6, kind: input, shape index: {}]   ;;  %s11441_s7 = inlined_call_operand.vmem [shape: f32[13,16], index: 7, kind: input, shape index: {}]   ;;  %s11442_s8 = inlined_call_operand.hbm [shape: f32[2,64,16], index: 8, kind: output, shape index: {}]  }
   0x1   :  { %v7111_v0 = vld [vmem:[%s11434_s0 + $0x10] sm:$0xff]  ;;  %v7116_v1 = vld [vmem:[%s11434_s0] sm:$0xff]  ;;  %31 = vst.msk [vmem:[#allocation2] sm:$0xff] %vm11443_vm0, %v7033_v3  ;;  %v7134_v4 = vld [vmem:[%s11434_s0 + $0x18] sm:$0xff] }
   0x2   :  { %140 = vrot.lane.b32.xlu1 %v7111_v0, %s7032_s9  ;;  %136 = vrot.lane.b32.xlu0 %v7116_v1, %s7032_s9  ;;  %v7125_v2 = vld [vmem:[%s11434_s0 + $0x20] sm:$0xff]  ;;  %33 = vst.msk [vmem:[#allocation2 + $0x8] sm:$0x3] %vm32_vm1, %v7033_v3  ;;  %v7141_v5 = vld [vmem:[%s11434_s0 + $0x8] sm:$0xff] }
   0x3   :  { %144 = vrot.lane.b32.xlu2 %v7125_v2, %s7032_s9  ;;  %34 = vst.msk [vmem:[#allocation2 + $0x10] sm:$0xff] %vm11443_vm0, %v7033_v3  ;;  %v7150_v6 = vld [vmem:[%s11434_s0 + $0x28] sm:$0xff] }
   0x4   :  { %35 = vst.msk [vmem:[#allocation2 + $0x18] sm:$0x3] %vm32_vm1, %v7033_v3 }
   0x5   :  { %36 = vst.msk [vmem:[#allocation2 + $0x20] sm:$0xff] %vm11443_vm0, %v7033_v3 }
   0x6   :  { %37 = vst.msk [vmem:[#allocation2 + $0x28] sm:$0x3] %vm32_vm1, %v7033_v3 }
   0x7   :  { %38 = vst.msk [vmem:[#allocation2 + $0x30] sm:$0xff] %vm11443_vm0, %v7033_v3 }
   0x8   :  { %39 = vst.msk [vmem:[#allocation2 + $0x38] sm:$0x3] %vm32_vm1, %v7033_v3 }
   0x9   :  { %40 = vst.msk [vmem:[#allocation2 + $0x40] sm:$0xff] %vm11443_vm0, %v7033_v3 }
   0xa   :  { %142 = vrot.lane.b32.xlu1 %v7134_v4, %s7032_s9  ;;  %138 = vrot.lane.b32.xlu0 %v7141_v5, %s7032_s9  ;;  %41 = vst.msk [vmem:[#allocation2 + $0x48] sm:$0x3] %vm32_vm1, %v7033_v3 }
   0xb   :  { %146 = vrot.lane.b32.xlu2 %v7150_v6, %s7032_s9  ;;  %42 = vst.msk [vmem:[#allocation2 + $0x50] sm:$0xff] %vm11443_vm0, %v7033_v3 }
   0xc   :  { %13 = vsyncpa [#allocation5], 0  ;;  %v7175_v7 = vld [vmem:[%s11434_s0 + $0x38] sm:$0xff]  ;;  %v7180_v8 = vld [vmem:[%s11434_s0 + $0x30] sm:$0xff]  ;;  %43 = vst.msk [vmem:[#allocation2 + $0x58] sm:$0x3] %vm32_vm1, %v7033_v3 }
   0xd   :  { %v7187_v9 = vld [vmem:[%s11434_s0 + $0x40] sm:$0xff]  ;;  %44 = vst.msk [vmem:[#allocation2 + $0x60] sm:$0xff] %vm11443_vm0, %v7033_v3  ;;  %v7212_v10 = vld [vmem:[%s11434_s0 + $0x48] sm:$0xff]  ;;  %v7217_v11 = vld [vmem:[%s11434_s0 + $0x50] sm:$0xff]  ;;  %s7034_s15 = smov 8   ;;  %s7035_s16 = smov 16  }
   0xe   :  { %45 = vst.msk [vmem:[#allocation2 + $0x68] sm:$0x3] %vm32_vm1, %v7033_v3  ;;  %v7224_v12 = vld [vmem:[%s11434_s0 + $0x58] sm:$0xff]  ;;  %v7249_v13 = vld [vmem:[%s11434_s0 + $0x68] sm:$0xff]  ;;  %v7254_v14 = vld [vmem:[%s11434_s0 + $0x60] sm:$0xff]  ;;  %vm11457_vm2 = vcmask 64512  }
   0xf   :  { %46 = vst.msk [vmem:[#allocation2 + $0x70] sm:$0xff] %vm11443_vm0, %v7033_v3  ;;  %v7261_v15 = vld [vmem:[%s11434_s0 + $0x70] sm:$0xff]  ;;  %v330_v16 = vld [vmem:[#allocation2 + $0x1] sm:$0xff]  ;;  %v7305_v19 = vld [vmem:[%s11434_s0 + $0x78] sm:$0xff]  ;;  %s7036_s10 = smov 24   ;;  %s7037_s11 = smov 40  }
  0x10   :  { %47 = vst.msk [vmem:[#allocation2 + $0x78] sm:$0x3] %vm32_vm1, %v7033_v3  ;;  %v427_v17 = vld [vmem:[#allocation2 + $0x2] sm:$0xff]  ;;  %v7315_v21 = vld [vmem:[%s11434_s0 + $0x98] sm:$0xff]  ;;  %v7326_v22 = vld [vmem:[%s11434_s0 + $0x90] sm:$0xff]  ;;  %s7038_s12 = smov 32  }
  0x11   :  { %48 = vst.msk [vmem:[#allocation2 + $0x80] sm:$0xff] %vm11443_vm0, %v7033_v3  ;;  %v7298_v18 = vld [vmem:[%s11434_s0 + $0x80] sm:$0xff]  ;;  %v7310_v20 = vld [vmem:[%s11434_s0 + $0x88] sm:$0xff]  ;;  %s7039_s13 = smov 48   ;;  %s7040_s14 = smov 64   ;;  %vm11452_vm3 = vcmask 130112  }
  0x12   :  { %150 = vrot.lane.b32.xlu1 %v7175_v7, %s7032_s9  ;;  %148 = vrot.lane.b32.xlu0 %v7180_v8, %s7032_s9  ;;  %49 = vst.msk [vmem:[#allocation2 + $0x88] sm:$0x3] %vm32_vm1, %v7033_v3  ;;  %v7331_v23 = vld [vmem:[%s11434_s0 + $0xa8] sm:$0xff]  ;;  %v7336_v24 = vld [vmem:[%s11434_s0 + $0xa0] sm:$0xff]  ;;  %s7041_s17 = smov 56   ;;  %vm11451_vm4 = vcmask 195712  }
  0x13   :  { %152 = vrot.lane.b32.xlu2 %v7187_v9, %s7032_s9  ;;  %50 = vst.msk [vmem:[#allocation2 + $0x90] sm:$0xff] %vm11443_vm0, %v7033_v3  ;;  %vm11450_vm5 = vcmask 261312   ;;  %vm11449_vm6 = vcmask 326912   ;;  %vm11448_vm7 = vcmask 392512   ;;  %vm11447_vm8 = vcmask 458112   ;;  %s7045_s29 = smov 124  }
  0x14   :  { %51 = vst.msk [vmem:[#allocation2 + $0x98] sm:$0x3] %vm32_vm1, %v7033_v3  ;;  %vm11446_vm9 = vcmask 523712   ;;  %vm11445_vm10 = vcmask 589312   ;;  %vm11444_vm11 = vcmask 588800   ;;  %s7046_s30 = smov 114  }
  0x15   :  { %52 = vst.msk [vmem:[#allocation2 + $0xa0] sm:$0xff] %vm11443_vm0, %v7033_v3  ;;  %s7047_s18 = smov 116   ;;  %s7048_s19 = smov 118  }
  0x16   :  { %53 = vst.msk [vmem:[#allocation2 + $0xa8] sm:$0x3] %vm32_vm1, %v7033_v3  ;;  %s7053_s20 = smov 6   ;;  %s7054_s21 = smov 4  }
  0x17   :  { %54 = vst.msk [vmem:[#allocation2 + $0xb0] sm:$0xff] %vm11443_vm0, %v7033_v3  ;;  %s11466_s22 = smov 10   ;;  %s11464_s23 = smov 12  }
  0x18   :  { %55 = vst.msk [vmem:[#allocation2 + $0xb8] sm:$0x3] %vm32_vm1, %v7033_v3  ;;  %s7058_s24 = smov 96   ;;  %s7059_s25 = smov 112  }
  0x19   :  { %56 = vst.msk [vmem:[#allocation2 + $0xc0] sm:$0xff] %vm11443_vm0, %v7033_v3  ;;  %s7060_s28 = smov 80   ;;  %s7062_s27 = smov 128  }
  0x1a   :  { %154 = vrot.lane.b32.xlu0 %v7212_v10, %s7032_s9  ;;  %156 = vrot.lane.b32.xlu1 %v7217_v11, %s7032_s9  ;;  %57 = vst.msk [vmem:[#allocation2 + $0xc8] sm:$0x3] %vm32_vm1, %v7033_v3 }
  0x1b   :  { %158 = vrot.lane.b32.xlu2 %v7224_v12, %s7032_s9  ;;  %58 = vst.msk [vmem:[#allocation2 + $0xd0] sm:$0xff] %vm11443_vm0, %v7033_v3 }
  0x1c   :  { %59 = vst.msk [vmem:[#allocation2 + $0xd8] sm:$0x3] %vm32_vm1, %v7033_v3 }
  0x1d   :  { %60 = vst.msk [vmem:[#allocation2 + $0xe0] sm:$0xff] %vm11443_vm0, %v7033_v3 }
  0x1e   :  { %61 = vst.msk [vmem:[#allocation2 + $0xe8] sm:$0x3] %vm32_vm1, %v7033_v3 }
  0x1f   :  { %62 = vst.msk [vmem:[#allocation2 + $0xf0] sm:$0xff] %vm11443_vm0, %v7033_v3 }
  0x20   :  { %63 = vst.msk [vmem:[#allocation2 + $0xf8] sm:$0x3] %vm32_vm1, %v7033_v3 }
  0x21   :  { %64 = vst.msk [vmem:[#allocation2 + $0x100] sm:$0xff] %vm11443_vm0, %v7033_v3 }
  0x22   :  { %162 = vrot.lane.b32.xlu1 %v7249_v13, %s7032_s9  ;;  %160 = vrot.lane.b32.xlu0 %v7254_v14, %s7032_s9  ;;  %65 = vst.msk [vmem:[#allocation2 + $0x108] sm:$0x3] %vm32_vm1, %v7033_v3 }
  0x23   :  { %164 = vrot.lane.b32.xlu2 %v7261_v15, %s7032_s9  ;;  %66 = vst.msk [vmem:[#allocation2 + $0x110] sm:$0xff] %vm11443_vm0, %v7033_v3 }
  0x24   :  { %67 = vst.msk [vmem:[#allocation2 + $0x118] sm:$0x3] %vm32_vm1, %v7033_v3 }
  0x25   :  { %68 = vst.msk [vmem:[#allocation2 + $0x120] sm:$0xff] %vm11443_vm0, %v7033_v3 }
  0x26   :  { %69 = vst.msk [vmem:[#allocation2 + $0x128] sm:$0x3] %vm32_vm1, %v7033_v3 }
  0x27   :  { %70 = vst.msk [vmem:[#allocation2 + $0x130] sm:$0xff] %vm11443_vm0, %v7033_v3 }
  0x28   :  { %71 = vst.msk [vmem:[#allocation2 + $0x138] sm:$0x3] %vm32_vm1, %v7033_v3 }
  0x2a   :  { %362 = vrot.lane.b32.xlu1 %v330_v16, %s7034_s15  ;;  %166 = vrot.lane.b32.xlu0 %v7305_v19, %s7032_s9 }
  0x2b   :  { %459 = vrot.lane.b32.xlu2 %v427_v17, %s7035_s16 }
  0x32   :  { %168 = vrot.lane.b32.xlu1 %v7298_v18, %s7032_s9  ;;  %172 = vrot.lane.b32.xlu0 %v7326_v22, %s7032_s9 }
  0x33   :  { %170 = vrot.lane.b32.xlu2 %v7310_v20, %s7032_s9 }
  0x3a   :  { %174 = vrot.lane.b32.xlu1 %v7315_v21, %s7032_s9 }
  0x3b   :  { %178 = vrot.lane.b32.xlu2 %v7331_v23, %s7032_s9 }
  0x42   :  { %176 = vrot.lane.b32.xlu1 %v7336_v24, %s7032_s9 }
  0x5d   :  { %v145_v25 = vpop.permute.xlu2 %144 }
  0x5e   :  { %v236_v26 = vmax.f32 %v7125_v2, %v145_v25 }
  0x65   :  { %v147_v27 = vpop.permute.xlu2 %146 }
  0x66   :  { %v237_v30 = vmax.f32 %v7150_v6, %v147_v27 }
  0x68   :  { %v7346_v31 = vmax.f32 %v236_v26, %v237_v30 }
  0x6a   :  { %284 = vst.msk [vmem:[#allocation2 + $0x31] sm:$0xff] %vm11457_vm2, %v7346_v31 }
  0x6d   :  { %v153_v50 = vpop.permute.xlu2 %152 }
  0x6e   :  { %v240_v51 = vmax.f32 %v7187_v9, %v153_v50 }
  0x71   :  { %v7362_v40 = vld [vmem:[#allocation2 + $0x30] sm:$0xff] }
  0x72   :  { %317 = vst.msk [vmem:[#allocation3 + $0x30] sm:$0xff] %vm11457_vm2, %v7362_v40  ;;  %v914_v63 = vld [vmem:[#allocation2 + $0x31] sm:$0xff] }
  0x73   :  { %v1011_v6 = vld [vmem:[#allocation2 + $0x32] sm:$0xff] }
  0x74   :  { %v141_v28 = vpop.permute.xlu1 %140  ;;  %v137_v29 = vpop.permute.xlu0 %136 }
  0x75   :  { %v234_v32 = vmax.f32 %v7111_v0, %v141_v28  ;;  %v232_v35 = vmax.f32 %v7116_v1, %v137_v29  ;;  %v159_v58 = vpop.permute.xlu2 %158 }
  0x76   :  { %v243_v60 = vmax.f32 %v7224_v12, %v159_v58 }
  0x7c   :  { %v143_v33 = vpop.permute.xlu1 %142  ;;  %v139_v34 = vpop.permute.xlu0 %138 }
  0x7d   :  { %v235_v36 = vmax.f32 %v7134_v4, %v143_v33  ;;  %v233_v37 = vmax.f32 %v7141_v5, %v139_v34 }
  0x7f   :  { %v7354_v38 = vmax.f32 %v234_v32, %v235_v36  ;;  %v7356_v39 = vmax.f32 %v232_v35, %v233_v37 }
  0x81   :  { %283 = vst.msk [vmem:[#allocation2 + $0x21] sm:$0xff] %vm11457_vm2, %v7354_v38 }
  0x82   :  { %282 = vst.msk [vmem:[#allocation2 + $0x11] sm:$0xff] %vm11457_vm2, %v7356_v39 }
  0x84   :  { %v151_v41 = vpop.permute.xlu1 %150  ;;  %v149_v42 = vpop.permute.xlu0 %148 }
  0x85   :  { %v239_v43 = vmax.f32 %v7175_v7, %v151_v41  ;;  %v238_v44 = vmax.f32 %v7180_v8, %v149_v42  ;;  %v165_v7 = vpop.permute.xlu2 %164  ;;  %v7476_v42 = vld [vmem:[%s11434_s0 + $0xb0] sm:$0xff] }
  0x86   :  { %v246_v30 = vmax.f32 %v7261_v15, %v165_v7  ;;  %v7588_v7 = vld [vmem:[%s11434_s0 + $0xd0] sm:$0xff] }
  0x87   :  { %v7368_v45 = vmax.f32 %v238_v44, %v239_v43 }
  0x88   :  { %v816_v46 = vld [vmem:[#allocation2 + $0x20] sm:$0xff] }
  0x89   :  { %v524_v47 = vld [vmem:[#allocation2 + $0x10] sm:$0xff]  ;;  %285 = vst.msk [vmem:[#allocation2 + $0x41] sm:$0xff] %vm11457_vm2, %v7368_v45  ;;  %v1010_v55 = vld [vmem:[#allocation2 + $0x22] sm:$0xff] }
  0x8a   :  { %v718_v48 = vld [vmem:[#allocation2 + $0x12] sm:$0xff]  ;;  %556 = vrot.lane.b32.xlu0 %v524_v47, %s7036_s10  ;;  %315 = vst.msk [vmem:[#allocation3 + $0x10] sm:$0xff] %vm11457_vm2, %v524_v47  ;;  %v913_v56 = vld [vmem:[#allocation2 + $0x21] sm:$0xff] }
  0x8b   :  { %v621_v49 = vld [vmem:[#allocation2 + $0x11] sm:$0xff]  ;;  %750 = vrot.lane.b32.xlu2 %v718_v48, %s7037_s11  ;;  %316 = vst.msk [vmem:[#allocation3 + $0x20] sm:$0xff] %vm11457_vm2, %v816_v46 }
  0x8c   :  { %653 = vrot.lane.b32.xlu1 %v621_v49, %s7038_s12  ;;  %v155_v52 = vpop.permute.xlu0 %154  ;;  %v157_v59 = vpop.permute.xlu1 %156  ;;  %v1129_v47 = vld [vmem:[%s11436_s2 + $0x30] sm:$0xff] }
  0x8d   :  { %v241_v53 = vmax.f32 %v7212_v10, %v155_v52  ;;  %v242_v61 = vmax.f32 %v7217_v11, %v157_v59  ;;  %v460_v12 = vpop.permute.xlu2 %459  ;;  %v7531_v52 = vld [vmem:[%s11434_s0 + $0xb8] sm:$0xff]  ;;  %v1123_v59 = vld [vmem:[%s11436_s2] sm:$0xff] }
  0x8f   :  { %v7379_v54 = vmax.f32 %v240_v51, %v241_v53  ;;  %v7389_v62 = vmax.f32 %v242_v61, %v243_v60  ;;  %v1127_v51 = vld [vmem:[%s11436_s2 + $0x20] sm:$0xff]  ;;  %v1126_v53 = vld [vmem:[%s11436_s2 + $0x18] sm:$0xff] }
  0x90   :  { %v818_v57 = vld [vmem:[#allocation2 + $0x40] sm:$0xff]  ;;  %v7563_v61 = vld [vmem:[%s11434_s0 + $0xd8] sm:$0xff] }
  0x91   :  { %286 = vst.msk [vmem:[#allocation2 + $0x51] sm:$0xff] %vm11457_vm2, %v7379_v54  ;;  %v7436_v16 = vld [vmem:[#allocation2 + $0x42] sm:$0xff] }
  0x92   :  { %848 = vrot.lane.b32.xlu0 %v816_v46, %s7039_s13  ;;  %318 = vst.msk [vmem:[#allocation3 + $0x40] sm:$0xff] %vm11457_vm2, %v818_v57  ;;  %v7447_v29 = vld [vmem:[#allocation2 + $0x41] sm:$0xff] }
  0x93   :  { %1042 = vrot.lane.b32.xlu2 %v1010_v55, %s7040_s14  ;;  %287 = vst.msk [vmem:[#allocation2 + $0x61] sm:$0xff] %vm11457_vm2, %v7389_v62  ;;  %v7558_v60 = vld [vmem:[%s11434_s0 + $0xc0] sm:$0xff] }
  0x94   :  { %945 = vrot.lane.b32.xlu1 %v913_v56, %s7041_s17  ;;  %v163_v1 = vpop.permute.xlu1 %162  ;;  %v161_v3 = vpop.permute.xlu0 %160 }
  0x95   :  { %v245_v2 = vmax.f32 %v7249_v13, %v163_v1  ;;  %v244_v4 = vmax.f32 %v7254_v14, %v161_v3  ;;  %v298_v14 = vld [vmem:[#allocation2] sm:$0xff]  ;;  %v171_v17 = vpop.permute.xlu2 %170 }
  0x96   :  { %314 = vst.msk [vmem:[#allocation3] sm:$0xff] %vm11457_vm2, %v298_v14  ;;  %v249_v25 = vmax.f32 %v7310_v20, %v171_v17  ;;  %v7604_v17 = vld [vmem:[%s11434_s0 + $0xe0] sm:$0xff] }
  0x97   :  { %v7405_v5 = vmax.f32 %v244_v4, %v245_v2 }
  0x98   :  { %v7413_v8 = vld [vmem:[#allocation2 + $0x50] sm:$0xff] }
  0x99   :  { %288 = vst.msk [vmem:[#allocation2 + $0x71] sm:$0xff] %vm11457_vm2, %v7405_v5  ;;  %v7425_v10 = vld [vmem:[#allocation2 + $0x51] sm:$0xff] }
  0x9a   :  { %364 = vrot.lane.b32.xlu0 %v621_v49, %s7034_s15  ;;  %v7398_v0 = vld [vmem:[#allocation2 + $0x60] sm:$0xff]  ;;  %319 = vst.msk [vmem:[#allocation3 + $0x50] sm:$0xff] %vm11457_vm2, %v7413_v8  ;;  %v7427_v11 = vld [vmem:[#allocation2 + $0x52] sm:$0xff]  ;;  %v1128_v49 = vld [vmem:[%s11436_s2 + $0x28] sm:$0xff] }
  0x9b   :  { %655 = vrot.lane.b32.xlu2 %v913_v56, %s7038_s12  ;;  %320 = vst.msk [vmem:[#allocation3 + $0x60] sm:$0xff] %vm11457_vm2, %v7398_v0  ;;  %v7459_v34 = vld [vmem:[#allocation2 + $0x62] sm:$0xff] }
  0x9c   :  { %558 = vrot.lane.b32.xlu1 %v816_v46, %s7036_s10  ;;  %v363_v13 = vpop.permute.xlu1 %362  ;;  %v167_v20 = vpop.permute.xlu0 %166  ;;  %v7505_v46 = vld [vmem:[%s11434_s0 + $0xc8] sm:$0xff] }
  0x9d   :  { %411 = vst.msk [vmem:[#allocation3] sm:$0xff] %vm11452_vm3, %v363_v13  ;;  %v247_v32 = vmax.f32 %v7305_v19, %v167_v20  ;;  %v179_v15 = vpop.permute.xlu2 %178 }
  0x9e   :  { %v253_v19 = vmax.f32 %v7331_v23, %v179_v15  ;;  %508 = vst.msk [vmem:[#allocation3] sm:$0xff] %vm11451_vm4, %v460_v12  ;;  %v1130_v23 = vld [vmem:[%s11436_s2 + $0x38] sm:$0xff] }
  0x9f   :  { %v7457_v33 = vmax.f32 %v246_v30, %v247_v32  ;;  %v7625_v32 = vld [vmem:[%s11434_s0 + $0xe8] sm:$0xff] }
  0xa0   :  { %v7420_v9 = vld [vmem:[#allocation2 + $0x70] sm:$0xff] }
  0xa1   :  { %321 = vst.msk [vmem:[#allocation3 + $0x70] sm:$0xff] %vm11457_vm2, %v7420_v9  ;;  %v7575_v2 = vld [vmem:[#allocation2 + $0x72] sm:$0xff] }
  0xa2   :  { %461 = vrot.lane.b32.xlu0 %v718_v48, %s7035_s16  ;;  %289 = vst.msk [vmem:[#allocation2 + $0x81] sm:$0xff] %vm11457_vm2, %v7457_v33 }
  0xa3   :  { %752 = vrot.lane.b32.xlu2 %v1010_v55, %s7037_s11 }
  0xa4   :  { %947 = vrot.lane.b32.xlu1 %v914_v63, %s7041_s17  ;;  %v169_v26 = vpop.permute.xlu1 %168  ;;  %v173_v36 = vpop.permute.xlu0 %172 }
  0xa5   :  { %v248_v27 = vmax.f32 %v7298_v18, %v169_v26  ;;  %v250_v37 = vmax.f32 %v7326_v22, %v173_v36  ;;  %v1131_v22 = vld [vmem:[%s11436_s2 + $0x40] sm:$0xff] }
  0xa6   :  { %1190 = vmatpush.msra.mxu0 %v1131_v22  ;;  %6783 = vmatpush.msra.mxu1 %v1131_v22 }
  0xa7   :  { %v7445_v28 = vmax.f32 %v248_v27, %v249_v25  ;;  %6784 = vmatpush.msra.mxu2 %v1131_v22  ;;  %6785 = vmatpush.msra.mxu3 %v1131_v22 }
  0xa8   :  { %1191 = vmatpush.msra.mxu0 %v1130_v23  ;;  %6786 = vmatpush.msra.mxu1 %v1130_v23 }
  0xa9   :  { %290 = vst.msk [vmem:[#allocation2 + $0xb1] sm:$0xff] %vm11457_vm2, %v7445_v28  ;;  %6787 = vmatpush.msra.mxu2 %v1130_v23  ;;  %6788 = vmatpush.msra.mxu3 %v1130_v23 }
  0xaa   :  { %850 = vrot.lane.b32.xlu0 %v7362_v40, %s7039_s13  ;;  %1192 = vmatpush.msra.mxu0 %v1129_v47 }
  0xab   :  { %1044 = vrot.lane.b32.xlu2 %v1011_v6, %s7040_s14  ;;  %6789 = vmatpush.msra.mxu1 %v1129_v47 }
  0xac   :  { %463 = vrot.lane.b32.xlu1 %v1010_v55, %s7035_s16  ;;  %v175_v18 = vpop.permute.xlu1 %174  ;;  %1193 = vmatpush.msra.mxu0 %v1128_v49  ;;  %v1125_v55 = vld [vmem:[%s11436_s2 + $0x10] sm:$0xff] }
  0xad   :  { %v251_v35 = vmax.f32 %v7315_v21, %v175_v18  ;;  %v7482_v21 = vld [vmem:[#allocation2 + $0x61] sm:$0xff]  ;;  %6792 = vmatpush.msra.mxu1 %v1128_v49  ;;  %6790 = vmatpush.msra.mxu2 %v1129_v47 }
  0xae   :  { %1194 = vmatpush.msra.mxu0 %v1127_v51  ;;  %6791 = vmatpush.msra.mxu3 %v1129_v47 }
  0xaf   :  { %v7478_v43 = vmax.f32 %v250_v37, %v251_v35  ;;  %6795 = vmatpush.msra.mxu1 %v1127_v51  ;;  %6793 = vmatpush.msra.mxu2 %v1128_v49  ;;  %v1016_v35 = vld [vmem:[#allocation2 + $0x82] sm:$0xff] }
  0xb0   :  { %1195 = vmatpush.msra.mxu0 %v1126_v53  ;;  %6794 = vmatpush.msra.mxu3 %v1128_v49  ;;  %v919_v37 = vld [vmem:[#allocation2 + $0x81] sm:$0xff]  ;;  %v920_v49 = vld [vmem:[#allocation2 + $0x91] sm:$0xff] }
  0xb1   :  { %291 = vst.msk [vmem:[#allocation2 + $0xc1] sm:$0xff] %vm11457_vm2, %v7478_v43  ;;  %6798 = vmatpush.msra.mxu1 %v1126_v53  ;;  %6796 = vmatpush.msra.mxu2 %v1127_v51 }
  0xb2   :  { %366 = vrot.lane.b32.xlu0 %v913_v56, %s7034_s15  ;;  %v7539_v56 = vld [vmem:[#allocation2 + $0xb0] sm:$0xff]  ;;  %1196 = vmatpush.msra.mxu0 %v1125_v55 }
  0xb3   :  { %560 = vrot.lane.b32.xlu2 %v7362_v40, %s7036_s10  ;;  %323 = vst.msk [vmem:[#allocation3 + $0x90] sm:$0xff] %vm11457_vm2, %v7539_v56  ;;  %6797 = vmatpush.msra.mxu3 %v1127_v51 }
  0xb4   :  { %852 = vrot.lane.b32.xlu1 %v818_v57, %s7039_s13  ;;  %v177_v40 = vpop.permute.xlu1 %176  ;;  %6801 = vmatpush.msra.mxu1 %v1125_v55 }
  0xb5   :  { %v252_v41 = vmax.f32 %v7336_v24, %v177_v40  ;;  %v7500_v24 = vld [vmem:[#allocation2 + $0x71] sm:$0xff]  ;;  %6799 = vmatpush.msra.mxu2 %v1126_v53  ;;  %6800 = vmatpush.msra.mxu3 %v1126_v53 }
  0xb6   :  { %v7677_v53 = vld [vmem:[%s11434_s0 + $0xf0] sm:$0xff] }
  0xb7   :  { %v7480_v44 = vmax.f32 %v252_v41, %v253_v19  ;;  %6802 = vmatpush.msra.mxu2 %v1125_v55  ;;  %6803 = vmatpush.msra.mxu3 %v1125_v55  ;;  %v1017_v55 = vld [vmem:[#allocation2 + $0x92] sm:$0xff] }
  0xb8   :  { %v7510_v48 = vld [vmem:[#allocation2 + $0xc0] sm:$0xff] }
  0xb9   :  { %292 = vst.msk [vmem:[#allocation2 + $0xd1] sm:$0xff] %vm11457_vm2, %v7480_v44 }
  0xba   :  { %657 = vrot.lane.b32.xlu0 %v914_v63, %s7038_s12  ;;  %324 = vst.msk [vmem:[#allocation3 + $0xa0] sm:$0xff] %vm11457_vm2, %v7510_v48 }
  0xbb   :  { %372 = vrot.lane.b32.xlu2 %v7425_v10, %s7034_s15 }
  0xbc   :  { %469 = vrot.lane.b32.xlu1 %v7427_v11, %s7035_s16 }
  0xc2   :  { %754 = vrot.lane.b32.xlu0 %v1011_v6, %s7037_s11 }
  0xc3   :  { %1046 = vrot.lane.b32.xlu2 %v7436_v16, %s7040_s14 }
  0xc4   :  { %566 = vrot.lane.b32.xlu1 %v7398_v0, %s7036_s10 }
  0xca   :  { %949 = vrot.lane.b32.xlu0 %v7447_v29, %s7041_s17 }
  0xcb   :  { %465 = vrot.lane.b32.xlu2 %v1011_v6, %s7035_s16 }
  0xcc   :  { %562 = vrot.lane.b32.xlu1 %v818_v57, %s7036_s10  ;;  %v1124_v57 = vld [vmem:[%s11436_s2 + $0x8] sm:$0xff]  ;;  %s7052_s2 = smov 2  }
  0xcd   :  { %1197 = vmatpush.msra.mxu0 %v1124_v57  ;;  %6804 = vmatpush.msra.mxu1 %v1124_v57 }
  0xce   :  { %6805 = vmatpush.msra.mxu2 %v1124_v57  ;;  %6806 = vmatpush.msra.mxu3 %v1124_v57  ;;  %v435_v57 = vld [vmem:[#allocation2 + $0xa2] sm:$0xff] }
  0xcf   :  { %1198 = vmatpush.msra.mxu0 %v1123_v59  ;;  %6807 = vmatpush.msra.mxu1 %v1123_v59 }
  0xd0   :  { %6808 = vmatpush.msra.mxu2 %v1123_v59  ;;  %6809 = vmatpush.msra.mxu3 %v1123_v59 }
  0xd2   :  { %368 = vrot.lane.b32.xlu0 %v914_v63, %s7034_s15  ;;  %v7565_v63 = vld [vmem:[#allocation2 + $0xd0] sm:$0xff] }
  0xd3   :  { %760 = vrot.lane.b32.xlu2 %v7459_v34, %s7037_s11  ;;  %325 = vst.msk [vmem:[#allocation3 + $0xb0] sm:$0xff] %vm11457_vm2, %v7565_v63 }
  0xd4   :  { %858 = vrot.lane.b32.xlu1 %v7420_v9, %s7039_s13 }
  0xda   :  { %663 = vrot.lane.b32.xlu0 %v7482_v21, %s7038_s12 }
  0xdb   :  { %180 = vrot.lane.b32.xlu2 %v7476_v42, %s7032_s9 }
  0xdc   :  { %756 = vrot.lane.b32.xlu1 %v7436_v16, %s7037_s11 }
  0xe2   :  { %659 = vrot.lane.b32.xlu0 %v7447_v29, %s7038_s12 }
  0xe3   :  { %955 = vrot.lane.b32.xlu2 %v7500_v24, %s7041_s17 }
  0xe4   :  { %186 = vrot.lane.b32.xlu1 %v7505_v46, %s7032_s9 }
  0xe5   :  { %v7523_v50 = vpop.permute.xlu2 %750 }
  0xea   :  { %182 = vrot.lane.b32.xlu0 %v7531_v52, %s7032_s9 }
  0xeb   :  { %854 = vrot.lane.b32.xlu2 %v7413_v8, %s7039_s13 }
  0xec   :  { %374 = vrot.lane.b32.xlu1 %v7482_v21, %s7034_s15 }
  0xed   :  { %v1043_v58 = vpop.permute.xlu2 %1042 }
  0xf2   :  { %184 = vrot.lane.b32.xlu0 %v7558_v60, %s7032_s9 }
  0xf3   :  { %951 = vrot.lane.b32.xlu2 %v7425_v10, %s7041_s17 }
  0xf4   :  { %190 = vrot.lane.b32.xlu1 %v7563_v61, %s7032_s9 }
  0xf5   :  { %v656_v1 = vpop.permute.xlu2 %655 }
  0xfa   :  { %1052 = vrot.lane.b32.xlu0 %v7575_v2, %s7040_s14 }
  0xfb   :  { %471 = vrot.lane.b32.xlu2 %v7459_v34, %s7035_s16 }
  0xfc   :  { %370 = vrot.lane.b32.xlu1 %v7447_v29, %s7034_s15  ;;  %v557_v3 = vpop.permute.xlu0 %556  ;;  %v822_v29 = vld [vmem:[#allocation2 + $0x80] sm:$0xff] }
  0xfd   :  { %v753_v4 = vpop.permute.xlu2 %752  ;;  %605 = vst.msk [vmem:[#allocation3] sm:$0xff] %vm11450_vm5, %v557_v3  ;;  %v726_v3 = vld [vmem:[#allocation2 + $0xb2] sm:$0xff] }
  0xfe   :  { %v654_v6 = vpop.permute.xlu1 %653 }
  0xff   :  { %702 = vst.msk [vmem:[#allocation3] sm:$0xff] %vm11449_vm6, %v654_v6 }
 0x100   :  { %799 = vst.msk [vmem:[#allocation3] sm:$0xff] %vm11448_vm7, %v7523_v50 }
 0x102   :  { %188 = vrot.lane.b32.xlu0 %v7588_v7, %s7032_s9 }
 0x103   :  { %568 = vrot.lane.b32.xlu2 %v7420_v9, %s7036_s10 }
 0x104   :  { %665 = vrot.lane.b32.xlu1 %v7500_v24, %s7038_s12  ;;  %v849_v12 = vpop.permute.xlu0 %848 }
 0x105   :  { %v1045_v13 = vpop.permute.xlu2 %1044  ;;  %897 = vst.msk [vmem:[#allocation3] sm:$0xff] %vm11447_vm8, %v849_v12 }
 0x106   :  { %v946_v14 = vpop.permute.xlu1 %945 }
 0x107   :  { %994 = vst.msk [vmem:[#allocation3] sm:$0xff] %vm11446_vm9, %v946_v14  ;;  %v1018_v14 = vld [vmem:[#allocation2 + $0xc2] sm:$0xff] }
 0x108   :  { %1091 = vst.msk [vmem:[#allocation3] sm:$0xff] %vm11445_vm10, %v1043_v58 }
 0x10a   :  { %1048 = vrot.lane.b32.xlu0 %v7427_v11, %s7040_s14 }
 0x10b   :  { %192 = vrot.lane.b32.xlu2 %v7604_v17, %s7032_s9 }
 0x10c   :  { %564 = vrot.lane.b32.xlu1 %v7413_v8, %s7036_s10  ;;  %v365_v9 = vpop.permute.xlu0 %364 }
 0x10d   :  { %v561_v25 = vpop.permute.xlu2 %560  ;;  %412 = vst.msk [vmem:[#allocation3 + $0x10] sm:$0xff] %vm11452_vm3, %v365_v9 }
 0x10e   :  { %v559_v26 = vpop.permute.xlu1 %558 }
 0x10f   :  { %v1107_v27 = vld [vmem:[#allocation3] sm:$0xff] }
 0x110   :  { %6718 = vmatmul.msk.f32.vlgmr.msra.gmra.mxu0 %vm11444_vm11, %v1107_v27 }
 0x112   :  { %467 = vrot.lane.b32.xlu0 %v7436_v16, %s7035_s16 }
 0x113   :  { %762 = vrot.lane.b32.xlu2 %v7575_v2, %s7037_s11 }
 0x114   :  { %860 = vrot.lane.b32.xlu1 %v822_v29, %s7039_s13  ;;  %v462_v30 = vpop.permute.xlu0 %461 }
 0x115   :  { %v373_v8 = vpop.permute.xlu2 %372  ;;  %509 = vst.msk [vmem:[#allocation3 + $0x10] sm:$0xff] %vm11451_vm4, %v462_v30 }
 0x116   :  { %v948_v20 = vpop.permute.xlu1 %947  ;;  %606 = vst.msk [vmem:[#allocation3 + $0x10] sm:$0xff] %vm11450_vm5, %v559_v26  ;;  %v629_v26 = vld [vmem:[#allocation2 + $0xb1] sm:$0xff] }
 0x117   :  { %703 = vst.msk [vmem:[#allocation3 + $0x10] sm:$0xff] %vm11449_vm6, %v656_v1 }
 0x118   :  { %416 = vst.msk [vmem:[#allocation3 + $0x50] sm:$0xff] %vm11452_vm3, %v373_v8 }
 0x119   :  { %800 = vst.msk [vmem:[#allocation3 + $0x10] sm:$0xff] %vm11448_vm7, %v753_v4 }
 0x11a   :  { %194 = vrot.lane.b32.xlu0 %v7625_v32, %s7032_s9 }
 0x11b   :  { %758 = vrot.lane.b32.xlu2 %v7427_v11, %s7037_s11 }
 0x11c   :  { %856 = vrot.lane.b32.xlu1 %v7398_v0, %s7039_s13  ;;  %v851_v16 = vpop.permute.xlu0 %850 }
 0x11d   :  { %v1047_v18 = vpop.permute.xlu2 %1046  ;;  %898 = vst.msk [vmem:[#allocation3 + $0x10] sm:$0xff] %vm11447_vm8, %v851_v16 }
 0x11e   :  { %v464_v15 = vpop.permute.xlu1 %463  ;;  %995 = vst.msk [vmem:[#allocation3 + $0x10] sm:$0xff] %vm11446_vm9, %v948_v20 }
 0x11f   :  { %1092 = vst.msk [vmem:[#allocation3 + $0x10] sm:$0xff] %vm11445_vm10, %v1045_v13  ;;  %v338_v13 = vld [vmem:[#allocation2 + $0xa1] sm:$0xff] }
 0x122   :  { %661 = vrot.lane.b32.xlu0 %v7425_v10, %s7038_s12 }
 0x123   :  { %1054 = vrot.lane.b32.xlu2 %v1016_v35, %s7040_s14 }
 0x124   :  { %953 = vrot.lane.b32.xlu1 %v7482_v21, %s7041_s17  ;;  %v367_v11 = vpop.permute.xlu0 %366  ;;  %v7656_v21 = vld [vmem:[%s11434_s0 + $0xf8] sm:$0xff] }
 0x125   :  { %v466_v0 = vpop.permute.xlu2 %465  ;;  %413 = vst.msk [vmem:[#allocation3 + $0x20] sm:$0xff] %vm11452_vm3, %v367_v11 }
 0x126   :  { %v853_v19 = vpop.permute.xlu1 %852  ;;  %510 = vst.msk [vmem:[#allocation3 + $0x20] sm:$0xff] %vm11451_vm4, %v464_v15  ;;  %v1108_v36 = vld [vmem:[#allocation3 + $0x10] sm:$0xff] }
 0x127   :  { %607 = vst.msk [vmem:[#allocation3 + $0x20] sm:$0xff] %vm11450_vm5, %v561_v25  ;;  %6719 = vmatmul.msk.f32.gmra.mxu0 %vm11444_vm11, %v1108_v36 }
 0x12a   :  { %957 = vrot.lane.b32.xlu0 %v919_v37, %s7041_s17 }
 0x12b   :  { %473 = vrot.lane.b32.xlu2 %v7575_v2, %s7035_s16  ;;  %v823_v2 = vld [vmem:[#allocation2 + $0x90] sm:$0xff] }
 0x12c   :  { %570 = vrot.lane.b32.xlu1 %v822_v29, %s7036_s10  ;;  %v658_v10 = vpop.permute.xlu0 %657 }
 0x12d   :  { %v761_v40 = vpop.permute.xlu2 %760  ;;  %704 = vst.msk [vmem:[#allocation3 + $0x20] sm:$0xff] %vm11449_vm6, %v658_v10 }
 0x12e   :  { %v470_v41 = vpop.permute.xlu1 %469 }
 0x12f   :  { %513 = vst.msk [vmem:[#allocation3 + $0x50] sm:$0xff] %vm11451_vm4, %v470_v41 }
 0x132   :  { %376 = vrot.lane.b32.xlu0 %v7500_v24, %s7034_s15 }
 0x133   :  { %667 = vrot.lane.b32.xlu2 %v919_v37, %s7038_s12 }
 0x134   :  { %198 = vrot.lane.b32.xlu1 %v7656_v21, %s7032_s9  ;;  %v755_v22 = vpop.permute.xlu0 %754 }
 0x135   :  { %v7663_v23 = vpop.permute.xlu2 %180  ;;  %801 = vst.msk [vmem:[#allocation3 + $0x20] sm:$0xff] %vm11448_vm7, %v755_v22 }
 0x136   :  { %v567_v47 = vpop.permute.xlu1 %566  ;;  %899 = vst.msk [vmem:[#allocation3 + $0x20] sm:$0xff] %vm11447_vm8, %v853_v19  ;;  %v254_v27 = vmax.f32 %v7476_v42, %v7663_v23  ;;  %v921_v42 = vld [vmem:[#allocation2 + $0xc1] sm:$0xff]  ;;  %v922_v19 = vld [vmem:[#allocation2 + $0xd1] sm:$0xff] }
 0x137   :  { %610 = vst.msk [vmem:[#allocation3 + $0x50] sm:$0xff] %vm11450_vm5, %v567_v47 }
 0x13a   :  { %1050 = vrot.lane.b32.xlu0 %v7459_v34, %s7040_s14 }
 0x13b   :  { %764 = vrot.lane.b32.xlu2 %v1016_v35, %s7037_s11 }
 0x13c   :  { %959 = vrot.lane.b32.xlu1 %v920_v49, %s7041_s17  ;;  %v950_v24 = vpop.permute.xlu0 %949 }
 0x13d   :  { %v956_v50 = vpop.permute.xlu2 %955  ;;  %996 = vst.msk [vmem:[#allocation3 + $0x20] sm:$0xff] %vm11446_vm9, %v950_v24 }
 0x13e   :  { %v563_v51 = vpop.permute.xlu1 %562  ;;  %1093 = vst.msk [vmem:[#allocation3 + $0x20] sm:$0xff] %vm11445_vm10, %v1047_v18 }
 0x142   :  { %196 = vrot.lane.b32.xlu0 %v7677_v53, %s7032_s9 }
 0x143   :  { %1056 = vrot.lane.b32.xlu2 %v1017_v55, %s7040_s14 }
 0x144   :  { %475 = vrot.lane.b32.xlu1 %v435_v57, %s7035_s16  ;;  %v369_v34 = vpop.permute.xlu0 %368 }
 0x145   :  { %v855_v58 = vpop.permute.xlu2 %854  ;;  %414 = vst.msk [vmem:[#allocation3 + $0x30] sm:$0xff] %vm11452_vm3, %v369_v34  ;;  %v1109_v1 = vld [vmem:[#allocation3 + $0x20] sm:$0xff] }
 0x146   :  { %v859_v59 = vpop.permute.xlu1 %858  ;;  %511 = vst.msk [vmem:[#allocation3 + $0x30] sm:$0xff] %vm11451_vm4, %v466_v0  ;;  %6720 = vmatmul.msk.f32.gmra.mxu0 %vm11444_vm11, %v1109_v1 }
 0x147   :  { %608 = vst.msk [vmem:[#allocation3 + $0x30] sm:$0xff] %vm11450_vm5, %v563_v51 }
 0x14a   :  { %862 = vrot.lane.b32.xlu0 %v823_v2, %s7039_s13 }
 0x14b   :  { %572 = vrot.lane.b32.xlu2 %v7539_v56, %s7036_s10 }
 0x14c   :  { %766 = vrot.lane.b32.xlu1 %v726_v3, %s7037_s11  ;;  %v664_v4 = vpop.permute.xlu0 %663 }
 0x14d   :  { %v952_v6 = vpop.permute.xlu2 %951  ;;  %707 = vst.msk [vmem:[#allocation3 + $0x50] sm:$0xff] %vm11449_vm6, %v664_v4 }
 0x14e   :  { %v757_v12 = vpop.permute.xlu1 %756  ;;  %804 = vst.msk [vmem:[#allocation3 + $0x50] sm:$0xff] %vm11448_vm7, %v761_v40 }
 0x14f   :  { %902 = vst.msk [vmem:[#allocation3 + $0x50] sm:$0xff] %vm11447_vm8, %v859_v59 }
 0x150   :  { %999 = vst.msk [vmem:[#allocation3 + $0x50] sm:$0xff] %vm11446_vm9, %v956_v50 }
 0x152   :  { %378 = vrot.lane.b32.xlu0 %v338_v13, %s7034_s15 }
 0x153   :  { %864 = vrot.lane.b32.xlu2 %v7510_v48, %s7039_s13 }
 0x154   :  { %1058 = vrot.lane.b32.xlu1 %v1018_v14, %s7040_s14  ;;  %v660_v56 = vpop.permute.xlu0 %659 }
 0x155   :  { %v472_v9 = vpop.permute.xlu2 %471  ;;  %705 = vst.msk [vmem:[#allocation3 + $0x30] sm:$0xff] %vm11449_vm6, %v660_v56 }
 0x156   :  { %v187_v25 = vpop.permute.xlu1 %186  ;;  %802 = vst.msk [vmem:[#allocation3 + $0x30] sm:$0xff] %vm11448_vm7, %v757_v12 }
 0x157   :  { %900 = vst.msk [vmem:[#allocation3 + $0x30] sm:$0xff] %vm11447_vm8, %v855_v58 }
 0x158   :  { %997 = vst.msk [vmem:[#allocation3 + $0x30] sm:$0xff] %vm11446_vm9, %v952_v6 }
 0x15a   :  { %669 = vrot.lane.b32.xlu0 %v629_v26, %s7038_s12 }
 0x15b   :  { %380 = vrot.lane.b32.xlu2 %v629_v26, %s7034_s15 }
 0x15c   :  { %574 = vrot.lane.b32.xlu1 %v7510_v48, %s7036_s10  ;;  %v183_v29 = vpop.permute.xlu0 %182  ;;  %v257_v48 = vmax.f32 %v7505_v46, %v187_v25 }
 0x15d   :  { %v569_v30 = vpop.permute.xlu2 %568  ;;  %v255_v8 = vmax.f32 %v7531_v52, %v183_v29 }
 0x15e   :  { %v375_v20 = vpop.permute.xlu1 %374 }
 0x15f   :  { %417 = vst.msk [vmem:[#allocation3 + $0x60] sm:$0xff] %vm11452_vm3, %v375_v20  ;;  %v7711_v16 = vmax.f32 %v254_v27, %v255_v8 }
 0x160   :  { %514 = vst.msk [vmem:[#allocation3 + $0x60] sm:$0xff] %vm11451_vm4, %v472_v9 }
 0x161   :  { %611 = vst.msk [vmem:[#allocation3 + $0x60] sm:$0xff] %vm11450_vm5, %v569_v30 }
 0x162   :  { %293 = vst.msk [vmem:[#allocation2 + $0xe1] sm:$0xff] %vm11457_vm2, %v7711_v16  ;;  %961 = vrot.lane.b32.xlu0 %v921_v42, %s7041_s17 }
 0x163   :  { %671 = vrot.lane.b32.xlu2 %v921_v42, %s7038_s12 }
 0x164   :  { %866 = vrot.lane.b32.xlu1 %v7565_v63, %s7039_s13  ;;  %v185_v52 = vpop.permute.xlu0 %184 }
 0x165   :  { %v7722_v18 = vpop.permute.xlu2 %192  ;;  %v256_v15 = vmax.f32 %v7558_v60, %v185_v52 }
 0x166   :  { %v191_v35 = vpop.permute.xlu1 %190 }
 0x167   :  { %v7725_v11 = vmax.f32 %v256_v15, %v257_v48  ;;  %v259_v10 = vmax.f32 %v7563_v61, %v191_v35  ;;  %v1019_v61 = vld [vmem:[#allocation2 + $0xd2] sm:$0xff]  ;;  %v306_v15 = vld [vmem:[#allocation2 + $0xa0] sm:$0xff] }
 0x168   :  { %322 = vst.msk [vmem:[#allocation3 + $0x80] sm:$0xff] %vm11457_vm2, %v306_v15 }
 0x169   :  { %v7727_v0 = vld [vmem:[#allocation2 + $0xe0] sm:$0xff]  ;;  %294 = vst.msk [vmem:[#allocation2 + $0xf1] sm:$0xff] %vm11457_vm2, %v7725_v11 }
 0x16a   :  { %477 = vrot.lane.b32.xlu0 %v726_v3, %s7035_s16  ;;  %326 = vst.msk [vmem:[#allocation3 + $0xc0] sm:$0xff] %vm11457_vm2, %v7727_v0  ;;  %v7763_v57 = vld [vmem:[#allocation2 + $0xe1] sm:$0xff] }
 0x16b   :  { %963 = vrot.lane.b32.xlu2 %v922_v19, %s7041_s17  ;;  %v7771_v34 = vld [vmem:[#allocation2 + $0xe2] sm:$0xff] }
 0x16c   :  { %382 = vrot.lane.b32.xlu1 %v921_v42, %s7034_s15  ;;  %v1053_v46 = vpop.permute.xlu0 %1052 }
 0x16d   :  { %v763_v60 = vpop.permute.xlu2 %762  ;;  %1096 = vst.msk [vmem:[#allocation3 + $0x50] sm:$0xff] %vm11445_vm10, %v1053_v46 }
 0x16e   :  { %v371_v36 = vpop.permute.xlu1 %370 }
 0x16f   :  { %415 = vst.msk [vmem:[#allocation3 + $0x40] sm:$0xff] %vm11452_vm3, %v371_v36 }
 0x170   :  { %v7738_v37 = vld [vmem:[#allocation2 + $0xf0] sm:$0xff] }
 0x171   :  { %327 = vst.msk [vmem:[#allocation3 + $0xd0] sm:$0xff] %vm11457_vm2, %v7738_v37  ;;  %v7756_v24 = vld [vmem:[#allocation2 + $0xf1] sm:$0xff] }
 0x172   :  { %768 = vrot.lane.b32.xlu0 %v1018_v14, %s7037_s11 }
 0x173   :  { %479 = vrot.lane.b32.xlu2 %v1018_v14, %s7035_s16  ;;  %v7790_v14 = vld [vmem:[#allocation2 + $0xf2] sm:$0xff] }
 0x174   :  { %673 = vrot.lane.b32.xlu1 %v922_v19, %s7038_s12  ;;  %v189_v40 = vpop.permute.xlu0 %188  ;;  %v1112_v22 = vld [vmem:[#allocation3 + $0x50] sm:$0xff] }
 0x175   :  { %v759_v41 = vpop.permute.xlu2 %758  ;;  %v258_v23 = vmax.f32 %v7588_v7, %v189_v40  ;;  %6723 = vmatmul.msk.f32.vlgmr.msra.gmra.mxu1 %vm11444_vm11, %v1112_v22 }
 0x176   :  { %v666_v47 = vpop.permute.xlu1 %665 }
 0x177   :  { %708 = vst.msk [vmem:[#allocation3 + $0x60] sm:$0xff] %vm11449_vm6, %v666_v47  ;;  %v7749_v49 = vmax.f32 %v258_v23, %v259_v10 }
 0x178   :  { %805 = vst.msk [vmem:[#allocation3 + $0x60] sm:$0xff] %vm11448_vm7, %v763_v60 }
 0x179   :  { %295 = vst.msk [vmem:[#allocation2 + $0x101] sm:$0xff] %vm11457_vm2, %v7749_v49 }
 0x17a   :  { %1060 = vrot.lane.b32.xlu0 %v1019_v61, %s7040_s14 }
 0x17b   :  { %770 = vrot.lane.b32.xlu2 %v1019_v61, %s7037_s11 }
 0x17c   :  { %388 = vrot.lane.b32.xlu1 %v7756_v24, %s7034_s15  ;;  %v1049_v7 = vpop.permute.xlu0 %1048 }
 0x17d   :  { %v1055_v50 = vpop.permute.xlu2 %1054  ;;  %1094 = vst.msk [vmem:[#allocation3 + $0x30] sm:$0xff] %vm11445_vm10, %v1049_v7 }
 0x17e   :  { %v565_v51 = vpop.permute.xlu1 %564 }
 0x180   :  { %v7761_v55 = vld [vmem:[#allocation2 + $0x100] sm:$0xff] }
 0x181   :  { %328 = vst.msk [vmem:[#allocation3 + $0xe0] sm:$0xff] %vm11457_vm2, %v7761_v55  ;;  %v7792_v56 = vld [vmem:[#allocation2 + $0x101] sm:$0xff] }
 0x182   :  { %576 = vrot.lane.b32.xlu0 %v7565_v63, %s7036_s10  ;;  %v260_v63 = vmax.f32 %v7604_v17, %v7722_v18  ;;  %v7796_v17 = vld [vmem:[#allocation2 + $0x102] sm:$0xff] }
 0x183   :  { %965 = vrot.lane.b32.xlu2 %v7763_v57, %s7041_s17 }
 0x184   :  { %1062 = vrot.lane.b32.xlu1 %v7771_v34, %s7040_s14  ;;  %v468_v58 = vpop.permute.xlu0 %467  ;;  %v1110_v1 = vld [vmem:[#allocation3 + $0x30] sm:$0xff] }
 0x185   :  { %v474_v59 = vpop.permute.xlu2 %473  ;;  %512 = vst.msk [vmem:[#allocation3 + $0x40] sm:$0xff] %vm11451_vm4, %v468_v58  ;;  %6721 = vmatmul.msk.f32.gmra.mxu0 %vm11444_vm11, %v1110_v1 }
 0x186   :  { %v861_v2 = vpop.permute.xlu1 %860  ;;  %609 = vst.msk [vmem:[#allocation3 + $0x40] sm:$0xff] %vm11450_vm5, %v565_v51 }
 0x187   :  { %903 = vst.msk [vmem:[#allocation3 + $0x60] sm:$0xff] %vm11447_vm8, %v861_v2 }
 0x18a   :  { %868 = vrot.lane.b32.xlu0 %v7727_v0, %s7039_s13 }
 0x18b   :  { %384 = vrot.lane.b32.xlu2 %v922_v19, %s7034_s15 }
 0x18c   :  { %481 = vrot.lane.b32.xlu1 %v1019_v61, %s7035_s16  ;;  %v195_v3 = vpop.permute.xlu0 %194 }
 0x18d   :  { %v668_v4 = vpop.permute.xlu2 %667  ;;  %v261_v6 = vmax.f32 %v7625_v32, %v195_v3 }
 0x18e   :  { %v857_v12 = vpop.permute.xlu1 %856 }
 0x18f   :  { %v7786_v13 = vmax.f32 %v260_v63, %v261_v6  ;;  %v831_v6 = vld [vmem:[#allocation2 + $0x130] sm:$0xff] }
 0x191   :  { %296 = vst.msk [vmem:[#allocation2 + $0x111] sm:$0xff] %vm11457_vm2, %v7786_v13 }
 0x192   :  { %485 = vrot.lane.b32.xlu0 %v7790_v14, %s7035_s16 }
 0x193   :  { %679 = vrot.lane.b32.xlu2 %v7792_v56, %s7038_s12 }
 0x194   :  { %776 = vrot.lane.b32.xlu1 %v7796_v17, %s7037_s11  ;;  %v662_v32 = vpop.permute.xlu0 %661 }
 0x195   :  { %v765_v9 = vpop.permute.xlu2 %764  ;;  %706 = vst.msk [vmem:[#allocation3 + $0x40] sm:$0xff] %vm11449_vm6, %v662_v32 }
 0x196   :  { %v954_v25 = vpop.permute.xlu1 %953  ;;  %803 = vst.msk [vmem:[#allocation3 + $0x40] sm:$0xff] %vm11448_vm7, %v759_v41 }
 0x197   :  { %901 = vst.msk [vmem:[#allocation3 + $0x40] sm:$0xff] %vm11447_vm8, %v857_v12 }
 0x198   :  { %998 = vst.msk [vmem:[#allocation3 + $0x40] sm:$0xff] %vm11446_vm9, %v954_v25  ;;  %v829_v26 = vld [vmem:[#allocation2 + $0x110] sm:$0xff] }
 0x199   :  { %329 = vst.msk [vmem:[#allocation3 + $0xf0] sm:$0xff] %vm11457_vm2, %v829_v26  ;;  %v7815_v8 = vld [vmem:[#allocation2 + $0x111] sm:$0xff] }
 0x19a   :  { %582 = vrot.lane.b32.xlu0 %v7761_v55, %s7036_s10  ;;  %v7817_v20 = vld [vmem:[#allocation2 + $0x112] sm:$0xff] }
 0x19b   :  { %675 = vrot.lane.b32.xlu2 %v7763_v57, %s7038_s12 }
 0x19c   :  { %772 = vrot.lane.b32.xlu1 %v7771_v34, %s7037_s11  ;;  %v958_v27 = vpop.permute.xlu0 %957 }
 0x19d   :  { %v1057_v29 = vpop.permute.xlu2 %1056  ;;  %1000 = vst.msk [vmem:[#allocation3 + $0x60] sm:$0xff] %vm11446_vm9, %v958_v27 }
 0x19e   :  { %v571_v30 = vpop.permute.xlu1 %570  ;;  %1097 = vst.msk [vmem:[#allocation3 + $0x60] sm:$0xff] %vm11445_vm10, %v1055_v50 }
 0x1a2   :  { %578 = vrot.lane.b32.xlu0 %v7727_v0, %s7036_s10 }
 0x1a3   :  { %971 = vrot.lane.b32.xlu2 %v7815_v8, %s7041_s17 }
 0x1a4   :  { %1068 = vrot.lane.b32.xlu1 %v7817_v20, %s7040_s14  ;;  %v377_v42 = vpop.permute.xlu0 %376 }
 0x1a5   :  { %v573_v48 = vpop.permute.xlu2 %572  ;;  %418 = vst.msk [vmem:[#allocation3 + $0x70] sm:$0xff] %vm11452_vm3, %v377_v42  ;;  %v1113_v18 = vld [vmem:[#allocation3 + $0x60] sm:$0xff] }
 0x1a6   :  { %v199_v52 = vpop.permute.xlu1 %198  ;;  %515 = vst.msk [vmem:[#allocation3 + $0x70] sm:$0xff] %vm11451_vm4, %v474_v59  ;;  %6724 = vmatmul.msk.f32.gmra.mxu1 %vm11444_vm11, %v1113_v18 }
 0x1a7   :  { %612 = vst.msk [vmem:[#allocation3 + $0x70] sm:$0xff] %vm11450_vm5, %v571_v30  ;;  %v263_v46 = vmax.f32 %v7656_v21, %v199_v52 }
 0x1a8   :  { %709 = vst.msk [vmem:[#allocation3 + $0x70] sm:$0xff] %vm11449_vm6, %v668_v4 }
 0x1a9   :  { %806 = vst.msk [vmem:[#allocation3 + $0x70] sm:$0xff] %vm11448_vm7, %v765_v9 }
 0x1aa   :  { %874 = vrot.lane.b32.xlu0 %v829_v26, %s7039_s13 }
 0x1ab   :  { %390 = vrot.lane.b32.xlu2 %v7792_v56, %s7034_s15 }
 0x1ac   :  { %487 = vrot.lane.b32.xlu1 %v7796_v17, %s7035_s16  ;;  %v1051_v35 = vpop.permute.xlu0 %1050 }
 0x1ad   :  { %v865_v0 = vpop.permute.xlu2 %864  ;;  %1095 = vst.msk [vmem:[#allocation3 + $0x40] sm:$0xff] %vm11445_vm10, %v1051_v35 }
 0x1ae   :  { %v960_v19 = vpop.permute.xlu1 %959 }
 0x1b2   :  { %870 = vrot.lane.b32.xlu0 %v7738_v37, %s7039_s13 }
 0x1b3   :  { %1064 = vrot.lane.b32.xlu2 %v7790_v14, %s7040_s14 }
 0x1b4   :  { %584 = vrot.lane.b32.xlu1 %v829_v26, %s7036_s10  ;;  %v197_v60 = vpop.permute.xlu0 %196  ;;  %v1111_v10 = vld [vmem:[#allocation3 + $0x40] sm:$0xff]  ;;  %v928_v26 = vld [vmem:[#allocation2 + $0x131] sm:$0xff] }
 0x1b5   :  { %v381_v36 = vpop.permute.xlu2 %380  ;;  %v262_v40 = vmax.f32 %v7677_v53, %v197_v60  ;;  %6722 = vmatmul.msk.f32.gmra.mxu0 %vm11444_vm11, %v1111_v10 }
 0x1b6   :  { %420 = vst.msk [vmem:[#allocation3 + $0x90] sm:$0xff] %vm11452_vm3, %v381_v36  ;;  %v476_v41 = vpop.permute.xlu1 %475 }
 0x1b7   :  { %v7847_v22 = vmax.f32 %v262_v40, %v263_v46  ;;  %v1200_v46 = vpop.f32.mrf.mxu0 }
 0x1b9   :  { %11470 = vst [vmem:[#allocation7_spill] sm:$0xff] %v7847_v22 }
 0x1ba   :  { %297 = vst.msk [vmem:[#allocation2 + $0x121] sm:$0xff] %vm11457_vm2, %v7847_v22  ;;  %967 = vrot.lane.b32.xlu0 %v7756_v24, %s7041_s17 }
 0x1bb   :  { %483 = vrot.lane.b32.xlu2 %v7771_v34, %s7035_s16 }
 0x1bc   :  { %580 = vrot.lane.b32.xlu1 %v7738_v37, %s7036_s10  ;;  %v863_v21 = vpop.permute.xlu0 %862 }
 0x1bd   :  { %v672_v53 = vpop.permute.xlu2 %671  ;;  %904 = vst.msk [vmem:[#allocation3 + $0x70] sm:$0xff] %vm11447_vm8, %v863_v21 }
 0x1be   :  { %v767_v23 = vpop.permute.xlu1 %766  ;;  %1001 = vst.msk [vmem:[#allocation3 + $0x70] sm:$0xff] %vm11446_vm9, %v960_v19 }
 0x1bf   :  { %1098 = vst.msk [vmem:[#allocation3 + $0x70] sm:$0xff] %vm11445_vm10, %v1057_v29  ;;  %v1203_v40 = vpop.f32.mrf.mxu0 }
 0x1c1   :  { %v830_v47 = vld [vmem:[#allocation2 + $0x120] sm:$0xff] }
 0x1c2   :  { %386 = vrot.lane.b32.xlu0 %v7763_v57, %s7034_s15  ;;  %v1024_v58 = vld [vmem:[#allocation2 + $0x122] sm:$0xff] }
 0x1c3   :  { %778 = vrot.lane.b32.xlu2 %v7817_v20, %s7037_s11  ;;  %v927_v2 = vld [vmem:[#allocation2 + $0x121] sm:$0xff] }
 0x1c4   :  { %876 = vrot.lane.b32.xlu1 %v830_v47, %s7039_s13  ;;  %v379_v61 = vpop.permute.xlu0 %378 }
 0x1c5   :  { %v964_v37 = vpop.permute.xlu2 %963  ;;  %419 = vst.msk [vmem:[#allocation3 + $0x80] sm:$0xff] %vm11452_vm3, %v379_v61 }
 0x1c6   :  { %v1059_v7 = vpop.permute.xlu1 %1058  ;;  %516 = vst.msk [vmem:[#allocation3 + $0x80] sm:$0xff] %vm11451_vm4, %v476_v41  ;;  %v1114_v50 = vld [vmem:[#allocation3 + $0x70] sm:$0xff] }
 0x1c7   :  { %613 = vst.msk [vmem:[#allocation3 + $0x80] sm:$0xff] %vm11450_vm5, %v573_v48  ;;  %6725 = vmatmul.msk.f32.gmra.mxu1 %vm11444_vm11, %v1114_v50 }
 0x1ca   :  { %681 = vrot.lane.b32.xlu0 %v7815_v8, %s7038_s12 }
 0x1cb   :  { %774 = vrot.lane.b32.xlu2 %v7790_v14, %s7037_s11 }
 0x1cc   :  { %872 = vrot.lane.b32.xlu1 %v7761_v55, %s7039_s13  ;;  %v670_v51 = vpop.permute.xlu0 %669 }
 0x1cd   :  { %v480_v57 = vpop.permute.xlu2 %479  ;;  %710 = vst.msk [vmem:[#allocation3 + $0x80] sm:$0xff] %vm11449_vm6, %v670_v51 }
 0x1ce   :  { %v575_v34 = vpop.permute.xlu1 %574  ;;  %807 = vst.msk [vmem:[#allocation3 + $0x80] sm:$0xff] %vm11448_vm7, %v767_v23 }
 0x1cf   :  { %905 = vst.msk [vmem:[#allocation3 + $0x80] sm:$0xff] %vm11447_vm8, %v865_v0 }
 0x1d2   :  { %677 = vrot.lane.b32.xlu0 %v7756_v24, %s7038_s12 }
 0x1d3   :  { %1070 = vrot.lane.b32.xlu2 %v1024_v58, %s7040_s14 }
 0x1d4   :  { %969 = vrot.lane.b32.xlu1 %v7792_v56, %s7041_s17  ;;  %v962_v59 = vpop.permute.xlu0 %961 }
 0x1d5   :  { %v771_v55 = vpop.permute.xlu2 %770  ;;  %1002 = vst.msk [vmem:[#allocation3 + $0x80] sm:$0xff] %vm11446_vm9, %v962_v59 }
 0x1d6   :  { %v867_v1 = vpop.permute.xlu1 %866  ;;  %1099 = vst.msk [vmem:[#allocation3 + $0x80] sm:$0xff] %vm11445_vm10, %v1059_v7 }
 0x1da   :  { %973 = vrot.lane.b32.xlu0 %v927_v2, %s7041_s17 }
 0x1db   :  { %489 = vrot.lane.b32.xlu2 %v7817_v20, %s7035_s16 }
 0x1dc   :  { %586 = vrot.lane.b32.xlu1 %v830_v47, %s7036_s10  ;;  %v478_v24 = vpop.permute.xlu0 %477 }
 0x1dd   :  { %v966_v63 = vpop.permute.xlu2 %965  ;;  %517 = vst.msk [vmem:[#allocation3 + $0x90] sm:$0xff] %vm11451_vm4, %v478_v24  ;;  %v1115_v4 = vld [vmem:[#allocation3 + $0x80] sm:$0xff] }
 0x1de   :  { %v383_v3 = vpop.permute.xlu1 %382  ;;  %614 = vst.msk [vmem:[#allocation3 + $0x90] sm:$0xff] %vm11450_vm5, %v575_v34  ;;  %6726 = vmatmul.msk.f32.vlgmr.msra.gmra.mxu2 %vm11444_vm11, %v1115_v4 }
 0x1df   :  { %711 = vst.msk [vmem:[#allocation3 + $0x90] sm:$0xff] %vm11449_vm6, %v672_v53  ;;  %v1206_v53 = vpop.f32.mrf.mxu0 }
 0x1e0   :  { %421 = vst.msk [vmem:[#allocation3 + $0xa0] sm:$0xff] %vm11452_vm3, %v383_v3 }
 0x1e1   :  { %518 = vst.msk [vmem:[#allocation3 + $0xa0] sm:$0xff] %vm11451_vm4, %v480_v57  ;;  %v7939_v57 = vld [vmem:[%s11441_s7] ss:$0 sm:$0xff] }
 0x1e2   :  { %392 = vrot.lane.b32.xlu0 %v7815_v8, %s7034_s15  ;;  %v7945_v59 = vadd.f32 %v7939_v57, %v1200_v46 }
 0x1e3   :  { %683 = vrot.lane.b32.xlu2 %v927_v2, %s7038_s12 }
 0x1e4   :  { %878 = vrot.lane.b32.xlu1 %v831_v6, %s7039_s13  ;;  %v769_v12 = vpop.permute.xlu0 %768 }
 0x1e5   :  { %v385_v14 = vpop.permute.xlu2 %384  ;;  %808 = vst.msk [vmem:[#allocation3 + $0x90] sm:$0xff] %vm11448_vm7, %v769_v12  ;;  %v1248_v12 = vsel %vm11457_vm2, %v7945_v59, 0.0 }
 0x1e6   :  { %v674_v56 = vpop.permute.xlu1 %673  ;;  %906 = vst.msk [vmem:[#allocation3 + $0x90] sm:$0xff] %vm11447_vm8, %v867_v1 }
 0x1e7   :  { %1003 = vst.msk [vmem:[#allocation3 + $0x90] sm:$0xff] %vm11446_vm9, %v964_v37 }
 0x1e8   :  { %422 = vst.msk [vmem:[#allocation3 + $0xb0] sm:$0xff] %vm11452_vm3, %v385_v14 }
 0x1ea   :  { %1066 = vrot.lane.b32.xlu0 %v7796_v17, %s7040_s14  ;;  %v1025_v17 = vld [vmem:[#allocation2 + $0x132] sm:$0xff] }
 0x1eb   :  { %975 = vrot.lane.b32.xlu2 %v928_v26, %s7041_s17 }
 0x1ec   :  { %v1061_v32 = vpop.permute.xlu0 %1060 }
 0x1ed   :  { %v680_v9 = vpop.permute.xlu2 %679  ;;  %1100 = vst.msk [vmem:[#allocation3 + $0x90] sm:$0xff] %vm11445_vm10, %v1061_v32 }
 0x1ee   :  { %v389_v25 = vpop.permute.xlu1 %388 }
 0x1ef   :  { %424 = vst.msk [vmem:[#allocation3 + $0xd0] sm:$0xff] %vm11452_vm3, %v389_v25 }
 0x1f2   :  { %780 = vrot.lane.b32.xlu0 %v1024_v58, %s7037_s11  ;;  %v7942_v58 = vadd.f32 %v7939_v57, %v1203_v40  ;;  %v1215_v1 = vpop.f32.mrf.mxu1 }
 0x1f4   :  { %v577_v27 = vpop.permute.xlu0 %576  ;;  %v1116_v30 = vld [vmem:[#allocation3 + $0x90] sm:$0xff] }
 0x1f5   :  { %v676_v29 = vpop.permute.xlu2 %675  ;;  %615 = vst.msk [vmem:[#allocation3 + $0xa0] sm:$0xff] %vm11450_vm5, %v577_v27  ;;  %6727 = vmatmul.msk.f32.gmra.mxu2 %vm11444_vm11, %v1116_v30  ;;  %v7042_v27 = vmov 64.0  }
 0x1f6   :  { %v1063_v8 = vpop.permute.xlu1 %1062  ;;  %712 = vst.msk [vmem:[#allocation3 + $0xa0] sm:$0xff] %vm11449_vm6, %v674_v56  ;;  %6854 = vrcp.f32 %v7042_v27 }
 0x1f7   :  { %809 = vst.msk [vmem:[#allocation3 + $0xa0] sm:$0xff] %vm11448_vm7, %v771_v55  ;;  %v7948_v55 = vadd.f32 %v7939_v57, %v1206_v53 }
 0x1f9   :  { %v1251_v14 = vsel %vm11457_vm2, %v7948_v55, 0.0 }
 0x1fa   :  { %1072 = vrot.lane.b32.xlu0 %v1025_v17, %s7040_s14 }
 0x1fc   :  { %v869_v20 = vpop.permute.xlu0 %868 }
 0x1fd   :  { %v972_v42 = vpop.permute.xlu2 %971  ;;  %907 = vst.msk [vmem:[#allocation3 + $0xa0] sm:$0xff] %vm11447_vm8, %v869_v20  ;;  %v1216_v20 = vadd.f32 %v7939_v57, %v1215_v1 }
 0x1fe   :  { %v482_v48 = vpop.permute.xlu1 %481  ;;  %1004 = vst.msk [vmem:[#allocation3 + $0xa0] sm:$0xff] %vm11446_vm9, %v966_v63  ;;  %v1249_v63 = vsel %vm11457_vm2, %v7942_v58, 0.0 }
 0x1ff   :  { %1101 = vst.msk [vmem:[#allocation3 + $0xa0] sm:$0xff] %vm11445_vm10, %v1063_v8  ;;  %v1250_v32 = vadd.f32 %v1249_v63, %v1248_v12 }
 0x200   :  { %519 = vst.msk [vmem:[#allocation3 + $0xb0] sm:$0xff] %vm11451_vm4, %v482_v48 }
 0x201   :  { %v1252_v26 = vadd.f32 %v1251_v14, %v1250_v32 }
 0x202   :  { %v1209_v7 = vpop.f32.mrf.mxu0 }
 0x203   :  { %v7953_v3 = vadd.f32 %v7939_v57, %v1209_v7 }
 0x204   :  { %v486_v52 = vpop.permute.xlu0 %485 }
 0x205   :  { %v391_v18 = vpop.permute.xlu2 %390  ;;  %521 = vst.msk [vmem:[#allocation3 + $0xd0] sm:$0xff] %vm11451_vm4, %v486_v52  ;;  %v6855_v52 = vpop.eup %6854 }
 0x206   :  { %v777_v15 = vpop.permute.xlu1 %776  ;;  %425 = vst.msk [vmem:[#allocation3 + $0xe0] sm:$0xff] %vm11452_vm3, %v391_v18  ;;  %v1117_v35 = vld [vmem:[#allocation3 + $0xa0] sm:$0xff]  ;;  %v1257_v18 = vsel %vm11457_vm2, %v1216_v20, 0.0  ;;  %vm1295_vm12 = vweird.f32 %v6855_v52 }
 0x207   :  { %6728 = vmatmul.msk.f32.gmra.mxu2 %vm11444_vm11, %v1117_v35 }
 0x20c   :  { %v583_v0 = vpop.permute.xlu0 %582 }
 0x20d   :  { %618 = vst.msk [vmem:[#allocation3 + $0xd0] sm:$0xff] %vm11450_vm5, %v583_v0  ;;  %v1065_v10 = vpop.permute.xlu2 %1064 }
 0x20e   :  { %v773_v19 = vpop.permute.xlu1 %772  ;;  %715 = vst.msk [vmem:[#allocation3 + $0xd0] sm:$0xff] %vm11449_vm6, %v680_v9  ;;  %v1253_v9 = vsel %vm11457_vm2, %v7953_v3, 0.0 }
 0x20f   :  { %812 = vst.msk [vmem:[#allocation3 + $0xd0] sm:$0xff] %vm11448_vm7, %v777_v15  ;;  %v1254_v30 = vadd.f32 %v1253_v9, %v1252_v26 }
 0x214   :  { %v579_v60 = vpop.permute.xlu0 %578 }
 0x215   :  { %616 = vst.msk [vmem:[#allocation3 + $0xb0] sm:$0xff] %vm11450_vm5, %v579_v60  ;;  %v484_v47 = vpop.permute.xlu2 %483 }
 0x216   :  { %v1069_v36 = vpop.permute.xlu1 %1068  ;;  %713 = vst.msk [vmem:[#allocation3 + $0xb0] sm:$0xff] %vm11449_vm6, %v676_v29 }
 0x217   :  { %810 = vst.msk [vmem:[#allocation3 + $0xb0] sm:$0xff] %vm11448_vm7, %v773_v19  ;;  %v1291_v19 = vmul.f32 64.0, %v6855_v52 }
 0x21c   :  { %v875_v41 = vpop.permute.xlu0 %874 }
 0x21d   :  { %910 = vst.msk [vmem:[#allocation3 + $0xd0] sm:$0xff] %vm11447_vm8, %v875_v41  ;;  %v779_v34 = vpop.permute.xlu2 %778 }
 0x21e   :  { %v488_v21 = vpop.permute.xlu1 %487  ;;  %1007 = vst.msk [vmem:[#allocation3 + $0xd0] sm:$0xff] %vm11446_vm9, %v972_v42 }
 0x21f   :  { %1104 = vst.msk [vmem:[#allocation3 + $0xd0] sm:$0xff] %vm11445_vm10, %v1069_v36 }
 0x220   :  { %522 = vst.msk [vmem:[#allocation3 + $0xe0] sm:$0xff] %vm11451_vm4, %v488_v21  ;;  %v1292_v21 = vsub.f32 1.0, %v1291_v19 }
 0x223   :  { %v1218_v8 = vpop.f32.mrf.mxu1 }
 0x224   :  { %v871_v23 = vpop.permute.xlu0 %870  ;;  %v1219_v15 = vadd.f32 %v7939_v57, %v1218_v8 }
 0x225   :  { %908 = vst.msk [vmem:[#allocation3 + $0xb0] sm:$0xff] %vm11447_vm8, %v871_v23  ;;  %v775_v25 = vpop.permute.xlu2 %774 }
 0x226   :  { %v585_v61 = vpop.permute.xlu1 %584  ;;  %v1120_v37 = vld [vmem:[#allocation3 + $0xd0] sm:$0xff]  ;;  %v1259_v36 = vsel %vm11457_vm2, %v1219_v15, 0.0 }
 0x227   :  { %619 = vst.msk [vmem:[#allocation3 + $0xe0] sm:$0xff] %vm11450_vm5, %v585_v61  ;;  %6731 = vmatmul.msk.f32.vlgmr.msra.gmra.mxu3 %vm11444_vm11, %v1120_v37  ;;  %v1293_v61 = vmul.f32 %v6855_v52, %v1292_v21 }
 0x22c   :  { %v968_v50 = vpop.permute.xlu0 %967 }
 0x22d   :  { %1005 = vst.msk [vmem:[#allocation3 + $0xb0] sm:$0xff] %vm11446_vm9, %v968_v50  ;;  %v1071_v0 = vpop.permute.xlu2 %1070 }
 0x22e   :  { %v581_v51 = vpop.permute.xlu1 %580  ;;  %1102 = vst.msk [vmem:[#allocation3 + $0xb0] sm:$0xff] %vm11445_vm10, %v1065_v10 }
 0x232   :  { %v1212_v2 = vpop.f32.mrf.mxu0 }
 0x233   :  { %v7963_v56 = vadd.f32 %v7939_v57, %v1212_v2 }
 0x234   :  { %v387_v24 = vpop.permute.xlu0 %386 }
 0x235   :  { %423 = vst.msk [vmem:[#allocation3 + $0xc0] sm:$0xff] %vm11452_vm3, %v387_v24  ;;  %v1118_v6 = vld [vmem:[#allocation3 + $0xb0] sm:$0xff]  ;;  %v1255_v29 = vsel %vm11457_vm2, %v7963_v56, 0.0  ;;  %v490_v50 = vpop.permute.xlu2 %489 }
 0x236   :  { %v877_v4 = vpop.permute.xlu1 %876  ;;  %520 = vst.msk [vmem:[#allocation3 + $0xc0] sm:$0xff] %vm11451_vm4, %v484_v47  ;;  %6729 = vmatmul.msk.f32.gmra.mxu2 %vm11444_vm11, %v1118_v6  ;;  %v1256_v48 = vadd.f32 %v1255_v29, %v1254_v30 }
 0x237   :  { %617 = vst.msk [vmem:[#allocation3 + $0xc0] sm:$0xff] %vm11450_vm5, %v581_v51 }
 0x238   :  { %v1258_v35 = vadd.f32 %v1257_v18, %v1256_v48 }
 0x23a   :  { %v1260_v40 = vadd.f32 %v1259_v36, %v1258_v35 }
 0x23c   :  { %v682_v17 = vpop.permute.xlu0 %681 }
 0x23d   :  { %716 = vst.msk [vmem:[#allocation3 + $0xe0] sm:$0xff] %vm11449_vm6, %v682_v17  ;;  %v684_v32 = vpop.permute.xlu2 %683 }
 0x23e   :  { %v873_v42 = vpop.permute.xlu1 %872  ;;  %813 = vst.msk [vmem:[#allocation3 + $0xe0] sm:$0xff] %vm11448_vm7, %v779_v34  ;;  %v1294_v34 = vadd.f32 %v6855_v52, %v1293_v61 }
 0x23f   :  { %911 = vst.msk [vmem:[#allocation3 + $0xe0] sm:$0xff] %vm11447_vm8, %v877_v4 }
 0x240   :  { %v7985_v24 = vsel %vm1295_vm12, %v6855_v52, %v1294_v34 }
 0x244   :  { %v678_v46 = vpop.permute.xlu0 %677  ;;  %v1221_v60 = vpop.f32.mrf.mxu1 }
 0x245   :  { %714 = vst.msk [vmem:[#allocation3 + $0xc0] sm:$0xff] %vm11449_vm6, %v678_v46  ;;  %v1222_v10 = vadd.f32 %v7939_v57, %v1221_v60 }
 0x246   :  { %811 = vst.msk [vmem:[#allocation3 + $0xc0] sm:$0xff] %vm11448_vm7, %v775_v25  ;;  %v970_v53 = vpop.permute.xlu1 %969 }
 0x247   :  { %909 = vst.msk [vmem:[#allocation3 + $0xc0] sm:$0xff] %vm11447_vm8, %v873_v42  ;;  %v1261_v41 = vsel %vm11457_vm2, %v1222_v10, 0.0 }
 0x248   :  { %v1262_v23 = vadd.f32 %v1261_v41, %v1260_v40  ;;  %1006 = vst.msk [vmem:[#allocation3 + $0xc0] sm:$0xff] %vm11446_vm9, %v970_v53 }
 0x24a   :  { %v1263_v47 = vrot.slane %v1262_v23, 4 }
 0x24c   :  { %v1264_v37 = vadd.f32 %v1263_v47, %v1262_v23  ;;  %v974_v7 = vpop.permute.xlu0 %973  ;;  %v976_v47 = vpop.permute.xlu2 %975 }
 0x24d   :  { %1008 = vst.msk [vmem:[#allocation3 + $0xe0] sm:$0xff] %vm11446_vm9, %v974_v7 }
 0x24e   :  { %v1265_v51 = vrot.slane %v1264_v37, 2  ;;  %1105 = vst.msk [vmem:[#allocation3 + $0xe0] sm:$0xff] %vm11445_vm10, %v1071_v0  ;;  %v587_v14 = vpop.permute.xlu1 %586 }
 0x250   :  { %v1266_v1 = vadd.f32 %v1265_v51, %v1264_v37 }
 0x252   :  { %v1267_v2 = vrot.slane %v1266_v1, 1 }
 0x254   :  { %v1268_v63 = vadd.f32 %v1267_v2, %v1266_v1  ;;  %v393_v4 = vpop.permute.xlu0 %392 }
 0x255   :  { %426 = vst.msk [vmem:[#allocation3 + $0xf0] sm:$0xff] %vm11452_vm3, %v393_v4  ;;  %v1121_v6 = vld [vmem:[#allocation3 + $0xe0] sm:$0xff] }
 0x256   :  { %v1297_v12 = vmul.f32 %v7985_v24, %v1268_v63  ;;  %523 = vst.msk [vmem:[#allocation3 + $0xf0] sm:$0xff] %vm11451_vm4, %v490_v50  ;;  %6732 = vmatmul.msk.f32.gmra.mxu3 %vm11444_vm11, %v1121_v6  ;;  %v879_v41 = vpop.permute.xlu1 %878 }
 0x257   :  { %620 = vst.msk [vmem:[#allocation3 + $0xf0] sm:$0xff] %vm11450_vm5, %v587_v14 }
 0x258   :  { %v7993_v9 = vsub.f32 %v7945_v59, %v1297_v12  ;;  %v7996_v25 = vsub.f32 %v7942_v58, %v1297_v12  ;;  %v7999_v26 = vsub.f32 %v7948_v55, %v1297_v12  ;;  %v8002_v27 = vsub.f32 %v7953_v3, %v1297_v12  ;;  %717 = vst.msk [vmem:[#allocation3 + $0xf0] sm:$0xff] %vm11449_vm6, %v684_v32 }
 0x259   :  { %v8006_v29 = vsub.f32 %v7963_v56, %v1297_v12  ;;  %v8014_v8 = vsub.f32 %v1216_v20, %v1297_v12  ;;  %v1307_v48 = vsub.f32 %v1219_v15, %v1297_v12  ;;  %v1308_v20 = vsub.f32 %v1222_v10, %v1297_v12 }
 0x25a   :  { %v1317_v30 = vmul.f32 %v7993_v9, %v7993_v9  ;;  %v1318_v59 = vmul.f32 %v7996_v25, %v7996_v25  ;;  %v1319_v58 = vmul.f32 %v7999_v26, %v7999_v26  ;;  %v1320_v55 = vmul.f32 %v8002_v27, %v8002_v27 }
 0x25b   :  { %v1321_v52 = vmul.f32 %v8006_v29, %v8006_v29  ;;  %v1322_v0 = vmul.f32 %v8014_v8, %v8014_v8  ;;  %v1323_v60 = vmul.f32 %v1307_v48, %v1307_v48  ;;  %v1324_v21 = vmul.f32 %v1308_v20, %v1308_v20 }
 0x25c   :  { %v1333_v3 = vsel %vm11457_vm2, %v1317_v30, 0.0  ;;  %v1334_v17 = vsel %vm11457_vm2, %v1318_v59, 0.0  ;;  %v1067_v56 = vpop.permute.xlu0 %1066  ;;  %v1336_v18 = vsel %vm11457_vm2, %v1319_v58, 0.0  ;;  %v1338_v19 = vsel %vm11457_vm2, %v1320_v55, 0.0 }
 0x25d   :  { %v1335_v42 = vadd.f32 %v1334_v17, %v1333_v3  ;;  %1103 = vst.msk [vmem:[#allocation3 + $0xc0] sm:$0xff] %vm11445_vm10, %v1067_v56  ;;  %v1340_v36 = vsel %vm11457_vm2, %v1321_v52, 0.0  ;;  %v1342_v15 = vsel %vm11457_vm2, %v1322_v0, 0.0  ;;  %v1344_v10 = vsel %vm11457_vm2, %v1323_v60, 0.0  ;;  %v8041_v56 = vld [vmem:[%s11441_s7 + $0x1] ss:$0 sm:$0xff] }
 0x25e   :  { %v1346_v7 = vsel %vm11457_vm2, %v1324_v21, 0.0 }
 0x25f   :  { %v1337_v35 = vadd.f32 %v1336_v18, %v1335_v42 }
 0x261   :  { %v1339_v46 = vadd.f32 %v1338_v19, %v1337_v35  ;;  %v8050_v19 = vld [vmem:[%s11441_s7 + $0x2] ss:$0 sm:$0xff] }
 0x263   :  { %v1341_v40 = vadd.f32 %v1340_v36, %v1339_v46 }
 0x264   :  { %v781_v53 = vpop.permute.xlu0 %780  ;;  %v1119_v23 = vld [vmem:[#allocation3 + $0xc0] sm:$0xff] }
 0x265   :  { %v1343_v61 = vadd.f32 %v1342_v15, %v1341_v40  ;;  %814 = vst.msk [vmem:[#allocation3 + $0xf0] sm:$0xff] %vm11448_vm7, %v781_v53  ;;  %6730 = vmatmul.msk.f32.gmra.mxu2 %vm11444_vm11, %v1119_v23 }
 0x266   :  { %912 = vst.msk [vmem:[#allocation3 + $0xf0] sm:$0xff] %vm11447_vm8, %v879_v41 }
 0x267   :  { %v1345_v37 = vadd.f32 %v1344_v10, %v1343_v61  ;;  %1009 = vst.msk [vmem:[#allocation3 + $0xf0] sm:$0xff] %vm11446_vm9, %v976_v47 }
 0x269   :  { %v1347_v50 = vadd.f32 %v1346_v7, %v1345_v37 }
 0x26b   :  { %v1348_v51 = vrot.slane %v1347_v50, 4 }
 0x26c   :  { %v1073_v34 = vpop.permute.xlu0 %1072 }
 0x26d   :  { %v1349_v1 = vadd.f32 %v1348_v51, %v1347_v50  ;;  %1106 = vst.msk [vmem:[#allocation3 + $0xf0] sm:$0xff] %vm11445_vm10, %v1073_v34 }
 0x26f   :  { %v1350_v2 = vrot.slane %v1349_v1, 2 }
 0x271   :  { %v1351_v63 = vadd.f32 %v1350_v2, %v1349_v1 }
 0x273   :  { %v1352_v4 = vrot.slane %v1351_v63, 1 }
 0x274   :  { %v1122_v6 = vld [vmem:[#allocation3 + $0xf0] sm:$0xff] }
 0x275   :  { %v1353_v12 = vadd.f32 %v1352_v4, %v1351_v63  ;;  %6733 = vmatmul.msk.f32.gmra.mxu3 %vm11444_vm11, %v1122_v6 }
 0x277   :  { %v1375_v14 = vmul.f32 %v1353_v12, %v7985_v24 }
 0x279   :  { %v1379_v32 = vadd.f32 1e-05, %v1375_v14 }
 0x27b   :  { %6856 = vrsqrt.f32 %v1379_v32  ;;  %vm1387_vm14 = vweird.f32 %v1379_v32 }
 0x281   :  { %v6857_v30 = vpop.eup %6856 }
 0x282   :  { %v1382_v59 = vmul.f32 %v6857_v30, %v1379_v32  ;;  %vm1388_vm13 = vweird.f32 %v6857_v30 }
 0x283   :  { %vm1389_vm15 = vmor %vm1387_vm14, %vm1388_vm13 }
 0x284   :  { %v1383_v58 = vmul.f32 %v6857_v30, %v1382_v59 }
 0x286   :  { %v1384_v55 = vmul.f32 0.5, %v1383_v58 }
 0x288   :  { %v1385_v3 = vsub.f32 1.5, %v1384_v55 }
 0x28a   :  { %v1386_v17 = vmul.f32 %v6857_v30, %v1385_v3 }
 0x28c   :  { %v1390_v42 = vsel %vm1389_vm15, %v6857_v30, %v1386_v17 }
 0x28d   :  { %v1401_v52 = vmul.f32 %v1390_v42, %v7993_v9  ;;  %v1402_v18 = vmul.f32 %v1390_v42, %v7996_v25  ;;  %v1403_v35 = vmul.f32 %v1390_v42, %v7999_v26  ;;  %v1404_v0 = vmul.f32 %v1390_v42, %v8002_v27 }
 0x28e   :  { %v1405_v46 = vmul.f32 %v1390_v42, %v8006_v29  ;;  %v1406_v60 = vmul.f32 %v1390_v42, %v8014_v8  ;;  %v1407_v36 = vmul.f32 %v1390_v42, %v1307_v48  ;;  %v1408_v40 = vmul.f32 %v1390_v42, %v1308_v20 }
 0x28f   :  { %v1419_v41 = vmul.f32 %v8041_v56, %v1401_v52  ;;  %v1420_v9 = vmul.f32 %v8041_v56, %v1402_v18  ;;  %v1421_v25 = vmul.f32 %v8041_v56, %v1403_v35  ;;  %v1422_v26 = vmul.f32 %v8041_v56, %v1404_v0 }
 0x290   :  { %v1423_v27 = vmul.f32 %v8041_v56, %v1405_v46  ;;  %v1424_v21 = vmul.f32 %v8041_v56, %v1406_v60  ;;  %v1425_v15 = vmul.f32 %v8041_v56, %v1407_v36  ;;  %v1426_v29 = vmul.f32 %v8041_v56, %v1408_v40 }
 0x291   :  { %v8063_v8 = vadd.f32 %v8050_v19, %v1419_v41  ;;  %v8066_v48 = vadd.f32 %v8050_v19, %v1420_v9  ;;  %v8069_v20 = vadd.f32 %v8050_v19, %v1421_v25  ;;  %v8072_v53 = vadd.f32 %v8050_v19, %v1422_v26 }
 0x292   :  { %v8075_v23 = vadd.f32 %v8050_v19, %v1423_v27  ;;  %v8078_v47 = vadd.f32 %v8050_v19, %v1424_v21  ;;  %v8081_v61 = vadd.f32 %v8050_v19, %v1425_v15  ;;  %v8084_v10 = vadd.f32 %v8050_v19, %v1426_v29 }
 0x293   :  { %v1453_v37 = vsub.f32 0.0, %v8063_v8  ;;  %v1454_v7 = vsub.f32 0.0, %v8066_v48  ;;  %v1455_v50 = vsub.f32 0.0, %v8069_v20  ;;  %v1456_v51 = vsub.f32 0.0, %v8072_v53 }
 0x294   :  { %v1457_v34 = vsub.f32 0.0, %v8075_v23  ;;  %v1458_v1 = vsub.f32 0.0, %v8078_v47  ;;  %v1459_v6 = vsub.f32 0.0, %v8081_v61  ;;  %v1460_v14 = vsub.f32 0.0, %v8084_v10 }
 0x295   :  { %v1469_v2 = vmul.f32 1.442695, %v1453_v37  ;;  %v1471_v63 = vmul.f32 1.442695, %v1454_v7  ;;  %v1473_v4 = vmul.f32 1.442695, %v1455_v50 }
 0x296   :  { %v1475_v12 = vmul.f32 1.442695, %v1456_v51  ;;  %v1477_v32 = vmul.f32 1.442695, %v1457_v34  ;;  %v1479_v30 = vmul.f32 1.442695, %v1458_v1 }
 0x297   :  { %6858 = vpow2.f32 %v1469_v2  ;;  %v1481_v59 = vmul.f32 1.442695, %v1459_v6  ;;  %v1483_v58 = vmul.f32 1.442695, %v1460_v14  ;;  %v1917_v51 = vld [vmem:[#allocation2 + $0x2] sm:$0xff] }
 0x298   :  { %6860 = vpow2.f32 %v1471_v63  ;;  %v1821_v34 = vld [vmem:[#allocation2 + $0x1] sm:$0xff]  ;;  %1949 = vrot.lane.b32.xlu2 %v1917_v51, %s7035_s16 }
 0x299   :  { %6862 = vpow2.f32 %v1473_v4  ;;  %1853 = vrot.lane.b32.xlu1 %v1821_v34, %s7034_s15 }
 0x29a   :  { %6864 = vpow2.f32 %v1475_v12 }
 0x29b   :  { %6866 = vpow2.f32 %v1477_v32 }
 0x29c   :  { %6868 = vpow2.f32 %v1479_v30 }
 0x29d   :  { %v6859_v55 = vpop.eup %6858  ;;  %6870 = vpow2.f32 %v1481_v59 }
 0x29e   :  { %v6861_v3 = vpop.eup %6860  ;;  %v8094_v17 = vadd.f32 1.0, %v6859_v55  ;;  %6872 = vpow2.f32 %v1483_v58 }
 0x29f   :  { %v6863_v42 = vpop.eup %6862  ;;  %v8096_v52 = vadd.f32 1.0, %v6861_v3 }
 0x2a0   :  { %v6865_v18 = vpop.eup %6864  ;;  %v8098_v35 = vadd.f32 1.0, %v6863_v42  ;;  %6874 = vrcp.f32 %v8094_v17  ;;  %v1528_v40 = vand.u32 2147483648, %v8094_v17  ;;  %vm1522_vm1 = vweird.f32 %v8094_v17 }
 0x2a1   :  { %v6867_v0 = vpop.eup %6866  ;;  %v8101_v46 = vadd.f32 1.0, %v6865_v18  ;;  %6876 = vrcp.f32 %v8096_v52  ;;  %v1543_v9 = vand.u32 2147483648, %v8096_v52  ;;  %v1526_v21 = vand.u32 2147483647, %v8094_v17 }
 0x2a2   :  { %v6869_v60 = vpop.eup %6868  ;;  %v8104_v36 = vadd.f32 1.0, %v6867_v0  ;;  %6878 = vrcp.f32 %v8098_v35  ;;  %v8121_v37 = vor.u32 1.1754944e-38, %v1528_v40  ;;  %vm1537_vm12 = vweird.f32 %v8096_v52 }
 0x2a3   :  { %v6871_v41 = vpop.eup %6870  ;;  %v8109_v26 = vadd.f32 1.0, %v6869_v60  ;;  %6880 = vrcp.f32 %v8101_v46  ;;  %v1541_v7 = vand.u32 2147483647, %v8096_v52  ;;  %v1558_v50 = vand.u32 2147483648, %v8098_v35 }
 0x2a4   :  { %v6873_v25 = vpop.eup %6872  ;;  %6882 = vrcp.f32 %v8104_v36  ;;  %v8126_v1 = vadd.f32 1.0, %v6871_v41  ;;  %v1544_v63 = vor.u32 1.1754944e-38, %v1543_v9  ;;  %vm1552_vm13 = vweird.f32 %v8098_v35 }
 0x2a5   :  { %v1556_v4 = vand.u32 2147483647, %v8098_v35  ;;  %v8136_v12 = vadd.f32 1.0, %v6873_v25  ;;  %v1571_v32 = vand.u32 2147483647, %v8101_v46  ;;  %6884 = vrcp.f32 %v8109_v26 }
 0x2a6   :  { %v8112_v27 = vpop.eup %6874  ;;  %vm8141_vm15 = vcmp.eq.f32.partialorder %v1526_v21, 8.507059e+37  ;;  %vm1567_vm0 = vweird.f32 %v8101_v46  ;;  %v1573_v55 = vand.u32 2147483648, %v8101_v46  ;;  %vm8150_vm11 = vcmp.eq.f32.partialorder %v1541_v7, 8.507059e+37 }
 0x2a7   :  { %v8117_v15 = vpop.eup %6876  ;;  %v1518_v29 = vmul.f32 %v8112_v27, %v8094_v17  ;;  %vm1523_vm14 = vweird.f32 %v8112_v27  ;;  %v1559_v0 = vor.u32 1.1754944e-38, %v1558_v50  ;;  %vm1582_vm10 = vweird.f32 %v8104_v36 }
 0x2a8   :  { %v1533_v2 = vmul.f32 %v8117_v15, %v8096_v52  ;;  %v8134_v6 = vpop.eup %6878  ;;  %v1586_v60 = vand.u32 2147483647, %v8104_v36  ;;  %vm1538_vm9 = vweird.f32 %v8117_v15  ;;  %vm8158_vm8 = vcmp.eq.f32.partialorder %v1556_v4, 8.507059e+37  ;;  %vm8177_vm5 = vmor %vm1522_vm1, %vm1523_vm14 }
 0x2a9   :  { %v1519_v14 = vsub.f32 1.0, %v1518_v29  ;;  %v1548_v58 = vmul.f32 %v8134_v6, %v8098_v35  ;;  %v6881_v3 = vpop.eup %6880  ;;  %vm8164_vm7 = vcmp.eq.f32.partialorder %v1571_v32, 8.507059e+37  ;;  %v1588_v51 = vand.u32 2147483648, %v8104_v36  ;;  %vm8193_vm1 = vmor %vm1537_vm12, %vm1538_vm9 }
 0x2aa   :  { %v1534_v59 = vsub.f32 1.0, %v1533_v2  ;;  %v6883_v40 = vpop.eup %6882  ;;  %v1563_v21 = vmul.f32 %v6881_v3, %v8101_v46  ;;  %vm1553_vm6 = vweird.f32 %v8134_v6  ;;  %vm8181_vm4 = vcmp.eq.f32.partialorder %v1586_v60, 8.507059e+37 }
 0x2ab   :  { %v1520_v42 = vmul.f32 %v8112_v27, %v1519_v14  ;;  %v1549_v9 = vsub.f32 1.0, %v1548_v58  ;;  %v1578_v50 = vmul.f32 %v6883_v40, %v8104_v36  ;;  %v6885_v14 = vpop.eup %6884  ;;  %6886 = vrcp.f32 %v8126_v1  ;;  %vm8203_vm3 = vmor %vm1552_vm13, %vm1553_vm6 }
 0x2ac   :  { %v1535_v41 = vmul.f32 %v8117_v15, %v1534_v59  ;;  %v1564_v4 = vsub.f32 1.0, %v1563_v21  ;;  %v1574_v59 = vor.u32 1.1754944e-38, %v1573_v55  ;;  %vm1568_vm14 = vweird.f32 %v6881_v3 }
 0x2ad   :  { %v1521_v29 = vadd.f32 %v8112_v27, %v1520_v42  ;;  %v1550_v2 = vmul.f32 %v8134_v6, %v1549_v9  ;;  %v1579_v58 = vsub.f32 1.0, %v1578_v50  ;;  %v1593_v52 = vmul.f32 %v6885_v14, %v8109_v26  ;;  %vm1569_vm6 = vmor %vm1567_vm0, %vm1568_vm14 }
 0x2ae   :  { %v1536_v34 = vadd.f32 %v8117_v15, %v1535_v41  ;;  %v1565_v60 = vmul.f32 %v6881_v3, %v1564_v4  ;;  %v1601_v4 = vand.u32 2147483647, %v8109_v26  ;;  %v1603_v32 = vand.u32 2147483648, %v8109_v26 }
 0x2af   :  { %v1525_v41 = vsel %vm8177_vm5, %v8112_v27, %v1521_v29  ;;  %v1551_v55 = vadd.f32 %v8134_v6, %v1550_v2  ;;  %v1580_v21 = vmul.f32 %v6883_v40, %v1579_v58  ;;  %vm1583_vm5 = vweird.f32 %v6883_v40 }
 0x2b0   :  { %v1540_v9 = vsel %vm8193_vm1, %v8117_v15, %v1536_v34  ;;  %v1566_v50 = vadd.f32 %v6881_v3, %v1565_v60  ;;  %v1589_v2 = vor.u32 1.1754944e-38, %v1588_v51  ;;  %v1530_v35 = vsel %vm8141_vm15, %v8121_v37, %v1525_v41 }
 0x2b1   :  { %v1555_v29 = vsel %vm8203_vm3, %v8134_v6, %v1551_v55  ;;  %v1581_v15 = vadd.f32 %v6883_v40, %v1580_v21  ;;  %v1594_v34 = vsub.f32 1.0, %v1593_v52  ;;  %v1545_v58 = vsel %vm8150_vm11, %v1544_v63, %v1540_v9  ;;  %vm1584_vm3 = vmor %vm1582_vm10, %vm1583_vm5  ;;  %v6887_v6 = vpop.eup %6886 }
 0x2b2   :  { %v1570_v17 = vsel %vm1569_vm6, %v6881_v3, %v1566_v50  ;;  %vm1598_vm9 = vweird.f32 %v6885_v14  ;;  %6888 = vrcp.f32 %v8136_v12  ;;  %v1560_v37 = vsel %vm8158_vm8, %v1559_v0, %v1555_v29 }
 0x2b3   :  { %v1575_v46 = vsel %vm8164_vm7, %v1574_v59, %v1570_v17  ;;  %v1585_v30 = vsel %vm1584_vm3, %v6883_v40, %v1581_v15  ;;  %v1595_v51 = vmul.f32 %v6885_v14, %v1594_v34  ;;  %v1608_v63 = vmul.f32 %v6887_v6, %v8126_v1 }
 0x2b4   :  { %v1590_v18 = vsel %vm8181_vm4, %v1589_v2, %v1585_v30  ;;  %vm1597_vm0 = vweird.f32 %v8109_v26  ;;  %v1757_v36 = vmul.f32 %v1530_v35, %v8063_v8  ;;  %v1758_v41 = vmul.f32 %v1545_v58, %v8066_v48 }
 0x2b5   :  { %v1596_v3 = vadd.f32 %v6885_v14, %v1595_v51  ;;  %vm1599_vm10 = vmor %vm1597_vm0, %vm1598_vm9  ;;  %v1604_v25 = vor.u32 1.1754944e-38, %v1603_v32  ;;  %v1609_v0 = vsub.f32 1.0, %v1608_v63  ;;  %v1759_v7 = vmul.f32 %v1560_v37, %v8069_v20 }
 0x2b6   :  { %v1760_v40 = vmul.f32 %v1575_v46, %v8072_v53  ;;  %vm1602_vm7 = vcmp.eq.f32.partialorder %v1601_v4, 8.507059e+37  ;;  %v1618_v42 = vand.u32 2147483648, %v8126_v1  ;;  %v1761_v55 = vmul.f32 %v1590_v18, %v8075_v23  ;;  %1773 = vst.msk [vmem:[#allocation2 + $0x11] sm:$0xff] %vm11457_vm2, %v1757_v36  ;;  %v1224_v46 = vpop.f32.mrf.mxu2 }
 0x2b7   :  { %v1600_v59 = vsel %vm1599_vm10, %v6885_v14, %v1596_v3  ;;  %v1610_v8 = vmul.f32 %v6887_v6, %v1609_v0  ;;  %vm1613_vm4 = vweird.f32 %v6887_v6  ;;  %v1616_v48 = vand.u32 2147483647, %v8126_v1  ;;  %1774 = vst.msk [vmem:[#allocation2 + $0x21] sm:$0xff] %vm11457_vm2, %v1758_v41 }
 0x2b8   :  { %v6889_v26 = vpop.eup %6888  ;;  %v1605_v60 = vsel %vm1602_vm7, %v1604_v25, %v1600_v59  ;;  %1775 = vst.msk [vmem:[#allocation2 + $0x31] sm:$0xff] %vm11457_vm2, %v1759_v7  ;;  %vm1612_vm8 = vweird.f32 %v8126_v1  ;;  %v1619_v23 = vor.u32 1.1754944e-38, %v1618_v42  ;;  %v1633_v21 = vand.u32 2147483648, %v8136_v12 }
 0x2b9   :  { %v1623_v20 = vmul.f32 %v6889_v26, %v8136_v12  ;;  %v1762_v53 = vmul.f32 %v1605_v60, %v8078_v47  ;;  %v1611_v14 = vadd.f32 %v6887_v6, %v1610_v8  ;;  %1776 = vst.msk [vmem:[#allocation2 + $0x41] sm:$0xff] %vm11457_vm2, %v1760_v40  ;;  %vm1614_vm11 = vmor %vm1612_vm8, %vm1613_vm4  ;;  %vm1617_vm12 = vcmp.eq.f32.partialorder %v1616_v48, 8.507059e+37  ;;  %v1239_v40 = vpop.f32.mrf.mxu3 }
 0x2ba   :  { %1777 = vst.msk [vmem:[#allocation2 + $0x51] sm:$0xff] %vm11457_vm2, %v1761_v55  ;;  %vm1628_vm13 = vweird.f32 %v6889_v26  ;;  %v1631_v29 = vand.u32 2147483647, %v8136_v12  ;;  %vm1627_vm15 = vweird.f32 %v8136_v12  ;;  %v1634_v34 = vor.u32 1.1754944e-38, %v1633_v21 }
 0x2bb   :  { %v1624_v9 = vsub.f32 1.0, %v1623_v20  ;;  %v1615_v27 = vsel %vm1614_vm11, %v6887_v6, %v1611_v14  ;;  %1778 = vst.msk [vmem:[#allocation2 + $0x61] sm:$0xff] %vm11457_vm2, %v1762_v53  ;;  %vm1629_vm1 = vmor %vm1627_vm15, %vm1628_vm13  ;;  %v1225_v0 = vadd.f32 %v7939_v57, %v1224_v46  ;;  %v1240_v21 = vadd.f32 %v7939_v57, %v1239_v40 }
 0x2bc   :  { %v1620_v52 = vsel %vm1617_vm12, %v1619_v23, %v1615_v27  ;;  %vm1632_vm14 = vcmp.eq.f32.partialorder %v1631_v29, 8.507059e+37  ;;  %vm11487_vm5 = vcmask 130112   ;;  %vm11488_vm6 = vcmask 195712  }
 0x2bd   :  { %v1625_v47 = vmul.f32 %v6889_v26, %v1624_v9  ;;  %v1763_v1 = vmul.f32 %v1620_v52, %v8081_v61  ;;  %v2205_v50 = vld [vmem:[#allocation2 + $0x12] sm:$0xff]  ;;  %vm11489_vm3 = vcmask 261312   ;;  %vm11490_vm9 = vcmask 326912   ;;  %vm11492_vm7 = vmmov %vm11487_vm5 }
 0x2be   :  { %v2109_v2 = vld [vmem:[#allocation2 + $0x11] sm:$0xff]  ;;  %2237 = vrot.lane.b32.xlu2 %v2205_v50, %s7037_s11  ;;  %v2301_v15 = vld [vmem:[#allocation2 + $0x20] sm:$0xff]  ;;  %v1227_v18 = vpop.f32.mrf.mxu2  ;;  %vm11491_vm0 = vcmask 392512   ;;  %vm11493_vm4 = vcmask 458112   ;;  %vm11494_vm11 = vcmask 523712   ;;  %vm11495_vm13 = vcmask 589312   ;;  %vm11496_vm15 = vmmov %vm11487_vm5 }
 0x2bf   :  { %v2013_v4 = vld [vmem:[#allocation2 + $0x10] sm:$0xff]  ;;  %v1626_v35 = vadd.f32 %v6889_v26, %v1625_v47  ;;  %2141 = vrot.lane.b32.xlu1 %v2109_v2, %s7038_s12  ;;  %1779 = vst.msk [vmem:[#allocation2 + $0x71] sm:$0xff] %vm11457_vm2, %v1763_v1  ;;  %v2493_v30 = vld [vmem:[#allocation2 + $0x22] sm:$0xff]  ;;  %v1228_v25 = vadd.f32 %v7939_v57, %v1227_v18  ;;  %v1278_v47 = vsel %vm11457_vm2, %v1240_v21, 0.0 }
 0x2c0   :  { %1806 = vst.msk [vmem:[#allocation3 + $0x10] sm:$0xff] %vm11457_vm2, %v2013_v4  ;;  %2045 = vrot.lane.b32.xlu0 %v2013_v4, %s7036_s10  ;;  %v2302_v61 = vld [vmem:[#allocation2 + $0x30] sm:$0xff]  ;;  %v8256_v58 = vld [vmem:[#allocation2 + $0x40] sm:$0xff] }
 0x2c1   :  { %v1630_v32 = vsel %vm1629_vm1, %v6889_v26, %v1626_v35  ;;  %1807 = vst.msk [vmem:[#allocation3 + $0x20] sm:$0xff] %vm11457_vm2, %v2301_v15  ;;  %v8259_v17 = vld [vmem:[#allocation2 + $0x50] sm:$0xff]  ;;  %v2397_v51 = vld [vmem:[#allocation2 + $0x21] sm:$0xff]  ;;  %v1270_v42 = vsel %vm11457_vm2, %v1228_v25, 0.0  ;;  %v1269_v26 = vsel %vm11457_vm2, %v1225_v0, 0.0  ;;  %vm11497_vm1 = vmmov %vm11488_vm6 }
 0x2c2   :  { %v1635_v12 = vsel %vm1632_vm14, %v1634_v34, %v1630_v32  ;;  %1808 = vst.msk [vmem:[#allocation3 + $0x30] sm:$0xff] %vm11457_vm2, %v2302_v61  ;;  %v8263_v37 = vld [vmem:[#allocation2 + $0x60] sm:$0xff]  ;;  %v2494_v36 = vld [vmem:[#allocation2 + $0x32] sm:$0xff]  ;;  %v1271_v48 = vadd.f32 %v1270_v42, %v1269_v26  ;;  %vm11498_vm14 = vmmov %vm11489_vm3 }
 0x2c3   :  { %v1764_v6 = vmul.f32 %v1635_v12, %v8084_v10  ;;  %1810 = vst.msk [vmem:[#allocation3 + $0x50] sm:$0xff] %vm11457_vm2, %v8259_v17  ;;  %v2398_v41 = vld [vmem:[#allocation2 + $0x31] sm:$0xff]  ;;  %v2399_v27 = vld [vmem:[#allocation2 + $0x41] sm:$0xff] }
 0x2c4   :  { %1809 = vst.msk [vmem:[#allocation3 + $0x40] sm:$0xff] %vm11457_vm2, %v8256_v58  ;;  %v2495_v4 = vld [vmem:[#allocation2 + $0x42] sm:$0xff]  ;;  %v2400_v18 = vld [vmem:[#allocation2 + $0x51] sm:$0xff] }
 0x2c5   :  { %1780 = vst.msk [vmem:[#allocation2 + $0x81] sm:$0xff] %vm11457_vm2, %v1764_v6 }
 0x2c6   :  { %1811 = vst.msk [vmem:[#allocation3 + $0x60] sm:$0xff] %vm11457_vm2, %v8263_v37  ;;  %2525 = vrot.lane.b32.xlu2 %v2493_v30, %s7040_s14  ;;  %v8274_v10 = vld [vmem:[#allocation2 + $0x70] sm:$0xff]  ;;  %v1230_v63 = vpop.f32.mrf.mxu2 }
 0x2c7   :  { %2429 = vrot.lane.b32.xlu1 %v2397_v51, %s7041_s17  ;;  %1812 = vst.msk [vmem:[#allocation3 + $0x70] sm:$0xff] %vm11457_vm2, %v8274_v10  ;;  %v1231_v7 = vadd.f32 %v7939_v57, %v1230_v63 }
 0x2c8   :  { %2333 = vrot.lane.b32.xlu0 %v2301_v15, %s7039_s13 }
 0x2c9   :  { %v1272_v60 = vsel %vm11457_vm2, %v1231_v7, 0.0 }
 0x2ca   :  { %v1273_v53 = vadd.f32 %v1272_v60, %v1271_v48 }
 0x2ce   :  { %2047 = vrot.lane.b32.xlu2 %v2301_v15, %s7036_s10  ;;  %v1233_v3 = vpop.f32.mrf.mxu2 }
 0x2cf   :  { %1951 = vrot.lane.b32.xlu1 %v2205_v50, %s7035_s16  ;;  %v1234_v55 = vadd.f32 %v7939_v57, %v1233_v3 }
 0x2d0   :  { %1855 = vrot.lane.b32.xlu0 %v2109_v2, %s7034_s15 }
 0x2d1   :  { %v1274_v20 = vsel %vm11457_vm2, %v1234_v55, 0.0 }
 0x2d2   :  { %v1275_v23 = vadd.f32 %v1274_v20, %v1273_v53 }
 0x2d6   :  { %2335 = vrot.lane.b32.xlu2 %v2302_v61, %s7039_s13 }
 0x2d7   :  { %2239 = vrot.lane.b32.xlu1 %v2493_v30, %s7037_s11 }
 0x2d8   :  { %2143 = vrot.lane.b32.xlu0 %v2397_v51, %s7038_s12 }
 0x2d9   :  { %v1242_v9 = vpop.f32.mrf.mxu3 }
 0x2da   :  { %v1243_v29 = vadd.f32 %v7939_v57, %v1242_v9 }
 0x2dc   :  { %v1280_v2 = vsel %vm11457_vm2, %v1243_v29, 0.0 }
 0x2de   :  { %1857 = vrot.lane.b32.xlu2 %v2397_v51, %s7034_s15 }
 0x2df   :  { %2527 = vrot.lane.b32.xlu1 %v2494_v36, %s7040_s14 }
 0x2e0   :  { %2431 = vrot.lane.b32.xlu0 %v2398_v41, %s7041_s17 }
 0x2e6   :  { %2145 = vrot.lane.b32.xlu2 %v2398_v41, %s7038_s12 }
 0x2e7   :  { %2049 = vrot.lane.b32.xlu1 %v2302_v61, %s7036_s10 }
 0x2e8   :  { %v1236_v59 = vpop.f32.mrf.mxu2  ;;  %1953 = vrot.lane.b32.xlu0 %v2493_v30, %s7035_s16 }
 0x2e9   :  { %v1237_v8 = vadd.f32 %v7939_v57, %v1236_v59 }
 0x2eb   :  { %v1276_v14 = vsel %vm11457_vm2, %v1237_v8, 0.0 }
 0x2ec   :  { %v1277_v52 = vadd.f32 %v1276_v14, %v1275_v23 }
 0x2ee   :  { %2433 = vrot.lane.b32.xlu2 %v2399_v27, %s7041_s17  ;;  %v1279_v1 = vadd.f32 %v1278_v47, %v1277_v52 }
 0x2ef   :  { %2337 = vrot.lane.b32.xlu1 %v8256_v58, %s7039_s13 }
 0x2f0   :  { %2241 = vrot.lane.b32.xlu0 %v2494_v36, %s7037_s11  ;;  %v1281_v15 = vadd.f32 %v1280_v2, %v1279_v1 }
 0x2f6   :  { %1955 = vrot.lane.b32.xlu2 %v2494_v36, %s7035_s16 }
 0x2f7   :  { %1859 = vrot.lane.b32.xlu1 %v2398_v41, %s7034_s15 }
 0x2f8   :  { %v1245_v50 = vpop.f32.mrf.mxu3  ;;  %2529 = vrot.lane.b32.xlu0 %v2495_v4, %s7040_s14 }
 0x2f9   :  { %v1246_v35 = vadd.f32 %v7939_v57, %v1245_v50  ;;  %v8318_v57 = vld [vmem:[#allocation2 + $0x52] sm:$0xff] }
 0x2fb   :  { %v1282_v34 = vsel %vm11457_vm2, %v1246_v35, 0.0 }
 0x2fc   :  { %v1283_v61 = vadd.f32 %v1282_v34, %v1281_v15 }
 0x2fe   :  { %v1284_v32 = vrot.slane %v1283_v61, 4  ;;  %2243 = vrot.lane.b32.xlu2 %v2495_v4, %s7037_s11 }
 0x2ff   :  { %2147 = vrot.lane.b32.xlu1 %v2399_v27, %s7038_s12 }
 0x300   :  { %v1285_v12 = vadd.f32 %v1284_v32, %v1283_v61  ;;  %2051 = vrot.lane.b32.xlu0 %v8256_v58, %s7036_s10  ;;  %v2497_v32 = vld [vmem:[#allocation2 + $0x62] sm:$0xff] }
 0x302   :  { %v1286_v6 = vrot.slane %v1285_v12, 2 }
 0x304   :  { %v1287_v46 = vadd.f32 %v1286_v6, %v1285_v12  ;;  %v2401_v6 = vld [vmem:[#allocation2 + $0x61] sm:$0xff] }
 0x306   :  { %v1288_v30 = vrot.slane %v1287_v46, 1  ;;  %2531 = vrot.lane.b32.xlu2 %v8318_v57, %s7040_s14 }
 0x307   :  { %2435 = vrot.lane.b32.xlu1 %v2400_v18, %s7041_s17 }
 0x308   :  { %v1289_v51 = vadd.f32 %v1288_v30, %v1287_v46  ;;  %2339 = vrot.lane.b32.xlu0 %v8259_v17, %s7039_s13  ;;  %v1789_v46 = vld [vmem:[#allocation2] sm:$0xff] }
 0x309   :  { %1805 = vst.msk [vmem:[#allocation3] sm:$0xff] %vm11457_vm2, %v1789_v46 }
 0x30a   :  { %v1298_v63 = vmul.f32 %v7985_v24, %v1289_v51 }
 0x30b   :  { %v1854_v30 = vpop.permute.xlu1 %1853 }
 0x30c   :  { %v8326_v3 = vsub.f32 %v1225_v0, %v1298_v63  ;;  %v8328_v36 = vsub.f32 %v1228_v25, %v1298_v63  ;;  %v8330_v58 = vsub.f32 %v1231_v7, %v1298_v63  ;;  %v8332_v41 = vsub.f32 %v1234_v55, %v1298_v63  ;;  %1901 = vst.msk [vmem:[#allocation3] sm:$0xff] %vm11487_vm5, %v1854_v30 }
 0x30d   :  { %v8334_v40 = vsub.f32 %v1237_v8, %v1298_v63  ;;  %v8342_v60 = vsub.f32 %v1240_v21, %v1298_v63  ;;  %v1950_v8 = vpop.permute.xlu2 %1949  ;;  %v8351_v48 = vsub.f32 %v1243_v29, %v1298_v63  ;;  %v8357_v23 = vsub.f32 %v1246_v35, %v1298_v63 }
 0x30e   :  { %v1325_v59 = vmul.f32 %v8326_v3, %v8326_v3  ;;  %v1326_v42 = vmul.f32 %v8328_v36, %v8328_v36  ;;  %v1327_v26 = vmul.f32 %v8330_v58, %v8330_v58  ;;  %v1328_v25 = vmul.f32 %v8332_v41, %v8332_v41  ;;  %2053 = vrot.lane.b32.xlu2 %v8259_v17, %s7036_s10 }
 0x30f   :  { %1957 = vrot.lane.b32.xlu1 %v2495_v4, %s7035_s16  ;;  %v1329_v20 = vmul.f32 %v8334_v40, %v8334_v40  ;;  %v1330_v9 = vmul.f32 %v8342_v60, %v8342_v60  ;;  %v1331_v52 = vmul.f32 %v8351_v48, %v8351_v48  ;;  %v1332_v1 = vmul.f32 %v8357_v23, %v8357_v23 }
 0x310   :  { %v1354_v0 = vsel %vm11457_vm2, %v1325_v59, 0.0  ;;  %v1355_v7 = vsel %vm11457_vm2, %v1326_v42, 0.0  ;;  %v1357_v53 = vsel %vm11457_vm2, %v1327_v26, 0.0  ;;  %1861 = vrot.lane.b32.xlu0 %v2399_v27, %s7034_s15  ;;  %v1359_v17 = vsel %vm11457_vm2, %v1328_v25, 0.0  ;;  %1997 = vst.msk [vmem:[#allocation3] sm:$0xff] %vm11488_vm6, %v1950_v8  ;;  %v2612_v26 = vld [vmem:[%s11437_s3 + $0x38] sm:$0xff]  ;;  %vm11500_vm6 = vmmov %vm11490_vm9 }
 0x311   :  { %v1356_v55 = vadd.f32 %v1355_v7, %v1354_v0  ;;  %v1361_v47 = vsel %vm11457_vm2, %v1329_v20, 0.0  ;;  %v1363_v27 = vsel %vm11457_vm2, %v1330_v9, 0.0  ;;  %v1365_v2 = vsel %vm11457_vm2, %v1331_v52, 0.0  ;;  %v2611_v0 = vld [vmem:[%s11437_s3 + $0x30] sm:$0xff]  ;;  %v2610_v8 = vld [vmem:[%s11437_s3 + $0x28] sm:$0xff] }
 0x312   :  { %v1367_v15 = vsel %vm11457_vm2, %v1332_v1, 0.0  ;;  %vm11499_vm5 = vcmask 588800  }
 0x313   :  { %v1358_v14 = vadd.f32 %v1357_v53, %v1356_v55  ;;  %v8407_v53 = vld [vmem:[#allocation2 + $0x71] sm:$0xff] }
 0x315   :  { %v1360_v21 = vadd.f32 %v1359_v17, %v1358_v14  ;;  %v2607_v14 = vld [vmem:[%s11437_s3 + $0x10] sm:$0xff] }
 0x316   :  { %2341 = vrot.lane.b32.xlu2 %v8263_v37, %s7039_s13 }
 0x317   :  { %v1362_v29 = vadd.f32 %v1361_v47, %v1360_v21  ;;  %2245 = vrot.lane.b32.xlu1 %v8318_v57, %s7037_s11  ;;  %v2606_v21 = vld [vmem:[%s11437_s3 + $0x8] sm:$0xff] }
 0x318   :  { %2149 = vrot.lane.b32.xlu0 %v2400_v18, %s7038_s12  ;;  %v2238_v35 = vpop.permute.xlu2 %2237 }
 0x319   :  { %v1364_v50 = vadd.f32 %v1363_v27, %v1362_v29  ;;  %v2605_v29 = vld [vmem:[%s11437_s3] sm:$0xff] }
 0x31b   :  { %v1366_v4 = vadd.f32 %v1365_v2, %v1364_v50  ;;  %v8430_v50 = vld [vmem:[#allocation2 + $0x72] sm:$0xff] }
 0x31d   :  { %v1368_v34 = vadd.f32 %v1367_v15, %v1366_v4 }
 0x31e   :  { %1863 = vrot.lane.b32.xlu2 %v2400_v18, %s7034_s15  ;;  %v2613_v18 = vld [vmem:[%s11437_s3 + $0x40] sm:$0xff] }
 0x31f   :  { %v1369_v61 = vrot.slane %v1368_v34, 4  ;;  %2533 = vrot.lane.b32.xlu1 %v2497_v32, %s7040_s14  ;;  %2671 = vmatpush.msrb.mxu1 %v2613_v18 }
 0x320   :  { %2437 = vrot.lane.b32.xlu0 %v2401_v6, %s7041_s17  ;;  %v2526_v63 = vpop.permute.xlu2 %2525 }
 0x321   :  { %v1370_v12 = vadd.f32 %v1369_v61, %v1368_v34  ;;  %2672 = vmatpush.msrb.mxu1 %v2612_v26 }
 0x323   :  { %v1371_v51 = vrot.slane %v1370_v12, 2  ;;  %2673 = vmatpush.msrb.mxu1 %v2611_v0 }
 0x325   :  { %v1372_v59 = vadd.f32 %v1371_v51, %v1370_v12  ;;  %2674 = vmatpush.msrb.mxu1 %v2610_v8 }
 0x326   :  { %2151 = vrot.lane.b32.xlu2 %v2401_v6, %s7038_s12 }
 0x327   :  { %v1373_v42 = vrot.slane %v1372_v59, 1  ;;  %2055 = vrot.lane.b32.xlu1 %v8263_v37, %s7036_s10  ;;  %v2609_v37 = vld [vmem:[%s11437_s3 + $0x20] sm:$0xff] }
 0x328   :  { %1959 = vrot.lane.b32.xlu0 %v8318_v57, %s7035_s16  ;;  %v8396_v55 = vpop.permute.xlu2 %2047  ;;  %2675 = vmatpush.msrb.mxu1 %v2609_v37  ;;  %v2608_v57 = vld [vmem:[%s11437_s3 + $0x18] sm:$0xff]  ;;  %s11468_s3 = smov 14  }
 0x329   :  { %v1374_v25 = vadd.f32 %v1373_v42, %v1372_v59 }
 0x32a   :  { %2676 = vmatpush.msrb.mxu1 %v2608_v57 }
 0x32b   :  { %v1376_v7 = vmul.f32 %v1374_v25, %v7985_v24 }
 0x32c   :  { %2677 = vmatpush.msrb.mxu1 %v2607_v14 }
 0x32d   :  { %v1380_v20 = vadd.f32 1e-05, %v1376_v7 }
 0x32e   :  { %2439 = vrot.lane.b32.xlu2 %v8407_v53, %s7041_s17  ;;  %2678 = vmatpush.msrb.mxu1 %v2606_v21 }
 0x32f   :  { %6890 = vrsqrt.f32 %v1380_v20  ;;  %2343 = vrot.lane.b32.xlu1 %v8274_v10, %s7039_s13  ;;  %vm1397_vm8 = vweird.f32 %v1380_v20 }
 0x330   :  { %2247 = vrot.lane.b32.xlu0 %v2497_v32, %s7037_s11  ;;  %v8417_v9 = vpop.permute.xlu2 %2335  ;;  %2679 = vmatpush.msrb.mxu1 %v2605_v29 }
 0x331   :  { %v2142_v17 = vpop.permute.xlu1 %2141 }
 0x332   :  { %v2046_v52 = vpop.permute.xlu0 %2045 }
 0x333   :  { %2093 = vst.msk [vmem:[#allocation3] sm:$0xff] %vm11489_vm3, %v2046_v52  ;;  %vm11501_vm3 = vmmov %vm11491_vm0 }
 0x334   :  { %2189 = vst.msk [vmem:[#allocation3] sm:$0xff] %vm11490_vm9, %v2142_v17  ;;  %vm11502_vm9 = vmmov %vm11493_vm4 }
 0x335   :  { %v6891_v47 = vpop.eup %6890  ;;  %2285 = vst.msk [vmem:[#allocation3] sm:$0xff] %vm11491_vm0, %v2238_v35  ;;  %vm11503_vm0 = vmmov %vm11494_vm11 }
 0x336   :  { %v1392_v1 = vmul.f32 %v6891_v47, %v1380_v20  ;;  %1961 = vrot.lane.b32.xlu2 %v2497_v32, %s7035_s16  ;;  %vm1398_vm10 = vweird.f32 %v6891_v47 }
 0x337   :  { %1865 = vrot.lane.b32.xlu1 %v2401_v6, %s7034_s15  ;;  %vm1399_vm12 = vmor %vm1397_vm8, %vm1398_vm10 }
 0x338   :  { %v1393_v27 = vmul.f32 %v6891_v47, %v1392_v1  ;;  %2535 = vrot.lane.b32.xlu0 %v8430_v50, %s7040_s14  ;;  %v1858_v4 = vpop.permute.xlu2 %1857  ;;  %v8497_v1 = vld [vmem:[#allocation2 + $0x82] sm:$0xff]  ;;  %vm11504_vm10 = vmmov %vm11495_vm13 }
 0x339   :  { %v2430_v15 = vpop.permute.xlu1 %2429  ;;  %1903 = vst.msk [vmem:[#allocation3 + $0x20] sm:$0xff] %vm11492_vm7, %v1858_v4 }
 0x33a   :  { %v1394_v2 = vmul.f32 0.5, %v1393_v27  ;;  %v2334_v61 = vpop.permute.xlu0 %2333  ;;  %v8499_v27 = vld [vmem:[#allocation2 + $0x81] sm:$0xff] }
 0x33b   :  { %2381 = vst.msk [vmem:[#allocation3] sm:$0xff] %vm11493_vm4, %v2334_v61 }
 0x33c   :  { %v1395_v34 = vsub.f32 1.5, %v1394_v2  ;;  %2477 = vst.msk [vmem:[#allocation3] sm:$0xff] %vm11494_vm11, %v2430_v15  ;;  %vm11505_vm11 = vmmov %vm11497_vm1 }
 0x33d   :  { %2573 = vst.msk [vmem:[#allocation3] sm:$0xff] %vm11495_vm13, %v2526_v63 }
 0x33e   :  { %v1396_v35 = vmul.f32 %v6891_v47, %v1395_v34  ;;  %2249 = vrot.lane.b32.xlu2 %v8430_v50, %s7037_s11 }
 0x33f   :  { %2153 = vrot.lane.b32.xlu1 %v8407_v53, %s7038_s12 }
 0x340   :  { %v1400_v32 = vsel %vm1399_vm12, %v6891_v47, %v1396_v35  ;;  %2057 = vrot.lane.b32.xlu0 %v8274_v10, %s7036_s10 }
 0x341   :  { %v1409_v12 = vmul.f32 %v1400_v32, %v8326_v3  ;;  %v1410_v6 = vmul.f32 %v1400_v32, %v8328_v36  ;;  %v1411_v46 = vmul.f32 %v1400_v32, %v8330_v58  ;;  %v1412_v30 = vmul.f32 %v1400_v32, %v8332_v41 }
 0x342   :  { %v1413_v51 = vmul.f32 %v1400_v32, %v8334_v40  ;;  %v1414_v59 = vmul.f32 %v1400_v32, %v8342_v60  ;;  %v1415_v18 = vmul.f32 %v1400_v32, %v8351_v48  ;;  %v1416_v63 = vmul.f32 %v1400_v32, %v8357_v23  ;;  %v8456_v40 = vpop.permute.xlu2 %2145  ;;  %v1952_v60 = vpop.permute.xlu1 %1951 }
 0x343   :  { %v1427_v3 = vmul.f32 %v8041_v56, %v1409_v12  ;;  %v1428_v36 = vmul.f32 %v8041_v56, %v1410_v6  ;;  %v1429_v58 = vmul.f32 %v8041_v56, %v1411_v46  ;;  %v1430_v41 = vmul.f32 %v8041_v56, %v1412_v30  ;;  %v1856_v25 = vpop.permute.xlu0 %1855 }
 0x344   :  { %v1431_v48 = vmul.f32 %v8041_v56, %v1413_v51  ;;  %v1432_v23 = vmul.f32 %v8041_v56, %v1414_v59  ;;  %v1433_v42 = vmul.f32 %v8041_v56, %v1415_v18  ;;  %v1434_v26 = vmul.f32 %v8041_v56, %v1416_v63  ;;  %1902 = vst.msk [vmem:[#allocation3 + $0x10] sm:$0xff] %vm11496_vm15, %v1856_v25  ;;  %v2589_v14 = vld [vmem:[#allocation3] sm:$0xff] }
 0x345   :  { %v8463_v0 = vadd.f32 %v8050_v19, %v1427_v3  ;;  %v8466_v7 = vadd.f32 %v8050_v19, %v1428_v36  ;;  %v8469_v10 = vadd.f32 %v8050_v19, %v1429_v58  ;;  %v8472_v8 = vadd.f32 %v8050_v19, %v1430_v41  ;;  %1998 = vst.msk [vmem:[#allocation3 + $0x10] sm:$0xff] %vm11497_vm1, %v1952_v60  ;;  %vm11508_vm1 = vmmov %vm11498_vm14 }
 0x346   :  { %v8476_v20 = vadd.f32 %v8050_v19, %v1431_v48  ;;  %v8479_v56 = vadd.f32 %v8050_v19, %v1432_v23  ;;  %v8482_v37 = vadd.f32 %v8050_v19, %v1433_v42  ;;  %v8485_v57 = vadd.f32 %v8050_v19, %v1434_v26  ;;  %2094 = vst.msk [vmem:[#allocation3 + $0x10] sm:$0xff] %vm11498_vm14, %v8396_v55  ;;  %v2307_v55 = vld [vmem:[#allocation2 + $0x80] sm:$0xff]  ;;  %vm11509_vm14 = vmmov %vm11499_vm5 }
 0x347   :  { %v1461_v17 = vsub.f32 0.0, %v8463_v0  ;;  %v1462_v21 = vsub.f32 0.0, %v8466_v7  ;;  %v1463_v52 = vsub.f32 0.0, %v8469_v10  ;;  %v1464_v47 = vsub.f32 0.0, %v8472_v8  ;;  %6734 = vmatmul.msk.f32.vlgmr.msrb.gmra.mxu1 %vm11499_vm5, %v2589_v14  ;;  %2537 = vrot.lane.b32.xlu2 %v8497_v1, %s7040_s14 }
 0x348   :  { %v1465_v29 = vsub.f32 0.0, %v8476_v20  ;;  %v1466_v19 = vsub.f32 0.0, %v8479_v56  ;;  %v1467_v34 = vsub.f32 0.0, %v8482_v37  ;;  %2441 = vrot.lane.b32.xlu1 %v8499_v27, %s7041_s17  ;;  %v1468_v35 = vsub.f32 0.0, %v8485_v57  ;;  %2345 = vrot.lane.b32.xlu0 %v2307_v55, %s7039_s13 }
 0x349   :  { %v1485_v2 = vmul.f32 1.442695, %v1461_v17  ;;  %v1487_v4 = vmul.f32 1.442695, %v1462_v21  ;;  %v1489_v15 = vmul.f32 1.442695, %v1463_v52 }
 0x34a   :  { %v1491_v61 = vmul.f32 1.442695, %v1464_v47  ;;  %v1493_v32 = vmul.f32 1.442695, %v1465_v29  ;;  %v8508_v12 = vpop.permute.xlu2 %2433  ;;  %v2240_v6 = vpop.permute.xlu1 %2239  ;;  %v1495_v46 = vmul.f32 1.442695, %v1466_v19 }
 0x34b   :  { %6892 = vpow2.f32 %v1485_v2  ;;  %v2144_v30 = vpop.permute.xlu0 %2143  ;;  %v1497_v51 = vmul.f32 1.442695, %v1467_v34  ;;  %v1499_v59 = vmul.f32 1.442695, %v1468_v35 }
 0x34c   :  { %6894 = vpow2.f32 %v1487_v4  ;;  %2190 = vst.msk [vmem:[#allocation3 + $0x10] sm:$0xff] %vm11500_vm6, %v2144_v30 }
 0x34d   :  { %6896 = vpow2.f32 %v1489_v15  ;;  %2286 = vst.msk [vmem:[#allocation3 + $0x10] sm:$0xff] %vm11501_vm3, %v2240_v6  ;;  %vm11512_vm3 = vcmask 326912  }
 0x34e   :  { %6898 = vpow2.f32 %v1491_v61  ;;  %2382 = vst.msk [vmem:[#allocation3 + $0x10] sm:$0xff] %vm11502_vm9, %v8417_v9 }
 0x34f   :  { %6900 = vpow2.f32 %v1493_v32  ;;  %2059 = vrot.lane.b32.xlu2 %v2307_v55, %s7036_s10 }
 0x350   :  { %6902 = vpow2.f32 %v1495_v46  ;;  %1963 = vrot.lane.b32.xlu1 %v8430_v50, %s7035_s16  ;;  %1867 = vrot.lane.b32.xlu0 %v8407_v53, %s7034_s15  ;;  %v2308_v53 = vld [vmem:[#allocation2 + $0x90] sm:$0xff] }
 0x351   :  { %v6893_v18 = vpop.eup %6892  ;;  %6904 = vpow2.f32 %v1497_v51 }
 0x352   :  { %v6895_v63 = vpop.eup %6894  ;;  %v8515_v3 = vadd.f32 1.0, %v6893_v18  ;;  %6906 = vpow2.f32 %v1499_v59  ;;  %v8523_v41 = vpop.permute.xlu2 %1955 }
 0x353   :  { %v6897_v36 = vpop.eup %6896  ;;  %v8519_v58 = vadd.f32 1.0, %v6895_v63  ;;  %v2528_v9 = vpop.permute.xlu1 %2527 }
 0x354   :  { %v6899_v60 = vpop.eup %6898  ;;  %v8525_v48 = vadd.f32 1.0, %v6897_v36  ;;  %6908 = vrcp.f32 %v8515_v3  ;;  %v2432_v23 = vpop.permute.xlu0 %2431  ;;  %v1648_v14 = vand.u32 2147483648, %v8515_v3  ;;  %vm1642_vm7 = vweird.f32 %v8515_v3 }
 0x355   :  { %v6901_v42 = vpop.eup %6900  ;;  %v8528_v26 = vadd.f32 1.0, %v6899_v60  ;;  %6910 = vrcp.f32 %v8519_v58  ;;  %2478 = vst.msk [vmem:[#allocation3 + $0x10] sm:$0xff] %vm11503_vm0, %v2432_v23  ;;  %v1663_v21 = vand.u32 2147483648, %v8519_v58  ;;  %v1646_v19 = vand.u32 2147483647, %v8515_v3 }
 0x356   :  { %v6903_v50 = vpop.eup %6902  ;;  %v8532_v25 = vadd.f32 1.0, %v6901_v42  ;;  %2574 = vst.msk [vmem:[#allocation3 + $0x10] sm:$0xff] %vm11504_vm10, %v2528_v9  ;;  %6912 = vrcp.f32 %v8525_v48  ;;  %v8553_v15 = vor.u32 1.1754944e-38, %v1648_v14  ;;  %vm1657_vm4 = vweird.f32 %v8519_v58  ;;  %v1829_v42 = vld [vmem:[#allocation2 + $0xa1] sm:$0xff] }
 0x357   :  { %v6905_v17 = vpop.eup %6904  ;;  %v8538_v47 = vadd.f32 1.0, %v6903_v50  ;;  %6914 = vrcp.f32 %v8528_v26  ;;  %2347 = vrot.lane.b32.xlu2 %v2308_v53, %s7039_s13  ;;  %v1661_v34 = vand.u32 2147483647, %v8519_v58  ;;  %v1678_v61 = vand.u32 2147483648, %v8525_v48 }
 0x358   :  { %v6907_v52 = vpop.eup %6906  ;;  %6916 = vrcp.f32 %v8532_v25  ;;  %2251 = vrot.lane.b32.xlu1 %v8497_v1, %s7037_s11  ;;  %2155 = vrot.lane.b32.xlu0 %v8499_v27, %s7038_s12  ;;  %v8562_v1 = vadd.f32 1.0, %v6905_v17  ;;  %v8566_v6 = vor.u32 1.1754944e-38, %v1663_v21  ;;  %vm1672_vm8 = vweird.f32 %v8525_v48 }
 0x359   :  { %v1676_v46 = vand.u32 2147483647, %v8525_v48  ;;  %v8572_v59 = vadd.f32 1.0, %v6907_v52  ;;  %v1691_v18 = vand.u32 2147483647, %v8528_v26  ;;  %6918 = vrcp.f32 %v8538_v47  ;;  %v2500_v52 = vld [vmem:[#allocation2 + $0x92] sm:$0xff] }
 0x35a   :  { %v8542_v29 = vpop.eup %6908  ;;  %v8560_v55 = vpop.permute.xlu2 %2243  ;;  %vm8578_vm13 = vcmp.eq.f32.partialorder %v1646_v19, 8.507059e+37  ;;  %vm1687_vm15 = vweird.f32 %v8528_v26  ;;  %v1693_v23 = vand.u32 2147483648, %v8528_v26  ;;  %vm8591_vm5 = vcmp.eq.f32.partialorder %v1661_v34, 8.507059e+37 }
 0x35b   :  { %v8549_v2 = vpop.eup %6910  ;;  %v1638_v4 = vmul.f32 %v8542_v29, %v8515_v3  ;;  %v2050_v35 = vpop.permute.xlu1 %2049  ;;  %vm1643_vm12 = vweird.f32 %v8542_v29  ;;  %v1679_v17 = vor.u32 1.1754944e-38, %v1678_v61  ;;  %vm1702_vm6 = vweird.f32 %v8532_v25 }
 0x35c   :  { %v1653_v32 = vmul.f32 %v8549_v2, %v8519_v58  ;;  %v1954_v30 = vpop.permute.xlu0 %1953  ;;  %v8570_v51 = vpop.eup %6912  ;;  %v1706_v21 = vand.u32 2147483647, %v8532_v25  ;;  %vm1658_vm9 = vweird.f32 %v8549_v2  ;;  %vm8601_vm0 = vcmp.eq.f32.partialorder %v1676_v46, 8.507059e+37 }
 0x35d   :  { %v1639_v27 = vsub.f32 1.0, %v1638_v4  ;;  %1999 = vst.msk [vmem:[#allocation3 + $0x20] sm:$0xff] %vm11505_vm11, %v1954_v30  ;;  %v2590_v63 = vld [vmem:[#allocation3 + $0x10] sm:$0xff]  ;;  %v1668_v60 = vmul.f32 %v8570_v51, %v8525_v48  ;;  %v8588_v50 = vpop.eup %6914  ;;  %vm8608_vm10 = vcmp.eq.f32.partialorder %v1691_v18, 8.507059e+37  ;;  %vm1673_vm11 = vweird.f32 %v8570_v51 }
 0x35e   :  { %v1654_v9 = vsub.f32 1.0, %v1653_v32  ;;  %2095 = vst.msk [vmem:[#allocation3 + $0x20] sm:$0xff] %vm11508_vm1, %v2050_v35  ;;  %6735 = vmatmul.msk.f32.gmra.mxu1 %vm11509_vm14, %v2590_v63  ;;  %v6917_v19 = vpop.eup %6916  ;;  %v1683_v61 = vmul.f32 %v8588_v50, %v8528_v26  ;;  %v2404_v32 = vld [vmem:[#allocation2 + $0x91] sm:$0xff]  ;;  %v1708_v63 = vand.u32 2147483648, %v8532_v25  ;;  %vm8625_vm1 = vmor %vm1642_vm7, %vm1643_vm12  ;;  %vm8629_vm14 = vcmp.eq.f32.partialorder %v1706_v21, 8.507059e+37  ;;  %v1925_v26 = vld [vmem:[#allocation2 + $0xa2] sm:$0xff] }
 0x35f   :  { %v1640_v53 = vmul.f32 %v8542_v29, %v1639_v27  ;;  %2191 = vst.msk [vmem:[#allocation3 + $0x20] sm:$0xff] %vm11512_vm3, %v8456_v40  ;;  %v1669_v35 = vsub.f32 1.0, %v1668_v60  ;;  %v1698_v40 = vmul.f32 %v6917_v19, %v8532_v25  ;;  %1869 = vrot.lane.b32.xlu2 %v1829_v42, %s7034_s15  ;;  %v1694_v42 = vor.u32 1.1754944e-38, %v1693_v23  ;;  %vm8644_vm7 = vmor %vm1657_vm4, %vm1658_vm9 }
 0x360   :  { %v1655_v4 = vmul.f32 %v8549_v2, %v1654_v9  ;;  %v1684_v60 = vsub.f32 1.0, %v1683_v61  ;;  %2539 = vrot.lane.b32.xlu1 %v2500_v52, %s7040_s14  ;;  %6920 = vrcp.f32 %v8562_v1  ;;  %2443 = vrot.lane.b32.xlu0 %v2404_v32, %s7041_s17  ;;  %vm1688_vm12 = vweird.f32 %v8588_v50  ;;  %vm8658_vm3 = vmor %vm1672_vm8, %vm1673_vm11 }
 0x361   :  { %v1641_v30 = vadd.f32 %v8542_v29, %v1640_v53  ;;  %v1670_v9 = vmul.f32 %v8570_v51, %v1669_v35  ;;  %v8619_v53 = vpop.eup %6918  ;;  %v1699_v22 = vsub.f32 1.0, %v1698_v40  ;;  %vm1703_vm4 = vweird.f32 %v6917_v19  ;;  %vm1689_vm11 = vmor %vm1687_vm15, %vm1688_vm12 }
 0x362   :  { %v1656_v46 = vadd.f32 %v8549_v2, %v1655_v4  ;;  %v8635_v52 = vpop.permute.xlu2 %2531  ;;  %v1685_v61 = vmul.f32 %v8588_v50, %v1684_v60  ;;  %vm11525_vm9 = vcmask 392512   ;;  %v1721_v48 = vand.u32 2147483647, %v8538_v47 }
 0x363   :  { %v2338_v35 = vpop.permute.xlu1 %2337  ;;  %v1645_v3 = vsel %vm8625_vm1, %v8542_v29, %v1641_v30  ;;  %v1671_v21 = vadd.f32 %v8570_v51, %v1670_v9  ;;  %v1700_v29 = vmul.f32 %v6917_v19, %v1699_v22  ;;  %v1713_v30 = vmul.f32 %v8619_v53, %v8538_v47 }
 0x364   :  { %v2242_v32 = vpop.permute.xlu0 %2241  ;;  %v1660_v40 = vsel %vm8644_vm7, %v8549_v2, %v1656_v46  ;;  %v1686_v2 = vadd.f32 %v8588_v50, %v1685_v61  ;;  %v1709_v46 = vor.u32 1.1754944e-38, %v1708_v63  ;;  %vm11526_vm8 = vcmask 458112  }
 0x365   :  { %2287 = vst.msk [vmem:[#allocation3 + $0x20] sm:$0xff] %vm11525_vm9, %v2242_v32  ;;  %v1675_v9 = vsel %vm8658_vm3, %v8570_v51, %v1671_v21  ;;  %v1650_v22 = vsel %vm8578_vm13, %v8553_v15, %v1645_v3  ;;  %v1701_v60 = vadd.f32 %v6917_v19, %v1700_v29  ;;  %v1714_v18 = vsub.f32 1.0, %v1713_v30  ;;  %vm1704_vm13 = vmor %vm1702_vm6, %vm1703_vm4 }
 0x366   :  { %2383 = vst.msk [vmem:[#allocation3 + $0x20] sm:$0xff] %vm11526_vm8, %v2338_v35  ;;  %v1723_v23 = vand.u32 2147483648, %v8538_v47  ;;  %vm11527_vm1 = vcmask 523712   ;;  %v1665_v51 = vsel %vm8591_vm5, %v8566_v6, %v1660_v40  ;;  %v1690_v63 = vsel %vm1689_vm11, %v8588_v50, %v1686_v2  ;;  %v6921_v15 = vpop.eup %6920 }
 0x367   :  { %2479 = vst.msk [vmem:[#allocation3 + $0x20] sm:$0xff] %vm11527_vm1, %v8508_v12  ;;  %vm1718_vm7 = vweird.f32 %v8619_v53  ;;  %6922 = vrcp.f32 %v8572_v59  ;;  %v1680_v36 = vsel %vm8601_vm0, %v1679_v17, %v1675_v9  ;;  %v1695_v12 = vsel %vm8608_vm10, %v1694_v42, %v1690_v63 }
 0x368   :  { %v1705_v14 = vsel %vm1704_vm13, %v6917_v19, %v1701_v60  ;;  %v1715_v6 = vmul.f32 %v8619_v53, %v1714_v18  ;;  %v1728_v25 = vmul.f32 %v6921_v15, %v8562_v1  ;;  %vm1717_vm15 = vweird.f32 %v8538_v47  ;;  %1965 = vrot.lane.b32.xlu0 %v1925_v26, %s7035_s16 }
 0x369   :  { %v1710_v50 = vsel %vm8629_vm14, %v1709_v46, %v1705_v14  ;;  %v1765_v3 = vmul.f32 %v1650_v22, %v8463_v0  ;;  %v1766_v34 = vmul.f32 %v1665_v51, %v8466_v7  ;;  %vm1719_vm5 = vmor %vm1717_vm15, %vm1718_vm7  ;;  %v1724_v19 = vor.u32 1.1754944e-38, %v1723_v23 }
 0x36a   :  { %v1716_v35 = vadd.f32 %v8619_v53, %v1715_v6  ;;  %v8700_v17 = vpop.permute.xlu2 %2053  ;;  %v1729_v42 = vsub.f32 1.0, %v1728_v25  ;;  %v1767_v4 = vmul.f32 %v1680_v36, %v8469_v10  ;;  %v1768_v21 = vmul.f32 %v1695_v12, %v8472_v8 }
 0x36b   :  { %v1860_v27 = vpop.permute.xlu1 %1859  ;;  %vm11528_vm6 = vcmask 130112   ;;  %vm1722_vm0 = vcmp.eq.f32.partialorder %v1721_v48, 8.507059e+37  ;;  %v1738_v7 = vand.u32 2147483648, %v8562_v1  ;;  %v1769_v61 = vmul.f32 %v1710_v50, %v8476_v20  ;;  %1781 = vst.msk [vmem:[#allocation2 + $0xb1] sm:$0xff] %vm11457_vm2, %v1765_v3 }
 0x36c   :  { %1904 = vst.msk [vmem:[#allocation3 + $0x30] sm:$0xff] %vm11528_vm6, %v1860_v27  ;;  %v2530_v47 = vpop.permute.xlu0 %2529  ;;  %v1720_v0 = vsel %vm1719_vm5, %v8619_v53, %v1716_v35  ;;  %v1730_v58 = vmul.f32 %v6921_v15, %v1729_v42  ;;  %vm1733_vm10 = vweird.f32 %v6921_v15  ;;  %v1736_v10 = vand.u32 2147483647, %v8562_v1 }
 0x36d   :  { %v6923_v32 = vpop.eup %6922  ;;  %v1725_v40 = vsel %vm1722_vm0, %v1724_v19, %v1720_v0  ;;  %1782 = vst.msk [vmem:[#allocation2 + $0xc1] sm:$0xff] %vm11457_vm2, %v1766_v34  ;;  %vm1732_vm14 = vweird.f32 %v8562_v1  ;;  %v1739_v20 = vor.u32 1.1754944e-38, %v1738_v7  ;;  %v1753_v2 = vand.u32 2147483648, %v8572_v59 }
 0x36e   :  { %v1743_v8 = vmul.f32 %v6923_v32, %v8572_v59  ;;  %v1770_v29 = vmul.f32 %v1725_v40, %v8479_v56  ;;  %1783 = vst.msk [vmem:[#allocation2 + $0xd1] sm:$0xff] %vm11457_vm2, %v1767_v4  ;;  %v1731_v53 = vadd.f32 %v6921_v15, %v1730_v58  ;;  %vm1734_vm12 = vmor %vm1732_vm14, %vm1733_vm10  ;;  %vm1737_vm3 = vcmp.eq.f32.partialorder %v1736_v10, 8.507059e+37 }
 0x36f   :  { %1784 = vst.msk [vmem:[#allocation2 + $0xe1] sm:$0xff] %vm11457_vm2, %v1768_v21  ;;  %vm1748_vm4 = vweird.f32 %v6923_v32  ;;  %v1751_v48 = vand.u32 2147483647, %v8572_v59  ;;  %vm11529_vm9 = vcmask 195712   ;;  %vm11530_vm8 = vcmask 589312  }
 0x370   :  { %v1744_v30 = vsub.f32 1.0, %v1743_v8  ;;  %1785 = vst.msk [vmem:[#allocation2 + $0xf1] sm:$0xff] %vm11457_vm2, %v1769_v61  ;;  %v1735_v9 = vsel %vm1734_vm12, %v6921_v15, %v1731_v53  ;;  %vm1747_vm11 = vweird.f32 %v8572_v59  ;;  %vm11531_vm1 = vcmask 261312   ;;  %vm11538_vm12 = vmmov %vm11530_vm8 }
 0x371   :  { %1786 = vst.msk [vmem:[#allocation2 + $0x101] sm:$0xff] %vm11457_vm2, %v1770_v29  ;;  %v1740_v46 = vsel %vm1737_vm3, %v1739_v20, %v1735_v9  ;;  %vm1749_vm13 = vmor %vm1747_vm11, %vm1748_vm4  ;;  %vm1752_vm7 = vcmp.eq.f32.partialorder %v1751_v48, 8.507059e+37  ;;  %vm11532_vm15 = vcmask 326912   ;;  %vm11533_vm5 = vcmask 392512  }
 0x372   :  { %v1745_v56 = vmul.f32 %v6923_v32, %v1744_v30  ;;  %2000 = vst.msk [vmem:[#allocation3 + $0x30] sm:$0xff] %vm11529_vm9, %v8523_v41  ;;  %v8725_v1 = vpop.permute.xlu2 %2341  ;;  %v1771_v60 = vmul.f32 %v1740_v46, %v8482_v37  ;;  %v2117_v23 = vld [vmem:[#allocation2 + $0xb1] sm:$0xff]  ;;  %v1754_v41 = vor.u32 1.1754944e-38, %v1753_v2  ;;  %vm11534_vm6 = vcmask 588800   ;;  %vm11540_vm4 = vmmov %vm11529_vm9  ;;  %v1797_v2 = vld [vmem:[#allocation2 + $0xa0] sm:$0xff] }
 0x373   :  { %v2148_v22 = vpop.permute.xlu1 %2147  ;;  %2575 = vst.msk [vmem:[#allocation3 + $0x20] sm:$0xff] %vm11530_vm8, %v2530_v47  ;;  %v2021_v51 = vld [vmem:[#allocation2 + $0xb0] sm:$0xff]  ;;  %2157 = vrot.lane.b32.xlu2 %v2117_v23, %s7038_s12  ;;  %vm11535_vm0 = vcmask 130112   ;;  %vm11536_vm10 = vcmask 458112   ;;  %vm11537_vm14 = vcmask 523712   ;;  %vm11541_vm9 = vmmov %vm11531_vm1 }
 0x374   :  { %v2052_v18 = vpop.permute.xlu0 %2051  ;;  %v2213_v63 = vld [vmem:[#allocation2 + $0xb2] sm:$0xff]  ;;  %v1746_v26 = vadd.f32 %v6923_v32, %v1745_v56  ;;  %2061 = vrot.lane.b32.xlu1 %v2021_v51, %s7036_s10  ;;  %1787 = vst.msk [vmem:[#allocation2 + $0x111] sm:$0xff] %vm11457_vm2, %v1771_v60  ;;  %v2405_v25 = vld [vmem:[#allocation2 + $0xc1] sm:$0xff]  ;;  %vm11539_vm3 = vmmov %vm11535_vm0 }
 0x375   :  { %2096 = vst.msk [vmem:[#allocation3 + $0x30] sm:$0xff] %vm11531_vm1, %v2052_v18  ;;  %2253 = vrot.lane.b32.xlu0 %v2213_v63, %s7037_s11  ;;  %v8737_v15 = vld [vmem:[#allocation2 + $0xd0] sm:$0xff]  ;;  %v2309_v35 = vld [vmem:[#allocation2 + $0xc0] sm:$0xff]  ;;  %vm11542_vm8 = vmmov %vm11534_vm6 }
 0x376   :  { %v1750_v37 = vsel %vm1749_vm13, %v6923_v32, %v1746_v26  ;;  %2192 = vst.msk [vmem:[#allocation3 + $0x30] sm:$0xff] %vm11532_vm15, %v2148_v22  ;;  %vm11543_vm11 = vmmov %vm11532_vm15  ;;  %v2502_v32 = vld [vmem:[#allocation2 + $0xd2] sm:$0xff]  ;;  %v2407_v9 = vld [vmem:[#allocation2 + $0xe1] sm:$0xff] }
 0x377   :  { %v1755_v59 = vsel %vm1752_vm7, %v1754_v41, %v1750_v37  ;;  %2288 = vst.msk [vmem:[#allocation3 + $0x30] sm:$0xff] %vm11533_vm5, %v8560_v55  ;;  %v8753_v55 = vld [vmem:[#allocation2 + $0xe0] sm:$0xff]  ;;  %v8759_v34 = vld [vmem:[#allocation2 + $0xf0] sm:$0xff]  ;;  %vm11544_vm1 = vmmov %vm11533_vm5 }
 0x378   :  { %v1772_v36 = vmul.f32 %v1755_v59, %v8485_v57  ;;  %1814 = vst.msk [vmem:[#allocation3 + $0x90] sm:$0xff] %vm11457_vm2, %v2021_v51  ;;  %v2501_v57 = vld [vmem:[#allocation2 + $0xc2] sm:$0xff]  ;;  %vm11545_vm13 = vmmov %vm11536_vm10  ;;  %v2406_v40 = vld [vmem:[#allocation2 + $0xd1] sm:$0xff] }
 0x379   :  { %1816 = vst.msk [vmem:[#allocation3 + $0xb0] sm:$0xff] %vm11457_vm2, %v8737_v15  ;;  %v8757_v3 = vld [vmem:[#allocation2 + $0x100] sm:$0xff]  ;;  %vm11546_vm7 = vmmov %vm11537_vm14  ;;  %v2408_v26 = vld [vmem:[#allocation2 + $0xf1] sm:$0xff] }
 0x37a   :  { %1788 = vst.msk [vmem:[#allocation2 + $0x121] sm:$0xff] %vm11457_vm2, %v1772_v36  ;;  %v2591_v12 = vld [vmem:[#allocation3 + $0x20] sm:$0xff]  ;;  %v1864_v14 = vpop.permute.xlu2 %1863  ;;  %vm11547_vm15 = vmmov %vm11538_vm12  ;;  %v2504_v37 = vld [vmem:[#allocation2 + $0xf2] sm:$0xff] }
 0x37b   :  { %v2436_v6 = vpop.permute.xlu1 %2435  ;;  %6736 = vmatmul.msk.f32.gmra.mxu1 %vm11534_vm6, %v2591_v12  ;;  %1906 = vst.msk [vmem:[#allocation3 + $0x50] sm:$0xff] %vm11535_vm0, %v1864_v14  ;;  %2445 = vrot.lane.b32.xlu2 %v2405_v25, %s7041_s17  ;;  %v8762_v27 = vld [vmem:[#allocation2 + $0x110] sm:$0xff]  ;;  %vm11548_vm5 = vmmov %vm11540_vm4 }
 0x37c   :  { %v2340_v50 = vpop.permute.xlu0 %2339  ;;  %2349 = vrot.lane.b32.xlu1 %v2309_v35, %s7039_s13  ;;  %1815 = vst.msk [vmem:[#allocation3 + $0xa0] sm:$0xff] %vm11457_vm2, %v2309_v35  ;;  %vm11549_vm6 = vmmov %vm11541_vm9 }
 0x37d   :  { %2384 = vst.msk [vmem:[#allocation3 + $0x30] sm:$0xff] %vm11536_vm10, %v2340_v50  ;;  %2541 = vrot.lane.b32.xlu0 %v2501_v57, %s7040_s14  ;;  %vm11550_vm0 = vmmov %vm11542_vm8 }
 0x37e   :  { %2480 = vst.msk [vmem:[#allocation3 + $0x30] sm:$0xff] %vm11537_vm14, %v2436_v6  ;;  %vm11551_vm10 = vmmov %vm11543_vm11 }
 0x37f   :  { %2576 = vst.msk [vmem:[#allocation3 + $0x30] sm:$0xff] %vm11538_vm12, %v8635_v52  ;;  %vm11552_vm14 = vmmov %vm11544_vm1 }
 0x380   :  { %1817 = vst.msk [vmem:[#allocation3 + $0xc0] sm:$0xff] %vm11457_vm2, %v8753_v55  ;;  %vm11553_vm12 = vmmov %vm11545_vm13 }
 0x381   :  { %1819 = vst.msk [vmem:[#allocation3 + $0xe0] sm:$0xff] %vm11457_vm2, %v8757_v3 }
 0x382   :  { %v2152_v19 = vpop.permute.xlu2 %2151  ;;  %1818 = vst.msk [vmem:[#allocation3 + $0xd0] sm:$0xff] %vm11457_vm2, %v8759_v34 }
 0x383   :  { %v1958_v42 = vpop.permute.xlu1 %1957  ;;  %1820 = vst.msk [vmem:[#allocation3 + $0xf0] sm:$0xff] %vm11457_vm2, %v8762_v27  ;;  %1967 = vrot.lane.b32.xlu2 %v2213_v63, %s7035_s16 }
 0x384   :  { %v1862_v52 = vpop.permute.xlu0 %1861  ;;  %1871 = vrot.lane.b32.xlu1 %v2117_v23, %s7034_s15  ;;  %1813 = vst.msk [vmem:[#allocation3 + $0x80] sm:$0xff] %vm11457_vm2, %v1797_v2 }
 0x385   :  { %1905 = vst.msk [vmem:[#allocation3 + $0x40] sm:$0xff] %vm11539_vm3, %v1862_v52  ;;  %2063 = vrot.lane.b32.xlu0 %v2309_v35, %s7036_s10  ;;  %vm11554_vm3 = vmmov %vm11546_vm7  ;;  %v2409_v35 = vld [vmem:[#allocation2 + $0x101] sm:$0xff]  ;;  %v2410_v52 = vld [vmem:[#allocation2 + $0x111] sm:$0xff] }
 0x386   :  { %2001 = vst.msk [vmem:[#allocation3 + $0x40] sm:$0xff] %vm11540_vm4, %v1958_v42  ;;  %v2592_v4 = vld [vmem:[#allocation3 + $0x30] sm:$0xff]  ;;  %vm11555_vm4 = vcmask 130112  }
 0x387   :  { %2097 = vst.msk [vmem:[#allocation3 + $0x40] sm:$0xff] %vm11541_vm9, %v8700_v17  ;;  %6737 = vmatmul.msk.f32.gmra.mxu1 %vm11542_vm8, %v2592_v4  ;;  %vm11556_vm9 = vmmov %vm11548_vm5 }
 0x388   :  { %vm11557_vm8 = vmmov %vm11547_vm15 }
 0x38a   :  { %v2440_v21 = vpop.permute.xlu2 %2439 }
 0x38b   :  { %v2246_v47 = vpop.permute.xlu1 %2245  ;;  %2255 = vrot.lane.b32.xlu2 %v2501_v57, %s7037_s11 }
 0x38c   :  { %v2150_v0 = vpop.permute.xlu0 %2149  ;;  %2159 = vrot.lane.b32.xlu1 %v2405_v25, %s7038_s12 }
 0x38d   :  { %2193 = vst.msk [vmem:[#allocation3 + $0x40] sm:$0xff] %vm11543_vm11, %v2150_v0  ;;  %2351 = vrot.lane.b32.xlu0 %v8737_v15, %s7039_s13  ;;  %vm11558_vm11 = vmmov %vm11549_vm6 }
 0x38e   :  { %2289 = vst.msk [vmem:[#allocation3 + $0x40] sm:$0xff] %vm11544_vm1, %v2246_v47  ;;  %vm11559_vm1 = vmmov %vm11550_vm0  ;;  %v2506_v47 = vld [vmem:[#allocation2 + $0x112] sm:$0xff] }
 0x38f   :  { %2385 = vst.msk [vmem:[#allocation3 + $0x40] sm:$0xff] %vm11545_vm13, %v8725_v1  ;;  %v2503_v1 = vld [vmem:[#allocation2 + $0xe2] sm:$0xff]  ;;  %vm11560_vm13 = vmmov %vm11551_vm10 }
 0x392   :  { %v1962_v17 = vpop.permute.xlu2 %1961 }
 0x393   :  { %v2534_v7 = vpop.permute.xlu1 %2533  ;;  %2543 = vrot.lane.b32.xlu2 %v2502_v32, %s7040_s14 }
 0x394   :  { %v2438_v61 = vpop.permute.xlu0 %2437  ;;  %2447 = vrot.lane.b32.xlu1 %v2406_v40, %s7041_s17 }
 0x395   :  { %2481 = vst.msk [vmem:[#allocation3 + $0x40] sm:$0xff] %vm11546_vm7, %v2438_v61  ;;  %1873 = vrot.lane.b32.xlu0 %v2405_v25, %s7034_s15  ;;  %vm11561_vm7 = vmmov %vm11552_vm14  ;;  %v2505_v25 = vld [vmem:[#allocation2 + $0x102] sm:$0xff] }
 0x396   :  { %2577 = vst.msk [vmem:[#allocation3 + $0x40] sm:$0xff] %vm11547_vm15, %v2534_v7  ;;  %vm11562_vm15 = vmmov %vm11555_vm4 }
 0x39a   :  { %v2250_v58 = vpop.permute.xlu2 %2249 }
 0x39b   :  { %v2056_v10 = vpop.permute.xlu1 %2055  ;;  %2065 = vrot.lane.b32.xlu2 %v8737_v15, %s7036_s10 }
 0x39c   :  { %v1960_v8 = vpop.permute.xlu0 %1959  ;;  %1969 = vrot.lane.b32.xlu1 %v2501_v57, %s7035_s16 }
 0x39d   :  { %2002 = vst.msk [vmem:[#allocation3 + $0x50] sm:$0xff] %vm11548_vm5, %v1960_v8  ;;  %v2593_v29 = vld [vmem:[#allocation3 + $0x40] sm:$0xff]  ;;  %2161 = vrot.lane.b32.xlu0 %v2406_v40, %s7038_s12  ;;  %vm11563_vm5 = vmmov %vm11553_vm12 }
 0x39e   :  { %2098 = vst.msk [vmem:[#allocation3 + $0x50] sm:$0xff] %vm11549_vm6, %v2056_v10  ;;  %6738 = vmatmul.msk.f32.gmra.mxu1 %vm11550_vm0, %v2593_v29  ;;  %vm11564_vm6 = vmmov %vm11554_vm3  ;;  %v2411_v10 = vld [vmem:[#allocation2 + $0x121] sm:$0xff] }
 0x39f   :  { %2194 = vst.msk [vmem:[#allocation3 + $0x50] sm:$0xff] %vm11551_vm10, %v2152_v19  ;;  %vm11565_vm0 = vmmov %vm11557_vm8  ;;  %v2315_v8 = vld [vmem:[#allocation2 + $0x120] sm:$0xff] }
 0x3a0   :  { %vm11566_vm10 = vmmov %vm11555_vm4 }
 0x3a2   :  { %v2538_v53 = vpop.permute.xlu2 %2537 }
 0x3a3   :  { %v2344_v20 = vpop.permute.xlu1 %2343  ;;  %2353 = vrot.lane.b32.xlu2 %v8753_v55, %s7039_s13 }
 0x3a4   :  { %v2248_v30 = vpop.permute.xlu0 %2247  ;;  %2257 = vrot.lane.b32.xlu1 %v2502_v32, %s7037_s11 }
 0x3a5   :  { %2290 = vst.msk [vmem:[#allocation3 + $0x50] sm:$0xff] %vm11552_vm14, %v2248_v30  ;;  %2449 = vrot.lane.b32.xlu0 %v2407_v9, %s7041_s17  ;;  %vm11567_vm14 = vmmov %vm11556_vm9 }
 0x3a6   :  { %2386 = vst.msk [vmem:[#allocation3 + $0x50] sm:$0xff] %vm11553_vm12, %v2344_v20  ;;  %vm11568_vm12 = vmmov %vm11558_vm11 }
 0x3a7   :  { %2482 = vst.msk [vmem:[#allocation3 + $0x50] sm:$0xff] %vm11554_vm3, %v2440_v21  ;;  %vm11569_vm3 = vmmov %vm11559_vm1 }
 0x3aa   :  { %v2060_v46 = vpop.permute.xlu2 %2059 }
 0x3ab   :  { %v1866_v56 = vpop.permute.xlu1 %1865  ;;  %1875 = vrot.lane.b32.xlu2 %v2406_v40, %s7034_s15 }
 0x3ac   :  { %1907 = vst.msk [vmem:[#allocation3 + $0x60] sm:$0xff] %vm11555_vm4, %v1866_v56  ;;  %v2536_v48 = vpop.permute.xlu0 %2535  ;;  %2545 = vrot.lane.b32.xlu1 %v2503_v1, %s7040_s14  ;;  %vm11570_vm4 = vmmov %vm11560_vm13 }
 0x3ad   :  { %2003 = vst.msk [vmem:[#allocation3 + $0x60] sm:$0xff] %vm11556_vm9, %v1962_v17  ;;  %1971 = vrot.lane.b32.xlu0 %v2502_v32, %s7035_s16  ;;  %vm11571_vm9 = vmmov %vm11561_vm7 }
 0x3ae   :  { %2578 = vst.msk [vmem:[#allocation3 + $0x50] sm:$0xff] %vm11557_vm8, %v2536_v48  ;;  %vm11572_vm8 = vmmov %vm11563_vm5 }
 0x3b2   :  { %v2348_v22 = vpop.permute.xlu2 %2347 }
 0x3b3   :  { %v2154_v60 = vpop.permute.xlu1 %2153  ;;  %2163 = vrot.lane.b32.xlu2 %v2407_v9, %s7038_s12 }
 0x3b4   :  { %v2058_v18 = vpop.permute.xlu0 %2057  ;;  %2067 = vrot.lane.b32.xlu1 %v8753_v55, %s7036_s10 }
 0x3b5   :  { %v2594_v23 = vld [vmem:[#allocation3 + $0x50] sm:$0xff]  ;;  %2099 = vst.msk [vmem:[#allocation3 + $0x60] sm:$0xff] %vm11558_vm11, %v2058_v18  ;;  %2259 = vrot.lane.b32.xlu0 %v2503_v1, %s7037_s11  ;;  %vm11573_vm11 = vmmov %vm11564_vm6 }
 0x3b6   :  { %6739 = vmatmul.msk.f32.gmra.mxu1 %vm11559_vm1, %v2594_v23  ;;  %2195 = vst.msk [vmem:[#allocation3 + $0x60] sm:$0xff] %vm11560_vm13, %v2154_v60  ;;  %vm11574_vm1 = vmmov %vm11565_vm0  ;;  %v2412_v60 = vld [vmem:[#allocation2 + $0x131] sm:$0xff] }
 0x3b7   :  { %2291 = vst.msk [vmem:[#allocation3 + $0x60] sm:$0xff] %vm11561_vm7, %v2250_v58  ;;  %vm11575_vm13 = vmmov %vm11567_vm14  ;;  %v2508_v18 = vld [vmem:[#allocation2 + $0x132] sm:$0xff] }
 0x3b8   :  { %vm11576_vm7 = vmmov %vm11569_vm3 }
 0x3ba   :  { %v1870_v51 = vpop.permute.xlu2 %1869 }
 0x3bb   :  { %v2442_v63 = vpop.permute.xlu1 %2441  ;;  %1909 = vst.msk [vmem:[#allocation3 + $0x80] sm:$0xff] %vm11562_vm15, %v1870_v51  ;;  %2451 = vrot.lane.b32.xlu2 %v2408_v26, %s7041_s17  ;;  %vm11577_vm15 = vmmov %vm11568_vm12 }
 0x3bc   :  { %v2346_v41 = vpop.permute.xlu0 %2345  ;;  %2355 = vrot.lane.b32.xlu1 %v8759_v34, %s7039_s13 }
 0x3bd   :  { %2387 = vst.msk [vmem:[#allocation3 + $0x60] sm:$0xff] %vm11563_vm5, %v2346_v41  ;;  %2547 = vrot.lane.b32.xlu0 %v2504_v37, %s7040_s14  ;;  %vm11578_vm5 = vmmov %vm11570_vm4 }
 0x3be   :  { %2483 = vst.msk [vmem:[#allocation3 + $0x60] sm:$0xff] %vm11564_vm6, %v2442_v63  ;;  %vm11579_vm6 = vmmov %vm11571_vm9 }
 0x3bf   :  { %2579 = vst.msk [vmem:[#allocation3 + $0x60] sm:$0xff] %vm11565_vm0, %v2538_v53  ;;  %vm11580_vm0 = vmmov %vm11572_vm8 }
 0x3c3   :  { %v1964_v15 = vpop.permute.xlu1 %1963  ;;  %1973 = vrot.lane.b32.xlu2 %v2503_v1, %s7035_s16 }
 0x3c4   :  { %v1868_v59 = vpop.permute.xlu0 %1867  ;;  %1877 = vrot.lane.b32.xlu1 %v2407_v9, %s7034_s15 }
 0x3c5   :  { %1908 = vst.msk [vmem:[#allocation3 + $0x70] sm:$0xff] %vm11566_vm10, %v1868_v59  ;;  %2069 = vrot.lane.b32.xlu0 %v8759_v34, %s7036_s10  ;;  %vm11581_vm10 = vmmov %vm11573_vm11 }
 0x3c6   :  { %2004 = vst.msk [vmem:[#allocation3 + $0x70] sm:$0xff] %vm11567_vm14, %v1964_v15  ;;  %v2595_v36 = vld [vmem:[#allocation3 + $0x60] sm:$0xff]  ;;  %vm11582_vm14 = vmmov %vm11574_vm1  ;;  %v2681_v15 = vpop.f32.mrf.mxu1 }
 0x3c7   :  { %2100 = vst.msk [vmem:[#allocation3 + $0x70] sm:$0xff] %vm11568_vm12, %v2060_v46  ;;  %6740 = vmatmul.msk.f32.gmra.mxu1 %vm11569_vm3, %v2595_v36  ;;  %vm11583_vm12 = vcmask 130112   ;;  %vm11584_vm3 = vmmov %vm11575_vm13  ;;  %v2316_v46 = vld [vmem:[#allocation2 + $0x130] sm:$0xff] }
 0x3cb   :  { %v2252_v12 = vpop.permute.xlu1 %2251  ;;  %2261 = vrot.lane.b32.xlu2 %v2504_v37, %s7037_s11 }
 0x3cc   :  { %v2156_v14 = vpop.permute.xlu0 %2155  ;;  %2165 = vrot.lane.b32.xlu1 %v2408_v26, %s7038_s12 }
 0x3cd   :  { %2196 = vst.msk [vmem:[#allocation3 + $0x70] sm:$0xff] %vm11570_vm4, %v2156_v14  ;;  %2357 = vrot.lane.b32.xlu0 %v8757_v3, %s7039_s13  ;;  %v2158_v6 = vpop.permute.xlu2 %2157  ;;  %vm11585_vm4 = vmmov %vm11577_vm15 }
 0x3ce   :  { %2292 = vst.msk [vmem:[#allocation3 + $0x70] sm:$0xff] %vm11571_vm9, %v2252_v12  ;;  %vm11586_vm9 = vmmov %vm11576_vm7 }
 0x3cf   :  { %2388 = vst.msk [vmem:[#allocation3 + $0x70] sm:$0xff] %vm11572_vm8, %v2348_v22  ;;  %vm11587_vm8 = vmmov %vm11578_vm5 }
 0x3d3   :  { %v2540_v50 = vpop.permute.xlu1 %2539  ;;  %2549 = vrot.lane.b32.xlu2 %v2505_v25, %s7040_s14 }
 0x3d4   :  { %v2444_v57 = vpop.permute.xlu0 %2443  ;;  %2453 = vrot.lane.b32.xlu1 %v2409_v35, %s7041_s17 }
 0x3d5   :  { %2484 = vst.msk [vmem:[#allocation3 + $0x70] sm:$0xff] %vm11573_vm11, %v2444_v57  ;;  %1879 = vrot.lane.b32.xlu0 %v2408_v26, %s7034_s15  ;;  %v2446_v55 = vpop.permute.xlu2 %2445  ;;  %vm11588_vm11 = vmmov %vm11579_vm6 }
 0x3d6   :  { %2580 = vst.msk [vmem:[#allocation3 + $0x70] sm:$0xff] %vm11574_vm1, %v2540_v50  ;;  %vm11589_vm1 = vmmov %vm11580_vm0 }
 0x3db   :  { %2071 = vrot.lane.b32.xlu2 %v8757_v3, %s7036_s10 }
 0x3dc   :  { %1975 = vrot.lane.b32.xlu1 %v2504_v37, %s7035_s16  ;;  %v1966_v34 = vpop.permute.xlu0 %1965 }
 0x3dd   :  { %2167 = vrot.lane.b32.xlu0 %v2409_v35, %s7038_s12  ;;  %v2596_v19 = vld [vmem:[#allocation3 + $0x70] sm:$0xff]  ;;  %2005 = vst.msk [vmem:[#allocation3 + $0x80] sm:$0xff] %vm11575_vm13, %v1966_v34  ;;  %v1968_v42 = vpop.permute.xlu2 %1967  ;;  %vm11590_vm13 = vmmov %vm11583_vm12 }
 0x3de   :  { %6741 = vmatmul.msk.f32.gmra.mxu1 %vm11576_vm7, %v2596_v19  ;;  %vm11591_vm7 = vmmov %vm11581_vm10 }
 0x3e3   :  { %2359 = vrot.lane.b32.xlu2 %v8762_v27, %s7039_s13 }
 0x3e4   :  { %2263 = vrot.lane.b32.xlu1 %v2505_v25, %s7037_s11 }
 0x3e5   :  { %2455 = vrot.lane.b32.xlu0 %v2410_v52, %s7041_s17  ;;  %v2256_v3 = vpop.permute.xlu2 %2255 }
 0x3e6   :  { %v2062_v4 = vpop.permute.xlu1 %2061 }
 0x3e7   :  { %2101 = vst.msk [vmem:[#allocation3 + $0x80] sm:$0xff] %vm11577_vm15, %v2062_v4  ;;  %v2254_v21 = vpop.permute.xlu0 %2253  ;;  %vm11592_vm15 = vmmov %vm11582_vm14 }
 0x3e8   :  { %2197 = vst.msk [vmem:[#allocation3 + $0x80] sm:$0xff] %vm11578_vm5, %v2158_v6  ;;  %vm11593_vm5 = vmmov %vm11583_vm12  ;;  %v2684_v6 = vpop.f32.mrf.mxu1 }
 0x3e9   :  { %2293 = vst.msk [vmem:[#allocation3 + $0x80] sm:$0xff] %vm11579_vm6, %v2254_v21  ;;  %vm11594_vm6 = vmmov %vm11584_vm3 }
 0x3eb   :  { %1881 = vrot.lane.b32.xlu2 %v2409_v35, %s7034_s15 }
 0x3ec   :  { %2551 = vrot.lane.b32.xlu1 %v2506_v47, %s7040_s14 }
 0x3ed   :  { %1977 = vrot.lane.b32.xlu0 %v2505_v25, %s7035_s16  ;;  %v2544_v0 = vpop.permute.xlu2 %2543 }
 0x3ee   :  { %v2350_v17 = vpop.permute.xlu1 %2349 }
 0x3ef   :  { %2389 = vst.msk [vmem:[#allocation3 + $0x80] sm:$0xff] %vm11580_vm0, %v2350_v17  ;;  %v2542_v7 = vpop.permute.xlu0 %2541  ;;  %vm11595_vm0 = vmmov %vm11585_vm4 }
 0x3f0   :  { %2485 = vst.msk [vmem:[#allocation3 + $0x80] sm:$0xff] %vm11581_vm10, %v2446_v55  ;;  %vm11596_vm10 = vmmov %vm11587_vm8 }
 0x3f1   :  { %2581 = vst.msk [vmem:[#allocation3 + $0x80] sm:$0xff] %vm11582_vm14, %v2542_v7  ;;  %vm11597_vm14 = vmmov %vm11586_vm9 }
 0x3f3   :  { %2169 = vrot.lane.b32.xlu2 %v2410_v52, %s7038_s12 }
 0x3f4   :  { %2073 = vrot.lane.b32.xlu1 %v8762_v27, %s7036_s10  ;;  %v2507_v27 = vld [vmem:[#allocation2 + $0x122] sm:$0xff] }
 0x3f5   :  { %2265 = vrot.lane.b32.xlu0 %v2506_v47, %s7037_s11  ;;  %v2066_v61 = vpop.permute.xlu2 %2065 }
 0x3f6   :  { %v1872_v32 = vpop.permute.xlu1 %1871 }
 0x3f7   :  { %1910 = vst.msk [vmem:[#allocation3 + $0x90] sm:$0xff] %vm11583_vm12, %v1872_v32  ;;  %v2064_v40 = vpop.permute.xlu0 %2063  ;;  %vm11598_vm12 = vmmov %vm11588_vm11 }
 0x3f8   :  { %2006 = vst.msk [vmem:[#allocation3 + $0x90] sm:$0xff] %vm11584_vm3, %v1968_v42  ;;  %v2597_v58 = vld [vmem:[#allocation3 + $0x80] sm:$0xff]  ;;  %vm11599_vm3 = vmmov %vm11589_vm1  ;;  %v2687_v57 = vpop.f32.mrf.mxu1 }
 0x3f9   :  { %2102 = vst.msk [vmem:[#allocation3 + $0x90] sm:$0xff] %vm11585_vm4, %v2064_v40  ;;  %6742 = vmatmul.msk.f32.gmra.mxu1 %vm11586_vm9, %v2597_v58  ;;  %vm11600_vm4 = vmmov %vm11591_vm7 }
 0x3fa   :  { %vm11601_vm9 = vmmov %vm11592_vm15 }
 0x3fb   :  { %2457 = vrot.lane.b32.xlu2 %v2411_v10, %s7041_s17 }
 0x3fc   :  { %2361 = vrot.lane.b32.xlu1 %v2315_v8, %s7039_s13 }
 0x3fd   :  { %2553 = vrot.lane.b32.xlu0 %v2507_v27, %s7040_s14  ;;  %v2354_v29 = vpop.permute.xlu2 %2353 }
 0x3fe   :  { %v2160_v53 = vpop.permute.xlu1 %2159 }
 0x3ff   :  { %2198 = vst.msk [vmem:[#allocation3 + $0x90] sm:$0xff] %vm11587_vm8, %v2160_v53  ;;  %v2352_v20 = vpop.permute.xlu0 %2351  ;;  %vm11602_vm8 = vmmov %vm11594_vm6 }
 0x400   :  { %2294 = vst.msk [vmem:[#allocation3 + $0x90] sm:$0xff] %vm11588_vm11, %v2256_v3  ;;  %vm11603_vm11 = vmmov %vm11595_vm0 }
 0x401   :  { %2390 = vst.msk [vmem:[#allocation3 + $0x90] sm:$0xff] %vm11589_vm1, %v2352_v20  ;;  %vm11604_vm1 = vmmov %vm11597_vm14 }
 0x403   :  { %1979 = vrot.lane.b32.xlu2 %v2506_v47, %s7035_s16 }
 0x404   :  { %1883 = vrot.lane.b32.xlu1 %v2410_v52, %s7034_s15  ;;  %v2690_v52 = vpop.f32.mrf.mxu1 }
 0x405   :  { %2075 = vrot.lane.b32.xlu0 %v2315_v8, %s7036_s10  ;;  %v1876_v30 = vpop.permute.xlu2 %1875 }
 0x406   :  { %v2448_v9 = vpop.permute.xlu1 %2447  ;;  %1912 = vst.msk [vmem:[#allocation3 + $0xb0] sm:$0xff] %vm11590_vm13, %v1876_v30  ;;  %vm11605_vm13 = vmmov %vm11596_vm10 }
 0x407   :  { %v1874_v2 = vpop.permute.xlu0 %1873  ;;  %2486 = vst.msk [vmem:[#allocation3 + $0x90] sm:$0xff] %vm11591_vm7, %v2448_v9  ;;  %vm11606_vm7 = vmmov %vm11598_vm12 }
 0x408   :  { %2582 = vst.msk [vmem:[#allocation3 + $0x90] sm:$0xff] %vm11592_vm15, %v2544_v0  ;;  %vm11607_vm15 = vmmov %vm11599_vm3 }
 0x409   :  { %1911 = vst.msk [vmem:[#allocation3 + $0xa0] sm:$0xff] %vm11593_vm5, %v1874_v2  ;;  %vm11608_vm5 = vmmov %vm11600_vm4 }
 0x40b   :  { %2267 = vrot.lane.b32.xlu2 %v2507_v27, %s7037_s11 }
 0x40c   :  { %2171 = vrot.lane.b32.xlu1 %v2411_v10, %s7038_s12 }
 0x40d   :  { %2363 = vrot.lane.b32.xlu0 %v2316_v46, %s7039_s13  ;;  %v2164_v56 = vpop.permute.xlu2 %2163 }
 0x40e   :  { %v1970_v48 = vpop.permute.xlu1 %1969 }
 0x40f   :  { %2007 = vst.msk [vmem:[#allocation3 + $0xa0] sm:$0xff] %vm11594_vm6, %v1970_v48  ;;  %v2162_v1 = vpop.permute.xlu0 %2161  ;;  %v2598_v22 = vld [vmem:[#allocation3 + $0x90] sm:$0xff]  ;;  %vm11609_vm6 = vmmov %vm11601_vm9 }
 0x410   :  { %2103 = vst.msk [vmem:[#allocation3 + $0xa0] sm:$0xff] %vm11595_vm0, %v2066_v61  ;;  %6743 = vmatmul.msk.f32.gmra.mxu1 %vm11597_vm14, %v2598_v22  ;;  %vm11610_vm0 = vcmask 130112   ;;  %vm11612_vm14 = vmmov %vm11603_vm11  ;;  %v8925_v61 = vld [vmem:[%s11441_s7 + $0x3] ss:$0 sm:$0xff] }
 0x411   :  { %2199 = vst.msk [vmem:[#allocation3 + $0xa0] sm:$0xff] %vm11596_vm10, %v2162_v1  ;;  %vm11611_vm10 = vmmov %vm11602_vm8  ;;  %v2685_v40 = vadd.f32 %v8925_v61, %v2684_v6  ;;  %v2682_v58 = vadd.f32 %v8925_v61, %v2681_v15  ;;  %v2688_v10 = vadd.f32 %v8925_v61, %v2687_v57  ;;  %v2691_v53 = vadd.f32 %v8925_v61, %v2690_v52 }
 0x413   :  { %2555 = vrot.lane.b32.xlu2 %v2508_v18, %s7040_s14  ;;  %v2729_v30 = vsel %vm11457_vm2, %v2682_v58, 0.0  ;;  %v2732_v9 = vsel %vm11457_vm2, %v2688_v10, 0.0  ;;  %v2734_v48 = vsel %vm11457_vm2, %v2691_v53, 0.0 }
 0x414   :  { %2459 = vrot.lane.b32.xlu1 %v2412_v60, %s7041_s17 }
 0x415   :  { %v2452_v23 = vpop.permute.xlu2 %2451 }
 0x416   :  { %v2258_v51 = vpop.permute.xlu1 %2257 }
 0x417   :  { %2295 = vst.msk [vmem:[#allocation3 + $0xa0] sm:$0xff] %vm11598_vm12, %v2258_v51  ;;  %v2450_v63 = vpop.permute.xlu0 %2449  ;;  %vm11613_vm12 = vmmov %vm11604_vm1 }
 0x418   :  { %2391 = vst.msk [vmem:[#allocation3 + $0xa0] sm:$0xff] %vm11599_vm3, %v2354_v29  ;;  %vm11614_vm3 = vmmov %vm11605_vm13  ;;  %v2730_v29 = vsel %vm11457_vm2, %v2685_v40, 0.0 }
 0x419   :  { %2487 = vst.msk [vmem:[#allocation3 + $0xa0] sm:$0xff] %vm11600_vm4, %v2450_v63  ;;  %vm11615_vm4 = vmmov %vm11606_vm7  ;;  %v2731_v46 = vadd.f32 %v2730_v29, %v2729_v30 }
 0x41b   :  { %v2693_v47 = vpop.f32.mrf.mxu1  ;;  %v2733_v22 = vadd.f32 %v2732_v9, %v2731_v46 }
 0x41c   :  { %v2694_v2 = vadd.f32 %v8925_v61, %v2693_v47 }
 0x41d   :  { %v1974_v26 = vpop.permute.xlu2 %1973  ;;  %v2735_v51 = vadd.f32 %v2734_v48, %v2733_v22 }
 0x41e   :  { %v2546_v41 = vpop.permute.xlu1 %2545  ;;  %v2736_v60 = vsel %vm11457_vm2, %v2694_v2, 0.0 }
 0x41f   :  { %2583 = vst.msk [vmem:[#allocation3 + $0xa0] sm:$0xff] %vm11601_vm9, %v2546_v41  ;;  %v1972_v37 = vpop.permute.xlu0 %1971  ;;  %vm11616_vm9 = vmmov %vm11607_vm15  ;;  %v2737_v41 = vadd.f32 %v2736_v60, %v2735_v51 }
 0x420   :  { %2008 = vst.msk [vmem:[#allocation3 + $0xb0] sm:$0xff] %vm11602_vm8, %v1972_v37  ;;  %vm11617_vm8 = vmmov %vm11610_vm0 }
 0x425   :  { %v2262_v59 = vpop.permute.xlu2 %2261 }
 0x426   :  { %v2068_v36 = vpop.permute.xlu1 %2067  ;;  %v2599_v12 = vld [vmem:[#allocation3 + $0xa0] sm:$0xff] }
 0x427   :  { %2104 = vst.msk [vmem:[#allocation3 + $0xb0] sm:$0xff] %vm11603_vm11, %v2068_v36  ;;  %v2260_v14 = vpop.permute.xlu0 %2259  ;;  %6744 = vmatmul.msk.f32.gmra.mxu1 %vm11604_vm1, %v2599_v12  ;;  %vm11618_vm11 = vmmov %vm11608_vm5 }
 0x428   :  { %2200 = vst.msk [vmem:[#allocation3 + $0xb0] sm:$0xff] %vm11605_vm13, %v2164_v56  ;;  %vm11619_vm1 = vmmov %vm11609_vm6 }
 0x429   :  { %2296 = vst.msk [vmem:[#allocation3 + $0xb0] sm:$0xff] %vm11606_vm7, %v2260_v14  ;;  %vm11620_vm13 = vmmov %vm11610_vm0 }
 0x42a   :  { %vm11621_vm7 = vmmov %vm11611_vm10 }
 0x42d   :  { %v2550_v50 = vpop.permute.xlu2 %2549 }
 0x42e   :  { %v2356_v25 = vpop.permute.xlu1 %2355 }
 0x42f   :  { %2392 = vst.msk [vmem:[#allocation3 + $0xb0] sm:$0xff] %vm11607_vm15, %v2356_v25  ;;  %v2548_v35 = vpop.permute.xlu0 %2547  ;;  %vm11622_vm15 = vmmov %vm11612_vm14 }
 0x430   :  { %2488 = vst.msk [vmem:[#allocation3 + $0xb0] sm:$0xff] %vm11608_vm5, %v2452_v23  ;;  %vm11623_vm5 = vmmov %vm11614_vm3 }
 0x431   :  { %2584 = vst.msk [vmem:[#allocation3 + $0xb0] sm:$0xff] %vm11609_vm6, %v2548_v35  ;;  %vm11624_vm6 = vmmov %vm11613_vm12 }
 0x433   :  { %v2696_v32 = vpop.f32.mrf.mxu1 }
 0x434   :  { %v2697_v1 = vadd.f32 %v8925_v61, %v2696_v32 }
 0x435   :  { %v2072_v55 = vpop.permute.xlu2 %2071 }
 0x436   :  { %v1878_v34 = vpop.permute.xlu1 %1877 }
 0x437   :  { %1913 = vst.msk [vmem:[#allocation3 + $0xc0] sm:$0xff] %vm11610_vm0, %v1878_v34  ;;  %v2070_v19 = vpop.permute.xlu0 %2069  ;;  %vm11625_vm0 = vmmov %vm11615_vm4 }
 0x438   :  { %2009 = vst.msk [vmem:[#allocation3 + $0xc0] sm:$0xff] %vm11611_vm10, %v1974_v26  ;;  %v2600_v42 = vld [vmem:[#allocation3 + $0xb0] sm:$0xff]  ;;  %v2738_v26 = vsel %vm11457_vm2, %v2697_v1, 0.0  ;;  %vm11626_vm10 = vmmov %vm11616_vm9 }
 0x439   :  { %2105 = vst.msk [vmem:[#allocation3 + $0xc0] sm:$0xff] %vm11612_vm14, %v2070_v19  ;;  %6745 = vmatmul.msk.f32.gmra.mxu1 %vm11613_vm12, %v2600_v42  ;;  %vm11627_vm14 = vmmov %vm11618_vm11  ;;  %v2739_v15 = vadd.f32 %v2738_v26, %v2737_v41 }
 0x43a   :  { %vm11628_vm12 = vmmov %vm11619_vm1 }
 0x43d   :  { %v2360_v3 = vpop.permute.xlu2 %2359 }
 0x43e   :  { %v2166_v4 = vpop.permute.xlu1 %2165 }
 0x43f   :  { %2201 = vst.msk [vmem:[#allocation3 + $0xc0] sm:$0xff] %vm11614_vm3, %v2166_v4  ;;  %v2358_v21 = vpop.permute.xlu0 %2357  ;;  %vm11629_vm3 = vmmov %vm11621_vm7 }
 0x440   :  { %2297 = vst.msk [vmem:[#allocation3 + $0xc0] sm:$0xff] %vm11615_vm4, %v2262_v59  ;;  %vm11630_vm4 = vmmov %vm11622_vm15 }
 0x441   :  { %2393 = vst.msk [vmem:[#allocation3 + $0xc0] sm:$0xff] %vm11616_vm9, %v2358_v21  ;;  %vm11631_vm9 = vmmov %vm11624_vm6 }
 0x444   :  { %v2699_v56 = vpop.f32.mrf.mxu1 }
 0x445   :  { %v1882_v0 = vpop.permute.xlu2 %1881  ;;  %v2700_v18 = vadd.f32 %v8925_v61, %v2699_v56 }
 0x446   :  { %v2454_v17 = vpop.permute.xlu1 %2453  ;;  %1915 = vst.msk [vmem:[#allocation3 + $0xe0] sm:$0xff] %vm11617_vm8, %v1882_v0  ;;  %vm11632_vm8 = vmmov %vm11623_vm5 }
 0x447   :  { %v1880_v7 = vpop.permute.xlu0 %1879  ;;  %2489 = vst.msk [vmem:[#allocation3 + $0xc0] sm:$0xff] %vm11618_vm11, %v2454_v17  ;;  %v2740_v37 = vsel %vm11457_vm2, %v2700_v18, 0.0  ;;  %vm11633_vm11 = vmmov %vm11625_vm0 }
 0x448   :  { %2585 = vst.msk [vmem:[#allocation3 + $0xc0] sm:$0xff] %vm11619_vm1, %v2550_v50  ;;  %v2741_v12 = vadd.f32 %v2740_v37, %v2739_v15  ;;  %vm11634_vm1 = vmmov %vm11626_vm10 }
 0x449   :  { %1914 = vst.msk [vmem:[#allocation3 + $0xd0] sm:$0xff] %vm11620_vm13, %v1880_v7  ;;  %vm11635_vm13 = vmmov %vm11627_vm14 }
 0x44d   :  { %v2170_v50 = vpop.permute.xlu2 %2169 }
 0x44e   :  { %v1976_v8 = vpop.permute.xlu1 %1975 }
 0x44f   :  { %2010 = vst.msk [vmem:[#allocation3 + $0xd0] sm:$0xff] %vm11621_vm7, %v1976_v8  ;;  %v2168_v27 = vpop.permute.xlu0 %2167  ;;  %v2601_v20 = vld [vmem:[#allocation3 + $0xc0] sm:$0xff]  ;;  %vm11636_vm7 = vmmov %vm11628_vm12 }
 0x450   :  { %2106 = vst.msk [vmem:[#allocation3 + $0xd0] sm:$0xff] %vm11622_vm15, %v2072_v55  ;;  %6746 = vmatmul.msk.f32.gmra.mxu1 %vm11624_vm6, %v2601_v20  ;;  %vm11637_vm15 = vcmask 130112   ;;  %vm11639_vm6 = vmmov %vm11630_vm4 }
 0x451   :  { %2202 = vst.msk [vmem:[#allocation3 + $0xd0] sm:$0xff] %vm11623_vm5, %v2168_v27  ;;  %vm11638_vm5 = vmmov %vm11629_vm3 }
 0x455   :  { %v2458_v4 = vpop.permute.xlu2 %2457 }
 0x456   :  { %v2264_v23 = vpop.permute.xlu1 %2263 }
 0x457   :  { %2298 = vst.msk [vmem:[#allocation3 + $0xd0] sm:$0xff] %vm11625_vm0, %v2264_v23  ;;  %v2456_v63 = vpop.permute.xlu0 %2455  ;;  %vm11640_vm0 = vmmov %vm11631_vm9 }
 0x458   :  { %2394 = vst.msk [vmem:[#allocation3 + $0xd0] sm:$0xff] %vm11626_vm10, %v2360_v3  ;;  %vm11641_vm10 = vmmov %vm11632_vm8 }
 0x459   :  { %2490 = vst.msk [vmem:[#allocation3 + $0xd0] sm:$0xff] %vm11627_vm14, %v2456_v63  ;;  %vm11642_vm14 = vmmov %vm11633_vm11 }
 0x45b   :  { %v2702_v59 = vpop.f32.mrf.mxu1 }
 0x45c   :  { %v2703_v36 = vadd.f32 %v8925_v61, %v2702_v59 }
 0x45d   :  { %v1980_v46 = vpop.permute.xlu2 %1979 }
 0x45e   :  { %v2742_v14 = vsel %vm11457_vm2, %v2703_v36, 0.0  ;;  %v2552_v6 = vpop.permute.xlu1 %2551 }
 0x45f   :  { %v2743_v25 = vadd.f32 %v2742_v14, %v2741_v12  ;;  %2586 = vst.msk [vmem:[#allocation3 + $0xd0] sm:$0xff] %vm11628_vm12, %v2552_v6  ;;  %v1978_v35 = vpop.permute.xlu0 %1977  ;;  %vm11643_vm12 = vmmov %vm11634_vm1 }
 0x460   :  { %2011 = vst.msk [vmem:[#allocation3 + $0xe0] sm:$0xff] %vm11629_vm3, %v1978_v35  ;;  %vm11644_vm3 = vmmov %vm11635_vm13 }
 0x461   :  { %v2744_v57 = vrot.slane %v2743_v25, 4 }
 0x463   :  { %v2745_v55 = vadd.f32 %v2744_v57, %v2743_v25 }
 0x465   :  { %v2746_v34 = vrot.slane %v2745_v55, 2  ;;  %v2268_v25 = vpop.permute.xlu2 %2267 }
 0x466   :  { %v2074_v19 = vpop.permute.xlu1 %2073  ;;  %v2602_v42 = vld [vmem:[#allocation3 + $0xd0] sm:$0xff] }
 0x467   :  { %v2747_v52 = vadd.f32 %v2746_v34, %v2745_v55  ;;  %2107 = vst.msk [vmem:[#allocation3 + $0xe0] sm:$0xff] %vm11630_vm4, %v2074_v19  ;;  %v2266_v3 = vpop.permute.xlu0 %2265  ;;  %6747 = vmatmul.msk.f32.gmra.mxu1 %vm11631_vm9, %v2602_v42  ;;  %vm11645_vm4 = vmmov %vm11636_vm7 }
 0x468   :  { %2203 = vst.msk [vmem:[#allocation3 + $0xe0] sm:$0xff] %vm11632_vm8, %v2170_v50  ;;  %vm11646_vm9 = vmmov %vm11640_vm0 }
 0x469   :  { %v2748_v21 = vrot.slane %v2747_v52, 1  ;;  %2299 = vst.msk [vmem:[#allocation3 + $0xe0] sm:$0xff] %vm11633_vm11, %v2266_v3 }
 0x46b   :  { %v2749_v47 = vadd.f32 %v2748_v21, %v2747_v52 }
 0x46d   :  { %v2771_v0 = vmul.f32 %v2749_v47, %v7985_v24  ;;  %v2556_v3 = vpop.permute.xlu2 %2555 }
 0x46e   :  { %v2362_v17 = vpop.permute.xlu1 %2361 }
 0x46f   :  { %v8958_v7 = vsub.f32 %v2682_v58, %v2771_v0  ;;  %v8960_v32 = vsub.f32 %v2685_v40, %v2771_v0  ;;  %v8962_v8 = vsub.f32 %v2688_v10, %v2771_v0  ;;  %v8964_v27 = vsub.f32 %v2691_v53, %v2771_v0  ;;  %2395 = vst.msk [vmem:[#allocation3 + $0xe0] sm:$0xff] %vm11634_vm1, %v2362_v17  ;;  %v2554_v29 = vpop.permute.xlu0 %2553  ;;  %v3087_v17 = vld [vmem:[#allocation2 + $0x2] sm:$0xff] }
 0x470   :  { %2491 = vst.msk [vmem:[#allocation3 + $0xe0] sm:$0xff] %vm11635_vm13, %v2458_v4  ;;  %v8968_v20 = vsub.f32 %v2694_v2, %v2771_v0  ;;  %v8977_v10 = vsub.f32 %v2697_v1, %v2771_v0  ;;  %v8983_v48 = vsub.f32 %v2700_v18, %v2771_v0  ;;  %v8988_v1 = vsub.f32 %v2703_v36, %v2771_v0  ;;  %v2991_v0 = vld [vmem:[#allocation2 + $0x1] sm:$0xff]  ;;  %vm11647_vm13 = vmmov %vm11637_vm15 }
 0x471   :  { %v2791_v30 = vmul.f32 %v8958_v7, %v8958_v7  ;;  %v2792_v58 = vmul.f32 %v8960_v32, %v8960_v32  ;;  %v2793_v40 = vmul.f32 %v8962_v8, %v8962_v8  ;;  %2587 = vst.msk [vmem:[#allocation3 + $0xe0] sm:$0xff] %vm11636_vm7, %v2554_v29  ;;  %v2794_v53 = vmul.f32 %v8964_v27, %v8964_v27  ;;  %vm11648_vm7 = vmmov %vm11638_vm5 }
 0x472   :  { %v2795_v22 = vmul.f32 %v8968_v20, %v8968_v20  ;;  %v2796_v63 = vmul.f32 %v8977_v10, %v8977_v10  ;;  %v2797_v15 = vmul.f32 %v8983_v48, %v8983_v48  ;;  %v2798_v12 = vmul.f32 %v8988_v1, %v8988_v1  ;;  %3023 = vrot.lane.b32.xlu0 %v2991_v0, %s7034_s15 }
 0x473   :  { %v2807_v9 = vsel %vm11457_vm2, %v2791_v30, 0.0  ;;  %v2808_v2 = vsel %vm11457_vm2, %v2792_v58, 0.0  ;;  %v2810_v60 = vsel %vm11457_vm2, %v2793_v40, 0.0  ;;  %v2812_v26 = vsel %vm11457_vm2, %v2794_v53, 0.0  ;;  %3119 = vrot.lane.b32.xlu1 %v3087_v17, %s7035_s16 }
 0x474   :  { %v2809_v56 = vadd.f32 %v2808_v2, %v2807_v9  ;;  %v2814_v59 = vsel %vm11457_vm2, %v2795_v22, 0.0  ;;  %v2816_v14 = vsel %vm11457_vm2, %v2796_v63, 0.0  ;;  %v2818_v50 = vsel %vm11457_vm2, %v2797_v15, 0.0  ;;  %v3574_v9 = vld [vmem:[#allocation2 + $0x91] sm:$0xff]  ;;  %v3095_v22 = vld [vmem:[#allocation2 + $0xa2] sm:$0xff] }
 0x475   :  { %v2820_v55 = vsel %vm11457_vm2, %v2798_v12, 0.0  ;;  %v3478_v2 = vld [vmem:[#allocation2 + $0x90] sm:$0xff]  ;;  %3613 = vrot.lane.b32.xlu2 %v3574_v9, %s7041_s17 }
 0x476   :  { %v2811_v23 = vadd.f32 %v2810_v60, %v2809_v56  ;;  %v1884_v51 = vpop.permute.xlu1 %1883  ;;  %v2999_v60 = vld [vmem:[#allocation2 + $0xa1] sm:$0xff] }
 0x477   :  { %1916 = vst.msk [vmem:[#allocation3 + $0xf0] sm:$0xff] %vm11637_vm15, %v1884_v51  ;;  %v2076_v41 = vpop.permute.xlu0 %2075  ;;  %vm11649_vm15 = vmmov %vm11639_vm6 }
 0x478   :  { %v2813_v37 = vadd.f32 %v2812_v26, %v2811_v23  ;;  %2012 = vst.msk [vmem:[#allocation3 + $0xf0] sm:$0xff] %vm11638_vm5, %v1980_v46  ;;  %v2603_v18 = vld [vmem:[#allocation3 + $0xe0] sm:$0xff]  ;;  %v3670_v46 = vld [vmem:[#allocation2 + $0x92] sm:$0xff]  ;;  %vm11650_vm5 = vmmov %vm11647_vm13 }
 0x479   :  { %2108 = vst.msk [vmem:[#allocation3 + $0xf0] sm:$0xff] %vm11639_vm6, %v2076_v41  ;;  %6748 = vmatmul.msk.f32.gmra.mxu1 %vm11640_vm0, %v2603_v18  ;;  %vm11651_vm6 = vmmov %vm11650_vm5 }
 0x47a   :  { %v2815_v36 = vadd.f32 %v2814_v59, %v2813_v37  ;;  %3709 = vrot.lane.b32.xlu0 %v3670_v46, %s7040_s14  ;;  %v9022_v37 = vld [vmem:[%s11441_s7 + $0x4] ss:$0 sm:$0xff]  ;;  %vm11652_vm0 = vmmov %vm11648_vm7 }
 0x47b   :  { %3517 = vrot.lane.b32.xlu1 %v3478_v2, %s7039_s13 }
 0x47c   :  { %v2817_v6 = vadd.f32 %v2816_v14, %v2815_v36  ;;  %v9031_v14 = vld [vmem:[%s11441_s7 + $0x5] ss:$0 sm:$0xff] }
 0x47d   :  { %3135 = vrot.lane.b32.xlu2 %v3095_v22, %s7035_s16  ;;  %v2705_v22 = vpop.f32.mrf.mxu1 }
 0x47e   :  { %v2819_v35 = vadd.f32 %v2818_v50, %v2817_v6  ;;  %v2172_v57 = vpop.permute.xlu1 %2171 }
 0x47f   :  { %2204 = vst.msk [vmem:[#allocation3 + $0xf0] sm:$0xff] %vm11641_vm10, %v2172_v57  ;;  %v2364_v34 = vpop.permute.xlu0 %2363 }
 0x480   :  { %v2821_v19 = vadd.f32 %v2820_v55, %v2819_v35  ;;  %2300 = vst.msk [vmem:[#allocation3 + $0xf0] sm:$0xff] %vm11642_vm14, %v2268_v25 }
 0x481   :  { %2396 = vst.msk [vmem:[#allocation3 + $0xf0] sm:$0xff] %vm11643_vm12, %v2364_v34 }
 0x482   :  { %v2822_v42 = vrot.slane %v2821_v19, 4 }
 0x483   :  { %3039 = vrot.lane.b32.xlu1 %v2999_v60, %s7034_s15 }
 0x484   :  { %v2823_v52 = vadd.f32 %v2822_v42, %v2821_v19 }
 0x486   :  { %v2824_v4 = vrot.slane %v2823_v52, 2  ;;  %v2460_v21 = vpop.permute.xlu1 %2459 }
 0x487   :  { %2492 = vst.msk [vmem:[#allocation3 + $0xf0] sm:$0xff] %vm11644_vm3, %v2460_v21 }
 0x488   :  { %v2825_v47 = vadd.f32 %v2824_v4, %v2823_v52  ;;  %2588 = vst.msk [vmem:[#allocation3 + $0xf0] sm:$0xff] %vm11645_vm4, %v2556_v3 }
 0x48a   :  { %v2826_v29 = vrot.slane %v2825_v47, 1 }
 0x48c   :  { %v2827_v30 = vadd.f32 %v2826_v29, %v2825_v47 }
 0x48d   :  { %v2708_v60 = vpop.f32.mrf.mxu1 }
 0x48e   :  { %v2849_v58 = vmul.f32 %v2827_v30, %v7985_v24 }
 0x48f   :  { %v2604_v40 = vld [vmem:[#allocation3 + $0xf0] sm:$0xff] }
 0x490   :  { %v2853_v53 = vadd.f32 1e-05, %v2849_v58  ;;  %6749 = vmatmul.msk.f32.gmra.mxu1 %vm11646_vm9, %v2604_v40  ;;  %vm11653_vm9 = vmmov %vm11652_vm0 }
 0x492   :  { %6924 = vrsqrt.f32 %v2853_v53  ;;  %vm2861_vm11 = vweird.f32 %v2853_v53 }
 0x498   :  { %v6925_v56 = vpop.eup %6924 }
 0x499   :  { %v2856_v23 = vmul.f32 %v6925_v56, %v2853_v53  ;;  %vm2862_vm8 = vweird.f32 %v6925_v56 }
 0x49a   :  { %vm2863_vm1 = vmor %vm2861_vm11, %vm2862_vm8  ;;  %vm11655_vm11 = vcmask 588800  }
 0x49b   :  { %v2857_v51 = vmul.f32 %v6925_v56, %v2856_v23  ;;  %vm11654_vm8 = vmmov %vm11649_vm15 }
 0x49d   :  { %v2858_v63 = vmul.f32 0.5, %v2857_v51 }
 0x49f   :  { %v2859_v26 = vsub.f32 1.5, %v2858_v63  ;;  %v2959_v63 = vld [vmem:[#allocation2] sm:$0xff] }
 0x4a0   :  { %2975 = vst.msk [vmem:[#allocation3] sm:$0xff] %vm11457_vm2, %v2959_v63 }
 0x4a1   :  { %v2860_v41 = vmul.f32 %v6925_v56, %v2859_v26 }
 0x4a3   :  { %v2864_v18 = vsel %vm2863_vm1, %v6925_v56, %v2860_v41  ;;  %vm11656_vm1 = vmmov %vm11641_vm10 }
 0x4a4   :  { %v2875_v15 = vmul.f32 %v2864_v18, %v8958_v7  ;;  %v2876_v59 = vmul.f32 %v2864_v18, %v8960_v32  ;;  %v2877_v36 = vmul.f32 %v2864_v18, %v8962_v8  ;;  %v2878_v12 = vmul.f32 %v2864_v18, %v8964_v27  ;;  %v2711_v51 = vpop.f32.mrf.mxu1 }
 0x4a5   :  { %v2879_v6 = vmul.f32 %v2864_v18, %v8968_v20  ;;  %v2880_v50 = vmul.f32 %v2864_v18, %v8977_v10  ;;  %v2881_v25 = vmul.f32 %v2864_v18, %v8983_v48  ;;  %v2882_v35 = vmul.f32 %v2864_v18, %v8988_v1 }
 0x4a6   :  { %v2893_v7 = vmul.f32 %v9022_v37, %v2875_v15  ;;  %v2894_v32 = vmul.f32 %v9022_v37, %v2876_v59  ;;  %v2895_v8 = vmul.f32 %v9022_v37, %v2877_v36  ;;  %v2896_v27 = vmul.f32 %v9022_v37, %v2878_v12 }
 0x4a7   :  { %v2897_v57 = vmul.f32 %v9022_v37, %v2879_v6  ;;  %v2898_v55 = vmul.f32 %v9022_v37, %v2880_v50  ;;  %v2899_v20 = vmul.f32 %v9022_v37, %v2881_v25  ;;  %v2900_v10 = vmul.f32 %v9022_v37, %v2882_v35 }
 0x4a8   :  { %v2911_v48 = vadd.f32 %v9031_v14, %v2893_v7  ;;  %v2912_v1 = vadd.f32 %v9031_v14, %v2894_v32  ;;  %v2913_v34 = vadd.f32 %v9031_v14, %v2895_v8  ;;  %v2914_v19 = vadd.f32 %v9031_v14, %v2896_v27 }
 0x4a9   :  { %v2915_v42 = vadd.f32 %v9031_v14, %v2897_v57  ;;  %v2916_v52 = vadd.f32 %v9031_v14, %v2898_v55  ;;  %v2917_v3 = vadd.f32 %v9031_v14, %v2899_v20  ;;  %v2918_v0 = vadd.f32 %v9031_v14, %v2900_v10 }
 0x4aa   :  { %v2927_v4 = vadd.f32 %v2911_v48, %v7356_v39  ;;  %v2928_v21 = vadd.f32 %v2912_v1, %v7354_v38  ;;  %v2929_v47 = vadd.f32 %v2913_v34, %v7346_v31  ;;  %v2930_v17 = vadd.f32 %v2914_v19, %v7368_v45 }
 0x4ab   :  { %v2931_v29 = vadd.f32 %v2915_v42, %v7379_v54  ;;  %v2932_v30 = vadd.f32 %v2916_v52, %v7389_v62  ;;  %v2933_v58 = vadd.f32 %v2917_v3, %v7405_v5  ;;  %v2934_v38 = vadd.f32 %v2918_v0, %v7457_v33 }
 0x4ac   :  { %2943 = vst.msk [vmem:[#allocation2 + $0x11] sm:$0xff] %vm11457_vm2, %v2927_v4  ;;  %v9125_v25 = vadd.f32 %v8925_v61, %v2708_v60  ;;  %v9128_v35 = vadd.f32 %v8925_v61, %v2705_v22  ;;  %v9131_v7 = vadd.f32 %v8925_v61, %v2711_v51  ;;  %v3780_v60 = vld [vmem:[%s11438_s4 + $0x28] sm:$0xff] }
 0x4ad   :  { %2944 = vst.msk [vmem:[#allocation2 + $0x21] sm:$0xff] %vm11457_vm2, %v2928_v21 }
 0x4ae   :  { %2945 = vst.msk [vmem:[#allocation2 + $0x31] sm:$0xff] %vm11457_vm2, %v2929_v47  ;;  %v2751_v32 = vsel %vm11457_vm2, %v9125_v25, 0.0  ;;  %v2750_v27 = vsel %vm11457_vm2, %v9128_v35, 0.0  ;;  %v2753_v57 = vsel %vm11457_vm2, %v9131_v7, 0.0 }
 0x4af   :  { %2946 = vst.msk [vmem:[#allocation2 + $0x41] sm:$0xff] %vm11457_vm2, %v2930_v17  ;;  %v2752_v20 = vadd.f32 %v2751_v32, %v2750_v27 }
 0x4b0   :  { %2947 = vst.msk [vmem:[#allocation2 + $0x51] sm:$0xff] %vm11457_vm2, %v2931_v29 }
 0x4b1   :  { %2948 = vst.msk [vmem:[#allocation2 + $0x61] sm:$0xff] %vm11457_vm2, %v2932_v30  ;;  %v2754_v19 = vadd.f32 %v2753_v57, %v2752_v20 }
 0x4b2   :  { %2949 = vst.msk [vmem:[#allocation2 + $0x71] sm:$0xff] %vm11457_vm2, %v2933_v58 }
 0x4b3   :  { %2950 = vst.msk [vmem:[#allocation2 + $0x81] sm:$0xff] %vm11457_vm2, %v2934_v38  ;;  %v3375_v31 = vld [vmem:[#allocation2 + $0x12] sm:$0xff] }
 0x4b4   :  { %v3279_v39 = vld [vmem:[#allocation2 + $0x11] sm:$0xff]  ;;  %3407 = vrot.lane.b32.xlu1 %v3375_v31, %s7037_s11  ;;  %v3471_v54 = vld [vmem:[#allocation2 + $0x20] sm:$0xff] }
 0x4b5   :  { %v3183_v45 = vld [vmem:[#allocation2 + $0x10] sm:$0xff]  ;;  %3311 = vrot.lane.b32.xlu0 %v3279_v39, %s7038_s12  ;;  %2977 = vst.msk [vmem:[#allocation3 + $0x20] sm:$0xff] %vm11457_vm2, %v3471_v54  ;;  %v3663_v9 = vld [vmem:[#allocation2 + $0x22] sm:$0xff] }
 0x4b6   :  { %2976 = vst.msk [vmem:[#allocation3 + $0x10] sm:$0xff] %vm11457_vm2, %v3183_v45  ;;  %3215 = vrot.lane.b32.xlu2 %v3183_v45, %s7036_s10  ;;  %v3472_v62 = vld [vmem:[#allocation2 + $0x30] sm:$0xff]  ;;  %v3473_v5 = vld [vmem:[#allocation2 + $0x40] sm:$0xff]  ;;  %v2714_v41 = vpop.f32.mrf.mxu1 }
 0x4b7   :  { %2978 = vst.msk [vmem:[#allocation3 + $0x30] sm:$0xff] %vm11457_vm2, %v3472_v62  ;;  %v9075_v33 = vld [vmem:[#allocation2 + $0x50] sm:$0xff]  ;;  %v3567_v2 = vld [vmem:[#allocation2 + $0x21] sm:$0xff]  ;;  %v9136_v8 = vadd.f32 %v8925_v61, %v2714_v41 }
 0x4b8   :  { %2979 = vst.msk [vmem:[#allocation3 + $0x40] sm:$0xff] %vm11457_vm2, %v3473_v5  ;;  %v9078_v40 = vld [vmem:[#allocation2 + $0x60] sm:$0xff]  ;;  %v3664_v46 = vld [vmem:[#allocation2 + $0x32] sm:$0xff] }
 0x4b9   :  { %2980 = vst.msk [vmem:[#allocation3 + $0x50] sm:$0xff] %vm11457_vm2, %v9075_v33  ;;  %v9082_v53 = vld [vmem:[#allocation2 + $0x70] sm:$0xff]  ;;  %v3569_v23 = vld [vmem:[#allocation2 + $0x41] sm:$0xff]  ;;  %v2755_v1 = vsel %vm11457_vm2, %v9136_v8, 0.0 }
 0x4ba   :  { %2981 = vst.msk [vmem:[#allocation3 + $0x60] sm:$0xff] %vm11457_vm2, %v9078_v40  ;;  %v3568_v56 = vld [vmem:[#allocation2 + $0x31] sm:$0xff]  ;;  %v3665_v26 = vld [vmem:[#allocation2 + $0x42] sm:$0xff]  ;;  %v2756_v3 = vadd.f32 %v2755_v1, %v2754_v19 }
 0x4bb   :  { %2982 = vst.msk [vmem:[#allocation3 + $0x70] sm:$0xff] %vm11457_vm2, %v9082_v53  ;;  %v9113_v15 = vld [vmem:[#allocation2 + $0x52] sm:$0xff]  ;;  %v3775_v1 = vld [vmem:[%s11438_s4] sm:$0xff] }
 0x4bc   :  { %3695 = vrot.lane.b32.xlu1 %v3663_v9, %s7040_s14  ;;  %v3570_v59 = vld [vmem:[#allocation2 + $0x51] sm:$0xff] }
 0x4bd   :  { %3599 = vrot.lane.b32.xlu0 %v3567_v2, %s7041_s17  ;;  %v9241_v27 = vld [vmem:[#allocation2 + $0x71] sm:$0xff] }
 0x4be   :  { %3503 = vrot.lane.b32.xlu2 %v3471_v54, %s7039_s13 }
 0x4c4   :  { %3217 = vrot.lane.b32.xlu1 %v3471_v54, %s7036_s10  ;;  %v9178_v54 = vld [vmem:[#allocation2 + $0x62] sm:$0xff] }
 0x4c5   :  { %3121 = vrot.lane.b32.xlu0 %v3375_v31, %s7035_s16 }
 0x4c6   :  { %3025 = vrot.lane.b32.xlu2 %v3279_v39, %s7034_s15 }
 0x4cc   :  { %3505 = vrot.lane.b32.xlu1 %v3472_v62, %s7039_s13 }
 0x4cd   :  { %3409 = vrot.lane.b32.xlu0 %v3663_v9, %s7037_s11  ;;  %v2717_v18 = vpop.f32.mrf.mxu1 }
 0x4ce   :  { %3313 = vrot.lane.b32.xlu2 %v3567_v2, %s7038_s12  ;;  %v9143_v55 = vadd.f32 %v8925_v61, %v2717_v18 }
 0x4cf   :  { %v9115_v36 = vpop.permute.xlu2 %3613 }
 0x4d0   :  { %v2757_v42 = vsel %vm11457_vm2, %v9143_v55, 0.0 }
 0x4d1   :  { %v2758_v21 = vadd.f32 %v2757_v42, %v2756_v3 }
 0x4d4   :  { %3027 = vrot.lane.b32.xlu1 %v3567_v2, %s7034_s15  ;;  %v3782_v2 = vld [vmem:[%s11438_s4 + $0x38] sm:$0xff] }
 0x4d5   :  { %3697 = vrot.lane.b32.xlu0 %v3664_v46, %s7040_s14 }
 0x4d6   :  { %3601 = vrot.lane.b32.xlu2 %v3568_v56, %s7041_s17 }
 0x4d7   :  { %v9149_v48 = vpop.permute.xlu2 %3135 }
 0x4dc   :  { %3315 = vrot.lane.b32.xlu1 %v3568_v56, %s7038_s12 }
 0x4dd   :  { %3219 = vrot.lane.b32.xlu0 %v3472_v62, %s7036_s10 }
 0x4de   :  { %3123 = vrot.lane.b32.xlu2 %v3663_v9, %s7035_s16 }
 0x4e4   :  { %3603 = vrot.lane.b32.xlu1 %v3569_v23, %s7041_s17  ;;  %v3024_v12 = vpop.permute.xlu0 %3023  ;;  %v2720_v50 = vpop.f32.mrf.mxu1 }
 0x4e5   :  { %3507 = vrot.lane.b32.xlu0 %v3473_v5, %s7039_s13  ;;  %3071 = vst.msk [vmem:[#allocation3] sm:$0xff] %vm11647_vm13, %v3024_v12  ;;  %v3120_v6 = vpop.permute.xlu1 %3119  ;;  %v9154_v34 = vadd.f32 %v8925_v61, %v2720_v50  ;;  %v3777_v50 = vld [vmem:[%s11438_s4 + $0x10] sm:$0xff]  ;;  %vm11657_vm13 = vmmov %vm11642_vm14 }
 0x4e6   :  { %3411 = vrot.lane.b32.xlu2 %v3664_v46, %s7037_s11  ;;  %3167 = vst.msk [vmem:[#allocation3] sm:$0xff] %vm11648_vm7, %v3120_v6  ;;  %vm11658_vm7 = vmmov %vm11643_vm12 }
 0x4e7   :  { %v2759_v4 = vsel %vm11457_vm2, %v9154_v34, 0.0 }
 0x4e8   :  { %v2760_v0 = vadd.f32 %v2759_v4, %v2758_v21 }
 0x4ec   :  { %3125 = vrot.lane.b32.xlu1 %v3664_v46, %s7035_s16  ;;  %v9205_v51 = vpop.permute.xlu0 %3709 }
 0x4ed   :  { %3029 = vrot.lane.b32.xlu0 %v3568_v56, %s7034_s15  ;;  %v9176_v39 = vpop.permute.xlu1 %3517  ;;  %v3781_v56 = vld [vmem:[%s11438_s4 + $0x30] sm:$0xff] }
 0x4ee   :  { %3699 = vrot.lane.b32.xlu2 %v3665_v26, %s7040_s14 }
 0x4f4   :  { %3413 = vrot.lane.b32.xlu1 %v3665_v26, %s7037_s11 }
 0x4f5   :  { %3317 = vrot.lane.b32.xlu0 %v3569_v23, %s7038_s12 }
 0x4f6   :  { %3221 = vrot.lane.b32.xlu2 %v3473_v5, %s7036_s10  ;;  %v2723_v10 = vpop.f32.mrf.mxu1  ;;  %v3783_v5 = vld [vmem:[%s11438_s4 + $0x40] sm:$0xff] }
 0x4f7   :  { %v9159_v52 = vadd.f32 %v8925_v61, %v2723_v10  ;;  %3841 = vmatpush.msrb.mxu2 %v3783_v5 }
 0x4f9   :  { %v2761_v47 = vsel %vm11457_vm2, %v9159_v52, 0.0  ;;  %3842 = vmatpush.msrb.mxu2 %v3782_v2 }
 0x4fa   :  { %v2762_v30 = vadd.f32 %v2761_v47, %v2760_v0 }
 0x4fb   :  { %3843 = vmatpush.msrb.mxu2 %v3781_v56 }
 0x4fc   :  { %3701 = vrot.lane.b32.xlu1 %v9113_v15, %s7040_s14 }
 0x4fd   :  { %3605 = vrot.lane.b32.xlu0 %v3570_v59, %s7041_s17  ;;  %3844 = vmatpush.msrb.mxu2 %v3780_v60 }
 0x4fe   :  { %3509 = vrot.lane.b32.xlu2 %v9075_v33, %s7039_s13 }
 0x504   :  { %3223 = vrot.lane.b32.xlu1 %v9075_v33, %s7036_s10 }
 0x505   :  { %3127 = vrot.lane.b32.xlu0 %v3665_v26, %s7035_s16  ;;  %v3779_v26 = vld [vmem:[%s11438_s4 + $0x20] sm:$0xff] }
 0x506   :  { %3031 = vrot.lane.b32.xlu2 %v3569_v23, %s7034_s15  ;;  %v3040_v23 = vpop.permute.xlu1 %3039  ;;  %3845 = vmatpush.msrb.mxu2 %v3779_v26 }
 0x50c   :  { %3511 = vrot.lane.b32.xlu1 %v9078_v40, %s7039_s13 }
 0x50d   :  { %3415 = vrot.lane.b32.xlu0 %v9113_v15, %s7037_s11  ;;  %v2726_v17 = vpop.f32.mrf.mxu1 }
 0x50e   :  { %3319 = vrot.lane.b32.xlu2 %v3570_v59, %s7038_s12  ;;  %v9171_v29 = vadd.f32 %v8925_v61, %v2726_v17  ;;  %v9183_v61 = vld [vmem:[#allocation2 + $0x61] sm:$0xff] }
 0x510   :  { %v3216_v58 = vpop.permute.xlu2 %3215  ;;  %v2763_v38 = vsel %vm11457_vm2, %v9171_v29, 0.0 }
 0x511   :  { %3263 = vst.msk [vmem:[#allocation3] sm:$0xff] %vm11649_vm15, %v3216_v58  ;;  %v2764_v31 = vadd.f32 %v2763_v38, %v2762_v30  ;;  %vm11659_vm15 = vmmov %vm11644_vm3 }
 0x513   :  { %v2765_v45 = vrot.slane %v2764_v31, 4 }
 0x514   :  { %3033 = vrot.lane.b32.xlu1 %v3570_v59, %s7034_s15 }
 0x515   :  { %3703 = vrot.lane.b32.xlu0 %v9178_v54, %s7040_s14  ;;  %v2766_v62 = vadd.f32 %v2765_v45, %v2764_v31 }
 0x516   :  { %3607 = vrot.lane.b32.xlu2 %v9183_v61, %s7041_s17 }
 0x517   :  { %v2767_v33 = vrot.slane %v2766_v62, 2 }
 0x518   :  { %v9190_v9 = vpop.permute.xlu2 %3503 }
 0x519   :  { %v2768_v46 = vadd.f32 %v2767_v33, %v2766_v62  ;;  %v3668_v62 = vld [vmem:[#allocation2 + $0x72] sm:$0xff] }
 0x51b   :  { %v2769_v22 = vrot.slane %v2768_v46, 1 }
 0x51c   :  { %3321 = vrot.lane.b32.xlu1 %v9183_v61, %s7038_s12 }
 0x51d   :  { %3225 = vrot.lane.b32.xlu0 %v9078_v40, %s7036_s10  ;;  %v2770_v63 = vadd.f32 %v2769_v22, %v2768_v46  ;;  %v3778_v40 = vld [vmem:[%s11438_s4 + $0x18] sm:$0xff] }
 0x51e   :  { %3129 = vrot.lane.b32.xlu2 %v9113_v15, %s7035_s16  ;;  %3846 = vmatpush.msrb.mxu2 %v3778_v40 }
 0x51f   :  { %v2772_v41 = vmul.f32 %v2770_v63, %v7985_v24 }
 0x520   :  { %v3026_v18 = vpop.permute.xlu2 %3025  ;;  %3847 = vmatpush.msrb.mxu2 %v3777_v50 }
 0x521   :  { %3072 = vst.msk [vmem:[#allocation3 + $0x10] sm:$0xff] %vm11650_vm5, %v3026_v18  ;;  %v9218_v59 = vsub.f32 %v9128_v35, %v2772_v41  ;;  %v9221_v15 = vsub.f32 %v9125_v25, %v2772_v41  ;;  %v9224_v12 = vsub.f32 %v9131_v7, %v2772_v41  ;;  %v9227_v6 = vsub.f32 %v9136_v8, %v2772_v41  ;;  %v3776_v8 = vld [vmem:[%s11438_s4 + $0x8] sm:$0xff] }
 0x522   :  { %v9233_v32 = vsub.f32 %v9143_v55, %v2772_v41  ;;  %v9249_v57 = vsub.f32 %v9154_v34, %v2772_v41  ;;  %v2967_v34 = vld [vmem:[#allocation2 + $0xa0] sm:$0xff]  ;;  %3848 = vmatpush.msrb.mxu2 %v3776_v8  ;;  %v9263_v4 = vsub.f32 %v9159_v52, %v2772_v41  ;;  %v9271_v30 = vsub.f32 %v9171_v29, %v2772_v41 }
 0x523   :  { %v2799_v35 = vmul.f32 %v9218_v59, %v9218_v59  ;;  %v2800_v25 = vmul.f32 %v9221_v15, %v9221_v15  ;;  %v2801_v7 = vmul.f32 %v9224_v12, %v9224_v12  ;;  %v2802_v55 = vmul.f32 %v9227_v6, %v9227_v6  ;;  %2983 = vst.msk [vmem:[#allocation3 + $0x80] sm:$0xff] %vm11457_vm2, %v2967_v34 }
 0x524   :  { %3609 = vrot.lane.b32.xlu1 %v9241_v27, %s7041_s17  ;;  %v2803_v21 = vmul.f32 %v9233_v32, %v9233_v32  ;;  %3079 = vst.msk [vmem:[#allocation3 + $0x80] sm:$0xff] %vm11651_vm6, %v3040_v23  ;;  %3849 = vmatpush.msrb.mxu2 %v3775_v1  ;;  %v2804_v58 = vmul.f32 %v9249_v57, %v9249_v57  ;;  %vm11660_vm6 = vmmov %vm11652_vm0 }
 0x525   :  { %v2828_v20 = vsel %vm11457_vm2, %v2799_v35, 0.0  ;;  %v2829_v10 = vsel %vm11457_vm2, %v2800_v25, 0.0  ;;  %3513 = vrot.lane.b32.xlu0 %v9082_v53, %s7039_s13  ;;  %v2831_v47 = vsel %vm11457_vm2, %v2801_v7, 0.0  ;;  %v2833_v52 = vsel %vm11457_vm2, %v2802_v55, 0.0  ;;  %3175 = vst.msk [vmem:[#allocation3 + $0x80] sm:$0xff] %vm11652_vm0, %v9149_v48  ;;  %v3669_v35 = vld [vmem:[#allocation2 + $0x82] sm:$0xff]  ;;  %vm11661_vm0 = vmmov %vm11645_vm4 }
 0x526   :  { %3417 = vrot.lane.b32.xlu2 %v9178_v54, %s7037_s11  ;;  %v2830_v19 = vadd.f32 %v2829_v10, %v2828_v20  ;;  %v3408_v42 = vpop.permute.xlu1 %3407  ;;  %v2805_v31 = vmul.f32 %v9263_v4, %v9263_v4  ;;  %v2835_v45 = vsel %vm11457_vm2, %v2803_v21, 0.0  ;;  %v2806_v48 = vmul.f32 %v9271_v30, %v9271_v30  ;;  %v3477_v7 = vld [vmem:[#allocation2 + $0x80] sm:$0xff] }
 0x527   :  { %v3312_v3 = vpop.permute.xlu0 %3311  ;;  %v2837_v5 = vsel %vm11457_vm2, %v2804_v58, 0.0 }
 0x528   :  { %v3314_v0 = vpop.permute.xlu2 %3313  ;;  %v2832_v17 = vadd.f32 %v2831_v47, %v2830_v19  ;;  %3359 = vst.msk [vmem:[#allocation3] sm:$0xff] %vm11641_vm10, %v3312_v3  ;;  %v2839_v56 = vsel %vm11457_vm2, %v2805_v31, 0.0  ;;  %v2841_v22 = vsel %vm11457_vm2, %v2806_v48, 0.0  ;;  %vm11662_vm10 = vmmov %vm11654_vm8 }
 0x529   :  { %3455 = vst.msk [vmem:[#allocation3] sm:$0xff] %vm11642_vm14, %v3408_v42  ;;  %vm11663_vm14 = vmmov %vm11656_vm1 }
 0x52a   :  { %v2834_v38 = vadd.f32 %v2833_v52, %v2832_v17  ;;  %3551 = vst.msk [vmem:[#allocation3] sm:$0xff] %vm11643_vm12, %v9190_v9 }
 0x52c   :  { %v2836_v29 = vadd.f32 %v2835_v45, %v2834_v38  ;;  %3131 = vrot.lane.b32.xlu1 %v9178_v54, %s7035_s16 }
 0x52d   :  { %3035 = vrot.lane.b32.xlu0 %v9183_v61, %s7034_s15 }
 0x52e   :  { %3705 = vrot.lane.b32.xlu2 %v3668_v62, %s7040_s14  ;;  %v2838_v33 = vadd.f32 %v2837_v5, %v2836_v29  ;;  %v3696_v2 = vpop.permute.xlu1 %3695 }
 0x52f   :  { %v3600_v46 = vpop.permute.xlu0 %3599 }
 0x530   :  { %3647 = vst.msk [vmem:[#allocation3] sm:$0xff] %vm11644_vm3, %v3600_v46  ;;  %v3602_v9 = vpop.permute.xlu2 %3601  ;;  %v2840_v54 = vadd.f32 %v2839_v56, %v2838_v33  ;;  %vm11664_vm3 = vmmov %vm11657_vm13 }
 0x531   :  { %3743 = vst.msk [vmem:[#allocation3] sm:$0xff] %vm11645_vm4, %v3696_v2  ;;  %vm11665_vm4 = vmmov %vm11655_vm11 }
 0x532   :  { %v2842_v60 = vadd.f32 %v2841_v22, %v2840_v54 }
 0x534   :  { %v2843_v23 = vrot.slane %v2842_v60, 4  ;;  %3419 = vrot.lane.b32.xlu1 %v3668_v62, %s7037_s11 }
 0x535   :  { %3323 = vrot.lane.b32.xlu0 %v9241_v27, %s7038_s12 }
 0x536   :  { %3227 = vrot.lane.b32.xlu2 %v9082_v53, %s7036_s10  ;;  %v2844_v61 = vadd.f32 %v2843_v23, %v2842_v60  ;;  %v3218_v63 = vpop.permute.xlu1 %3217  ;;  %v3573_v53 = vld [vmem:[#allocation2 + $0x81] sm:$0xff] }
 0x537   :  { %v3122_v26 = vpop.permute.xlu0 %3121 }
 0x538   :  { %3168 = vst.msk [vmem:[#allocation3 + $0x10] sm:$0xff] %vm11653_vm9, %v3122_v26  ;;  %v3124_v41 = vpop.permute.xlu2 %3123  ;;  %v3759_v18 = vld [vmem:[#allocation3] sm:$0xff]  ;;  %v2845_v40 = vrot.slane %v2844_v61, 2 }
 0x539   :  { %3264 = vst.msk [vmem:[#allocation3 + $0x10] sm:$0xff] %vm11654_vm8, %v3218_v63  ;;  %6750 = vmatmul.msk.f32.vlgmr.msrb.gmra.mxu2 %vm11655_vm11, %v3759_v18  ;;  %vm11666_vm11 = vmmov %vm11658_vm7 }
 0x53a   :  { %3360 = vst.msk [vmem:[#allocation3 + $0x10] sm:$0xff] %vm11656_vm1, %v3314_v0  ;;  %v2846_v50 = vadd.f32 %v2845_v40, %v2844_v61  ;;  %vm11667_vm1 = vmmov %vm11659_vm15 }
 0x53c   :  { %v2847_v25 = vrot.slane %v2846_v50, 1  ;;  %3707 = vrot.lane.b32.xlu1 %v3669_v35, %s7040_s14 }
 0x53d   :  { %3611 = vrot.lane.b32.xlu0 %v3573_v53, %s7041_s17 }
 0x53e   :  { %3515 = vrot.lane.b32.xlu2 %v3477_v7, %s7039_s13  ;;  %v2848_v8 = vadd.f32 %v2847_v25, %v2846_v50  ;;  %v3506_v55 = vpop.permute.xlu1 %3505 }
 0x53f   :  { %v3410_v20 = vpop.permute.xlu0 %3409 }
 0x540   :  { %3456 = vst.msk [vmem:[#allocation3 + $0x10] sm:$0xff] %vm11657_vm13, %v3410_v20  ;;  %v3412_v10 = vpop.permute.xlu2 %3411  ;;  %v2850_v1 = vmul.f32 %v2848_v8, %v7985_v24  ;;  %vm11668_vm13 = vmmov %vm11661_vm0 }
 0x541   :  { %3552 = vst.msk [vmem:[#allocation3 + $0x10] sm:$0xff] %vm11658_vm7, %v3506_v55  ;;  %vm11670_vm7 = vmmov %vm11665_vm4 }
 0x542   :  { %3648 = vst.msk [vmem:[#allocation3 + $0x10] sm:$0xff] %vm11659_vm15, %v3602_v9  ;;  %v2854_v19 = vadd.f32 1e-05, %v2850_v1  ;;  %vm11671_vm15 = vmmov %vm11650_vm5 }
 0x544   :  { %6926 = vrsqrt.f32 %v2854_v19  ;;  %3229 = vrot.lane.b32.xlu1 %v3477_v7, %s7036_s10  ;;  %vm2871_vm9 = vweird.f32 %v2854_v19 }
 0x545   :  { %3133 = vrot.lane.b32.xlu0 %v3668_v62, %s7035_s16 }
 0x546   :  { %3037 = vrot.lane.b32.xlu2 %v9241_v27, %s7034_s15  ;;  %v3028_v34 = vpop.permute.xlu1 %3027 }
 0x547   :  { %v3698_v42 = vpop.permute.xlu0 %3697  ;;  %3073 = vst.msk [vmem:[#allocation3 + $0x20] sm:$0xff] %vm11650_vm5, %v3028_v34  ;;  %vm11672_vm5 = vmmov %vm11660_vm6 }
 0x548   :  { %v3700_v3 = vpop.permute.xlu2 %3699  ;;  %3169 = vst.msk [vmem:[#allocation3 + $0x20] sm:$0xff] %vm11660_vm6, %v3124_v41  ;;  %vm11673_vm6 = vmmov %vm11662_vm10 }
 0x549   :  { %3744 = vst.msk [vmem:[#allocation3 + $0x10] sm:$0xff] %vm11661_vm0, %v3698_v42  ;;  %vm11674_vm0 = vmmov %vm11671_vm15 }
 0x54a   :  { %v6927_v21 = vpop.eup %6926 }
 0x54b   :  { %v2866_v47 = vmul.f32 %v6927_v21, %v2854_v19  ;;  %vm2872_vm12 = vweird.f32 %v6927_v21 }
 0x54c   :  { %vm2873_vm8 = vmor %vm2871_vm9, %vm2872_vm12 }
 0x54d   :  { %v2867_v0 = vmul.f32 %v6927_v21, %v2866_v47  ;;  %3421 = vrot.lane.b32.xlu0 %v3669_v35, %s7037_s11  ;;  %vm11677_vm12 = vmmov %vm11666_vm11 }
 0x54e   :  { %3325 = vrot.lane.b32.xlu2 %v3573_v53, %s7038_s12  ;;  %v3316_v17 = vpop.permute.xlu1 %3315  ;;  %vm11680_vm9 = vmmov %vm11672_vm5 }
 0x54f   :  { %v3220_v58 = vpop.permute.xlu0 %3219  ;;  %v2868_v52 = vmul.f32 0.5, %v2867_v0 }
 0x550   :  { %3265 = vst.msk [vmem:[#allocation3 + $0x20] sm:$0xff] %vm11662_vm10, %v3220_v58  ;;  %v9323_v27 = vpop.permute.xlu2 %3221  ;;  %v3760_v38 = vld [vmem:[#allocation3 + $0x10] sm:$0xff]  ;;  %vm11675_vm10 = vmmov %vm11663_vm14 }
 0x551   :  { %3361 = vst.msk [vmem:[#allocation3 + $0x20] sm:$0xff] %vm11663_vm14, %v3316_v17  ;;  %v2869_v31 = vsub.f32 1.5, %v2868_v52  ;;  %6751 = vmatmul.msk.f32.gmra.mxu2 %vm11665_vm4, %v3760_v38  ;;  %vm11676_vm14 = vmmov %vm11664_vm3 }
 0x552   :  { %3457 = vst.msk [vmem:[#allocation3 + $0x20] sm:$0xff] %vm11664_vm3, %v3412_v10  ;;  %vm11678_vm3 = vmmov %vm11667_vm1 }
 0x553   :  { %v2870_v45 = vmul.f32 %v6927_v21, %v2869_v31  ;;  %vm11679_vm4 = vmmov %vm11668_vm13 }
 0x555   :  { %v2874_v29 = vsel %vm2873_vm8, %v6927_v21, %v2870_v45  ;;  %vm11681_vm8 = vmmov %vm11673_vm6 }
 0x556   :  { %v2883_v62 = vmul.f32 %v2874_v29, %v9218_v59  ;;  %v2884_v48 = vmul.f32 %v2874_v29, %v9221_v15  ;;  %v2885_v5 = vmul.f32 %v2874_v29, %v9224_v12  ;;  %v2886_v33 = vmul.f32 %v2874_v29, %v9227_v6  ;;  %v3604_v2 = vpop.permute.xlu1 %3603 }
 0x557   :  { %v3508_v46 = vpop.permute.xlu0 %3507  ;;  %v2887_v56 = vmul.f32 %v2874_v29, %v9233_v32  ;;  %v2888_v9 = vmul.f32 %v2874_v29, %v9249_v57  ;;  %v2889_v54 = vmul.f32 %v2874_v29, %v9263_v4  ;;  %v2890_v22 = vmul.f32 %v2874_v29, %v9271_v30 }
 0x558   :  { %3553 = vst.msk [vmem:[#allocation3 + $0x20] sm:$0xff] %vm11666_vm11, %v3508_v46  ;;  %v3510_v60 = vpop.permute.xlu2 %3509  ;;  %v2901_v59 = vmul.f32 %v9022_v37, %v2883_v62  ;;  %v2902_v15 = vmul.f32 %v9022_v37, %v2884_v48  ;;  %v2903_v12 = vmul.f32 %v9022_v37, %v2885_v5  ;;  %v2904_v6 = vmul.f32 %v9022_v37, %v2886_v33  ;;  %vm11682_vm11 = vmmov %vm11670_vm7 }
 0x559   :  { %3649 = vst.msk [vmem:[#allocation3 + $0x20] sm:$0xff] %vm11667_vm1, %v3604_v2  ;;  %v2905_v32 = vmul.f32 %v9022_v37, %v2887_v56  ;;  %v2906_v57 = vmul.f32 %v9022_v37, %v2888_v9  ;;  %v2907_v4 = vmul.f32 %v9022_v37, %v2889_v54  ;;  %v2908_v30 = vmul.f32 %v9022_v37, %v2890_v22  ;;  %vm11683_vm1 = vmmov %vm11675_vm10 }
 0x55a   :  { %3745 = vst.msk [vmem:[#allocation3 + $0x20] sm:$0xff] %vm11668_vm13, %v3700_v3  ;;  %v2919_v23 = vadd.f32 %v9031_v14, %v2901_v59  ;;  %v2920_v61 = vadd.f32 %v9031_v14, %v2902_v15  ;;  %v2921_v63 = vadd.f32 %v9031_v14, %v2903_v12  ;;  %v2922_v26 = vadd.f32 %v9031_v14, %v2904_v6  ;;  %vm11684_vm13 = vmmov %vm11676_vm14 }
 0x55b   :  { %v2923_v41 = vadd.f32 %v9031_v14, %v2905_v32  ;;  %v2924_v18 = vadd.f32 %v9031_v14, %v2906_v57  ;;  %v2925_v40 = vadd.f32 %v9031_v14, %v2907_v4  ;;  %v2926_v25 = vadd.f32 %v9031_v14, %v2908_v30 }
 0x55c   :  { %v2935_v50 = vadd.f32 %v2919_v23, %v7445_v28  ;;  %v2936_v37 = vadd.f32 %v2920_v61, %v7478_v43  ;;  %v2937_v35 = vadd.f32 %v2921_v63, %v7480_v44  ;;  %v2938_v53 = vadd.f32 %v2922_v26, %v7711_v16  ;;  %v11669_v44 = vld [vmem:[#allocation7_spill] sm:$0xff] }
 0x55d   :  { %v2939_v7 = vadd.f32 %v2923_v41, %v7725_v11  ;;  %v2940_v20 = vadd.f32 %v2924_v18, %v7749_v49  ;;  %v2941_v28 = vadd.f32 %v2925_v40, %v7786_v13  ;;  %v2942_v14 = vadd.f32 %v2926_v25, %v11669_v44 }
 0x55e   :  { %2951 = vst.msk [vmem:[#allocation2 + $0xb1] sm:$0xff] %vm11457_vm2, %v2935_v50  ;;  %v3126_v8 = vpop.permute.xlu1 %3125 }
 0x55f   :  { %v3030_v55 = vpop.permute.xlu0 %3029  ;;  %2952 = vst.msk [vmem:[#allocation2 + $0xc1] sm:$0xff] %vm11457_vm2, %v2936_v37 }
 0x560   :  { %v3032_v10 = vpop.permute.xlu2 %3031  ;;  %2953 = vst.msk [vmem:[#allocation2 + $0xd1] sm:$0xff] %vm11457_vm2, %v2937_v35 }
 0x561   :  { %v3761_v43 = vld [vmem:[#allocation3 + $0x20] sm:$0xff]  ;;  %2954 = vst.msk [vmem:[#allocation2 + $0xe1] sm:$0xff] %vm11457_vm2, %v2938_v53 }
 0x562   :  { %6752 = vmatmul.msk.f32.gmra.mxu2 %vm11670_vm7, %v3761_v43  ;;  %2955 = vst.msk [vmem:[#allocation2 + $0xf1] sm:$0xff] %vm11457_vm2, %v2939_v7  ;;  %vm11685_vm7 = vmmov %vm11677_vm12 }
 0x563   :  { %2956 = vst.msk [vmem:[#allocation2 + $0x101] sm:$0xff] %vm11457_vm2, %v2940_v20 }
 0x564   :  { %2957 = vst.msk [vmem:[#allocation2 + $0x111] sm:$0xff] %vm11457_vm2, %v2941_v28 }
 0x565   :  { %2958 = vst.msk [vmem:[#allocation2 + $0x121] sm:$0xff] %vm11457_vm2, %v2942_v14  ;;  %v3287_v16 = vld [vmem:[#allocation2 + $0xb1] sm:$0xff] }
 0x566   :  { %v3191_v11 = vld [vmem:[#allocation2 + $0xb0] sm:$0xff]  ;;  %3074 = vst.msk [vmem:[#allocation3 + $0x30] sm:$0xff] %vm11671_vm15, %v3030_v55  ;;  %v3414_v13 = vpop.permute.xlu1 %3413  ;;  %3327 = vrot.lane.b32.xlu1 %v3287_v16, %s7038_s12  ;;  %v3479_v34 = vld [vmem:[#allocation2 + $0xc0] sm:$0xff]  ;;  %vm11686_vm15 = vmmov %vm11678_vm3 }
 0x567   :  { %v3383_v49 = vld [vmem:[#allocation2 + $0xb2] sm:$0xff]  ;;  %v3318_v1 = vpop.permute.xlu0 %3317  ;;  %3231 = vrot.lane.b32.xlu0 %v3191_v11, %s7036_s10  ;;  %3170 = vst.msk [vmem:[#allocation3 + $0x30] sm:$0xff] %vm11672_vm5, %v3126_v8  ;;  %v3575_v42 = vld [vmem:[#allocation2 + $0xc1] sm:$0xff]  ;;  %vm11687_vm5 = vmmov %vm11674_vm0 }
 0x568   :  { %v3320_v19 = vpop.permute.xlu2 %3319  ;;  %3423 = vrot.lane.b32.xlu2 %v3383_v49, %s7037_s11  ;;  %3266 = vst.msk [vmem:[#allocation3 + $0x30] sm:$0xff] %vm11673_vm6, %v9323_v27  ;;  %v3671_v47 = vld [vmem:[#allocation2 + $0xc2] sm:$0xff]  ;;  %v3480_v0 = vld [vmem:[#allocation2 + $0xd0] sm:$0xff]  ;;  %vm11688_vm6 = vmmov %vm11680_vm9 }
 0x569   :  { %3075 = vst.msk [vmem:[#allocation3 + $0x40] sm:$0xff] %vm11674_vm0, %v3032_v10  ;;  %v9389_v58 = vld [vmem:[#allocation2 + $0xf0] sm:$0xff]  ;;  %v9392_v52 = vld [vmem:[#allocation2 + $0xe0] sm:$0xff]  ;;  %vm11689_vm0 = vmmov %vm11679_vm4 }
 0x56a   :  { %3362 = vst.msk [vmem:[#allocation3 + $0x30] sm:$0xff] %vm11675_vm10, %v3318_v1  ;;  %v9394_v27 = vld [vmem:[#allocation2 + $0x100] sm:$0xff]  ;;  %v3672_v2 = vld [vmem:[#allocation2 + $0xd2] sm:$0xff]  ;;  %vm11690_vm10 = vmmov %vm11681_vm8 }
 0x56b   :  { %3458 = vst.msk [vmem:[#allocation3 + $0x30] sm:$0xff] %vm11676_vm14, %v3414_v13  ;;  %v9397_v38 = vld [vmem:[#allocation2 + $0x110] sm:$0xff]  ;;  %vm11691_vm14 = vmmov %vm11683_vm1  ;;  %v3577_v6 = vld [vmem:[#allocation2 + $0xe1] sm:$0xff] }
 0x56c   :  { %3554 = vst.msk [vmem:[#allocation3 + $0x30] sm:$0xff] %vm11677_vm12, %v3510_v60  ;;  %v3576_v46 = vld [vmem:[#allocation2 + $0xd1] sm:$0xff]  ;;  %vm11692_vm12 = vmmov %vm11684_vm13  ;;  %v3673_v4 = vld [vmem:[#allocation2 + $0xe2] sm:$0xff] }
 0x56d   :  { %2985 = vst.msk [vmem:[#allocation3 + $0xa0] sm:$0xff] %vm11457_vm2, %v3479_v34  ;;  %v3578_v18 = vld [vmem:[#allocation2 + $0xf1] sm:$0xff]  ;;  %v3675_v20 = vld [vmem:[#allocation2 + $0x102] sm:$0xff] }
 0x56e   :  { %v3702_v3 = vpop.permute.xlu1 %3701  ;;  %3615 = vrot.lane.b32.xlu1 %v3575_v42, %s7041_s17  ;;  %2984 = vst.msk [vmem:[#allocation3 + $0x90] sm:$0xff] %vm11457_vm2, %v3191_v11  ;;  %v3674_v50 = vld [vmem:[#allocation2 + $0xf2] sm:$0xff]  ;;  %v3579_v10 = vld [vmem:[#allocation2 + $0x101] sm:$0xff] }
 0x56f   :  { %v3606_v21 = vpop.permute.xlu0 %3605  ;;  %3519 = vrot.lane.b32.xlu0 %v3479_v34, %s7039_s13  ;;  %2986 = vst.msk [vmem:[#allocation3 + $0xb0] sm:$0xff] %vm11457_vm2, %v3480_v0 }
 0x570   :  { %3650 = vst.msk [vmem:[#allocation3 + $0x30] sm:$0xff] %vm11678_vm3, %v3606_v21  ;;  %v3608_v17 = vpop.permute.xlu2 %3607  ;;  %3711 = vrot.lane.b32.xlu2 %v3671_v47, %s7040_s14  ;;  %vm11693_vm3 = vmmov %vm11682_vm11  ;;  %v3485_v21 = vld [vmem:[#allocation2 + $0x120] sm:$0xff] }
 0x571   :  { %3746 = vst.msk [vmem:[#allocation3 + $0x30] sm:$0xff] %vm11679_vm4, %v3702_v3  ;;  %vm11694_vm4 = vmmov %vm11685_vm7  ;;  %v3581_v3 = vld [vmem:[#allocation2 + $0x121] sm:$0xff] }
 0x572   :  { %2988 = vst.msk [vmem:[#allocation3 + $0xd0] sm:$0xff] %vm11457_vm2, %v9389_v58 }
 0x573   :  { %2987 = vst.msk [vmem:[#allocation3 + $0xc0] sm:$0xff] %vm11457_vm2, %v9392_v52 }
 0x574   :  { %2989 = vst.msk [vmem:[#allocation3 + $0xe0] sm:$0xff] %vm11457_vm2, %v9394_v27 }
 0x575   :  { %2990 = vst.msk [vmem:[#allocation3 + $0xf0] sm:$0xff] %vm11457_vm2, %v9397_v38 }
 0x576   :  { %v3224_v31 = vpop.permute.xlu1 %3223  ;;  %3137 = vrot.lane.b32.xlu1 %v3383_v49, %s7035_s16 }
 0x577   :  { %v3128_v45 = vpop.permute.xlu0 %3127  ;;  %3041 = vrot.lane.b32.xlu0 %v3287_v16, %s7034_s15  ;;  %v3676_v16 = vld [vmem:[#allocation2 + $0x112] sm:$0xff] }
 0x578   :  { %3171 = vst.msk [vmem:[#allocation3 + $0x40] sm:$0xff] %vm11680_vm9, %v3128_v45  ;;  %v3130_v29 = vpop.permute.xlu2 %3129  ;;  %3233 = vrot.lane.b32.xlu2 %v3479_v34, %s7036_s10  ;;  %v3762_v62 = vld [vmem:[#allocation3 + $0x30] sm:$0xff]  ;;  %vm11695_vm9 = vmmov %vm11686_vm15 }
 0x579   :  { %3267 = vst.msk [vmem:[#allocation3 + $0x40] sm:$0xff] %vm11681_vm8, %v3224_v31  ;;  %6753 = vmatmul.msk.f32.gmra.mxu2 %vm11682_vm11, %v3762_v62  ;;  %vm11696_vm8 = vmmov %vm11689_vm0  ;;  %v3486_v31 = vld [vmem:[#allocation2 + $0x130] sm:$0xff] }
 0x57a   :  { %3363 = vst.msk [vmem:[#allocation3 + $0x40] sm:$0xff] %vm11683_vm1, %v3320_v19  ;;  %vm11697_vm11 = vmmov %vm11687_vm5 }
 0x57b   :  { %vm11698_vm1 = vmmov %vm11688_vm6 }
 0x57e   :  { %v3512_v48 = vpop.permute.xlu1 %3511  ;;  %3425 = vrot.lane.b32.xlu1 %v3671_v47, %s7037_s11 }
 0x57f   :  { %v3416_v5 = vpop.permute.xlu0 %3415  ;;  %3329 = vrot.lane.b32.xlu0 %v3575_v42, %s7038_s12 }
 0x580   :  { %3459 = vst.msk [vmem:[#allocation3 + $0x40] sm:$0xff] %vm11684_vm13, %v3416_v5  ;;  %v3418_v33 = vpop.permute.xlu2 %3417  ;;  %3521 = vrot.lane.b32.xlu2 %v3480_v0, %s7039_s13  ;;  %vm11699_vm13 = vmmov %vm11690_vm10  ;;  %v3582_v5 = vld [vmem:[#allocation2 + $0x131] sm:$0xff] }
 0x581   :  { %3555 = vst.msk [vmem:[#allocation3 + $0x40] sm:$0xff] %vm11685_vm7, %v3512_v48  ;;  %vm11700_vm7 = vmmov %vm11693_vm3 }
 0x582   :  { %3651 = vst.msk [vmem:[#allocation3 + $0x40] sm:$0xff] %vm11686_vm15, %v3608_v17  ;;  %vm11701_vm15 = vmmov %vm11687_vm5 }
 0x586   :  { %v3034_v56 = vpop.permute.xlu1 %3033  ;;  %3713 = vrot.lane.b32.xlu1 %v3672_v2, %s7040_s14 }
 0x587   :  { %v3704_v9 = vpop.permute.xlu0 %3703  ;;  %3617 = vrot.lane.b32.xlu0 %v3576_v46, %s7041_s17  ;;  %3076 = vst.msk [vmem:[#allocation3 + $0x50] sm:$0xff] %vm11687_vm5, %v3034_v56  ;;  %vm11702_vm5 = vmmov %vm11691_vm14 }
 0x588   :  { %v3706_v54 = vpop.permute.xlu2 %3705  ;;  %3043 = vrot.lane.b32.xlu2 %v3575_v42, %s7034_s15  ;;  %3172 = vst.msk [vmem:[#allocation3 + $0x50] sm:$0xff] %vm11688_vm6, %v3130_v29  ;;  %vm11703_vm6 = vmmov %vm11692_vm12 }
 0x589   :  { %3747 = vst.msk [vmem:[#allocation3 + $0x40] sm:$0xff] %vm11689_vm0, %v3704_v9  ;;  %vm11704_vm0 = vmmov %vm11694_vm4 }
 0x58e   :  { %v3322_v22 = vpop.permute.xlu1 %3321  ;;  %3235 = vrot.lane.b32.xlu1 %v3480_v0, %s7036_s10 }
 0x58f   :  { %v3226_v60 = vpop.permute.xlu0 %3225  ;;  %3139 = vrot.lane.b32.xlu0 %v3671_v47, %s7035_s16  ;;  %v3677_v47 = vld [vmem:[#allocation2 + $0x122] sm:$0xff] }
 0x590   :  { %3268 = vst.msk [vmem:[#allocation3 + $0x50] sm:$0xff] %vm11690_vm10, %v3226_v60  ;;  %v3228_v59 = vpop.permute.xlu2 %3227  ;;  %3331 = vrot.lane.b32.xlu2 %v3576_v46, %s7038_s12  ;;  %v3763_v15 = vld [vmem:[#allocation3 + $0x40] sm:$0xff]  ;;  %vm11705_vm10 = vmmov %vm11695_vm9 }
 0x591   :  { %3364 = vst.msk [vmem:[#allocation3 + $0x50] sm:$0xff] %vm11691_vm14, %v3322_v22  ;;  %6754 = vmatmul.msk.f32.gmra.mxu2 %vm11693_vm3, %v3763_v15  ;;  %vm11706_vm14 = vmmov %vm11696_vm8 }
 0x592   :  { %3460 = vst.msk [vmem:[#allocation3 + $0x50] sm:$0xff] %vm11692_vm12, %v3418_v33  ;;  %vm11707_vm12 = vmmov %vm11698_vm1  ;;  %v3678_v33 = vld [vmem:[#allocation2 + $0x132] sm:$0xff] }
 0x593   :  { %vm11708_vm3 = vmmov %vm11699_vm13 }
 0x596   :  { %v3610_v12 = vpop.permute.xlu1 %3609  ;;  %3523 = vrot.lane.b32.xlu1 %v9392_v52, %s7039_s13 }
 0x597   :  { %3427 = vrot.lane.b32.xlu0 %v3672_v2, %s7037_s11  ;;  %v3514_v32 = vpop.permute.xlu0 %3513 }
 0x598   :  { %v3516_v57 = vpop.permute.xlu2 %3515  ;;  %3619 = vrot.lane.b32.xlu2 %v3577_v6, %s7041_s17  ;;  %3556 = vst.msk [vmem:[#allocation3 + $0x50] sm:$0xff] %vm11694_vm4, %v3514_v32  ;;  %vm11709_vm4 = vmmov %vm11700_vm7 }
 0x599   :  { %3652 = vst.msk [vmem:[#allocation3 + $0x50] sm:$0xff] %vm11695_vm9, %v3610_v12  ;;  %vm11710_vm9 = vmmov %vm11702_vm5 }
 0x59a   :  { %3748 = vst.msk [vmem:[#allocation3 + $0x50] sm:$0xff] %vm11696_vm8, %v3706_v54  ;;  %vm11711_vm8 = vmmov %vm11703_vm6 }
 0x59e   :  { %v3132_v30 = vpop.permute.xlu1 %3131  ;;  %3045 = vrot.lane.b32.xlu1 %v3576_v46, %s7034_s15 }
 0x59f   :  { %3715 = vrot.lane.b32.xlu0 %v3673_v4, %s7040_s14  ;;  %v3036_v23 = vpop.permute.xlu0 %3035 }
 0x5a0   :  { %3141 = vrot.lane.b32.xlu2 %v3672_v2, %s7035_s16  ;;  %3077 = vst.msk [vmem:[#allocation3 + $0x60] sm:$0xff] %vm11697_vm11, %v3036_v23  ;;  %v3038_v61 = vpop.permute.xlu2 %3037  ;;  %vm11712_vm11 = vmmov %vm11704_vm0 }
 0x5a1   :  { %3173 = vst.msk [vmem:[#allocation3 + $0x60] sm:$0xff] %vm11698_vm1, %v3132_v30  ;;  %v3764_v63 = vld [vmem:[#allocation3 + $0x50] sm:$0xff]  ;;  %vm11713_vm1 = vmmov %vm11705_vm10 }
 0x5a2   :  { %3269 = vst.msk [vmem:[#allocation3 + $0x60] sm:$0xff] %vm11699_vm13, %v3228_v59  ;;  %6755 = vmatmul.msk.f32.gmra.mxu2 %vm11700_vm7, %v3764_v63  ;;  %vm11714_vm13 = vmmov %vm11706_vm14 }
 0x5a3   :  { %3078 = vst.msk [vmem:[#allocation3 + $0x70] sm:$0xff] %vm11701_vm15, %v3038_v61  ;;  %vm11715_vm7 = vmmov %vm11709_vm4 }
 0x5a4   :  { %vm11716_vm15 = vmmov %vm11708_vm3 }
 0x5a6   :  { %v3420_v26 = vpop.permute.xlu1 %3419  ;;  %3333 = vrot.lane.b32.xlu1 %v3577_v6, %s7038_s12 }
 0x5a7   :  { %3237 = vrot.lane.b32.xlu0 %v9392_v52, %s7036_s10  ;;  %v3324_v41 = vpop.permute.xlu0 %3323 }
 0x5a8   :  { %3429 = vrot.lane.b32.xlu2 %v3673_v4, %s7037_s11  ;;  %3365 = vst.msk [vmem:[#allocation3 + $0x60] sm:$0xff] %vm11702_vm5, %v3324_v41  ;;  %v3326_v7 = vpop.permute.xlu2 %3325 }
 0x5a9   :  { %3461 = vst.msk [vmem:[#allocation3 + $0x60] sm:$0xff] %vm11703_vm6, %v3420_v26 }
 0x5aa   :  { %3557 = vst.msk [vmem:[#allocation3 + $0x60] sm:$0xff] %vm11704_vm0, %v3516_v57 }
 0x5ae   :  { %v3708_v40 = vpop.permute.xlu1 %3707  ;;  %3621 = vrot.lane.b32.xlu1 %v3578_v18, %s7041_s17 }
 0x5af   :  { %3525 = vrot.lane.b32.xlu0 %v9389_v58, %s7039_s13  ;;  %v3612_v37 = vpop.permute.xlu0 %3611 }
 0x5b0   :  { %3717 = vrot.lane.b32.xlu2 %v3674_v50, %s7040_s14  ;;  %3653 = vst.msk [vmem:[#allocation3 + $0x60] sm:$0xff] %vm11705_vm10, %v3612_v37  ;;  %vm11717_vm10 = vmmov %vm11713_vm1 }
 0x5b1   :  { %3749 = vst.msk [vmem:[#allocation3 + $0x60] sm:$0xff] %vm11706_vm14, %v3708_v40  ;;  %vm11718_vm14 = vmmov %vm11714_vm13 }
 0x5b6   :  { %v3230_v35 = vpop.permute.xlu1 %3229  ;;  %3143 = vrot.lane.b32.xlu1 %v3673_v4, %s7035_s16 }
 0x5b7   :  { %3047 = vrot.lane.b32.xlu0 %v3577_v6, %s7034_s15  ;;  %v3134_v25 = vpop.permute.xlu0 %3133 }
 0x5b8   :  { %3239 = vrot.lane.b32.xlu2 %v9389_v58, %s7036_s10  ;;  %3174 = vst.msk [vmem:[#allocation3 + $0x70] sm:$0xff] %vm11707_vm12, %v3134_v25  ;;  %v3765_v53 = vld [vmem:[#allocation3 + $0x60] sm:$0xff]  ;;  %vm11719_vm12 = vcmask 130112  }
 0x5b9   :  { %3270 = vst.msk [vmem:[#allocation3 + $0x70] sm:$0xff] %vm11708_vm3, %v3230_v35  ;;  %6756 = vmatmul.msk.f32.gmra.mxu2 %vm11709_vm4, %v3765_v53  ;;  %vm11720_vm3 = vmmov %vm11719_vm12  ;;  %vm11721_vm4 = vcmask 195712   ;;  %v9556_v53 = vld [vmem:[%s11441_s7 + $0x6] ss:$0 sm:$0xff] }
 0x5ba   :  { %3366 = vst.msk [vmem:[#allocation3 + $0x70] sm:$0xff] %vm11710_vm9, %v3326_v7  ;;  %vm11722_vm9 = vmmov %vm11716_vm15 }
 0x5bc   :  { %v3851_v60 = vpop.f32.mrf.mxu2 }
 0x5be   :  { %3431 = vrot.lane.b32.xlu1 %v3674_v50, %s7037_s11 }
 0x5bf   :  { %3335 = vrot.lane.b32.xlu0 %v3578_v18, %s7038_s12  ;;  %v3422_v8 = vpop.permute.xlu0 %3421 }
 0x5c0   :  { %3527 = vrot.lane.b32.xlu2 %v9394_v27, %s7039_s13  ;;  %3462 = vst.msk [vmem:[#allocation3 + $0x70] sm:$0xff] %vm11711_vm8, %v3422_v8  ;;  %vm11723_vm8 = vmmov %vm11715_vm7 }
 0x5c1   :  { %3558 = vst.msk [vmem:[#allocation3 + $0x70] sm:$0xff] %vm11712_vm11, %v9176_v39  ;;  %v3580_v39 = vld [vmem:[#allocation2 + $0x111] sm:$0xff]  ;;  %vm11724_vm11 = vmmov %vm11702_vm5 }
 0x5c2   :  { %v3424_v55 = vpop.permute.xlu2 %3423  ;;  %3654 = vst.msk [vmem:[#allocation3 + $0x70] sm:$0xff] %vm11713_vm1, %v9115_v36  ;;  %vm11725_vm1 = vmmov %vm11703_vm6 }
 0x5c3   :  { %3750 = vst.msk [vmem:[#allocation3 + $0x70] sm:$0xff] %vm11714_vm13, %v9205_v51  ;;  %vm11726_vm13 = vmmov %vm11704_vm0 }
 0x5c6   :  { %3719 = vrot.lane.b32.xlu1 %v3675_v20, %s7040_s14 }
 0x5c7   :  { %3623 = vrot.lane.b32.xlu0 %v3579_v10, %s7041_s17 }
 0x5c8   :  { %3049 = vrot.lane.b32.xlu2 %v3578_v18, %s7034_s15 }
 0x5ca   :  { %v3712_v28 = vpop.permute.xlu2 %3711  ;;  %v3766_v43 = vld [vmem:[#allocation3 + $0x70] sm:$0xff] }
 0x5cb   :  { %6757 = vmatmul.msk.f32.gmra.mxu2 %vm11715_vm7, %v3766_v43  ;;  %vm11727_vm7 = vmmov %vm11717_vm10 }
 0x5ce   :  { %3241 = vrot.lane.b32.xlu1 %v9394_v27, %s7036_s10 }
 0x5cf   :  { %3145 = vrot.lane.b32.xlu0 %v3674_v50, %s7035_s16 }
 0x5d0   :  { %3337 = vrot.lane.b32.xlu2 %v3579_v10, %s7038_s12 }
 0x5d2   :  { %v3234_v36 = vpop.permute.xlu2 %3233 }
 0x5d4   :  { %v3854_v32 = vpop.f32.mrf.mxu2 }
 0x5d5   :  { %v9559_v8 = vadd.f32 %v9556_v53, %v3854_v32 }
 0x5d6   :  { %3529 = vrot.lane.b32.xlu1 %v9397_v38, %s7039_s13 }
 0x5d7   :  { %3433 = vrot.lane.b32.xlu0 %v3675_v20, %s7037_s11 }
 0x5d8   :  { %3625 = vrot.lane.b32.xlu2 %v3580_v39, %s7041_s17  ;;  %v3328_v51 = vpop.permute.xlu1 %3327 }
 0x5d9   :  { %v3232_v44 = vpop.permute.xlu0 %3231 }
 0x5da   :  { %3271 = vst.msk [vmem:[#allocation3 + $0x80] sm:$0xff] %vm11716_vm15, %v3232_v44  ;;  %v3522_v14 = vpop.permute.xlu2 %3521  ;;  %vm11728_vm15 = vmmov %vm11718_vm14 }
 0x5db   :  { %3367 = vst.msk [vmem:[#allocation3 + $0x80] sm:$0xff] %vm11702_vm5, %v3328_v51  ;;  %vm11729_vm5 = vmmov %vm11721_vm4 }
 0x5dc   :  { %3463 = vst.msk [vmem:[#allocation3 + $0x80] sm:$0xff] %vm11703_vm6, %v3424_v55  ;;  %vm11730_vm6 = vmmov %vm11722_vm9 }
 0x5de   :  { %3051 = vrot.lane.b32.xlu1 %v3579_v10, %s7034_s15 }
 0x5df   :  { %3721 = vrot.lane.b32.xlu0 %v3676_v16, %s7040_s14 }
 0x5e0   :  { %3147 = vrot.lane.b32.xlu2 %v3675_v20, %s7035_s16  ;;  %v3616_v11 = vpop.permute.xlu1 %3615 }
 0x5e1   :  { %v3520_v49 = vpop.permute.xlu0 %3519 }
 0x5e2   :  { %3559 = vst.msk [vmem:[#allocation3 + $0x80] sm:$0xff] %vm11704_vm0, %v3520_v49  ;;  %v3044_v13 = vpop.permute.xlu2 %3043  ;;  %vm11731_vm0 = vmmov %vm11723_vm8 }
 0x5e3   :  { %3655 = vst.msk [vmem:[#allocation3 + $0x80] sm:$0xff] %vm11717_vm10, %v3616_v11  ;;  %vm11732_vm10 = vmmov %vm11724_vm11 }
 0x5e4   :  { %3751 = vst.msk [vmem:[#allocation3 + $0x80] sm:$0xff] %vm11718_vm14, %v3712_v28  ;;  %vm11733_vm14 = vmmov %vm11725_vm1  ;;  %v9562_v28 = vadd.f32 %v9556_v53, %v3851_v60 }
 0x5e5   :  { %3081 = vst.msk [vmem:[#allocation3 + $0xa0] sm:$0xff] %vm11719_vm12, %v3044_v13  ;;  %vm11734_vm12 = vmmov %vm11726_vm13  ;;  %v3857_v23 = vpop.f32.mrf.mxu2 }
 0x5e6   :  { %3339 = vrot.lane.b32.xlu1 %v3580_v39, %s7038_s12  ;;  %v9565_v43 = vadd.f32 %v9556_v53, %v3857_v23 }
 0x5e7   :  { %3243 = vrot.lane.b32.xlu0 %v9397_v38, %s7036_s10 }
 0x5e8   :  { %3435 = vrot.lane.b32.xlu2 %v3676_v16, %s7037_s11  ;;  %v3138_v1 = vpop.permute.xlu1 %3137 }
 0x5e9   :  { %v3042_v19 = vpop.permute.xlu0 %3041 }
 0x5ea   :  { %3080 = vst.msk [vmem:[#allocation3 + $0x90] sm:$0xff] %vm11720_vm3, %v3042_v19  ;;  %v3332_v34 = vpop.permute.xlu2 %3331  ;;  %vm11735_vm3 = vmmov %vm11727_vm7 }
 0x5eb   :  { %3176 = vst.msk [vmem:[#allocation3 + $0x90] sm:$0xff] %vm11721_vm4, %v3138_v1  ;;  %v3767_v42 = vld [vmem:[#allocation3 + $0x80] sm:$0xff]  ;;  %vm11736_vm4 = vcmask 130112  }
 0x5ec   :  { %3272 = vst.msk [vmem:[#allocation3 + $0x90] sm:$0xff] %vm11722_vm9, %v3234_v36  ;;  %6758 = vmatmul.msk.f32.gmra.mxu2 %vm11723_vm8, %v3767_v42  ;;  %vm11737_vm9 = vmmov %vm11729_vm5 }
 0x5ed   :  { %vm11738_vm8 = vmmov %vm11728_vm15 }
 0x5ee   :  { %3627 = vrot.lane.b32.xlu1 %v3581_v3, %s7041_s17 }
 0x5ef   :  { %3531 = vrot.lane.b32.xlu0 %v3485_v21, %s7039_s13 }
 0x5f0   :  { %3723 = vrot.lane.b32.xlu2 %v3677_v47, %s7040_s14  ;;  %v3426_v0 = vpop.permute.xlu1 %3425 }
 0x5f1   :  { %v3330_v17 = vpop.permute.xlu0 %3329 }
 0x5f2   :  { %3368 = vst.msk [vmem:[#allocation3 + $0x90] sm:$0xff] %vm11724_vm11, %v3330_v17  ;;  %v3620_v58 = vpop.permute.xlu2 %3619  ;;  %vm11739_vm11 = vmmov %vm11730_vm6 }
 0x5f3   :  { %3464 = vst.msk [vmem:[#allocation3 + $0x90] sm:$0xff] %vm11725_vm1, %v3426_v0  ;;  %vm11740_vm1 = vmmov %vm11732_vm10 }
 0x5f4   :  { %3560 = vst.msk [vmem:[#allocation3 + $0x90] sm:$0xff] %vm11726_vm13, %v3522_v14  ;;  %vm11741_vm13 = vmmov %vm11733_vm14 }
 0x5f6   :  { %3149 = vrot.lane.b32.xlu1 %v3676_v16, %s7035_s16 }
 0x5f7   :  { %3053 = vrot.lane.b32.xlu0 %v3580_v39, %s7034_s15 }
 0x5f8   :  { %3245 = vrot.lane.b32.xlu2 %v3485_v21, %s7036_s10  ;;  %v3714_v52 = vpop.permute.xlu1 %3713  ;;  %s7061_s10 = smov [#allocation4]  }
 0x5f9   :  { %v3618_v27 = vpop.permute.xlu0 %3617  ;;  %s6704_s26 = sshll.u32 %s7061_s10, 4  ;;  %s6705_s26 = int_to_ptr.vmem [resolvable:$true] %s6704_s26 }
 0x5fa   :  { %3656 = vst.msk [vmem:[#allocation3 + $0x90] sm:$0xff] %vm11727_vm7, %v3618_v27  ;;  %v3142_v38 = vpop.permute.xlu2 %3141  ;;  %vm11742_vm7 = vmmov %vm11731_vm0 }
 0x5fb   :  { %3752 = vst.msk [vmem:[#allocation3 + $0x90] sm:$0xff] %vm11728_vm15, %v3714_v52  ;;  %vm11743_vm15 = vmmov %vm11734_vm12 }
 0x5fc   :  { %v3860_v41 = vpop.f32.mrf.mxu2 }
 0x5fd   :  { %v9573_v51 = vadd.f32 %v9556_v53, %v3860_v41 }
 0x5fe   :  { %3437 = vrot.lane.b32.xlu1 %v3677_v47, %s7037_s11  ;;  %s7043_s11 = smov 126  }
 0x5ff   :  { %3341 = vrot.lane.b32.xlu0 %v3581_v3, %s7038_s12 }
 0x600   :  { %3533 = vrot.lane.b32.xlu2 %v3486_v31, %s7039_s13  ;;  %v3236_v45 = vpop.permute.xlu1 %3235 }
 0x601   :  { %v3140_v29 = vpop.permute.xlu0 %3139 }
 0x602   :  { %3177 = vst.msk [vmem:[#allocation3 + $0xa0] sm:$0xff] %vm11729_vm5, %v3140_v29  ;;  %v3430_v62 = vpop.permute.xlu2 %3429  ;;  %v3768_v48 = vld [vmem:[#allocation3 + $0x90] sm:$0xff]  ;;  %vm11744_vm5 = vmmov %vm11735_vm3 }
 0x603   :  { %3273 = vst.msk [vmem:[#allocation3 + $0xa0] sm:$0xff] %vm11730_vm6, %v3236_v45  ;;  %6759 = vmatmul.msk.f32.gmra.mxu2 %vm11731_vm0, %v3768_v48  ;;  %vm11745_vm6 = vmmov %vm11738_vm8 }
 0x604   :  { %3369 = vst.msk [vmem:[#allocation3 + $0xa0] sm:$0xff] %vm11732_vm10, %v3332_v34  ;;  %vm11746_vm0 = vmmov %vm11736_vm4 }
 0x605   :  { %vm11747_vm10 = vmmov %vm11746_vm0 }
 0x606   :  { %3725 = vrot.lane.b32.xlu1 %v3678_v33, %s7040_s14 }
 0x607   :  { %3629 = vrot.lane.b32.xlu0 %v3582_v5, %s7041_s17  ;;  %s7044_s17 = smov 122  }
 0x608   :  { %v3524_v2 = vpop.permute.xlu1 %3523 }
 0x609   :  { %v3428_v46 = vpop.permute.xlu0 %3427 }
 0x60a   :  { %3465 = vst.msk [vmem:[#allocation3 + $0xa0] sm:$0xff] %vm11733_vm14, %v3428_v46  ;;  %v3718_v56 = vpop.permute.xlu2 %3717  ;;  %vm11748_vm14 = vmmov %vm11737_vm9 }
 0x60b   :  { %3561 = vst.msk [vmem:[#allocation3 + $0xa0] sm:$0xff] %vm11734_vm12, %v3524_v2  ;;  %vm11749_vm12 = vmmov %vm11739_vm11 }
 0x60c   :  { %3657 = vst.msk [vmem:[#allocation3 + $0xa0] sm:$0xff] %vm11735_vm3, %v3620_v58  ;;  %vm11750_vm3 = vmmov %vm11742_vm7 }
 0x610   :  { %v3046_v9 = vpop.permute.xlu1 %3045 }
 0x611   :  { %v3716_v54 = vpop.permute.xlu0 %3715  ;;  %3082 = vst.msk [vmem:[#allocation3 + $0xb0] sm:$0xff] %vm11736_vm4, %v3046_v9  ;;  %vm11751_vm4 = vmmov %vm11740_vm1 }
 0x612   :  { %v3240_v22 = vpop.permute.xlu2 %3239  ;;  %3178 = vst.msk [vmem:[#allocation3 + $0xb0] sm:$0xff] %vm11737_vm9, %v3142_v38  ;;  %vm11752_vm9 = vmmov %vm11741_vm13 }
 0x613   :  { %3753 = vst.msk [vmem:[#allocation3 + $0xa0] sm:$0xff] %vm11738_vm8, %v3716_v54  ;;  %vm11753_vm8 = vmmov %vm11743_vm15 }
 0x614   :  { %v3863_v37 = vpop.f32.mrf.mxu2 }
 0x615   :  { %v9581_v16 = vadd.f32 %v9556_v53, %v3863_v37 }
 0x618   :  { %v3334_v59 = vpop.permute.xlu1 %3333 }
 0x619   :  { %v3238_v15 = vpop.permute.xlu0 %3237 }
 0x61a   :  { %3274 = vst.msk [vmem:[#allocation3 + $0xb0] sm:$0xff] %vm11739_vm11, %v3238_v15  ;;  %v3528_v12 = vpop.permute.xlu2 %3527  ;;  %v3769_v6 = vld [vmem:[#allocation3 + $0xa0] sm:$0xff]  ;;  %vm11754_vm11 = vmmov %vm11744_vm5 }
 0x61b   :  { %3370 = vst.msk [vmem:[#allocation3 + $0xb0] sm:$0xff] %vm11740_vm1, %v3334_v59  ;;  %6760 = vmatmul.msk.f32.gmra.mxu2 %vm11742_vm7, %v3769_v6  ;;  %vm11755_vm1 = vmmov %vm11745_vm6 }
 0x61c   :  { %3466 = vst.msk [vmem:[#allocation3 + $0xb0] sm:$0xff] %vm11741_vm13, %v3430_v62  ;;  %vm11756_vm13 = vmmov %vm11748_vm14 }
 0x61d   :  { %vm11757_vm7 = vmmov %vm11749_vm12 }
 0x620   :  { %v3622_v57 = vpop.permute.xlu1 %3621 }
 0x621   :  { %v3526_v4 = vpop.permute.xlu0 %3525 }
 0x622   :  { %3562 = vst.msk [vmem:[#allocation3 + $0xb0] sm:$0xff] %vm11743_vm15, %v3526_v4  ;;  %v3050_v30 = vpop.permute.xlu2 %3049  ;;  %vm11758_vm15 = vmmov %vm11750_vm3 }
 0x623   :  { %3658 = vst.msk [vmem:[#allocation3 + $0xb0] sm:$0xff] %vm11744_vm5, %v3622_v57  ;;  %vm11759_vm5 = vcmask 130048  }
 0x624   :  { %3754 = vst.msk [vmem:[#allocation3 + $0xb0] sm:$0xff] %vm11745_vm6, %v3718_v56  ;;  %v3900_v39 = vsel %vm11759_vm5, %v9559_v8, 0.0  ;;  %vm11760_vm6 = vmmov %vm11751_vm4 }
 0x625   :  { %3084 = vst.msk [vmem:[#allocation3 + $0xd0] sm:$0xff] %vm11746_vm0, %v3050_v30  ;;  %v3866_v7 = vpop.f32.mrf.mxu2  ;;  %vm11761_vm0 = vmmov %vm11759_vm5  ;;  %vm11774_vm5 = vcmask 261312  }
 0x626   :  { %v3899_v44 = vsel %vm11761_vm0, %v9562_v28, 0.0  ;;  %v9586_v1 = vadd.f32 %v9556_v53, %v3866_v7 }
 0x627   :  { %v3901_v11 = vadd.f32 %v3900_v39, %v3899_v44 }
 0x628   :  { %v3144_v61 = vpop.permute.xlu1 %3143 }
 0x629   :  { %v3048_v63 = vpop.permute.xlu0 %3047 }
 0x62a   :  { %3083 = vst.msk [vmem:[#allocation3 + $0xc0] sm:$0xff] %vm11747_vm10, %v3048_v63  ;;  %v3338_v50 = vpop.permute.xlu2 %3337  ;;  %vm11762_vm10 = vmmov %vm11761_vm0 }
 0x62b   :  { %3179 = vst.msk [vmem:[#allocation3 + $0xc0] sm:$0xff] %vm11748_vm14, %v3144_v61  ;;  %v3770_v26 = vld [vmem:[#allocation3 + $0xb0] sm:$0xff]  ;;  %v3902_v14 = vsel %vm11762_vm10, %v9565_v43, 0.0  ;;  %vm11763_vm14 = vmmov %vm11761_vm0  ;;  %vm11776_vm10 = vcmask 588800  }
 0x62c   :  { %3275 = vst.msk [vmem:[#allocation3 + $0xc0] sm:$0xff] %vm11749_vm12, %v3240_v22  ;;  %6761 = vmatmul.msk.f32.gmra.mxu2 %vm11750_vm3, %v3770_v26  ;;  %v3904_v13 = vsel %vm11763_vm14, %v9573_v51, 0.0  ;;  %v3903_v19 = vadd.f32 %v3902_v14, %v3901_v11  ;;  %vm11764_vm12 = vmmov %vm11761_vm0 }
 0x62d   :  { %v3906_v3 = vsel %vm11764_vm12, %v9581_v16, 0.0  ;;  %vm11765_vm3 = vmmov %vm11752_vm9 }
 0x62e   :  { %v3905_v0 = vadd.f32 %v3904_v13, %v3903_v19 }
 0x630   :  { %v3432_v18 = vpop.permute.xlu1 %3431  ;;  %v3907_v58 = vadd.f32 %v3906_v3, %v3905_v0 }
 0x631   :  { %v3336_v40 = vpop.permute.xlu0 %3335 }
 0x632   :  { %3371 = vst.msk [vmem:[#allocation3 + $0xc0] sm:$0xff] %vm11751_vm4, %v3336_v40  ;;  %v3626_v55 = vpop.permute.xlu2 %3625  ;;  %vm11766_vm4 = vmmov %vm11753_vm8 }
 0x633   :  { %3467 = vst.msk [vmem:[#allocation3 + $0xc0] sm:$0xff] %vm11752_vm9, %v3432_v18  ;;  %vm11767_vm9 = vmmov %vm11761_vm0 }
 0x634   :  { %3563 = vst.msk [vmem:[#allocation3 + $0xc0] sm:$0xff] %vm11753_vm8, %v3528_v12  ;;  %v3908_v17 = vsel %vm11767_vm9, %v9586_v1, 0.0  ;;  %vm11768_vm8 = vmmov %vm11754_vm11 }
 0x635   :  { %v3909_v27 = vadd.f32 %v3908_v17, %v3907_v58  ;;  %vm11777_vm14 = vmmov %vm11766_vm4 }
 0x636   :  { %vm11778_vm12 = vmmov %vm11768_vm8 }
 0x638   :  { %v3720_v35 = vpop.permute.xlu1 %3719 }
 0x639   :  { %v3624_v25 = vpop.permute.xlu0 %3623 }
 0x63a   :  { %3659 = vst.msk [vmem:[#allocation3 + $0xc0] sm:$0xff] %vm11754_vm11, %v3624_v25  ;;  %v3148_v21 = vpop.permute.xlu2 %3147  ;;  %vm11769_vm11 = vmmov %vm11761_vm0 }
 0x63b   :  { %3755 = vst.msk [vmem:[#allocation3 + $0xc0] sm:$0xff] %vm11755_vm1, %v3720_v35  ;;  %vm11770_vm1 = vmmov %vm11761_vm0 }
 0x63c   :  { %v3869_v49 = vpop.f32.mrf.mxu2  ;;  %vm11775_vm0 = vmmov %vm11765_vm3 }
 0x63d   :  { %v9591_v47 = vadd.f32 %v9556_v53, %v3869_v49 }
 0x63f   :  { %v3910_v52 = vsel %vm11769_vm11, %v9591_v47, 0.0  ;;  %vm11783_vm11 = vmmov %vm11776_vm10 }
 0x640   :  { %v3242_v20 = vpop.permute.xlu1 %3241  ;;  %v3911_v45 = vadd.f32 %v3910_v52, %v3909_v27 }
 0x641   :  { %v3146_v10 = vpop.permute.xlu0 %3145 }
 0x642   :  { %3180 = vst.msk [vmem:[#allocation3 + $0xd0] sm:$0xff] %vm11756_vm13, %v3146_v10  ;;  %v3771_v36 = vld [vmem:[#allocation3 + $0xc0] sm:$0xff]  ;;  %vm11771_vm13 = vcmask 130112   ;;  %v3436_v33 = vpop.permute.xlu2 %3435 }
 0x643   :  { %3276 = vst.msk [vmem:[#allocation3 + $0xd0] sm:$0xff] %vm11757_vm7, %v3242_v20  ;;  %6762 = vmatmul.msk.f32.gmra.mxu2 %vm11758_vm15, %v3771_v36  ;;  %vm11772_vm7 = vcmask 195712   ;;  %vm11773_vm15 = vcmask 589312  }
 0x644   :  { %3372 = vst.msk [vmem:[#allocation3 + $0xd0] sm:$0xff] %vm11760_vm6, %v3338_v50  ;;  %vm11781_vm9 = vmmov %vm11772_vm7 }
 0x648   :  { %v3530_v34 = vpop.permute.xlu1 %3529 }
 0x649   :  { %v3434_v42 = vpop.permute.xlu0 %3433 }
 0x64a   :  { %3468 = vst.msk [vmem:[#allocation3 + $0xd0] sm:$0xff] %vm11765_vm3, %v3434_v42  ;;  %v3724_v15 = vpop.permute.xlu2 %3723  ;;  %vm11779_vm3 = vmmov %vm11773_vm15 }
 0x64b   :  { %3564 = vst.msk [vmem:[#allocation3 + $0xd0] sm:$0xff] %vm11766_vm4, %v3530_v34  ;;  %vm11780_vm4 = vmmov %vm11771_vm13 }
 0x64c   :  { %3660 = vst.msk [vmem:[#allocation3 + $0xd0] sm:$0xff] %vm11768_vm8, %v3626_v55  ;;  %vm11782_vm8 = vmmov %vm11774_vm5 }
 0x64e   :  { %v3872_v38 = vpop.f32.mrf.mxu2 }
 0x64f   :  { %v9601_v31 = vadd.f32 %v9556_v53, %v3872_v38 }
 0x650   :  { %v3052_v29 = vpop.permute.xlu1 %3051 }
 0x651   :  { %v3722_v62 = vpop.permute.xlu0 %3721  ;;  %v3912_v48 = vsel %vm11770_vm1, %v9601_v31, 0.0  ;;  %3085 = vst.msk [vmem:[#allocation3 + $0xe0] sm:$0xff] %vm11771_vm13, %v3052_v29  ;;  %vm11784_vm1 = vmmov %vm11760_vm6 }
 0x652   :  { %v3913_v5 = vadd.f32 %v3912_v48, %v3911_v45  ;;  %3181 = vst.msk [vmem:[#allocation3 + $0xe0] sm:$0xff] %vm11772_vm7, %v3148_v21  ;;  %v3246_v4 = vpop.permute.xlu2 %3245  ;;  %vm11785_vm13 = vmmov %vm11775_vm0 }
 0x653   :  { %3756 = vst.msk [vmem:[#allocation3 + $0xd0] sm:$0xff] %vm11773_vm15, %v3722_v62  ;;  %vm11786_vm7 = vmmov %vm11777_vm14 }
 0x654   :  { %v3914_v2 = vrot.slane %v3913_v5, 4  ;;  %vm11787_vm15 = vmmov %vm11778_vm12 }
 0x656   :  { %v3915_v46 = vadd.f32 %v3914_v2, %v3913_v5 }
 0x658   :  { %v3916_v56 = vrot.slane %v3915_v46, 2  ;;  %v3340_v9 = vpop.permute.xlu1 %3339 }
 0x659   :  { %v3244_v54 = vpop.permute.xlu0 %3243 }
 0x65a   :  { %3277 = vst.msk [vmem:[#allocation3 + $0xe0] sm:$0xff] %vm11774_vm5, %v3244_v54  ;;  %v3917_v22 = vadd.f32 %v3916_v56, %v3915_v46  ;;  %v3772_v60 = vld [vmem:[#allocation3 + $0xd0] sm:$0xff]  ;;  %v3534_v63 = vpop.permute.xlu2 %3533  ;;  %vm11788_vm5 = vmmov %vm11779_vm3 }
 0x65b   :  { %3373 = vst.msk [vmem:[#allocation3 + $0xe0] sm:$0xff] %vm11760_vm6, %v3340_v9  ;;  %6763 = vmatmul.msk.f32.gmra.mxu2 %vm11776_vm10, %v3772_v60  ;;  %vm11789_vm6 = vmmov %vm11776_vm10 }
 0x65c   :  { %3469 = vst.msk [vmem:[#allocation3 + $0xe0] sm:$0xff] %vm11775_vm0, %v3436_v33  ;;  %v3918_v59 = vrot.slane %v3917_v22, 1  ;;  %vm11790_vm0 = vcmask 130048  }
 0x65d   :  { %vm11791_vm10 = vmmov %vm11790_vm0 }
 0x65e   :  { %v3919_v12 = vadd.f32 %v3918_v59, %v3917_v22 }
 0x660   :  { %v9613_v6 = vmul.f32 %v3919_v12, %v7985_v24  ;;  %v3628_v32 = vpop.permute.xlu1 %3627 }
 0x661   :  { %v3532_v57 = vpop.permute.xlu0 %3531 }
 0x662   :  { %3565 = vst.msk [vmem:[#allocation3 + $0xe0] sm:$0xff] %vm11777_vm14, %v3532_v57  ;;  %3945 = vrot.lane.b32.xlu1 %v9613_v6, %s7043_s11  ;;  %3953 = vrot.lane.b32.xlu2 %v9613_v6, %s7044_s17  ;;  %vm11792_vm14 = vmmov %vm11790_vm0 }
 0x663   :  { %3661 = vst.msk [vmem:[#allocation3 + $0xe0] sm:$0xff] %vm11778_vm12, %v3628_v32  ;;  %vm11793_vm12 = vmmov %vm11790_vm0 }
 0x664   :  { %3757 = vst.msk [vmem:[#allocation3 + $0xe0] sm:$0xff] %vm11779_vm3, %v3724_v15  ;;  %vm11794_vm3 = vmmov %vm11790_vm0 }
 0x668   :  { %v3150_v30 = vpop.permute.xlu1 %3149 }
 0x669   :  { %v3054_v23 = vpop.permute.xlu0 %3053 }
 0x66a   :  { %3086 = vst.msk [vmem:[#allocation3 + $0xf0] sm:$0xff] %vm11780_vm4, %v3054_v23  ;;  %3949 = vrot.lane.b32.xlu2 %v9613_v6, %s7045_s29  ;;  %vm11795_vm4 = vmmov %vm11790_vm0 }
 0x66b   :  { %3182 = vst.msk [vmem:[#allocation3 + $0xf0] sm:$0xff] %vm11781_vm9, %v3150_v30  ;;  %v3773_v61 = vld [vmem:[#allocation3 + $0xe0] sm:$0xff]  ;;  %vm11796_vm9 = vmmov %vm11790_vm0 }
 0x66c   :  { %3278 = vst.msk [vmem:[#allocation3 + $0xf0] sm:$0xff] %vm11782_vm8, %v3246_v4  ;;  %6764 = vmatmul.msk.f32.gmra.mxu2 %vm11783_vm11, %v3773_v61  ;;  %vm11797_vm8 = vmmov %vm11790_vm0  ;;  %vm11462_vm11 = vcmask 1041409  }
 0x66f   :  { %v3875_v37 = vpop.f32.mrf.mxu2 }
 0x670   :  { %v3438_v26 = vpop.permute.xlu1 %3437  ;;  %v9640_v36 = vadd.f32 %v9556_v53, %v3875_v37 }
 0x671   :  { %v3342_v41 = vpop.permute.xlu0 %3341 }
 0x672   :  { %3374 = vst.msk [vmem:[#allocation3 + $0xf0] sm:$0xff] %vm11784_vm1, %v3342_v41  ;;  %3969 = vrot.lane.b32.xlu2 %v9613_v6, %s7046_s30  ;;  %v3920_v11 = vsel %vm11791_vm10, %v9640_v36, 0.0  ;;  %vm11461_vm1 = vcmask 1047556   ;;  %vm11454_vm10 = vcmask 113664  }
 0x673   :  { %3470 = vst.msk [vmem:[#allocation3 + $0xf0] sm:$0xff] %vm11785_vm13, %v3438_v26  ;;  %vm11460_vm13 = vcmask 15360  }
 0x674   :  { %3566 = vst.msk [vmem:[#allocation3 + $0xf0] sm:$0xff] %vm11786_vm7, %v3534_v63 }
 0x678   :  { %v3726_v40 = vpop.permute.xlu1 %3725 }
 0x679   :  { %v3630_v18 = vpop.permute.xlu0 %3629 }
 0x67a   :  { %3662 = vst.msk [vmem:[#allocation3 + $0xf0] sm:$0xff] %vm11787_vm15, %v3630_v18  ;;  %v7049_v18 = vmov 1983009808   ;;  %vm11459_vm15 = vcmask 31744  }
 0x67b   :  { %3758 = vst.msk [vmem:[#allocation3 + $0xf0] sm:$0xff] %vm11788_vm5, %v3726_v40  ;;  %v4002_v40 = vunpack.c.l.s4 %v7049_v18  ;;  %v7051_v18 = vmov 2.0   ;;  %vm11458_vm5 = vcmask 48128  }
 0x67c   :  { %6928 = vrcp.f32 %v7051_v18 }
 0x682   :  { %v3774_v50 = vld [vmem:[#allocation3 + $0xf0] sm:$0xff] }
 0x683   :  { %6765 = vmatmul.msk.f32.gmra.mxu2 %vm11789_vm6, %v3774_v50  ;;  %vm11455_vm6 = vcmask 97280  }
 0x686   :  { %v3878_v35 = vpop.f32.mrf.mxu2 }
 0x687   :  { %v9637_v10 = vadd.f32 %v9556_v53, %v3878_v35 }
 0x689   :  { %v3921_v44 = vsel %vm11790_vm0, %v9637_v10, 0.0  ;;  %vm11456_vm0 = vcmask 80896  }
 0x68a   :  { %v3922_v19 = vadd.f32 %v3921_v44, %v3920_v11 }
 0x69e   :  { %v3881_v25 = vpop.f32.mrf.mxu2 }
 0x69f   :  { %v9643_v39 = vadd.f32 %v9556_v53, %v3881_v25 }
 0x6a1   :  { %v3923_v49 = vsel %vm11792_vm14, %v9643_v39, 0.0  ;;  %vm11798_vm14 = vmmov %vm11794_vm3 }
 0x6a2   :  { %v3924_v21 = vadd.f32 %v3923_v49, %v3922_v19 }
 0x6af   :  { %v3884_v7 = vpop.f32.mrf.mxu2 }
 0x6b0   :  { %v9648_v14 = vadd.f32 %v9556_v53, %v3884_v7  ;;  %v9693_v7 = vunpack.c.0.s8 %v4002_v40  ;;  %v6929_v40 = vpop.eup %6928 }
 0x6b1   :  { %vm4051_vm7 = vweird.f32 %v6929_v40 }
 0x6b2   :  { %v3925_v42 = vsel %vm11793_vm12, %v9648_v14, 0.0  ;;  %vm11799_vm12 = vmmov %vm11794_vm3 }
 0x6b3   :  { %v3926_v58 = vadd.f32 %v3925_v42, %v3924_v21 }
 0x6c6   :  { %v3887_v55 = vpop.f32.mrf.mxu2 }
 0x6c7   :  { %v9655_v13 = vadd.f32 %v9556_v53, %v3887_v55 }
 0x6c9   :  { %v3927_v0 = vsel %vm11794_vm3, %v9655_v13, 0.0 }
 0x6ca   :  { %v3928_v27 = vadd.f32 %v3927_v0, %v3926_v58 }
 0x6d4   :  { %v3946_v15 = vpop.permute.xlu1 %3945 }
 0x6de   :  { %v3890_v20 = vpop.f32.mrf.mxu2 }
 0x6df   :  { %v9660_v3 = vadd.f32 %v9556_v53, %v3890_v20 }
 0x6e1   :  { %v3929_v52 = vsel %vm11795_vm4, %v9660_v3, 0.0  ;;  %vm11800_vm4 = vmmov %vm11794_vm3 }
 0x6e2   :  { %v3930_v45 = vadd.f32 %v3929_v52, %v3928_v27 }
 0x6ef   :  { %v3893_v34 = vpop.f32.mrf.mxu2 }
 0x6f0   :  { %v9665_v17 = vadd.f32 %v9556_v53, %v3893_v34 }
 0x6f2   :  { %v3931_v38 = vsel %vm11796_vm9, %v9665_v17, 0.0  ;;  %vm11801_vm9 = vmmov %vm11794_vm3 }
 0x6f3   :  { %v3932_v48 = vadd.f32 %v3931_v38, %v3930_v45  ;;  %v7050_v45 = vmov 1934713408  }
 0x706   :  { %v3896_v29 = vpop.f32.mrf.mxu2 }
 0x707   :  { %v9672_v62 = vadd.f32 %v9556_v53, %v3896_v29  ;;  %v3954_v53 = vpop.permute.xlu2 %3953  ;;  %v4026_v29 = vunpack.c.l.s4 %v7050_v45 }
 0x709   :  { %v3933_v5 = vsel %vm11797_vm8, %v9672_v62, 0.0  ;;  %vm11802_vm8 = vmmov %vm11794_vm3 }
 0x70a   :  { %v3934_v33 = vadd.f32 %v3933_v5, %v3932_v48 }
 0x70c   :  { %v3935_v2 = vrot.slane %v3934_v33, 4 }
 0x70e   :  { %v3936_v46 = vadd.f32 %v3935_v2, %v3934_v33 }
 0x70f   :  { %v3950_v59 = vpop.permute.xlu2 %3949 }
 0x710   :  { %v3937_v56 = vrot.slane %v3936_v46, 2 }
 0x712   :  { %v3938_v9 = vadd.f32 %v3937_v56, %v3936_v46  ;;  %v9705_v46 = vunpack.c.0.s8 %v4026_v29 }
 0x714   :  { %v3939_v54 = vrot.slane %v3938_v9, 1 }
 0x716   :  { %v3940_v22 = vadd.f32 %v3939_v54, %v3938_v9 }
 0x717   :  { %v3970_v12 = vpop.permute.xlu2 %3969 }
 0x718   :  { %v3942_v60 = vmul.f32 %v3940_v22, %v7985_v24 }
 0x71a   :  { %3947 = vrot.lane.b32.xlu0 %v3942_v60, %s7043_s11  ;;  %3951 = vrot.lane.b32.xlu1 %v3942_v60, %s7045_s29  ;;  %v3973_v55 = vrot.slane %v3942_v60, 7 }
 0x71b   :  { %3955 = vrot.lane.b32.xlu2 %v3942_v60, %s7044_s17 }
 0x71c   :  { %v3975_v34 = vsel %vm11462_vm11, %v3973_v55, %v9613_v6 }
 0x722   :  { %3971 = vrot.lane.b32.xlu0 %v3942_v60, %s7046_s30  ;;  %3967 = vrot.lane.b32.xlu1 %v3942_v60, %s7047_s18 }
 0x723   :  { %3965 = vrot.lane.b32.xlu2 %v9613_v6, %s7047_s18 }
 0x72a   :  { %3963 = vrot.lane.b32.xlu0 %v3942_v60, %s7048_s19  ;;  %3961 = vrot.lane.b32.xlu1 %v9613_v6, %s7048_s19 }
 0x732   :  { %3959 = vrot.lane.b32.xlu0 %v3942_v60, %s7032_s9 }
 0x73a   :  { %3957 = vrot.lane.b32.xlu0 %v9613_v6, %s7032_s9 }
 0x775   :  { %v3956_v4 = vpop.permute.xlu2 %3955 }
 0x776   :  { %v3980_v23 = vrot.slane %v3956_v4, 7 }
 0x778   :  { %v3981_v41 = vsel %vm11462_vm11, %v3980_v23, %v3954_v53 }
 0x779   :  { %v4005_v25 = vrot.slane %v3981_v41, 4 }
 0x77d   :  { %v3966_v33 = vpop.permute.xlu2 %3965 }
 0x78c   :  { %v3948_v32 = vpop.permute.xlu0 %3947  ;;  %v3952_v57 = vpop.permute.xlu1 %3951 }
 0x78d   :  { %v3976_v61 = vrot.slane %v3948_v32, 7  ;;  %v3978_v63 = vrot.slane %v3952_v57, 7 }
 0x78f   :  { %v3977_v37 = vsel %vm11462_vm11, %v3976_v61, %v3946_v15  ;;  %v3979_v35 = vsel %vm11462_vm11, %v3978_v63, %v3950_v59 }
 0x790   :  { %v4006_v44 = vsel %vm11461_vm1, %v4005_v25, %v3977_v37  ;;  %v3998_v11 = vrot.slane %v3979_v35, 4 }
 0x791   :  { %v4010_v19 = vperm.slane %v4006_v44, %v9693_v7 }
 0x792   :  { %v4000_v21 = vsel %vm11461_vm1, %v3998_v11, %v3975_v34 }
 0x793   :  { %v4023_v48 = vrot.slane %v4010_v19, 4  ;;  %v4004_v5 = vperm.slane %v4000_v21, %v9693_v7 }
 0x794   :  { %v3972_v30 = vpop.permute.xlu0 %3971  ;;  %v3968_v26 = vpop.permute.xlu1 %3967 }
 0x795   :  { %v3988_v20 = vrot.slane %v3972_v30, 7  ;;  %v3986_v52 = vrot.slane %v3968_v26, 7  ;;  %v4024_v54 = vsel %vm11461_vm1, %v4023_v48, %v4004_v5 }
 0x796   :  { %v4028_v15 = vperm.slane %v4024_v54, %v9705_v46 }
 0x797   :  { %v3989_v42 = vsel %vm11462_vm11, %v3988_v20, %v3970_v12  ;;  %v3987_v6 = vsel %vm11462_vm11, %v3986_v52, %v3966_v33 }
 0x798   :  { %v4017_v38 = vrot.slane %v3989_v42, 4  ;;  %v4011_v22 = vrot.slane %v3987_v6, 4  ;;  %v4037_v30 = vrot.slane %v4028_v15, 4 }
 0x79c   :  { %v3964_v50 = vpop.permute.xlu0 %3963  ;;  %v3962_v0 = vpop.permute.xlu1 %3961 }
 0x79d   :  { %v3984_v49 = vrot.slane %v3964_v50, 7  ;;  %v4047_v50 = vmul.f32 2.0, %v6929_v40 }
 0x79f   :  { %v3985_v27 = vsel %vm11462_vm11, %v3984_v49, %v3962_v0  ;;  %v4048_v37 = vsub.f32 1.0, %v4047_v50 }
 0x7a0   :  { %v4018_v2 = vsel %vm11461_vm1, %v4017_v38, %v3985_v27 }
 0x7a1   :  { %v4022_v56 = vperm.slane %v4018_v2, %v9693_v7  ;;  %v4049_v35 = vmul.f32 %v6929_v40, %v4048_v37 }
 0x7a3   :  { %v4029_v12 = vrot.slane %v4022_v56, 4  ;;  %v4050_v25 = vadd.f32 %v6929_v40, %v4049_v35 }
 0x7a4   :  { %v3960_v58 = vpop.permute.xlu0 %3959 }
 0x7a5   :  { %v3982_v9 = vrot.slane %v3960_v58, 7  ;;  %v9719_v55 = vsel %vm4051_vm7, %v6929_v40, %v4050_v25  ;;  %vm11803_vm7 = vmmov %vm11794_vm3 }
 0x7ac   :  { %v3958_v60 = vpop.permute.xlu0 %3957 }
 0x7ad   :  { %v3983_v53 = vsel %vm11462_vm11, %v3982_v9, %v3958_v60 }
 0x7ae   :  { %v4012_v59 = vsel %vm11461_vm1, %v4011_v22, %v3983_v53 }
 0x7af   :  { %v4016_v32 = vperm.slane %v4012_v59, %v9693_v7 }
 0x7b1   :  { %v4030_v57 = vsel %vm11461_vm1, %v4029_v12, %v4016_v32 }
 0x7b2   :  { %v4034_v4 = vperm.slane %v4030_v57, %v9705_v46 }
 0x7b4   :  { %v4038_v23 = vsel %vm11461_vm1, %v4034_v4, %v4037_v30  ;;  %v4035_v61 = vrot.slane %v4034_v4, 4 }
 0x7b5   :  { %v4043_v63 = vsel %vm11460_vm13, %v4038_v23, 0.0 }
 0x7b6   :  { %4044 = vadd.xlane.f32.xlu1 %v4043_v63  ;;  %v4036_v26 = vsel %vm11461_vm1, %v4035_v61, %v4028_v15 }
 0x7b7   :  { %v4040_v41 = vsel %vm11460_vm13, %v4036_v26, 0.0 }
 0x7b8   :  { %4041 = vadd.xlane.f32.xlu2 %v4040_v41 }
 0x829   :  { %v4045_v20 = vpop.xlane.xlu1 %4044 }
 0x82a   :  { %v4054_v44 = vmul.f32 %v9719_v55, %v4045_v20 }
 0x82b   :  { %v4042_v11 = vpop.xlane.xlu2 %4041 }
 0x82c   :  { %v4093_v49 = vrot.slane %v4054_v44, 4  ;;  %v4098_v19 = vperm.slane %v4054_v44, %v9693_v7  ;;  %v4053_v34 = vmul.f32 %v9719_v55, %v4042_v11 }
 0x82e   :  { %v4094_v42 = vsel %vm11461_vm1, 0.0, %v4093_v49  ;;  %v9726_v21 = vperm.slane %v4098_v19, %v9705_v46  ;;  %v4055_v0 = vrot.slane %v4053_v34, 4  ;;  %v4060_v52 = vperm.slane %v4053_v34, %v9693_v7 }
 0x82f   :  { %v4102_v58 = vperm.slane %v4094_v42, %v9693_v7  ;;  %v4103_v5 = vrot.slane %v4098_v19, 4 }
 0x830   :  { %v4056_v27 = vsel %vm11461_vm1, 0.0, %v4055_v0  ;;  %v4123_v38 = vrot.slane %v9726_v21, 4  ;;  %v4065_v48 = vrot.slane %v4060_v52, 4  ;;  %v4070_v4 = vperm.slane %v4060_v52, %v9705_v46 }
 0x831   :  { %v4113_v45 = vrot.slane %v4102_v58, 4  ;;  %v4064_v29 = vperm.slane %v4056_v27, %v9693_v7  ;;  %v4118_v2 = vperm.slane %v4102_v58, %v9705_v46  ;;  %v4104_v60 = vsel %vm11461_vm1, 0.0, %v4103_v5 }
 0x832   :  { %v4124_v33 = vsel %vm11461_vm1, 0.0, %v4123_v38  ;;  %v4066_v6 = vsel %vm11461_vm1, 0.0, %v4065_v48  ;;  %v4112_v57 = vperm.slane %v4104_v60, %v9705_v46  ;;  %v4085_v63 = vrot.slane %v4070_v4, 4  ;;  %v5073_v48 = vld [vmem:[#allocation2 + $0x2] sm:$0xff] }
 0x833   :  { %4135 = vrot.lane.b32.xlu0 %v4124_v33, %s7052_s2  ;;  %v4080_v56 = vperm.slane %v4064_v29, %v9705_v46  ;;  %v4075_v9 = vrot.slane %v4064_v29, 4  ;;  %4159 = vrot.lane.b32.xlu2 %v4118_v2, %s7034_s15  ;;  %v4074_v54 = vperm.slane %v4066_v6, %v9705_v46  ;;  %v4114_v22 = vsel %vm11461_vm1, 0.0, %v4113_v45  ;;  %v5468_v45 = vld [vmem:[#allocation2 + $0x90] sm:$0xff]  ;;  %v4976_v29 = vld [vmem:[#allocation2 + $0x1] sm:$0xff] }
 0x834   :  { %v4122_v12 = vperm.slane %v4114_v22, %v9705_v46  ;;  %v4086_v18 = vsel %vm11461_vm1, 0.0, %v4085_v63  ;;  %v4125_v50 = vrot.slane %v4112_v57, 4  ;;  %v4127_v35 = vrot.slane %v4118_v2, 4 }
 0x835   :  { %v4087_v53 = vrot.slane %v4074_v54, 4  ;;  %v4089_v59 = vrot.slane %v4080_v56, 4  ;;  %v4076_v32 = vsel %vm11461_vm1, 0.0, %v4075_v9 }
 0x836   :  { %v4084_v23 = vperm.slane %v4076_v32, %v9705_v46  ;;  %v4129_v61 = vrot.slane %v4122_v12, 4  ;;  %v4126_v37 = vsel %vm11461_vm1, 0.0, %v4125_v50  ;;  %v4128_v25 = vsel %vm11461_vm1, 0.0, %v4127_v35 }
 0x837   :  { %v4088_v15 = vsel %vm11461_vm1, 0.0, %v4087_v53  ;;  %v4090_v30 = vsel %vm11461_vm1, 0.0, %v4089_v59  ;;  %v5081_v53 = vld [vmem:[#allocation2 + $0xa2] sm:$0xff] }
 0x838   :  { %4149 = vrot.lane.b32.xlu1 %v4088_v15, %s7053_s20  ;;  %v4091_v26 = vrot.slane %v4084_v23, 4  ;;  %v4130_v41 = vsel %vm11461_vm1, 0.0, %v4129_v61 }
 0x83a   :  { %v4092_v40 = vsel %vm11461_vm1, 0.0, %v4091_v26 }
 0x83b   :  { %4143 = vrot.lane.b32.xlu0 %v4112_v57, %s7054_s21  ;;  %4165 = vrot.lane.b32.xlu2 %v4090_v30, %s11466_s22  ;;  %v5565_v57 = vld [vmem:[#allocation2 + $0x91] sm:$0xff] }
 0x840   :  { %4183 = vrot.lane.b32.xlu1 %v4130_v41, %s11468_s3 }
 0x843   :  { %4133 = vrot.lane.b32.xlu0 %v4086_v18, %s7052_s2  ;;  %4181 = vrot.lane.b32.xlu2 %v4092_v40, %s11468_s3 }
 0x848   :  { %5507 = vrot.lane.b32.xlu1 %v5468_v45, %s7058_s24 }
 0x84b   :  { %4141 = vrot.lane.b32.xlu0 %v4074_v54, %s7054_s21  ;;  %5105 = vrot.lane.b32.xlu2 %v5073_v48, %s7038_s12 }
 0x850   :  { %5121 = vrot.lane.b32.xlu1 %v5081_v53, %s7038_s12 }
 0x853   :  { %4157 = vrot.lane.b32.xlu0 %v4080_v56, %s7034_s15 }
 0x85b   :  { %4151 = vrot.lane.b32.xlu0 %v4126_v37, %s7053_s20 }
 0x863   :  { %4167 = vrot.lane.b32.xlu0 %v4128_v25, %s11466_s22 }
 0x86b   :  { %4175 = vrot.lane.b32.xlu0 %v4122_v12, %s11464_s23 }
 0x873   :  { %4173 = vrot.lane.b32.xlu0 %v4084_v23, %s11464_s23  ;;  %v4984_v23 = vld [vmem:[#allocation2 + $0xa1] sm:$0xff] }
 0x874   :  { %5024 = vrot.lane.b32.xlu2 %v4984_v23, %s7035_s16 }
 0x87b   :  { %5008 = vrot.lane.b32.xlu0 %v4976_v29, %s7035_s16 }
 0x883   :  { %5604 = vrot.lane.b32.xlu0 %v5565_v57, %s7059_s25 }
 0x88d   :  { %v4160_v42 = vpop.permute.xlu2 %4159 }
 0x895   :  { %v4166_v2 = vpop.permute.xlu2 %4165 }
 0x89d   :  { %v4182_v37 = vpop.permute.xlu2 %4181 }
 0x8a5   :  { %v4136_v20 = vpop.permute.xlu0 %4135 }
 0x8a6   :  { %v4188_v52 = vsel %vm11460_vm13, %v9726_v21, %v4136_v20 }
 0x8aa   :  { %v4150_v0 = vpop.permute.xlu1 %4149 }
 0x8ad   :  { %v4144_v44 = vpop.permute.xlu0 %4143 }
 0x8ae   :  { %v4191_v27 = vsel %vm11459_vm15, %v4188_v52, %v4144_v44 }
 0x8b2   :  { %v4184_v6 = vpop.permute.xlu1 %4183 }
 0x8b5   :  { %v4134_v11 = vpop.permute.xlu0 %4133 }
 0x8b6   :  { %v4187_v9 = vsel %vm11460_vm13, %v4070_v4, %v4134_v11 }
 0x8bd   :  { %v4142_v49 = vpop.permute.xlu0 %4141 }
 0x8be   :  { %v4190_v22 = vsel %vm11459_vm15, %v4187_v9, %v4142_v49 }
 0x8bf   :  { %v4193_v4 = vsel %vm11458_vm5, %v4190_v22, %v4150_v0 }
 0x8c5   :  { %v4158_v19 = vpop.permute.xlu0 %4157 }
 0x8c6   :  { %v4195_v61 = vsel %vm11457_vm2, %v4193_v4, %v4158_v19 }
 0x8c7   :  { %v4198_v50 = vsel %vm11456_vm0, %v4195_v61, %v4166_v2 }
 0x8cd   :  { %v4152_v34 = vpop.permute.xlu0 %4151 }
 0x8ce   :  { %v4194_v38 = vsel %vm11458_vm5, %v4191_v27, %v4152_v34 }
 0x8cf   :  { %v4196_v5 = vsel %vm11457_vm2, %v4194_v38, %v4160_v42 }
 0x8d5   :  { %v4168_v58 = vpop.permute.xlu0 %4167 }
 0x8d6   :  { %v4199_v21 = vsel %vm11456_vm0, %v4196_v5, %v4168_v58 }
 0x8dd   :  { %v4176_v33 = vpop.permute.xlu0 %4175 }
 0x8de   :  { %v4202_v56 = vsel %vm11455_vm6, %v4199_v21, %v4176_v33 }
 0x8df   :  { %v4205_v54 = vsel %vm11454_vm10, %v4202_v56, %v4184_v6 }
 0x8e0   :  { %v4207_v60 = vperm.slane %v4205_v54, 0 }
 0x8e2   :  { %v9780_v59 = vsub.f32 %v9640_v36, %v4207_v60  ;;  %v9783_v15 = vsub.f32 %v9637_v10, %v4207_v60  ;;  %v9786_v12 = vsub.f32 %v9643_v39, %v4207_v60  ;;  %v9789_v32 = vsub.f32 %v9648_v14, %v4207_v60 }
 0x8e3   :  { %v9793_v30 = vsub.f32 %v9655_v13, %v4207_v60  ;;  %v9804_v14 = vsub.f32 %v9660_v3, %v4207_v60  ;;  %v9813_v18 = vsub.f32 %v9665_v17, %v4207_v60  ;;  %v9821_v20 = vsub.f32 %v9672_v62, %v4207_v60 }
 0x8e4   :  { %v4232_v36 = vmul.f32 %v9780_v59, %v9780_v59  ;;  %v4233_v10 = vmul.f32 %v9783_v15, %v9783_v15  ;;  %v4234_v39 = vmul.f32 %v9786_v12, %v9786_v12  ;;  %v4235_v13 = vmul.f32 %v9789_v32, %v9789_v32 }
 0x8e5   :  { %v4174_v63 = vpop.permute.xlu0 %4173  ;;  %v4236_v3 = vmul.f32 %v9793_v30, %v9793_v30  ;;  %v4237_v44 = vmul.f32 %v9804_v14, %v9804_v14  ;;  %v4238_v34 = vmul.f32 %v9813_v18, %v9813_v18  ;;  %v4239_v38 = vmul.f32 %v9821_v20, %v9821_v20 }
 0x8e6   :  { %v4261_v26 = vsel %vm11798_vm14, %v4232_v36, 0.0  ;;  %v4262_v41 = vsel %vm11799_vm12, %v4233_v10, 0.0  ;;  %v4264_v35 = vsel %vm11794_vm3, %v4234_v39, 0.0  ;;  %v4201_v25 = vsel %vm11455_vm6, %v4198_v50, %v4174_v63  ;;  %vm11804_vm14 = vmmov %vm11794_vm3 }
 0x8e7   :  { %v4263_v40 = vadd.f32 %v4262_v41, %v4261_v26  ;;  %v4204_v17 = vsel %vm11454_vm10, %v4201_v25, %v4182_v37  ;;  %v4266_v49 = vsel %vm11800_vm4, %v4235_v13, 0.0  ;;  %v4268_v0 = vsel %vm11801_vm9, %v4236_v3, 0.0  ;;  %vm11805_vm12 = vmmov %vm11794_vm3 }
 0x8e8   :  { %v4206_v19 = vperm.slane %v4204_v17, 0  ;;  %v4270_v29 = vsel %vm11802_vm8, %v4237_v44, 0.0  ;;  %v4272_v5 = vsel %vm11803_vm7, %v4238_v34, 0.0  ;;  %v4274_v9 = vsel %vm11794_vm3, %v4239_v38, 0.0  ;;  %vm11806_vm4 = vmmov %vm11794_vm3 }
 0x8e9   :  { %v4265_v11 = vadd.f32 %v4264_v35, %v4263_v40  ;;  %vm11807_vm9 = vmmov %vm11794_vm3 }
 0x8ea   :  { %v9831_v58 = vsub.f32 %v9562_v28, %v4206_v19  ;;  %v9834_v62 = vsub.f32 %v9559_v8, %v4206_v19  ;;  %v9837_v52 = vsub.f32 %v9565_v43, %v4206_v19  ;;  %v9840_v27 = vsub.f32 %v9573_v51, %v4206_v19  ;;  %vm11808_vm8 = vmmov %vm11794_vm3 }
 0x8eb   :  { %v4267_v42 = vadd.f32 %v4266_v49, %v4265_v11  ;;  %v9846_v48 = vsub.f32 %v9581_v16, %v4206_v19  ;;  %v9856_v21 = vsub.f32 %v9586_v1, %v4206_v19  ;;  %v9864_v54 = vsub.f32 %v9591_v47, %v4206_v19  ;;  %vm11809_vm7 = vmmov %vm11794_vm3 }
 0x8ec   :  { %v4224_v28 = vmul.f32 %v9831_v58, %v9831_v58  ;;  %v4225_v8 = vmul.f32 %v9834_v62, %v9834_v62  ;;  %v4226_v43 = vmul.f32 %v9837_v52, %v9837_v52  ;;  %v4227_v33 = vmul.f32 %v9840_v27, %v9840_v27 }
 0x8ed   :  { %v4269_v45 = vadd.f32 %v4268_v0, %v4267_v42  ;;  %v4228_v22 = vmul.f32 %v9846_v48, %v9846_v48  ;;  %v9870_v57 = vsub.f32 %v9601_v31, %v4206_v19  ;;  %v4229_v4 = vmul.f32 %v9856_v21, %v9856_v21 }
 0x8ee   :  { %v4240_v16 = vsel %vm11804_vm14, %v4224_v28, 0.0  ;;  %v4241_v2 = vsel %vm11805_vm12, %v4225_v8, 0.0  ;;  %v4243_v1 = vsel %vm11806_vm4, %v4226_v43, 0.0  ;;  %v4245_v23 = vsel %vm11807_vm9, %v4227_v33, 0.0  ;;  %vm11810_vm14 = vmmov %vm11794_vm3  ;;  %v4952_v28 = vld [vmem:[#allocation2 + $0xa0] sm:$0xff]  ;;  %v5106_v8 = vpop.permute.xlu2 %5105  ;;  %v5009_v33 = vpop.permute.xlu0 %5008 }
 0x8ef   :  { %v4271_v51 = vadd.f32 %v4270_v29, %v4269_v45  ;;  %v4242_v56 = vadd.f32 %v4241_v2, %v4240_v16  ;;  %v4230_v47 = vmul.f32 %v9864_v54, %v9864_v54  ;;  %v4247_v10 = vsel %vm11808_vm8, %v4228_v22, 0.0  ;;  %vm11811_vm12 = vmmov %vm11794_vm3  ;;  %4968 = vst.msk [vmem:[#allocation3 + $0x80] sm:$0xff] %vm11794_vm3, %v4952_v28  ;;  %v4944_v43 = vld [vmem:[#allocation2] sm:$0xff] }
 0x8f0   :  { %v4231_v13 = vmul.f32 %v9870_v57, %v9870_v57  ;;  %v4249_v31 = vsel %vm11809_vm7, %v4229_v4, 0.0  ;;  %vm11812_vm4 = vmmov %vm11794_vm3  ;;  %vm5056_vm9 = vcmask 261248   ;;  %vm11463_vm8 = vcmask 392448  }
 0x8f1   :  { %v4273_v6 = vadd.f32 %v4272_v5, %v4271_v51  ;;  %v4244_v60 = vadd.f32 %v4243_v1, %v4242_v56  ;;  %v4251_v3 = vsel %vm11810_vm14, %v4230_v47, 0.0  ;;  %4960 = vst.msk [vmem:[#allocation3] sm:$0xff] %vm11812_vm4, %v4944_v43  ;;  %v9905_v5 = vpop.permute.xlu1 %5507 }
 0x8f2   :  { %v4253_v37 = vsel %vm11811_vm12, %v4231_v13, 0.0  ;;  %5057 = vst.msk [vmem:[#allocation3] sm:$0xff] %vm5056_vm9, %v5009_v33 }
 0x8f3   :  { %v4275_v53 = vadd.f32 %v4274_v9, %v4273_v6  ;;  %v4246_v61 = vadd.f32 %v4245_v23, %v4244_v60  ;;  %5154 = vst.msk [vmem:[#allocation3] sm:$0xff] %vm11463_vm8, %v5106_v8 }
 0x8f5   :  { %v4276_v36 = vrot.slane %v4275_v53, 4  ;;  %v4248_v39 = vadd.f32 %v4247_v10, %v4246_v61 }
 0x8f6   :  { %v5025_v51 = vpop.permute.xlu2 %5024  ;;  %v9910_v2 = vpop.permute.xlu0 %5604 }
 0x8f7   :  { %v4277_v63 = vadd.f32 %v4276_v36, %v4275_v53  ;;  %v4250_v26 = vadd.f32 %v4249_v31, %v4248_v39  ;;  %5065 = vst.msk [vmem:[#allocation3 + $0x80] sm:$0xff] %vm5056_vm9, %v5025_v51 }
 0x8f9   :  { %v4278_v41 = vrot.slane %v4277_v63, 2  ;;  %v4252_v40 = vadd.f32 %v4251_v3, %v4250_v26  ;;  %v5122_v16 = vpop.permute.xlu1 %5121 }
 0x8fa   :  { %5162 = vst.msk [vmem:[#allocation3 + $0x80] sm:$0xff] %vm11463_vm8, %v5122_v16 }
 0x8fb   :  { %v4279_v50 = vadd.f32 %v4278_v41, %v4277_v63  ;;  %v4254_v25 = vadd.f32 %v4253_v37, %v4252_v40 }
 0x8fd   :  { %v4280_v35 = vrot.slane %v4279_v50, 1  ;;  %v4255_v11 = vrot.slane %v4254_v25, 4 }
 0x8ff   :  { %v4281_v44 = vadd.f32 %v4280_v35, %v4279_v50  ;;  %v4256_v49 = vadd.f32 %v4255_v11, %v4254_v25 }
 0x901   :  { %v4283_v17 = vmul.f32 %v4281_v44, %v7985_v24  ;;  %v4257_v19 = vrot.slane %v4256_v49, 2 }
 0x903   :  { %4304 = vrot.lane.b32.xlu2 %v4283_v17, %s7048_s19  ;;  %4296 = vrot.lane.b32.xlu0 %v4283_v17, %s7044_s17  ;;  %v4258_v34 = vadd.f32 %v4257_v19, %v4256_v49  ;;  %v4314_v45 = vrot.slane %v4283_v17, 7 }
 0x904   :  { %4312 = vrot.lane.b32.xlu1 %v4283_v17, %s7046_s30 }
 0x905   :  { %v4259_v42 = vrot.slane %v4258_v34, 1 }
 0x907   :  { %v4260_v0 = vadd.f32 %v4259_v42, %v4258_v34 }
 0x909   :  { %v4282_v38 = vmul.f32 %v4260_v0, %v7985_v24 }
 0x90b   :  { %4288 = vrot.lane.b32.xlu2 %v4283_v17, %s7043_s11  ;;  %4310 = vrot.lane.b32.xlu0 %v4282_v38, %s7046_s30  ;;  %v9892_v29 = vsel %vm11462_vm11, %v4314_v45, %v4282_v38 }
 0x90c   :  { %4308 = vrot.lane.b32.xlu1 %v4283_v17, %s7047_s18 }
 0x913   :  { %4300 = vrot.lane.b32.xlu2 %v4283_v17, %s7032_s9  ;;  %4294 = vrot.lane.b32.xlu0 %v4282_v38, %s7044_s17 }
 0x914   :  { %4292 = vrot.lane.b32.xlu1 %v4283_v17, %s7045_s29 }
 0x91b   :  { %4286 = vrot.lane.b32.xlu2 %v4282_v38, %s7043_s11  ;;  %4306 = vrot.lane.b32.xlu0 %v4282_v38, %s7047_s18 }
 0x91c   :  { %4302 = vrot.lane.b32.xlu1 %v4282_v38, %s7048_s19 }
 0x923   :  { %4298 = vrot.lane.b32.xlu0 %v4282_v38, %s7032_s9 }
 0x924   :  { %4290 = vrot.lane.b32.xlu1 %v4282_v38, %s7045_s29 }
 0x95d   :  { %v4305_v6 = vpop.permute.xlu2 %4304 }
 0x95e   :  { %v4324_v10 = vrot.slane %v4305_v6, 7 }
 0x965   :  { %v4289_v22 = vpop.permute.xlu2 %4288 }
 0x966   :  { %v4316_v3 = vrot.slane %v4289_v22, 7 }
 0x96d   :  { %v4301_v53 = vpop.permute.xlu2 %4300 }
 0x96e   :  { %v4322_v17 = vrot.slane %v4301_v53, 7 }
 0x975   :  { %v4297_v56 = vpop.permute.xlu0 %4296  ;;  %v4287_v31 = vpop.permute.xlu2 %4286 }
 0x976   :  { %v4313_v9 = vpop.permute.xlu1 %4312  ;;  %v4320_v61 = vrot.slane %v4297_v56, 7  ;;  %v4317_v37 = vsel %vm11462_vm11, %v4316_v3, %v4287_v31 }
 0x977   :  { %v4328_v36 = vrot.slane %v4313_v9, 7 }
 0x97d   :  { %v4311_v60 = vpop.permute.xlu0 %4310 }
 0x97e   :  { %v4309_v1 = vpop.permute.xlu1 %4308  ;;  %v4329_v39 = vsel %vm11462_vm11, %v4328_v36, %v4311_v60 }
 0x97f   :  { %v4356_v40 = vrot.slane %v4329_v39, 4  ;;  %v4326_v50 = vrot.slane %v4309_v1, 7 }
 0x985   :  { %v4295_v23 = vpop.permute.xlu0 %4294 }
 0x986   :  { %v4293_v4 = vpop.permute.xlu1 %4292  ;;  %v4321_v47 = vsel %vm11462_vm11, %v4320_v61, %v4295_v23 }
 0x987   :  { %v4344_v26 = vrot.slane %v4321_v47, 4  ;;  %v4318_v11 = vrot.slane %v4293_v4, 7 }
 0x989   :  { %v4345_v25 = vsel %vm11461_vm1, %v4344_v26, %v4317_v37 }
 0x98a   :  { %v4349_v34 = vperm.slane %v4345_v25, %v9693_v7 }
 0x98c   :  { %v4362_v16 = vrot.slane %v4349_v34, 4 }
 0x98d   :  { %v4307_v13 = vpop.permute.xlu0 %4306 }
 0x98e   :  { %v4303_v63 = vpop.permute.xlu1 %4302  ;;  %v4327_v44 = vsel %vm11462_vm11, %v4326_v50, %v4307_v13 }
 0x98f   :  { %v4325_v41 = vsel %vm11462_vm11, %v4324_v10, %v4303_v63  ;;  %v4350_v42 = vrot.slane %v4327_v44, 4 }
 0x990   :  { %v4357_v35 = vsel %vm11461_vm1, %v4356_v40, %v4325_v41 }
 0x991   :  { %v4361_v49 = vperm.slane %v4357_v35, %v9693_v7 }
 0x993   :  { %v4368_v43 = vrot.slane %v4361_v49, 4 }
 0x995   :  { %v4299_v38 = vpop.permute.xlu0 %4298 }
 0x996   :  { %v4291_v19 = vpop.permute.xlu1 %4290  ;;  %v4323_v28 = vsel %vm11462_vm11, %v4322_v17, %v4299_v38 }
 0x997   :  { %v4319_v0 = vsel %vm11462_vm11, %v4318_v11, %v4291_v19  ;;  %v4351_v8 = vsel %vm11461_vm1, %v4350_v42, %v4323_v28 }
 0x998   :  { %v4338_v45 = vrot.slane %v4319_v0, 4  ;;  %v4355_v33 = vperm.slane %v4351_v8, %v9693_v7 }
 0x99a   :  { %v4339_v51 = vsel %vm11461_vm1, %v4338_v45, %v9892_v29  ;;  %v4369_v56 = vsel %vm11461_vm1, %v4368_v43, %v4355_v33 }
 0x99b   :  { %v4343_v6 = vperm.slane %v4339_v51, %v9693_v7  ;;  %v4373_v22 = vperm.slane %v4369_v56, %v9705_v46 }
 0x99d   :  { %v4363_v9 = vsel %vm11461_vm1, %v4362_v16, %v4343_v6  ;;  %v4374_v60 = vrot.slane %v4373_v22, 4 }
 0x99e   :  { %v4367_v1 = vperm.slane %v4363_v9, %v9705_v46 }
 0x9a0   :  { %v4376_v53 = vrot.slane %v4367_v1, 4  ;;  %v4375_v4 = vsel %vm11461_vm1, %v4374_v60, %v4367_v1 }
 0x9a1   :  { %v4378_v23 = vsel %vm11460_vm13, %v4375_v4, 0.0 }
 0x9a2   :  { %v4377_v29 = vsel %vm11461_vm1, %v4373_v22, %v4376_v53  ;;  %4379 = vadd.xlane.f32.xlu2 %v4378_v23 }
 0x9a3   :  { %v4381_v61 = vsel %vm11460_vm13, %v4377_v29, 0.0 }
 0x9a4   :  { %4382 = vadd.xlane.f32.xlu0 %v4381_v61 }
 0xa15   :  { %v4380_v36 = vpop.xlane.xlu2 %4379 }
 0xa16   :  { %v4384_v47 = vmul.f32 %v4380_v36, %v9719_v55 }
 0xa17   :  { %v4383_v10 = vpop.xlane.xlu0 %4382 }
 0xa18   :  { %v4385_v39 = vmul.f32 %v4383_v10, %v9719_v55  ;;  %v4391_v63 = vperm.slane %v4384_v47, %v9693_v7  ;;  %v4386_v26 = vrot.slane %v4384_v47, 4 }
 0xa1a   :  { %v4424_v13 = vrot.slane %v4385_v39, 4  ;;  %v4429_v31 = vperm.slane %v4385_v39, %v9693_v7  ;;  %v4396_v41 = vrot.slane %v4391_v63, 4  ;;  %v4401_v3 = vperm.slane %v4391_v63, %v9705_v46 }
 0xa1b   :  { %v4387_v17 = vsel %vm11461_vm1, 0.0, %v4386_v26 }
 0xa1c   :  { %v4425_v40 = vsel %vm11461_vm1, 0.0, %v4424_v13  ;;  %v4434_v50 = vrot.slane %v4429_v31, 4  ;;  %v4397_v37 = vsel %vm11461_vm1, 0.0, %v4396_v41  ;;  %v4416_v25 = vrot.slane %v4401_v3, 4 }
 0xa1d   :  { %v4433_v35 = vperm.slane %v4425_v40, %v9693_v7  ;;  %v4405_v11 = vperm.slane %v4397_v37, %v9705_v46  ;;  %v4439_v49 = vperm.slane %v4429_v31, %v9705_v46  ;;  %v4395_v0 = vperm.slane %v4387_v17, %v9693_v7 }
 0xa1e   :  { %v4435_v44 = vsel %vm11461_vm1, 0.0, %v4434_v50  ;;  %v4417_v19 = vsel %vm11461_vm1, 0.0, %v4416_v25 }
 0xa1f   :  { %v4443_v34 = vperm.slane %v4435_v44, %v9705_v46  ;;  %v4444_v42 = vrot.slane %v4433_v35, 4  ;;  %4464 = vrot.lane.b32.xlu1 %v4417_v19, %s7052_s2  ;;  %4472 = vrot.lane.b32.xlu0 %v4405_v11, %s7054_s21  ;;  %v4454_v38 = vrot.slane %v4439_v49, 4  ;;  %v4411_v28 = vperm.slane %v4395_v0, %v9705_v46 }
 0xa20   :  { %v4406_v8 = vrot.slane %v4395_v0, 4  ;;  %v4449_v16 = vperm.slane %v4433_v35, %v9705_v46  ;;  %v4418_v56 = vrot.slane %v4405_v11, 4 }
 0xa21   :  { %4474 = vrot.lane.b32.xlu2 %v4443_v34, %s7054_s21  ;;  %v4445_v45 = vsel %vm11461_vm1, 0.0, %v4444_v42  ;;  %v4455_v43 = vsel %vm11461_vm1, 0.0, %v4454_v38  ;;  %v4420_v22 = vrot.slane %v4411_v28, 4  ;;  %v4456_v60 = vrot.slane %v4443_v34, 4 }
 0xa22   :  { %v4453_v51 = vperm.slane %v4445_v45, %v9705_v46  ;;  %v4407_v33 = vsel %vm11461_vm1, 0.0, %v4406_v8  ;;  %v4419_v9 = vsel %vm11461_vm1, 0.0, %v4418_v56  ;;  %v4458_v4 = vrot.slane %v4449_v16, 4 }
 0xa23   :  { %v4415_v6 = vperm.slane %v4407_v33, %v9705_v46  ;;  %v4421_v1 = vsel %vm11461_vm1, 0.0, %v4420_v22  ;;  %v4457_v53 = vsel %vm11461_vm1, 0.0, %v4456_v60 }
 0xa24   :  { %v4459_v23 = vsel %vm11461_vm1, 0.0, %v4458_v4  ;;  %v4460_v36 = vrot.slane %v4453_v51, 4 }
 0xa25   :  { %v4422_v29 = vrot.slane %v4415_v6, 4 }
 0xa26   :  { %v4461_v47 = vsel %vm11461_vm1, 0.0, %v4460_v36  ;;  %v10003_v36 = vld [vmem:[%s11441_s7 + $0x7] ss:$0 sm:$0xff] }
 0xa27   :  { %4466 = vrot.lane.b32.xlu1 %v4455_v43, %s7052_s2  ;;  %4488 = vrot.lane.b32.xlu0 %v4411_v28, %s7034_s15  ;;  %v4423_v61 = vsel %vm11461_vm1, 0.0, %v4422_v29 }
 0xa29   :  { %4506 = vrot.lane.b32.xlu2 %v4453_v51, %s11464_s23 }
 0xa2f   :  { %4490 = vrot.lane.b32.xlu1 %v4449_v16, %s7034_s15  ;;  %4504 = vrot.lane.b32.xlu0 %v4415_v6, %s11464_s23  ;;  %s6706_s23 = sshll.u32 %s11442_s8, 4  ;;  %s6707_s23 = int_to_ptr.hbm [resolvable:$true] %s6706_s23 }
 0xa37   :  { %4480 = vrot.lane.b32.xlu1 %v4419_v9, %s7053_s20 }
 0xa3f   :  { %4496 = vrot.lane.b32.xlu1 %v4421_v1, %s11466_s22 }
 0xa47   :  { %4482 = vrot.lane.b32.xlu1 %v4457_v53, %s7053_s20 }
 0xa4f   :  { %4498 = vrot.lane.b32.xlu1 %v4459_v23, %s11466_s22 }
 0xa57   :  { %4512 = vrot.lane.b32.xlu1 %v4423_v61, %s11468_s3 }
 0xa5f   :  { %4514 = vrot.lane.b32.xlu1 %v4461_v47, %s11468_s3 }
 0xa7b   :  { %v4475_v11 = vpop.permute.xlu2 %4474 }
 0xa83   :  { %v4507_v51 = vpop.permute.xlu2 %4506 }
 0xa91   :  { %v4465_v10 = vpop.permute.xlu1 %4464  ;;  %v4473_v26 = vpop.permute.xlu0 %4472 }
 0xa92   :  { %v4518_v40 = vsel %vm11460_vm13, %v4401_v3, %v4465_v10 }
 0xa93   :  { %v4520_v37 = vsel %vm11459_vm15, %v4518_v40, %v4473_v26 }
 0xa99   :  { %v4467_v39 = vpop.permute.xlu1 %4466  ;;  %v4489_v50 = vpop.permute.xlu0 %4488 }
 0xa9a   :  { %v4519_v17 = vsel %vm11460_vm13, %v4439_v49, %v4467_v39  ;;  %v10008_v39 = vld [vmem:[%s11441_s7 + $0x8] ss:$0 sm:$0xff] }
 0xa9b   :  { %v4521_v42 = vsel %vm11459_vm15, %v4519_v17, %v4475_v11 }
 0xaa1   :  { %v4491_v63 = vpop.permute.xlu1 %4490  ;;  %v4505_v34 = vpop.permute.xlu0 %4504 }
 0xaa9   :  { %v4481_v13 = vpop.permute.xlu1 %4480 }
 0xaaa   :  { %v4522_v25 = vsel %vm11458_vm5, %v4520_v37, %v4481_v13 }
 0xaab   :  { %v4524_v44 = vsel %vm11457_vm2, %v4522_v25, %v4489_v50 }
 0xab1   :  { %v4497_v31 = vpop.permute.xlu1 %4496 }
 0xab2   :  { %v4526_v19 = vsel %vm11456_vm0, %v4524_v44, %v4497_v31 }
 0xab3   :  { %v4528_v0 = vsel %vm11455_vm6, %v4526_v19, %v4505_v34 }
 0xab9   :  { %v4483_v41 = vpop.permute.xlu1 %4482 }
 0xaba   :  { %v4523_v3 = vsel %vm11458_vm5, %v4521_v42, %v4483_v41 }
 0xabb   :  { %v4525_v8 = vsel %vm11457_vm2, %v4523_v3, %v4491_v63 }
 0xac1   :  { %v4499_v35 = vpop.permute.xlu1 %4498 }
 0xac2   :  { %v4527_v43 = vsel %vm11456_vm0, %v4525_v8, %v4499_v35 }
 0xac3   :  { %v4529_v33 = vsel %vm11455_vm6, %v4527_v43, %v4507_v51 }
 0xac9   :  { %v4513_v38 = vpop.permute.xlu1 %4512 }
 0xaca   :  { %v4530_v45 = vsel %vm11454_vm10, %v4528_v0, %v4513_v38 }
 0xacb   :  { %v4532_v28 = vadd.f32 1e-05, %v4530_v45 }
 0xacd   :  { %6930 = vrsqrt.f32 %v4532_v28  ;;  %vm4540_vm14 = vweird.f32 %v4532_v28 }
 0xad1   :  { %v4515_v49 = vpop.permute.xlu1 %4514 }
 0xad2   :  { %v4531_v16 = vsel %vm11454_vm10, %v4529_v33, %v4515_v49 }
 0xad3   :  { %v6931_v6 = vpop.eup %6930  ;;  %v9992_v56 = vadd.f32 1e-05, %v4531_v16 }
 0xad4   :  { %v4535_v9 = vmul.f32 %v6931_v6, %v4532_v28  ;;  %vm4541_vm7 = vweird.f32 %v6931_v6 }
 0xad5   :  { %6932 = vrsqrt.f32 %v9992_v56  ;;  %vm4542_vm12 = vmor %vm4540_vm14, %vm4541_vm7  ;;  %vm4550_vm4 = vweird.f32 %v9992_v56 }
 0xad6   :  { %v4536_v22 = vmul.f32 %v6931_v6, %v4535_v9 }
 0xad8   :  { %v4537_v1 = vmul.f32 0.5, %v4536_v22 }
 0xada   :  { %v4538_v60 = vsub.f32 1.5, %v4537_v1 }
 0xadb   :  { %v9995_v53 = vpop.eup %6932 }
 0xadc   :  { %v4539_v4 = vmul.f32 %v6931_v6, %v4538_v60  ;;  %v4545_v23 = vmul.f32 %v9995_v53, %v9992_v56  ;;  %vm4551_vm3 = vweird.f32 %v9995_v53 }
 0xadd   :  { %vm4552_vm7 = vmor %vm4550_vm4, %vm4551_vm3 }
 0xade   :  { %v4543_v29 = vsel %vm4542_vm12, %v6931_v6, %v4539_v4  ;;  %v4546_v61 = vmul.f32 %v9995_v53, %v4545_v23 }
 0xadf   :  { %v4554_v47 = vperm.slane %v4543_v29, 0 }
 0xae0   :  { %v4547_v10 = vmul.f32 0.5, %v4546_v61 }
 0xae1   :  { %v4556_v63 = vmul.f32 %v4554_v47, %v9831_v58  ;;  %v4557_v13 = vmul.f32 %v4554_v47, %v9834_v62  ;;  %v4558_v31 = vmul.f32 %v4554_v47, %v9837_v52  ;;  %v4559_v26 = vmul.f32 %v4554_v47, %v9840_v27 }
 0xae2   :  { %v4560_v41 = vmul.f32 %v4554_v47, %v9846_v48  ;;  %v4561_v40 = vmul.f32 %v4554_v47, %v9856_v21  ;;  %v4562_v50 = vmul.f32 %v4554_v47, %v9864_v54  ;;  %v4563_v37 = vmul.f32 %v4554_v47, %v9870_v57 }
 0xae3   :  { %v4574_v35 = vmul.f32 %v10003_v36, %v4556_v63  ;;  %v4575_v25 = vmul.f32 %v10003_v36, %v4557_v13  ;;  %v4576_v58 = vmul.f32 %v10003_v36, %v4558_v31  ;;  %v4577_v62 = vmul.f32 %v10003_v36, %v4559_v26 }
 0xae4   :  { %v4578_v52 = vmul.f32 %v10003_v36, %v4560_v41  ;;  %v4579_v27 = vmul.f32 %v10003_v36, %v4561_v40  ;;  %v4580_v48 = vmul.f32 %v10003_v36, %v4562_v50  ;;  %v4581_v21 = vmul.f32 %v10003_v36, %v4563_v37 }
 0xae5   :  { %v10027_v54 = vadd.f32 %v10008_v39, %v4574_v35  ;;  %v10030_v57 = vadd.f32 %v10008_v39, %v4575_v25  ;;  %v10033_v44 = vadd.f32 %v10008_v39, %v4576_v58  ;;  %v10036_v11 = vadd.f32 %v10008_v39, %v4577_v62 }
 0xae6   :  { %v10039_v17 = vadd.f32 %v10008_v39, %v4578_v52  ;;  %v10042_v19 = vadd.f32 %v10008_v39, %v4579_v27  ;;  %v10045_v34 = vadd.f32 %v10008_v39, %v4580_v48  ;;  %v10048_v42 = vadd.f32 %v10008_v39, %v4581_v21 }
 0xae7   :  { %v4608_v0 = vsub.f32 0.0, %v10027_v54  ;;  %v4609_v38 = vsub.f32 0.0, %v10030_v57  ;;  %v4610_v3 = vsub.f32 0.0, %v10033_v44  ;;  %v4611_v45 = vsub.f32 0.0, %v10036_v11 }
 0xae8   :  { %v4612_v28 = vsub.f32 0.0, %v10039_v17  ;;  %v4613_v8 = vsub.f32 0.0, %v10042_v19  ;;  %v4614_v33 = vsub.f32 0.0, %v10045_v34  ;;  %v4615_v6 = vsub.f32 0.0, %v10048_v42 }
 0xae9   :  { %v4624_v43 = vmul.f32 1.442695, %v4608_v0  ;;  %v4626_v51 = vmul.f32 1.442695, %v4609_v38  ;;  %v4628_v49 = vmul.f32 1.442695, %v4610_v3 }
 0xaea   :  { %v4630_v16 = vmul.f32 1.442695, %v4611_v45  ;;  %v4632_v9 = vmul.f32 1.442695, %v4612_v28  ;;  %v4548_v22 = vsub.f32 1.5, %v4547_v10 }
 0xaeb   :  { %6934 = vpow2.f32 %v4624_v43  ;;  %v4634_v1 = vmul.f32 1.442695, %v4613_v8  ;;  %v4636_v4 = vmul.f32 1.442695, %v4614_v33  ;;  %v4638_v23 = vmul.f32 1.442695, %v4615_v6 }
 0xaec   :  { %6936 = vpow2.f32 %v4626_v51  ;;  %v4549_v60 = vmul.f32 %v9995_v53, %v4548_v22 }
 0xaed   :  { %6938 = vpow2.f32 %v4628_v49 }
 0xaee   :  { %6940 = vpow2.f32 %v4630_v16  ;;  %v4553_v29 = vsel %vm4552_vm7, %v9995_v53, %v4549_v60 }
 0xaef   :  { %6942 = vpow2.f32 %v4632_v9  ;;  %v10066_v31 = vperm.slane %v4553_v29, 0 }
 0xaf0   :  { %6944 = vpow2.f32 %v4634_v1 }
 0xaf1   :  { %v6935_v61 = vpop.eup %6934  ;;  %6946 = vpow2.f32 %v4636_v4  ;;  %v10081_v25 = vmul.f32 %v10066_v31, %v9780_v59  ;;  %v10085_v62 = vmul.f32 %v10066_v31, %v9783_v15  ;;  %v10089_v52 = vmul.f32 %v10066_v31, %v9786_v12 }
 0xaf2   :  { %v6937_v47 = vpop.eup %6936  ;;  %v10062_v10 = vadd.f32 1.0, %v6935_v61  ;;  %6948 = vpow2.f32 %v4638_v23  ;;  %v10093_v27 = vmul.f32 %v10066_v31, %v9789_v32  ;;  %v10097_v48 = vmul.f32 %v10066_v31, %v9793_v30 }
 0xaf3   :  { %v6939_v63 = vpop.eup %6938  ;;  %v10064_v13 = vadd.f32 1.0, %v6937_v47 }
 0xaf4   :  { %v6941_v26 = vpop.eup %6940  ;;  %v10068_v41 = vadd.f32 1.0, %v6939_v63  ;;  %6950 = vrcp.f32 %v10062_v10  ;;  %v4683_v37 = vand.u32 2147483648, %v10062_v10  ;;  %vm4677_vm14 = vweird.f32 %v10062_v10 }
 0xaf5   :  { %v6943_v56 = vpop.eup %6942  ;;  %v10071_v40 = vadd.f32 1.0, %v6941_v26  ;;  %6952 = vrcp.f32 %v10064_v13  ;;  %v4698_v35 = vand.u32 2147483648, %v10064_v13  ;;  %v4681_v15 = vand.u32 2147483647, %v10062_v10 }
 0xaf6   :  { %v6945_v53 = vpop.eup %6944  ;;  %v10074_v50 = vadd.f32 1.0, %v6943_v56  ;;  %6954 = vrcp.f32 %v10068_v41  ;;  %v10106_v12 = vor.u32 1.1754944e-38, %v4683_v37  ;;  %vm4692_vm12 = vweird.f32 %v10064_v13 }
 0xaf7   :  { %v6947_v58 = vpop.eup %6946  ;;  %v10099_v59 = vadd.f32 1.0, %v6945_v53  ;;  %6956 = vrcp.f32 %v10071_v40  ;;  %v4696_v32 = vand.u32 2147483647, %v10064_v13  ;;  %v4713_v30 = vand.u32 2147483648, %v10068_v41 }
 0xaf8   :  { %v6949_v21 = vpop.eup %6948  ;;  %6958 = vrcp.f32 %v10074_v50  ;;  %v10114_v3 = vadd.f32 1.0, %v6947_v58  ;;  %v4699_v28 = vor.u32 1.1754944e-38, %v4698_v35  ;;  %v4728_v8 = vand.u32 2147483648, %v10071_v40 }
 0xaf9   :  { %v10119_v43 = vadd.f32 1.0, %v6949_v21  ;;  %vm4707_vm3 = vweird.f32 %v10068_v41  ;;  %v4711_v49 = vand.u32 2147483647, %v10068_v41  ;;  %v4726_v33 = vand.u32 2147483647, %v10071_v40 }
 0xafa   :  { %v10104_v0 = vpop.eup %6950  ;;  %vm10129_vm7 = vcmp.eq.f32.partialorder %v4681_v15, 8.507059e+37  ;;  %v4741_v22 = vand.u32 2147483647, %v10074_v50  ;;  %6960 = vrcp.f32 %v10099_v59  ;;  %vm10135_vm10 = vcmp.eq.f32.partialorder %v4696_v32, 8.507059e+37 }
 0xafb   :  { %v10112_v38 = vpop.eup %6952  ;;  %v4673_v45 = vmul.f32 %v10104_v0, %v10062_v10  ;;  %vm4678_vm4 = vweird.f32 %v10104_v0  ;;  %v4714_v23 = vor.u32 1.1754944e-38, %v4713_v30  ;;  %vm4722_vm6 = vweird.f32 %v10071_v40 }
 0xafc   :  { %v4688_v51 = vmul.f32 %v10112_v38, %v10064_v13  ;;  %v10126_v16 = vpop.eup %6954  ;;  %v4743_v29 = vand.u32 2147483648, %v10074_v50  ;;  %vm4693_vm0 = vweird.f32 %v10112_v38  ;;  %v4729_v63 = vor.u32 1.1754944e-38, %v4728_v8  ;;  %vm10168_vm11 = vmor %vm4677_vm14, %vm4678_vm4 }
 0xafd   :  { %v4674_v6 = vsub.f32 1.0, %v4673_v45  ;;  %v4703_v4 = vmul.f32 %v10126_v16, %v10068_v41  ;;  %v6957_v61 = vpop.eup %6956  ;;  %vm4737_vm2 = vweird.f32 %v10074_v50  ;;  %vm4708_vm5 = vweird.f32 %v10126_v16  ;;  %vm10181_vm8 = vmor %vm4692_vm12, %vm4693_vm0 }
 0xafe   :  { %v4689_v1 = vsub.f32 1.0, %v4688_v51  ;;  %v6959_v26 = vpop.eup %6958  ;;  %vm10148_vm15 = vcmp.eq.f32.partialorder %v4711_v49, 8.507059e+37  ;;  %v4718_v35 = vmul.f32 %v6957_v61, %v10071_v40  ;;  %vm10153_vm13 = vcmp.eq.f32.partialorder %v4726_v33, 8.507059e+37 }
 0xaff   :  { %v4675_v47 = vmul.f32 %v10104_v0, %v4674_v6  ;;  %v4704_v53 = vsub.f32 1.0, %v4703_v4  ;;  %v4733_v15 = vmul.f32 %v6959_v26, %v10074_v50  ;;  %vm10159_vm1 = vcmp.eq.f32.partialorder %v4741_v22, 8.507059e+37 }
 0xb00   :  { %v4690_v56 = vmul.f32 %v10112_v38, %v4689_v1  ;;  %v4756_v30 = vand.u32 2147483647, %v10099_v59  ;;  %v4719_v49 = vsub.f32 1.0, %v4718_v35  ;;  %v4744_v33 = vor.u32 1.1754944e-38, %v4743_v29  ;;  %v6961_v6 = vpop.eup %6960 }
 0xb01   :  { %v4676_v21 = vadd.f32 %v10104_v0, %v4675_v47  ;;  %v4705_v51 = vmul.f32 %v10126_v16, %v4704_v53  ;;  %vm4723_vm14 = vweird.f32 %v6957_v61  ;;  %v4734_v1 = vsub.f32 1.0, %v4733_v15 }
 0xb02   :  { %v4691_v8 = vadd.f32 %v10112_v38, %v4690_v56  ;;  %vm4752_vm4 = vweird.f32 %v10099_v59  ;;  %6962 = vrcp.f32 %v10114_v3  ;;  %v4720_v29 = vmul.f32 %v6957_v61, %v4719_v49 }
 0xb03   :  { %v4680_v22 = vsel %vm10168_vm11, %v10104_v0, %v4676_v21  ;;  %v4706_v0 = vadd.f32 %v10126_v16, %v4705_v51  ;;  %v4758_v47 = vand.u32 2147483648, %v10099_v59  ;;  %vm10196_vm11 = vmor %vm4707_vm3, %vm4708_vm5  ;;  %v4735_v56 = vmul.f32 %v6959_v26, %v4734_v1 }
 0xb04   :  { %v4695_v4 = vsel %vm10181_vm8, %v10112_v38, %v4691_v8  ;;  %vm4738_vm0 = vweird.f32 %v6959_v26  ;;  %v4748_v53 = vmul.f32 %v6961_v6, %v10099_v59  ;;  %vm10201_vm12 = vcmp.eq.f32.partialorder %v4756_v30, 8.507059e+37  ;;  %vm4724_vm5 = vmor %vm4722_vm6, %vm4723_vm14 }
 0xb05   :  { %v4685_v38 = vsel %vm10129_vm7, %v10106_v12, %v4680_v22  ;;  %v4710_v41 = vsel %vm10196_vm11, %v10126_v16, %v4706_v0  ;;  %v4721_v21 = vadd.f32 %v6957_v61, %v4720_v29  ;;  %v4771_v15 = vand.u32 2147483647, %v10114_v3  ;;  %vm4739_vm8 = vmor %vm4737_vm2, %vm4738_vm0 }
 0xb06   :  { %v4700_v45 = vsel %vm10135_vm10, %v4699_v28, %v4695_v4  ;;  %v4736_v30 = vadd.f32 %v6959_v26, %v4735_v56  ;;  %v4749_v8 = vsub.f32 1.0, %v4748_v53  ;;  %v4773_v51 = vand.u32 2147483648, %v10114_v3 }
 0xb07   :  { %v4725_v9 = vsel %vm4724_vm5, %v6957_v61, %v4721_v21  ;;  %vm4753_vm3 = vweird.f32 %v6961_v6  ;;  %v4759_v12 = vor.u32 1.1754944e-38, %v4758_v47  ;;  %vm4767_vm7 = vweird.f32 %v10114_v3 }
 0xb08   :  { %6964 = vrcp.f32 %v10119_v43  ;;  %v6963_v16 = vpop.eup %6962  ;;  %v4715_v28 = vsel %vm10148_vm15, %v4714_v23, %v4710_v41  ;;  %v4730_v40 = vsel %vm10153_vm13, %v4729_v63, %v4725_v9  ;;  %v4740_v60 = vsel %vm4739_vm8, %v6959_v26, %v4736_v30  ;;  %vm4754_vm13 = vmor %vm4752_vm4, %vm4753_vm3 }
 0xb09   :  { %v4750_v49 = vmul.f32 %v6961_v6, %v4749_v8  ;;  %v4745_v61 = vsel %vm10159_vm1, %v4744_v33, %v4740_v60  ;;  %v4763_v50 = vmul.f32 %v6963_v16, %v10114_v3  ;;  %vm4768_vm2 = vweird.f32 %v6963_v16 }
 0xb0a   :  { %vm10229_vm6 = vcmp.eq.f32.partialorder %v4771_v15, 8.507059e+37  ;;  %v4774_v10 = vor.u32 1.1754944e-38, %v4773_v51  ;;  %v4788_v37 = vand.u32 2147483648, %v10119_v43  ;;  %v4912_v23 = vmul.f32 %v4685_v38, %v10027_v54  ;;  %vm4769_vm0 = vmor %vm4767_vm7, %vm4768_vm2 }
 0xb0b   :  { %v4751_v1 = vadd.f32 %v6961_v6, %v4750_v49  ;;  %v4913_v63 = vmul.f32 %v4700_v45, %v10030_v57  ;;  %v4764_v26 = vsub.f32 1.0, %v4763_v50  ;;  %v4786_v58 = vand.u32 2147483647, %v10119_v43 }
 0xb0c   :  { %v4914_v32 = vmul.f32 %v4715_v28, %v10033_v44  ;;  %v4915_v33 = vmul.f32 %v4730_v40, %v10036_v11  ;;  %vm4782_vm1 = vweird.f32 %v10119_v43  ;;  %v4789_v0 = vor.u32 1.1754944e-38, %v4788_v37 }
 0xb0d   :  { %v4755_v4 = vsel %vm4754_vm13, %v6961_v6, %v4751_v1  ;;  %v4916_v29 = vmul.f32 %v4745_v61, %v10039_v17  ;;  %vm11833_vm15 = vcmask 130048   ;;  %v4569_v54 = vmul.f32 %v10066_v31, %v9804_v14 }
 0xb0e   :  { %4928 = vst.msk [vmem:[#allocation2 + $0x11] sm:$0xff] %vm11833_vm15, %v4912_v23  ;;  %v6965_v57 = vpop.eup %6964  ;;  %v4760_v59 = vsel %vm10201_vm12, %v4759_v12, %v4755_v4  ;;  %v4765_v47 = vmul.f32 %v6963_v16, %v4764_v26  ;;  %vm11834_vm10 = vmmov %vm11833_vm15  ;;  %v4570_v44 = vmul.f32 %v10066_v31, %v9813_v18  ;;  %v4571_v11 = vmul.f32 %v10066_v31, %v9821_v20 }
 0xb0f   :  { %4929 = vst.msk [vmem:[#allocation2 + $0x21] sm:$0xff] %vm11834_vm10, %v4913_v63  ;;  %v4778_v17 = vmul.f32 %v6965_v57, %v10119_v43  ;;  %vm4783_vm14 = vweird.f32 %v6965_v57  ;;  %v4917_v6 = vmul.f32 %v4760_v59, %v10042_v19  ;;  %vm11835_vm4 = vmmov %vm11834_vm10  ;;  %v4582_v14 = vmul.f32 %v10003_v36, %v10081_v25 }
 0xb10   :  { %4930 = vst.msk [vmem:[#allocation2 + $0x31] sm:$0xff] %vm11835_vm4, %v4914_v32  ;;  %v4766_v13 = vadd.f32 %v6963_v16, %v4765_v47  ;;  %vm11836_vm11 = vmmov %vm11835_vm4  ;;  %v4583_v56 = vmul.f32 %v10003_v36, %v10085_v62  ;;  %v4584_v18 = vmul.f32 %v10003_v36, %v10089_v52  ;;  %v4585_v20 = vmul.f32 %v10003_v36, %v10093_v27 }
 0xb11   :  { %4931 = vst.msk [vmem:[#allocation2 + $0x41] sm:$0xff] %vm11836_vm11, %v4915_v33  ;;  %v4779_v19 = vsub.f32 1.0, %v4778_v17  ;;  %vm11837_vm12 = vmmov %vm11835_vm4  ;;  %v4586_v31 = vmul.f32 %v10003_v36, %v10097_v48  ;;  %v4587_v25 = vmul.f32 %v10003_v36, %v4569_v54  ;;  %v4588_v62 = vmul.f32 %v10003_v36, %v4570_v44 }
 0xb12   :  { %4932 = vst.msk [vmem:[#allocation2 + $0x51] sm:$0xff] %vm11837_vm12, %v4916_v29  ;;  %v4770_v53 = vsel %vm4769_vm0, %v6963_v16, %v4766_v13  ;;  %vm11838_vm5 = vmmov %vm11835_vm4  ;;  %v4589_v52 = vmul.f32 %v10003_v36, %v4571_v11  ;;  %v10277_v27 = vadd.f32 %v10008_v39, %v4582_v14  ;;  %v10280_v3 = vadd.f32 %v10008_v39, %v4583_v56 }
 0xb13   :  { %4933 = vst.msk [vmem:[#allocation2 + $0x61] sm:$0xff] %vm11838_vm5, %v4917_v6  ;;  %v4775_v35 = vsel %vm10229_vm6, %v4774_v10, %v4770_v53  ;;  %v4780_v38 = vmul.f32 %v6965_v57, %v4779_v19  ;;  %v10285_v48 = vadd.f32 %v10008_v39, %v4584_v18  ;;  %v10288_v41 = vadd.f32 %v10008_v39, %v4585_v20  ;;  %vm4784_vm8 = vmor %vm4782_vm1, %vm4783_vm14 }
 0xb14   :  { %v4918_v21 = vmul.f32 %v4775_v35, %v10045_v34  ;;  %v10292_v36 = vadd.f32 %v10008_v39, %v4586_v31  ;;  %v10295_v15 = vadd.f32 %v10008_v39, %v4587_v25  ;;  %v10298_v45 = vadd.f32 %v10008_v39, %v4588_v62  ;;  %vm11839_vm3 = vmmov %vm11835_vm4 }
 0xb15   :  { %v4781_v30 = vadd.f32 %v6965_v57, %v4780_v38  ;;  %v10301_v8 = vadd.f32 %v10008_v39, %v4589_v52  ;;  %v4616_v51 = vsub.f32 0.0, %v10277_v27  ;;  %v4617_v9 = vsub.f32 0.0, %v10280_v3  ;;  %vm11840_vm2 = vmmov %vm11839_vm3  ;;  %v5267_v62 = vld [vmem:[#allocation2 + $0x11] sm:$0xff]  ;;  %v5736_v52 = vld [vmem:[%s11439_s5 + $0x88] sm:$0xff] }
 0xb16   :  { %4934 = vst.msk [vmem:[#allocation2 + $0x71] sm:$0xff] %vm11839_vm3, %v4918_v21  ;;  %v4618_v34 = vsub.f32 0.0, %v10285_v48  ;;  %v4619_v12 = vsub.f32 0.0, %v10288_v41  ;;  %v4620_v16 = vsub.f32 0.0, %v10292_v36  ;;  %v4621_v28 = vsub.f32 0.0, %v10295_v15  ;;  %v5170_v53 = vld [vmem:[#allocation2 + $0x10] sm:$0xff]  ;;  %5299 = vrot.lane.b32.xlu2 %v5267_v62, %s7040_s14  ;;  %vm11841_vm15 = vmmov %vm11840_vm2  ;;  %5010 = vrot.lane.b32.xlu0 %v5267_v62, %s7035_s16 }
 0xb17   :  { %v4785_v39 = vsel %vm4784_vm8, %v6965_v57, %v4781_v30  ;;  %vm4787_vm7 = vcmp.eq.f32.partialorder %v4786_v58, 8.507059e+37  ;;  %v4622_v40 = vsub.f32 0.0, %v10298_v45  ;;  %v4640_v60 = vmul.f32 1.442695, %v4616_v51  ;;  %5202 = vrot.lane.b32.xlu1 %v5170_v53, %s7039_s13  ;;  %v5735_v30 = vld [vmem:[%s11439_s5 + $0x80] sm:$0xff]  ;;  %4961 = vst.msk [vmem:[#allocation3 + $0x10] sm:$0xff] %vm11841_vm15, %v5170_v53  ;;  %5866 = vmatpush.msrb.mxu0 %v5736_v52  ;;  %vm11842_vm10 = vmmov %vm11840_vm2 }
 0xb18   :  { %v4790_v49 = vsel %vm4787_vm7, %v4789_v0, %v4785_v39  ;;  %v4642_v61 = vmul.f32 1.442695, %v4617_v9  ;;  %v4644_v50 = vmul.f32 1.442695, %v4618_v34  ;;  %v4646_v43 = vmul.f32 1.442695, %v4619_v12  ;;  %vm11845_vm0 = vmmov %vm11840_vm2 }
 0xb19   :  { %v4919_v22 = vmul.f32 %v4790_v49, %v10048_v42  ;;  %v4623_v10 = vsub.f32 0.0, %v10301_v8  ;;  %6966 = vpow2.f32 %v4640_v60  ;;  %v4648_v1 = vmul.f32 1.442695, %v4620_v16  ;;  %v10365_v51 = vld [vmem:[#allocation2 + $0x22] sm:$0xff]  ;;  %5867 = vmatpush.msrb.mxu0 %v5735_v30  ;;  %vm11848_vm8 = vmmov %vm11845_vm0 }
 0xb1a   :  { %6968 = vpow2.f32 %v4642_v61  ;;  %v4650_v37 = vmul.f32 1.442695, %v4621_v28  ;;  %v4652_v23 = vmul.f32 1.442695, %v4622_v40  ;;  %5671 = vst.msk [vmem:[#allocation3 + $0x8] sm:$0xff] %vm11842_vm10, %v10365_v51  ;;  %v10377_v28 = vld [vmem:[#allocation2 + $0x20] sm:$0xff]  ;;  %vm11853_vm15 = vmmov %vm11845_vm0 }
 0xb1b   :  { %4935 = vst.msk [vmem:[#allocation2 + $0x81] sm:$0xff] %vm11840_vm2, %v4919_v22  ;;  %6970 = vpow2.f32 %v4644_v50  ;;  %v4654_v63 = vmul.f32 1.442695, %v4623_v10  ;;  %v10388_v61 = vld [vmem:[#allocation2 + $0x32] sm:$0xff] }
 0xb1c   :  { %6972 = vpow2.f32 %v4646_v43  ;;  %4962 = vst.msk [vmem:[#allocation3 + $0x20] sm:$0xff] %vm11845_vm0, %v10377_v28 }
 0xb1d   :  { %6974 = vpow2.f32 %v4648_v1  ;;  %5672 = vst.msk [vmem:[#allocation3 + $0x18] sm:$0xff] %vm11848_vm8, %v10388_v61  ;;  %v10534_v39 = vld [vmem:[#allocation2 + $0x70] sm:$0xff] }
 0xb1e   :  { %6976 = vpow2.f32 %v4650_v37  ;;  %5493 = vrot.lane.b32.xlu2 %v10377_v28, %s7058_s24 }
 0xb1f   :  { %v6967_v26 = vpop.eup %6966  ;;  %6978 = vpow2.f32 %v4652_v23 }
 0xb20   :  { %v6969_v58 = vpop.eup %6968  ;;  %v10317_v32 = vadd.f32 1.0, %v6967_v26  ;;  %6980 = vpow2.f32 %v4654_v63 }
 0xb21   :  { %v6971_v42 = vpop.eup %6970  ;;  %v10319_v33 = vadd.f32 1.0, %v6969_v58 }
 0xb22   :  { %v6973_v4 = vpop.eup %6972  ;;  %v10321_v0 = vadd.f32 1.0, %v6971_v42  ;;  %6982 = vrcp.f32 %v10317_v32  ;;  %v4803_v47 = vand.u32 2147483648, %v10317_v32  ;;  %vm4797_vm6 = vweird.f32 %v10317_v32  ;;  %v10415_v42 = vld [vmem:[#allocation2 + $0x42] sm:$0xff] }
 0xb23   :  { %v6975_v29 = vpop.eup %6974  ;;  %v10324_v54 = vadd.f32 1.0, %v6973_v4  ;;  %6984 = vrcp.f32 %v10319_v33  ;;  %v4818_v11 = vand.u32 2147483648, %v10319_v33  ;;  %v4801_v13 = vand.u32 2147483647, %v10317_v32  ;;  %v10417_v4 = vld [vmem:[#allocation2 + $0x52] sm:$0xff]  ;;  %5673 = vst.msk [vmem:[#allocation3 + $0x28] sm:$0xff] %vm11853_vm15, %v10415_v42  ;;  %vm11860_vm15 = vmmov %vm11848_vm8 }
 0xb24   :  { %v6977_v57 = vpop.eup %6976  ;;  %v10327_v59 = vadd.f32 1.0, %v6975_v29  ;;  %6986 = vrcp.f32 %v10321_v0  ;;  %vm4812_vm13 = vweird.f32 %v10319_v33  ;;  %v4816_v56 = vand.u32 2147483647, %v10319_v33  ;;  %5674 = vst.msk [vmem:[#allocation3 + $0x38] sm:$0xff] %vm11848_vm8, %v10417_v4 }
 0xb25   :  { %v6979_v44 = vpop.eup %6978  ;;  %v10332_v6 = vadd.f32 1.0, %v6977_v57  ;;  %6988 = vrcp.f32 %v10324_v54  ;;  %v10348_v31 = vor.u32 1.1754944e-38, %v4803_v47  ;;  %v4833_v25 = vand.u32 2147483648, %v10321_v0 }
 0xb26   :  { %v6981_v17 = vpop.eup %6980  ;;  %6990 = vrcp.f32 %v10327_v59  ;;  %v10344_v20 = vadd.f32 1.0, %v6979_v44  ;;  %v10356_v38 = vor.u32 1.1754944e-38, %v4818_v11  ;;  %vm4827_vm1 = vweird.f32 %v10321_v0  ;;  %v10429_v11 = vld [vmem:[#allocation2 + $0x62] sm:$0xff] }
 0xb27   :  { %v4831_v21 = vand.u32 2147483647, %v10321_v0  ;;  %v10370_v34 = vadd.f32 1.0, %v6981_v17  ;;  %v4846_v16 = vand.u32 2147483647, %v10324_v54  ;;  %6992 = vrcp.f32 %v10332_v6  ;;  %5675 = vst.msk [vmem:[#allocation3 + $0x48] sm:$0xff] %vm11860_vm15, %v10429_v11 }
 0xb28   :  { %v10336_v14 = vpop.eup %6982  ;;  %vm10380_vm4 = vcmp.eq.f32.partialorder %v4801_v13, 8.507059e+37  ;;  %vm4842_vm11 = vweird.f32 %v10324_v54  ;;  %v4848_v49 = vand.u32 2147483648, %v10324_v54  ;;  %vm10395_vm12 = vcmp.eq.f32.partialorder %v4816_v56, 8.507059e+37 }
 0xb29   :  { %v10342_v18 = vpop.eup %6984  ;;  %v4793_v19 = vmul.f32 %v10336_v14, %v10317_v32  ;;  %vm4798_vm14 = vweird.f32 %v10336_v14  ;;  %v10399_v10 = vor.u32 1.1754944e-38, %v4833_v25  ;;  %vm4857_vm5 = vweird.f32 %v10327_v59  ;;  %v10545_v32 = vld [vmem:[#allocation2 + $0x60] sm:$0xff] }
 0xb2a   :  { %v4808_v35 = vmul.f32 %v10342_v18, %v10319_v33  ;;  %v10368_v9 = vpop.eup %6986  ;;  %v4861_v1 = vand.u32 2147483647, %v10327_v59  ;;  %vm4813_vm3 = vweird.f32 %v10342_v18  ;;  %vm10409_vm7 = vcmp.eq.f32.partialorder %v4831_v21, 8.507059e+37  ;;  %vm10435_vm10 = vmor %vm4797_vm6, %vm4798_vm14 }
 0xb2b   :  { %v4794_v12 = vsub.f32 1.0, %v4793_v19  ;;  %v4823_v60 = vmul.f32 %v10368_v9, %v10321_v0  ;;  %v10392_v50 = vpop.eup %6988  ;;  %vm10420_vm2 = vcmp.eq.f32.partialorder %v4846_v16, 8.507059e+37  ;;  %v4863_v44 = vand.u32 2147483648, %v10327_v59  ;;  %vm10450_vm6 = vmor %vm4812_vm13, %vm4813_vm3  ;;  %v5364_v16 = vld [vmem:[#allocation2 + $0x12] sm:$0xff] }
 0xb2c   :  { %v4809_v40 = vsub.f32 1.0, %v4808_v35  ;;  %v10405_v37 = vpop.eup %6990  ;;  %v4838_v58 = vmul.f32 %v10392_v50, %v10324_v54  ;;  %vm4828_vm0 = vweird.f32 %v10368_v9  ;;  %v4849_v62 = vor.u32 1.1754944e-38, %v4848_v49  ;;  %v10461_v35 = vld [vmem:[#allocation2 + $0x72] sm:$0xff]  ;;  %5396 = vrot.lane.b32.xlu1 %v5364_v16, %s7060_s28  ;;  %5107 = vrot.lane.b32.xlu2 %v5364_v16, %s7038_s12 }
 0xb2d   :  { %v4795_v43 = vmul.f32 %v10336_v14, %v4794_v12  ;;  %v4824_v63 = vsub.f32 1.0, %v4823_v60  ;;  %v4853_v47 = vmul.f32 %v10405_v37, %v10327_v59  ;;  %v10444_v25 = vpop.eup %6992  ;;  %vm10454_vm14 = vcmp.eq.f32.partialorder %v4861_v1, 8.507059e+37  ;;  %v5688_v12 = vld [vmem:[#allocation3 + $0x8] sm:$0xff]  ;;  %vm10480_vm3 = vmor %vm4827_vm1, %vm4828_vm0  ;;  %v10492_v1 = vld [vmem:[#allocation2 + $0x40] sm:$0xff] }
 0xb2e   :  { %v4810_v23 = vmul.f32 %v10342_v18, %v4809_v40  ;;  %v4839_v19 = vsub.f32 1.0, %v4838_v58  ;;  %6994 = vrcp.f32 %v10344_v20  ;;  %vm4843_vm13 = vweird.f32 %v10392_v50  ;;  %v10471_v40 = vld [vmem:[#allocation2 + $0x82] sm:$0xff]  ;;  %6766 = vmatmul.msk.f32.vlgmr.msrb.gmra.mxu0 %vm11848_vm8, %v5688_v12  ;;  %vm11863_vm1 = vmmov %vm11848_vm8 }
 0xb2f   :  { %v4796_v29 = vadd.f32 %v10336_v14, %v4795_v43  ;;  %v4825_v56 = vmul.f32 %v10368_v9, %v4824_v63  ;;  %v4854_v53 = vsub.f32 1.0, %v4853_v47  ;;  %v4868_v43 = vmul.f32 %v10444_v25, %v10332_v6  ;;  %5676 = vst.msk [vmem:[#allocation3 + $0x58] sm:$0xff] %vm11863_vm1, %v10461_v35  ;;  %vm10512_vm0 = vmor %vm4842_vm11, %vm4843_vm13  ;;  %v5696_v57 = vld [vmem:[#allocation3 + $0x48] sm:$0xff] }
 0xb30   :  { %v4811_v13 = vadd.f32 %v10342_v18, %v4810_v23  ;;  %v4840_v30 = vmul.f32 %v10392_v50, %v4839_v19  ;;  %v4864_v63 = vor.u32 1.1754944e-38, %v4863_v44  ;;  %v4876_v58 = vand.u32 2147483647, %v10332_v6  ;;  %vm11867_vm15 = vmmov %vm11863_vm1 }
 0xb31   :  { %v4800_v33 = vsel %vm10435_vm10, %v10336_v14, %v4796_v29  ;;  %v4826_v21 = vadd.f32 %v10368_v9, %v4825_v56  ;;  %v4855_v49 = vmul.f32 %v10405_v37, %v4854_v53  ;;  %vm4858_vm10 = vweird.f32 %v10405_v37  ;;  %v10501_v29 = vld [vmem:[#allocation2 + $0x30] sm:$0xff]  ;;  %4964 = vst.msk [vmem:[#allocation3 + $0x40] sm:$0xff] %vm11867_vm15, %v10492_v1  ;;  %vm11875_vm8 = vmmov %vm11863_vm1 }
 0xb32   :  { %v4815_v60 = vsel %vm10450_vm6, %v10342_v18, %v4811_v13  ;;  %v10490_v18 = vld [vmem:[#allocation2 + $0x21] sm:$0xff]  ;;  %v4841_v23 = vadd.f32 %v10392_v50, %v4840_v30  ;;  %v4805_v47 = vsel %vm10380_vm4, %v10348_v31, %v4800_v33  ;;  %v4869_v17 = vsub.f32 1.0, %v4868_v43  ;;  %vm11866_vm6 = vmmov %vm11863_vm1  ;;  %v10520_v56 = vld [vmem:[#allocation2 + $0x50] sm:$0xff] }
 0xb33   :  { %v4830_v0 = vsel %vm10480_vm3, %v10368_v9, %v4826_v21  ;;  %5301 = vrot.lane.b32.xlu0 %v10490_v18, %s7040_s14  ;;  %v4856_v44 = vadd.f32 %v10405_v37, %v4855_v49  ;;  %v4878_v13 = vand.u32 2147483648, %v10332_v6  ;;  %5677 = vst.msk [vmem:[#allocation3 + $0x68] sm:$0xff] %vm11866_vm6, %v10471_v40  ;;  %v4820_v31 = vsel %vm10395_vm12, %v10356_v38, %v4815_v60  ;;  %vm4859_vm4 = vmor %vm4857_vm5, %vm4858_vm10  ;;  %v5692_v9 = vld [vmem:[#allocation3 + $0x28] sm:$0xff] }
 0xb34   :  { %v4845_v54 = vsel %vm10512_vm0, %v10392_v50, %v4841_v23  ;;  %vm4873_vm11 = vweird.f32 %v10444_v25  ;;  %6996 = vrcp.f32 %v10370_v34  ;;  %v6995_v22 = vpop.eup %6994  ;;  %v4835_v38 = vsel %vm10409_vm7, %v10399_v10, %v4830_v0  ;;  %vm11868_vm12 = vmmov %vm11863_vm1  ;;  %5590 = vrot.lane.b32.xlu1 %v10490_v18, %s7059_s25  ;;  %5398 = vrot.lane.b32.xlu2 %v10365_v51, %s7060_s28 }
 0xb35   :  { %v4850_v50 = vsel %vm10420_vm2, %v4849_v62, %v4845_v54  ;;  %v4860_v59 = vsel %vm4859_vm4, %v10405_v37, %v4856_v44  ;;  %v4870_v19 = vmul.f32 %v10444_v25, %v4869_v17  ;;  %4963 = vst.msk [vmem:[#allocation3 + $0x30] sm:$0xff] %vm11868_vm12, %v10501_v29  ;;  %v4883_v33 = vmul.f32 %v6995_v22, %v10344_v20  ;;  %vm11869_vm5 = vmmov %vm11863_vm1 }
 0xb36   :  { %v4865_v53 = vsel %vm10454_vm14, %v4864_v63, %v4860_v59  ;;  %4965 = vst.msk [vmem:[#allocation3 + $0x50] sm:$0xff] %vm11869_vm5, %v10520_v56  ;;  %vm4872_vm7 = vweird.f32 %v10332_v6  ;;  %v4920_v37 = vmul.f32 %v4805_v47, %v10277_v27  ;;  %v4921_v26 = vmul.f32 %v4820_v31, %v10280_v3  ;;  %vm11870_vm2 = vmmov %vm11863_vm1  ;;  %v5690_v6 = vld [vmem:[#allocation3 + $0x18] sm:$0xff] }
 0xb37   :  { %v4871_v10 = vadd.f32 %v10444_v25, %v4870_v19  ;;  %4967 = vst.msk [vmem:[#allocation3 + $0x70] sm:$0xff] %vm11870_vm2, %v10534_v39  ;;  %vm10562_vm13 = vmor %vm4872_vm7, %vm4873_vm11  ;;  %v4879_v62 = vor.u32 1.1754944e-38, %v4878_v13  ;;  %v4884_v52 = vsub.f32 1.0, %v4883_v33  ;;  %v4922_v21 = vmul.f32 %v4835_v38, %v10285_v48  ;;  %6767 = vmatmul.msk.f32.gmra.mxu0 %vm11875_vm8, %v5690_v6  ;;  %v10580_v48 = vld [vmem:[#allocation2 + $0x31] sm:$0xff] }
 0xb38   :  { %v4923_v30 = vmul.f32 %v4850_v50, %v10288_v41  ;;  %vm11873_vm14 = vmmov %vm11863_vm1  ;;  %vm4877_vm3 = vcmp.eq.f32.partialorder %v4876_v58, 8.507059e+37  ;;  %v4893_v3 = vand.u32 2147483648, %v10344_v20  ;;  %v4924_v12 = vmul.f32 %v4865_v53, %v10292_v36  ;;  %v5662_v31 = vld [vmem:[#allocation2 + $0x92] sm:$0xff] }
 0xb39   :  { %4966 = vst.msk [vmem:[#allocation3 + $0x60] sm:$0xff] %vm11873_vm14, %v10545_v32  ;;  %v4875_v27 = vsel %vm10562_vm13, %v10444_v25, %v4871_v10  ;;  %vm11874_vm10 = vmmov %vm11863_vm1  ;;  %v4885_v60 = vmul.f32 %v6995_v22, %v4884_v52  ;;  %vm4888_vm1 = vweird.f32 %v6995_v22  ;;  %v4891_v25 = vand.u32 2147483647, %v10344_v20  ;;  %v5694_v19 = vld [vmem:[#allocation3 + $0x38] sm:$0xff] }
 0xb3a   :  { %4936 = vst.msk [vmem:[#allocation2 + $0xb1] sm:$0xff] %vm11874_vm10, %v4920_v37  ;;  %v6997_v41 = vpop.eup %6996  ;;  %v4880_v16 = vsel %vm4877_vm3, %v4879_v62, %v4875_v27  ;;  %vm11876_vm0 = vmmov %vm11870_vm2  ;;  %vm4887_vm4 = vweird.f32 %v10344_v20  ;;  %v4894_v43 = vor.u32 1.1754944e-38, %v4893_v3  ;;  %v4908_v63 = vand.u32 2147483648, %v10370_v34  ;;  %v5560_v62 = vld [vmem:[#allocation2 + $0x41] sm:$0xff]  ;;  %v5698_v52 = vld [vmem:[#allocation3 + $0x58] sm:$0xff] }
 0xb3b   :  { %4937 = vst.msk [vmem:[#allocation2 + $0xc1] sm:$0xff] %vm11876_vm0, %v4921_v26  ;;  %5592 = vrot.lane.b32.xlu0 %v10580_v48, %s7059_s25  ;;  %v4898_v36 = vmul.f32 %v6997_v41, %v10370_v34  ;;  %v4925_v14 = vmul.f32 %v4880_v16, %v10295_v15  ;;  %vm11877_vm6 = vmmov %vm11876_vm0  ;;  %v4886_v49 = vadd.f32 %v6995_v22, %v4885_v60  ;;  %vm4892_vm5 = vcmp.eq.f32.partialorder %v4891_v25, 8.507059e+37  ;;  %v5734_v6 = vld [vmem:[%s11439_s5 + $0x78] sm:$0xff]  ;;  %v5733_v27 = vld [vmem:[%s11439_s5 + $0x70] sm:$0xff] }
 0xb3c   :  { %4938 = vst.msk [vmem:[#allocation2 + $0xd1] sm:$0xff] %vm11877_vm6, %v4922_v21  ;;  %vm11878_vm11 = vmmov %vm11876_vm0  ;;  %vm4903_vm2 = vweird.f32 %v6997_v41  ;;  %v4906_v47 = vand.u32 2147483647, %v10370_v34  ;;  %vm4902_vm13 = vweird.f32 %v10370_v34  ;;  %5204 = vrot.lane.b32.xlu1 %v10377_v28, %s7039_s13  ;;  %5012 = vrot.lane.b32.xlu2 %v10490_v18, %s7035_s16  ;;  %v5700_v21 = vld [vmem:[#allocation3 + $0x68] sm:$0xff]  ;;  %v5727_v25 = vld [vmem:[%s11439_s5 + $0x40] sm:$0xff] }
 0xb3d   :  { %4939 = vst.msk [vmem:[#allocation2 + $0xe1] sm:$0xff] %vm11878_vm11, %v4923_v30  ;;  %vm4889_vm15 = vmor %vm4887_vm4, %vm4888_vm1  ;;  %v4899_v0 = vsub.f32 1.0, %v4898_v36  ;;  %v5562_v30 = vld [vmem:[#allocation2 + $0x61] sm:$0xff]  ;;  %5787 = vmatpush.msrb.mxu3 %v5734_v6  ;;  %v5726_v36 = vld [vmem:[%s11439_s5 + $0x38] sm:$0xff] }
 0xb3e   :  { %vm11879_vm12 = vmmov %vm11876_vm0  ;;  %v4890_v23 = vsel %vm4889_vm15, %v6995_v22, %v4886_v49  ;;  %vm4907_vm1 = vcmp.eq.f32.partialorder %v4906_v47, 8.507059e+37  ;;  %5678 = vst.msk [vmem:[#allocation3 + $0x78] sm:$0xff] %vm11876_vm0, %v5662_v31 }
 0xb3f   :  { %4940 = vst.msk [vmem:[#allocation2 + $0xf1] sm:$0xff] %vm11879_vm12, %v4924_v12  ;;  %vm11880_vm7 = vmmov %vm11876_vm0  ;;  %v4895_v58 = vsel %vm4892_vm5, %v4894_v43, %v4890_v23  ;;  %v4900_v15 = vmul.f32 %v6997_v41, %v4899_v0  ;;  %5788 = vmatpush.msrb.mxu3 %v5733_v27  ;;  %v5731_v12 = vld [vmem:[%s11439_s5 + $0x60] sm:$0xff]  ;;  %v5722_v23 = vld [vmem:[%s11439_s5 + $0x18] sm:$0xff] }
 0xb40   :  { %4941 = vst.msk [vmem:[#allocation2 + $0x101] sm:$0xff] %vm11880_vm7, %v4925_v14  ;;  %v4926_v20 = vmul.f32 %v4895_v58, %v10298_v45  ;;  %vm11881_vm14 = vmmov %vm11876_vm0  ;;  %v4909_v45 = vor.u32 1.1754944e-38, %v4908_v63  ;;  %v5724_v14 = vld [vmem:[%s11439_s5 + $0x28] sm:$0xff]  ;;  %v5723_v0 = vld [vmem:[%s11439_s5 + $0x20] sm:$0xff] }
 0xb41   :  { %v10598_v44 = vld [vmem:[#allocation2 + $0xb0] sm:$0xff]  ;;  %v4901_v17 = vadd.f32 %v6997_v41, %v4900_v15  ;;  %6768 = vmatmul.msk.f32.gmra.mxu0 %vm11881_vm14, %v5692_v9  ;;  %vm11882_vm3 = vmmov %vm11876_vm0  ;;  %v5720_v58 = vld [vmem:[%s11439_s5 + $0x8] sm:$0xff] }
 0xb42   :  { %v10604_v13 = vld [vmem:[#allocation2 + $0xc2] sm:$0xff]  ;;  %4969 = vst.msk [vmem:[#allocation3 + $0x90] sm:$0xff] %vm11882_vm3, %v10598_v44  ;;  %vm4904_vm10 = vmor %vm4902_vm13, %vm4903_vm2  ;;  %v5563_v63 = vld [vmem:[#allocation2 + $0x71] sm:$0xff] }
 0xb43   :  { %vm11883_vm8 = vmmov %vm11876_vm0  ;;  %5206 = vrot.lane.b32.xlu0 %v10501_v29, %s7039_s13  ;;  %v10611_v54 = vld [vmem:[#allocation2 + $0xd2] sm:$0xff]  ;;  %v4905_v34 = vsel %vm4904_vm10, %v6997_v41, %v4901_v17  ;;  %v5566_v27 = vld [vmem:[#allocation2 + $0xc1] sm:$0xff] }
 0xb44   :  { %4942 = vst.msk [vmem:[#allocation2 + $0x111] sm:$0xff] %vm11883_vm8, %v4926_v20  ;;  %v10614_v28 = vld [vmem:[#allocation2 + $0xe2] sm:$0xff]  ;;  %v4910_v22 = vsel %vm4907_vm1, %v4909_v45, %v4905_v34  ;;  %vm11884_vm6 = vmmov %vm11876_vm0  ;;  %5495 = vrot.lane.b32.xlu1 %v10501_v29, %s7058_s24  ;;  %v10641_v33 = vld [vmem:[#allocation2 + $0xd0] sm:$0xff]  ;;  %5303 = vrot.lane.b32.xlu2 %v10580_v48, %s7040_s14 }
 0xb45   :  { %5679 = vst.msk [vmem:[#allocation3 + $0x88] sm:$0xff] %vm11884_vm6, %v10604_v13  ;;  %v4927_v38 = vmul.f32 %v4910_v22, %v10301_v8  ;;  %vm11885_vm4 = vmmov %vm11876_vm0  ;;  %v10632_v8 = vld [vmem:[#allocation2 + $0xc0] sm:$0xff]  ;;  %v5729_v41 = vld [vmem:[%s11439_s5 + $0x50] sm:$0xff] }
 0xb46   :  { %5680 = vst.msk [vmem:[#allocation3 + $0x98] sm:$0xff] %vm11885_vm4, %v10611_v54  ;;  %v10621_v50 = vld [vmem:[#allocation2 + $0xf2] sm:$0xff]  ;;  %vm11886_vm11 = vmmov %vm11876_vm0  ;;  %v10647_v18 = vld [vmem:[#allocation2 + $0xe0] sm:$0xff] }
 0xb47   :  { %5681 = vst.msk [vmem:[#allocation3 + $0xa8] sm:$0xff] %vm11886_vm11, %v10614_v28  ;;  %v10625_v59 = vld [vmem:[#allocation2 + $0x102] sm:$0xff]  ;;  %vm11887_vm15 = vmmov %vm11876_vm0  ;;  %v10649_v10 = vld [vmem:[#allocation2 + $0xf0] sm:$0xff] }
 0xb48   :  { %4943 = vst.msk [vmem:[#allocation2 + $0x121] sm:$0xff] %vm11887_vm15, %v4927_v38  ;;  %vm11888_vm12 = vmmov %vm11876_vm0  ;;  %v10655_v29 = vld [vmem:[#allocation2 + $0x100] sm:$0xff] }
 0xb49   :  { %5682 = vst.msk [vmem:[#allocation3 + $0xb8] sm:$0xff] %vm11888_vm12, %v10621_v50  ;;  %vm11889_vm5 = vmmov %vm11876_vm0  ;;  %v5719_v20 = vld [vmem:[%s11439_s5] sm:$0xff] }
 0xb4a   :  { %6769 = vmatmul.msk.f32.gmra.mxu0 %vm11889_vm5, %v5694_v19  ;;  %vm11890_vm7 = vmmov %vm11876_vm0  ;;  %v5274_v34 = vld [vmem:[#allocation2 + $0x81] sm:$0xff] }
 0xb4b   :  { %5683 = vst.msk [vmem:[#allocation3 + $0xc8] sm:$0xff] %vm11890_vm7, %v10625_v59  ;;  %v10639_v53 = vld [vmem:[#allocation2 + $0x112] sm:$0xff]  ;;  %5497 = vrot.lane.b32.xlu0 %v10492_v1, %s7058_s24  ;;  %vm11891_vm2 = vmmov %vm11876_vm0 }
 0xb4c   :  { %5684 = vst.msk [vmem:[#allocation3 + $0xd8] sm:$0xff] %vm11891_vm2, %v10639_v53  ;;  %vm11892_vm13 = vmmov %vm11876_vm0  ;;  %v10661_v26 = vld [vmem:[#allocation2 + $0x110] sm:$0xff]  ;;  %5109 = vrot.lane.b32.xlu1 %v10365_v51, %s7038_s12  ;;  %5594 = vrot.lane.b32.xlu2 %v5560_v62, %s7059_s25  ;;  %v5702_v51 = vld [vmem:[#allocation3 + $0x78] sm:$0xff] }
 0xb4d   :  { %4970 = vst.msk [vmem:[#allocation3 + $0xa0] sm:$0xff] %vm11892_vm13, %v10632_v8  ;;  %vm11893_vm14 = vmmov %vm11876_vm0  ;;  %v5706_v3 = vld [vmem:[#allocation3 + $0x98] sm:$0xff] }
 0xb4e   :  { %4971 = vst.msk [vmem:[#allocation3 + $0xb0] sm:$0xff] %vm11893_vm14, %v10641_v33  ;;  %vm11894_vm3 = vmmov %vm11876_vm0  ;;  %v5708_v16 = vld [vmem:[#allocation3 + $0xa8] sm:$0xff]  ;;  %vm5250_vm14 = vcmask 523648  }
 0xb4f   :  { %4972 = vst.msk [vmem:[#allocation3 + $0xc0] sm:$0xff] %vm11894_vm3, %v10647_v18  ;;  %v10659_v37 = vld [vmem:[#allocation2 + $0x122] sm:$0xff]  ;;  %vm11895_vm10 = vmmov %vm11876_vm0 }
 0xb50   :  { %4973 = vst.msk [vmem:[#allocation3 + $0xd0] sm:$0xff] %vm11895_vm10, %v10649_v10  ;;  %vm11896_vm8 = vmmov %vm11876_vm0  ;;  %v5710_v49 = vld [vmem:[#allocation3 + $0xb8] sm:$0xff]  ;;  %vm5347_vm10 = vcmask 654848  }
 0xb51   :  { %5685 = vst.msk [vmem:[#allocation3 + $0xe8] sm:$0xff] %vm11896_vm8, %v10659_v37  ;;  %vm11897_vm1 = vmmov %vm11876_vm0  ;;  %vm11908_vm8 = vcmask 392448  }
 0xb52   :  { %4974 = vst.msk [vmem:[#allocation3 + $0xe0] sm:$0xff] %vm11897_vm1, %v10655_v29  ;;  %6770 = vmatmul.msk.f32.gmra.mxu0 %vm11876_vm0, %v5696_v57  ;;  %vm11898_vm6 = vmmov %vm11876_vm0  ;;  %v5712_v15 = vld [vmem:[#allocation3 + $0xc8] sm:$0xff] }
 0xb53   :  { %4975 = vst.msk [vmem:[#allocation3 + $0xf0] sm:$0xff] %vm11898_vm6, %v10661_v26  ;;  %5111 = vrot.lane.b32.xlu0 %v10388_v61, %s7038_s12  ;;  %vm11899_vm4 = vmmov %vm11876_vm0  ;;  %v5714_v9 = vld [vmem:[#allocation3 + $0xd8] sm:$0xff]  ;;  %vm5541_vm6 = vcmask 917248  }
 0xb54   :  { %5400 = vrot.lane.b32.xlu1 %v10388_v61, %s7060_s28  ;;  %5208 = vrot.lane.b32.xlu2 %v10492_v1, %s7039_s13  ;;  %vm11900_vm11 = vmmov %vm11876_vm0  ;;  %v5271_v61 = vld [vmem:[#allocation2 + $0x51] sm:$0xff]  ;;  %v5704_v1 = vld [vmem:[#allocation3 + $0x88] sm:$0xff] }
 0xb55   :  { %vm11901_vm15 = vmmov %vm11876_vm0 }
 0xb56   :  { %vm11902_vm12 = vmmov %vm11876_vm0 }
 0xb57   :  { %vm11903_vm5 = vmmov %vm11876_vm0 }
 0xb58   :  { %vm11904_vm7 = vmmov %vm11876_vm0  ;;  %v5716_v31 = vld [vmem:[#allocation3 + $0xe8] sm:$0xff] }
 0xb59   :  { %vm11905_vm2 = vmmov %vm11876_vm0 }
 0xb5a   :  { %6771 = vmatmul.msk.f32.gmra.mxu0 %vm11899_vm4, %v5698_v52  ;;  %vm11906_vm13 = vmmov %vm11876_vm0  ;;  %vm5638_vm4 = vcmask 1048448  }
 0xb5b   :  { %5402 = vrot.lane.b32.xlu0 %v10415_v42, %s7060_s28  ;;  %vm11907_vm3 = vmmov %vm11876_vm0 }
 0xb5c   :  { %5014 = vrot.lane.b32.xlu1 %v10580_v48, %s7035_s16  ;;  %5499 = vrot.lane.b32.xlu2 %v10520_v56, %s7058_s24  ;;  %v5730_v48 = vld [vmem:[%s11439_s5 + $0x58] sm:$0xff]  ;;  %vm11909_vm1 = vmmov %vm11876_vm0  ;;  %vm5444_vm0 = vcmask 786048  }
 0xb62   :  { %6772 = vmatmul.msk.f32.gmra.mxu0 %vm11900_vm11, %v5700_v21  ;;  %vm11910_vm11 = vmmov %vm11908_vm8 }
 0xb63   :  { %5016 = vrot.lane.b32.xlu0 %v5560_v62, %s7035_s16 }
 0xb64   :  { %5305 = vrot.lane.b32.xlu1 %v5560_v62, %s7040_s14  ;;  %5113 = vrot.lane.b32.xlu2 %v10415_v42, %s7038_s12  ;;  %v5732_v42 = vld [vmem:[%s11439_s5 + $0x68] sm:$0xff] }
 0xb65   :  { %5789 = vmatpush.msrb.mxu3 %v5732_v42 }
 0xb67   :  { %5790 = vmatpush.msrb.mxu3 %v5731_v12 }
 0xb69   :  { %5791 = vmatpush.msrb.mxu3 %v5730_v48 }
 0xb6a   :  { %6773 = vmatmul.msk.f32.gmra.mxu0 %vm11901_vm15, %v5702_v51  ;;  %vm11911_vm15 = vmmov %vm11908_vm8 }
 0xb6b   :  { %5307 = vrot.lane.b32.xlu0 %v5271_v61, %s7040_s14  ;;  %5792 = vmatpush.msrb.mxu3 %v5729_v41 }
 0xb6c   :  { %5596 = vrot.lane.b32.xlu1 %v5271_v61, %s7059_s25  ;;  %5404 = vrot.lane.b32.xlu2 %v10417_v4, %s7060_s28 }
 0xb70   :  { %v5300_v60 = vpop.permute.xlu2 %5299 }
 0xb72   :  { %6774 = vmatmul.msk.f32.gmra.mxu0 %vm11902_vm12, %v5704_v1  ;;  %v5372_v1 = vld [vmem:[#allocation2 + $0xb2] sm:$0xff]  ;;  %vm11912_vm12 = vmmov %vm11908_vm8 }
 0xb73   :  { %5598 = vrot.lane.b32.xlu0 %v5562_v30, %s7059_s25 }
 0xb74   :  { %5210 = vrot.lane.b32.xlu1 %v10520_v56, %s7039_s13  ;;  %v5728_v56 = vld [vmem:[%s11439_s5 + $0x48] sm:$0xff]  ;;  %5018 = vrot.lane.b32.xlu2 %v5271_v61, %s7035_s16 }
 0xb75   :  { %5793 = vmatpush.msrb.mxu3 %v5728_v56 }
 0xb77   :  { %5794 = vmatpush.msrb.mxu3 %v5727_v25 }
 0xb78   :  { %v5494_v43 = vpop.permute.xlu2 %5493 }
 0xb79   :  { %5795 = vmatpush.msrb.mxu3 %v5726_v36 }
 0xb7a   :  { %6775 = vmatmul.msk.f32.gmra.mxu0 %vm11903_vm5, %v5706_v3  ;;  %vm11913_vm5 = vmmov %vm11908_vm8 }
 0xb7b   :  { %5212 = vrot.lane.b32.xlu0 %v10545_v32, %s7039_s13 }
 0xb7c   :  { %5501 = vrot.lane.b32.xlu1 %v10545_v32, %s7058_s24  ;;  %v5725_v32 = vld [vmem:[%s11439_s5 + $0x30] sm:$0xff]  ;;  %5309 = vrot.lane.b32.xlu2 %v5562_v30, %s7040_s14 }
 0xb7d   :  { %5796 = vmatpush.msrb.mxu3 %v5725_v32 }
 0xb7f   :  { %5797 = vmatpush.msrb.mxu3 %v5724_v14  ;;  %v5568_v14 = vld [vmem:[#allocation2 + $0xe1] sm:$0xff] }
 0xb81   :  { %5798 = vmatpush.msrb.mxu3 %v5723_v0 }
 0xb82   :  { %6776 = vmatmul.msk.f32.gmra.mxu0 %vm11904_vm7, %v5708_v16  ;;  %vm11914_vm7 = vmmov %vm11913_vm5 }
 0xb83   :  { %5503 = vrot.lane.b32.xlu0 %v10534_v39, %s7058_s24  ;;  %5799 = vmatpush.msrb.mxu3 %v5722_v23 }
 0xb84   :  { %5115 = vrot.lane.b32.xlu1 %v10417_v4, %s7038_s12  ;;  %v5721_v4 = vld [vmem:[%s11439_s5 + $0x10] sm:$0xff]  ;;  %5600 = vrot.lane.b32.xlu2 %v5563_v63, %s7059_s25 }
 0xb85   :  { %5800 = vmatpush.msrb.mxu3 %v5721_v4 }
 0xb86   :  { %v5108_v47 = vpop.permute.xlu2 %5107 }
 0xb87   :  { %5801 = vmatpush.msrb.mxu3 %v5720_v58 }
 0xb88   :  { %v5011_v45 = vpop.permute.xlu0 %5010 }
 0xb89   :  { %5802 = vmatpush.msrb.mxu3 %v5719_v20  ;;  %5058 = vst.msk [vmem:[#allocation3 + $0x10] sm:$0xff] %vm5056_vm9, %v5011_v45  ;;  %v5569_v20 = vld [vmem:[#allocation2 + $0xf1] sm:$0xff] }
 0xb8a   :  { %6777 = vmatmul.msk.f32.gmra.mxu0 %vm11905_vm2, %v5710_v49  ;;  %5155 = vst.msk [vmem:[#allocation3 + $0x10] sm:$0xff] %vm11908_vm8, %v5108_v47  ;;  %vm11915_vm2 = vmmov %vm11913_vm5 }
 0xb8b   :  { %5117 = vrot.lane.b32.xlu0 %v10429_v11, %s7038_s12  ;;  %vm11918_vm8 = vmmov %vm11915_vm2 }
 0xb8c   :  { %5406 = vrot.lane.b32.xlu1 %v10429_v11, %s7060_s28  ;;  %5214 = vrot.lane.b32.xlu2 %v10534_v39, %s7039_s13  ;;  %v5203_v11 = vpop.permute.xlu1 %5202  ;;  %v5467_v39 = vld [vmem:[#allocation2 + $0x80] sm:$0xff] }
 0xb8d   :  { %5251 = vst.msk [vmem:[#allocation3] sm:$0xff] %vm5250_vm14, %v5203_v11 }
 0xb8e   :  { %v5399_v17 = vpop.permute.xlu2 %5398  ;;  %5348 = vst.msk [vmem:[#allocation3] sm:$0xff] %vm5347_vm10, %v5300_v60  ;;  %v5277_v60 = vld [vmem:[#allocation2 + $0xd1] sm:$0xff] }
 0xb92   :  { %6778 = vmatmul.msk.f32.gmra.mxu0 %vm11906_vm13, %v5712_v15  ;;  %vm11916_vm13 = vmmov %vm11915_vm2 }
 0xb93   :  { %5408 = vrot.lane.b32.xlu0 %v10461_v35, %s7060_s28 }
 0xb94   :  { %5020 = vrot.lane.b32.xlu1 %v5562_v30, %s7035_s16  ;;  %5505 = vrot.lane.b32.xlu2 %v5467_v39, %s7058_s24 }
 0xb96   :  { %v5013_v22 = vpop.permute.xlu2 %5012 }
 0xb97   :  { %5059 = vst.msk [vmem:[#allocation3 + $0x20] sm:$0xff] %vm5056_vm9, %v5013_v22 }
 0xb9a   :  { %6779 = vmatmul.msk.f32.gmra.mxu0 %vm11907_vm3, %v5714_v9  ;;  %vm11917_vm3 = vmmov %vm11915_vm2 }
 0xb9b   :  { %5022 = vrot.lane.b32.xlu0 %v5563_v63, %s7035_s16 }
 0xb9c   :  { %5311 = vrot.lane.b32.xlu1 %v5563_v63, %s7040_s14  ;;  %5119 = vrot.lane.b32.xlu2 %v10461_v35, %s7038_s12 }
 0xb9e   :  { %v5397_v38 = vpop.permute.xlu1 %5396  ;;  %v5304_v57 = vpop.permute.xlu2 %5303 }
 0xb9f   :  { %5445 = vst.msk [vmem:[#allocation3] sm:$0xff] %vm5444_vm0, %v5397_v38 }
 0xba0   :  { %5542 = vst.msk [vmem:[#allocation3] sm:$0xff] %vm5541_vm6, %v5494_v43 }
 0xba2   :  { %6780 = vmatmul.msk.f32.gmra.mxu0 %vm11909_vm1, %v5716_v31  ;;  %vm11919_vm1 = vmmov %vm11915_vm2 }
 0xba3   :  { %5313 = vrot.lane.b32.xlu0 %v5274_v34, %s7040_s14 }
 0xba4   :  { %5602 = vrot.lane.b32.xlu1 %v5274_v34, %s7059_s25  ;;  %5410 = vrot.lane.b32.xlu2 %v10471_v40, %s7060_s28  ;;  %v5280_v34 = vld [vmem:[#allocation2 + $0x101] sm:$0xff] }
 0xba5   :  { %v5302_v19 = vpop.permute.xlu0 %5301 }
 0xba6   :  { %v5591_v62 = vpop.permute.xlu1 %5590  ;;  %v5595_v35 = vpop.permute.xlu2 %5594 }
 0xba7   :  { %5639 = vst.msk [vmem:[#allocation3] sm:$0xff] %vm5638_vm4, %v5591_v62 }
 0xbab   :  { %5218 = vrot.lane.b32.xlu0 %v10598_v44, %s7039_s13  ;;  %v5275_v44 = vld [vmem:[#allocation2 + $0xb1] sm:$0xff] }
 0xbac   :  { %5216 = vrot.lane.b32.xlu1 %v5467_v39, %s7039_s13  ;;  %5315 = vrot.lane.b32.xlu2 %v5275_v44, %s7040_s14 }
 0xbad   :  { %v5593_v52 = vpop.permute.xlu0 %5592 }
 0xbae   :  { %v5205_v21 = vpop.permute.xlu1 %5204  ;;  %v5687_v51 = vld [vmem:[#allocation3] sm:$0xff]  ;;  %v5209_v40 = vpop.permute.xlu2 %5208 }
 0xbaf   :  { %5252 = vst.msk [vmem:[#allocation3 + $0x10] sm:$0xff] %vm5250_vm14, %v5205_v21  ;;  %5803 = vmatmul.f32.vlgmr.msrb.gmra.mxu3 %v5687_v51  ;;  %v5475_v51 = vld [vmem:[#allocation2 + $0x120] sm:$0xff] }
 0xbb0   :  { %5349 = vst.msk [vmem:[#allocation3 + $0x10] sm:$0xff] %vm5347_vm10, %v5302_v19 }
 0xbb1   :  { %5446 = vst.msk [vmem:[#allocation3 + $0x10] sm:$0xff] %vm5444_vm0, %v5399_v17 }
 0xbb3   :  { %5509 = vrot.lane.b32.xlu0 %v10632_v8, %s7058_s24 }
 0xbb4   :  { %5412 = vrot.lane.b32.xlu1 %v5372_v1, %s7060_s28  ;;  %5606 = vrot.lane.b32.xlu2 %v5566_v27, %s7059_s25 }
 0xbb5   :  { %v5207_v61 = vpop.permute.xlu0 %5206 }
 0xbb6   :  { %v5496_v30 = vpop.permute.xlu1 %5495  ;;  %v5500_v42 = vpop.permute.xlu2 %5499 }
 0xbb7   :  { %5543 = vst.msk [vmem:[#allocation3 + $0x10] sm:$0xff] %vm5541_vm6, %v5496_v30 }
 0xbb8   :  { %5640 = vst.msk [vmem:[#allocation3 + $0x10] sm:$0xff] %vm5638_vm4, %v5593_v52 }
 0xbbb   :  { %5123 = vrot.lane.b32.xlu0 %v5372_v1, %s7038_s12 }
 0xbbc   :  { %5026 = vrot.lane.b32.xlu1 %v5275_v44, %s7035_s16  ;;  %5220 = vrot.lane.b32.xlu2 %v10632_v8, %s7039_s13 }
 0xbbd   :  { %v5498_v6 = vpop.permute.xlu0 %5497 }
 0xbbe   :  { %v5110_v3 = vpop.permute.xlu1 %5109  ;;  %v5114_v41 = vpop.permute.xlu2 %5113 }
 0xbbf   :  { %5156 = vst.msk [vmem:[#allocation3 + $0x20] sm:$0xff] %vm11910_vm11, %v5110_v3  ;;  %v5689_v48 = vld [vmem:[#allocation3 + $0x10] sm:$0xff]  ;;  %vm11920_vm11 = vmmov %vm11919_vm1 }
 0xbc0   :  { %5253 = vst.msk [vmem:[#allocation3 + $0x20] sm:$0xff] %vm5250_vm14, %v5207_v61  ;;  %5806 = vmatmul.f32.gmra.mxu3 %v5689_v48 }
 0xbc1   :  { %5350 = vst.msk [vmem:[#allocation3 + $0x20] sm:$0xff] %vm5347_vm10, %v5304_v57  ;;  %v5571_v57 = vld [vmem:[#allocation2 + $0x111] sm:$0xff] }
 0xbc3   :  { %5414 = vrot.lane.b32.xlu0 %v10604_v13, %s7060_s28 }
 0xbc4   :  { %5317 = vrot.lane.b32.xlu1 %v5566_v27, %s7040_s14  ;;  %5511 = vrot.lane.b32.xlu2 %v10641_v33, %s7058_s24 }
 0xbc5   :  { %v5112_v12 = vpop.permute.xlu0 %5111 }
 0xbc6   :  { %v5401_v56 = vpop.permute.xlu1 %5400  ;;  %v5405_v8 = vpop.permute.xlu2 %5404 }
 0xbc7   :  { %5447 = vst.msk [vmem:[#allocation3 + $0x20] sm:$0xff] %vm5444_vm0, %v5401_v56 }
 0xbc8   :  { %5544 = vst.msk [vmem:[#allocation3 + $0x20] sm:$0xff] %vm5541_vm6, %v5498_v6  ;;  %v5572_v6 = vld [vmem:[#allocation2 + $0x121] sm:$0xff] }
 0xbc9   :  { %5641 = vst.msk [vmem:[#allocation3 + $0x20] sm:$0xff] %vm5638_vm4, %v5595_v35 }
 0xbcb   :  { %5028 = vrot.lane.b32.xlu0 %v5566_v27, %s7035_s16 }
 0xbcc   :  { %5608 = vrot.lane.b32.xlu1 %v5277_v60, %s7059_s25  ;;  %5125 = vrot.lane.b32.xlu2 %v10604_v13, %s7038_s12 }
 0xbcd   :  { %v5403_v16 = vpop.permute.xlu0 %5402 }
 0xbce   :  { %v5015_v25 = vpop.permute.xlu1 %5014  ;;  %v5019_v49 = vpop.permute.xlu2 %5018 }
 0xbcf   :  { %5060 = vst.msk [vmem:[#allocation3 + $0x30] sm:$0xff] %vm5056_vm9, %v5015_v25 }
 0xbd0   :  { %v5691_v32 = vld [vmem:[#allocation3 + $0x20] sm:$0xff]  ;;  %5157 = vst.msk [vmem:[#allocation3 + $0x30] sm:$0xff] %vm11912_vm12, %v5112_v12  ;;  %vm11922_vm12 = vmmov %vm11919_vm1 }
 0xbd1   :  { %5809 = vmatmul.f32.gmra.mxu3 %v5691_v32  ;;  %5254 = vst.msk [vmem:[#allocation3 + $0x30] sm:$0xff] %vm5250_vm14, %v5209_v40 }
 0xbd2   :  { %5062 = vst.msk [vmem:[#allocation3 + $0x50] sm:$0xff] %vm5056_vm9, %v5019_v49 }
 0xbd3   :  { %5319 = vrot.lane.b32.xlu0 %v5277_v60, %s7040_s14 }
 0xbd4   :  { %5222 = vrot.lane.b32.xlu1 %v10641_v33, %s7039_s13  ;;  %5416 = vrot.lane.b32.xlu2 %v10611_v54, %s7060_s28 }
 0xbd5   :  { %v5017_v36 = vpop.permute.xlu0 %5016 }
 0xbd6   :  { %5061 = vst.msk [vmem:[#allocation3 + $0x40] sm:$0xff] %vm5056_vm9, %v5017_v36  ;;  %v5306_v43 = vpop.permute.xlu1 %5305  ;;  %v5310_v13 = vpop.permute.xlu2 %5309 }
 0xbd7   :  { %5158 = vst.msk [vmem:[#allocation3 + $0x40] sm:$0xff] %vm11911_vm15, %v5114_v41  ;;  %v5573_v41 = vld [vmem:[#allocation2 + $0x131] sm:$0xff]  ;;  %vm11921_vm15 = vmmov %vm11919_vm1 }
 0xbd8   :  { %5351 = vst.msk [vmem:[#allocation3 + $0x30] sm:$0xff] %vm5347_vm10, %v5306_v43 }
 0xbd9   :  { %5448 = vst.msk [vmem:[#allocation3 + $0x30] sm:$0xff] %vm5444_vm0, %v5403_v16 }
 0xbda   :  { %5545 = vst.msk [vmem:[#allocation3 + $0x30] sm:$0xff] %vm5541_vm6, %v5500_v42 }
 0xbdb   :  { %5610 = vrot.lane.b32.xlu0 %v5568_v14, %s7059_s25 }
 0xbdc   :  { %5513 = vrot.lane.b32.xlu1 %v10647_v18, %s7058_s24  ;;  %5030 = vrot.lane.b32.xlu2 %v5277_v60, %s7035_s16 }
 0xbdd   :  { %v5308_v0 = vpop.permute.xlu0 %5307 }
 0xbde   :  { %v5597_v33 = vpop.permute.xlu1 %5596  ;;  %v5601_v4 = vpop.permute.xlu2 %5600 }
 0xbdf   :  { %5642 = vst.msk [vmem:[#allocation3 + $0x30] sm:$0xff] %vm5638_vm4, %v5597_v33 }
 0xbe3   :  { %5224 = vrot.lane.b32.xlu0 %v10647_v18, %s7039_s13 }
 0xbe4   :  { %5127 = vrot.lane.b32.xlu1 %v10611_v54, %s7038_s12  ;;  %5321 = vrot.lane.b32.xlu2 %v5568_v14, %s7040_s14 }
 0xbe5   :  { %v5599_v23 = vpop.permute.xlu0 %5598 }
 0xbe6   :  { %v5211_v63 = vpop.permute.xlu1 %5210  ;;  %v5693_v58 = vld [vmem:[#allocation3 + $0x30] sm:$0xff]  ;;  %v5215_v54 = vpop.permute.xlu2 %5214 }
 0xbe7   :  { %5255 = vst.msk [vmem:[#allocation3 + $0x40] sm:$0xff] %vm5250_vm14, %v5211_v63  ;;  %5812 = vmatmul.f32.gmra.mxu3 %v5693_v58 }
 0xbe8   :  { %5352 = vst.msk [vmem:[#allocation3 + $0x40] sm:$0xff] %vm5347_vm10, %v5308_v0 }
 0xbe9   :  { %5449 = vst.msk [vmem:[#allocation3 + $0x40] sm:$0xff] %vm5444_vm0, %v5405_v8 }
 0xbeb   :  { %5515 = vrot.lane.b32.xlu0 %v10649_v10, %s7058_s24 }
 0xbec   :  { %5418 = vrot.lane.b32.xlu1 %v10614_v28, %s7060_s28  ;;  %5612 = vrot.lane.b32.xlu2 %v5569_v20, %s7059_s25 }
 0xbed   :  { %v5213_v15 = vpop.permute.xlu0 %5212 }
 0xbee   :  { %v5502_v18 = vpop.permute.xlu1 %5501  ;;  %v5506_v9 = vpop.permute.xlu2 %5505 }
 0xbef   :  { %5546 = vst.msk [vmem:[#allocation3 + $0x40] sm:$0xff] %vm5541_vm6, %v5502_v18 }
 0xbf0   :  { %5643 = vst.msk [vmem:[#allocation3 + $0x40] sm:$0xff] %vm5638_vm4, %v5599_v23 }
 0xbf3   :  { %5129 = vrot.lane.b32.xlu0 %v10614_v28, %s7038_s12 }
 0xbf4   :  { %5032 = vrot.lane.b32.xlu1 %v5568_v14, %s7035_s16  ;;  %5226 = vrot.lane.b32.xlu2 %v10649_v10, %s7039_s13 }
 0xbf5   :  { %v5504_v47 = vpop.permute.xlu0 %5503 }
 0xbf6   :  { %v5116_v11 = vpop.permute.xlu1 %5115  ;;  %v5120_v45 = vpop.permute.xlu2 %5119 }
 0xbf7   :  { %5159 = vst.msk [vmem:[#allocation3 + $0x50] sm:$0xff] %vm11913_vm5, %v5116_v11  ;;  %v5695_v28 = vld [vmem:[#allocation3 + $0x40] sm:$0xff]  ;;  %vm11923_vm5 = vcmask 130048  }
 0xbf8   :  { %5256 = vst.msk [vmem:[#allocation3 + $0x50] sm:$0xff] %vm5250_vm14, %v5213_v15  ;;  %5815 = vmatmul.f32.gmra.mxu3 %v5695_v28 }
 0xbf9   :  { %5353 = vst.msk [vmem:[#allocation3 + $0x50] sm:$0xff] %vm5347_vm10, %v5310_v13 }
 0xbfb   :  { %5420 = vrot.lane.b32.xlu0 %v10621_v50, %s7060_s28 }
 0xbfc   :  { %5323 = vrot.lane.b32.xlu1 %v5569_v20, %s7040_s14  ;;  %5517 = vrot.lane.b32.xlu2 %v10655_v29, %s7058_s24 }
 0xbfd   :  { %v5118_v17 = vpop.permute.xlu0 %5117 }
 0xbfe   :  { %v5407_v39 = vpop.permute.xlu1 %5406  ;;  %v5411_v10 = vpop.permute.xlu2 %5410 }
 0xbff   :  { %5450 = vst.msk [vmem:[#allocation3 + $0x50] sm:$0xff] %vm5444_vm0, %v5407_v39 }
 0xc00   :  { %5547 = vst.msk [vmem:[#allocation3 + $0x50] sm:$0xff] %vm5541_vm6, %v5504_v47 }
 0xc01   :  { %5644 = vst.msk [vmem:[#allocation3 + $0x50] sm:$0xff] %vm5638_vm4, %v5601_v4 }
 0xc03   :  { %5034 = vrot.lane.b32.xlu0 %v5569_v20, %s7035_s16  ;;  %v10952_v20 = vpop.f32.mrf.mxu0 }
 0xc04   :  { %5614 = vrot.lane.b32.xlu1 %v5280_v34, %s7059_s25  ;;  %5131 = vrot.lane.b32.xlu2 %v10621_v50, %s7038_s12 }
 0xc05   :  { %v5409_v31 = vpop.permute.xlu0 %5408 }
 0xc06   :  { %v5021_v22 = vpop.permute.xlu1 %5020  ;;  %v5316_v62 = vpop.permute.xlu2 %5315 }
 0xc07   :  { %5063 = vst.msk [vmem:[#allocation3 + $0x60] sm:$0xff] %vm5056_vm9, %v5021_v22 }
 0xc08   :  { %v5697_v19 = vld [vmem:[#allocation3 + $0x50] sm:$0xff]  ;;  %5160 = vst.msk [vmem:[#allocation3 + $0x60] sm:$0xff] %vm11915_vm2, %v5118_v17  ;;  %vm11927_vm2 = vmmov %vm11923_vm5 }
 0xc09   :  { %5818 = vmatmul.f32.gmra.mxu3 %v5697_v19  ;;  %5257 = vst.msk [vmem:[#allocation3 + $0x60] sm:$0xff] %vm5250_vm14, %v5215_v54 }
 0xc0b   :  { %5325 = vrot.lane.b32.xlu0 %v5280_v34, %s7040_s14  ;;  %v5872_v28 = vpop.f32.mrf.mxu0 }
 0xc0c   :  { %5228 = vrot.lane.b32.xlu1 %v10655_v29, %s7039_s13  ;;  %5422 = vrot.lane.b32.xlu2 %v10625_v59, %s7060_s28 }
 0xc0d   :  { %v5023_v38 = vpop.permute.xlu0 %5022 }
 0xc0e   :  { %5064 = vst.msk [vmem:[#allocation3 + $0x70] sm:$0xff] %vm5056_vm9, %v5023_v38  ;;  %v5312_v52 = vpop.permute.xlu1 %5311  ;;  %v5607_v50 = vpop.permute.xlu2 %5606 }
 0xc0f   :  { %5161 = vst.msk [vmem:[#allocation3 + $0x70] sm:$0xff] %vm11914_vm7, %v5120_v45  ;;  %vm11926_vm7 = vmmov %vm11923_vm5 }
 0xc10   :  { %5354 = vst.msk [vmem:[#allocation3 + $0x60] sm:$0xff] %vm5347_vm10, %v5312_v52 }
 0xc11   :  { %5451 = vst.msk [vmem:[#allocation3 + $0x60] sm:$0xff] %vm5444_vm0, %v5409_v31 }
 0xc12   :  { %5548 = vst.msk [vmem:[#allocation3 + $0x60] sm:$0xff] %vm5541_vm6, %v5506_v9 }
 0xc13   :  { %5616 = vrot.lane.b32.xlu0 %v5571_v57, %s7059_s25  ;;  %v5875_v22 = vpop.f32.mrf.mxu0 }
 0xc14   :  { %5519 = vrot.lane.b32.xlu1 %v10661_v26, %s7058_s24  ;;  %5036 = vrot.lane.b32.xlu2 %v5280_v34, %s7035_s16 }
 0xc15   :  { %v5314_v35 = vpop.permute.xlu0 %5313 }
 0xc16   :  { %v5603_v29 = vpop.permute.xlu1 %5602  ;;  %v5221_v61 = vpop.permute.xlu2 %5220 }
 0xc17   :  { %5645 = vst.msk [vmem:[#allocation3 + $0x60] sm:$0xff] %vm5638_vm4, %v5603_v29 }
 0xc1b   :  { %5230 = vrot.lane.b32.xlu0 %v10661_v26, %s7039_s13 }
 0xc1c   :  { %5133 = vrot.lane.b32.xlu1 %v10625_v59, %s7038_s12  ;;  %5327 = vrot.lane.b32.xlu2 %v5571_v57, %s7040_s14 }
 0xc1d   :  { %v5219_v21 = vpop.permute.xlu0 %5218 }
 0xc1e   :  { %5259 = vst.msk [vmem:[#allocation3 + $0x80] sm:$0xff] %vm5250_vm14, %v5219_v21  ;;  %v5217_v44 = vpop.permute.xlu1 %5216  ;;  %v5699_v26 = vld [vmem:[#allocation3 + $0x60] sm:$0xff]  ;;  %v5512_v59 = vpop.permute.xlu2 %5511 }
 0xc1f   :  { %5356 = vst.msk [vmem:[#allocation3 + $0x80] sm:$0xff] %vm5347_vm10, %v5316_v62  ;;  %5821 = vmatmul.f32.gmra.mxu3 %v5699_v26 }
 0xc20   :  { %5258 = vst.msk [vmem:[#allocation3 + $0x70] sm:$0xff] %vm5250_vm14, %v5217_v44 }
 0xc21   :  { %5355 = vst.msk [vmem:[#allocation3 + $0x70] sm:$0xff] %vm5347_vm10, %v5314_v35  ;;  %v5878_v35 = vpop.f32.mrf.mxu0 }
 0xc22   :  { %5452 = vst.msk [vmem:[#allocation3 + $0x70] sm:$0xff] %vm5444_vm0, %v5411_v10 }
 0xc23   :  { %5521 = vrot.lane.b32.xlu0 %v5475_v51, %s7058_s24  ;;  %5549 = vst.msk [vmem:[#allocation3 + $0x70] sm:$0xff] %vm5541_vm6, %v9905_v5 }
 0xc24   :  { %5646 = vst.msk [vmem:[#allocation3 + $0x70] sm:$0xff] %vm5638_vm4, %v9910_v2  ;;  %5424 = vrot.lane.b32.xlu1 %v10639_v53, %s7060_s28  ;;  %5618 = vrot.lane.b32.xlu2 %v5572_v6, %s7059_s25 }
 0xc25   :  { %v5510_v1 = vpop.permute.xlu0 %5509 }
 0xc26   :  { %v5413_v40 = vpop.permute.xlu1 %5412  ;;  %v5126_v2 = vpop.permute.xlu2 %5125 }
 0xc27   :  { %5453 = vst.msk [vmem:[#allocation3 + $0x80] sm:$0xff] %vm5444_vm0, %v5413_v40 }
 0xc28   :  { %5550 = vst.msk [vmem:[#allocation3 + $0x80] sm:$0xff] %vm5541_vm6, %v5510_v1 }
 0xc29   :  { %5647 = vst.msk [vmem:[#allocation3 + $0x80] sm:$0xff] %vm5638_vm4, %v5607_v50  ;;  %v5881_v44 = vpop.f32.mrf.mxu0 }
 0xc2b   :  { %5135 = vrot.lane.b32.xlu0 %v10639_v53, %s7038_s12  ;;  %v5701_v5 = vld [vmem:[#allocation3 + $0x70] sm:$0xff]  ;;  %s11966_s12 = smov 14  }
 0xc2c   :  { %5824 = vmatmul.f32.gmra.mxu3 %v5701_v5  ;;  %5038 = vrot.lane.b32.xlu1 %v5571_v57, %s7035_s16  ;;  %v10976_v5 = vld [vmem:[%s11441_s7 + $0x9] ss:$0 sm:$0xff] }
 0xc2d   :  { %v5124_v30 = vpop.permute.xlu0 %5123  ;;  %5232 = vrot.lane.b32.xlu2 %v5475_v51, %s7039_s13  ;;  %s11969_s13 = smov 10  }
 0xc2e   :  { %v5027_v53 = vpop.permute.xlu1 %5026  ;;  %v5417_v3 = vpop.permute.xlu2 %5416 }
 0xc2f   :  { %5066 = vst.msk [vmem:[#allocation3 + $0x90] sm:$0xff] %vm5056_vm9, %v5027_v53 }
 0xc30   :  { %5163 = vst.msk [vmem:[#allocation3 + $0x90] sm:$0xff] %vm11916_vm13, %v5124_v30  ;;  %v5703_v42 = vld [vmem:[#allocation3 + $0x80] sm:$0xff]  ;;  %vm11928_vm13 = vmmov %vm11927_vm2 }
 0xc31   :  { %5260 = vst.msk [vmem:[#allocation3 + $0x90] sm:$0xff] %vm5250_vm14, %v5221_v61  ;;  %v5884_v30 = vpop.f32.mrf.mxu0 }
 0xc32   :  { %v5804_v45 = vpop.f32.mrf.mxu3 }
 0xc33   :  { %5426 = vrot.lane.b32.xlu0 %v10659_v37, %s7060_s28  ;;  %v5476_v37 = vld [vmem:[#allocation2 + $0x130] sm:$0xff] }
 0xc34   :  { %5827 = vmatmul.f32.gmra.mxu3 %v5703_v42  ;;  %5329 = vrot.lane.b32.xlu1 %v5572_v6, %s7040_s14  ;;  %s11974_s14 = smov 12  }
 0xc35   :  { %v5415_v27 = vpop.permute.xlu0 %5414  ;;  %5523 = vrot.lane.b32.xlu2 %v5476_v37, %s7058_s24 }
 0xc36   :  { %v5318_v12 = vpop.permute.xlu1 %5317  ;;  %v5031_v56 = vpop.permute.xlu2 %5030 }
 0xc37   :  { %5357 = vst.msk [vmem:[#allocation3 + $0x90] sm:$0xff] %vm5347_vm10, %v5318_v12 }
 0xc38   :  { %5454 = vst.msk [vmem:[#allocation3 + $0x90] sm:$0xff] %vm5444_vm0, %v5415_v27 }
 0xc39   :  { %5551 = vst.msk [vmem:[#allocation3 + $0x90] sm:$0xff] %vm5541_vm6, %v5512_v59 }
 0xc3a   :  { %5068 = vst.msk [vmem:[#allocation3 + $0xb0] sm:$0xff] %vm5056_vm9, %v5031_v56  ;;  %v5670_v56 = vld [vmem:[#allocation2 + $0x132] sm:$0xff] }
 0xc3b   :  { %5686 = vst.msk [vmem:[#allocation3 + $0xf8] sm:$0xff] %vm11923_vm5, %v5670_v56 }
 0xc3c   :  { %5620 = vrot.lane.b32.xlu1 %v5573_v41, %s7059_s25 }
 0xc3d   :  { %v5029_v48 = vpop.permute.xlu0 %5028 }
 0xc3e   :  { %5067 = vst.msk [vmem:[#allocation3 + $0xa0] sm:$0xff] %vm5056_vm9, %v5029_v48  ;;  %v5609_v16 = vpop.permute.xlu1 %5608  ;;  %v5322_v8 = vpop.permute.xlu2 %5321 }
 0xc3f   :  { %5164 = vst.msk [vmem:[#allocation3 + $0xa0] sm:$0xff] %vm11917_vm3, %v5126_v2  ;;  %vm11929_vm3 = vmmov %vm11927_vm2 }
 0xc40   :  { %5648 = vst.msk [vmem:[#allocation3 + $0x90] sm:$0xff] %vm5638_vm4, %v5609_v16 }
 0xc43   :  { %v5807_v10 = vpop.f32.mrf.mxu3 }
 0xc44   :  { %v5808_v2 = vadd.f32 %v10976_v5, %v5807_v10 }
 0xc45   :  { %v5320_v60 = vpop.permute.xlu0 %5319 }
 0xc46   :  { %v5223_v25 = vpop.permute.xlu1 %5222  ;;  %v5613_v14 = vpop.permute.xlu2 %5612  ;;  %v10983_v37 = vadd.f32 %v5872_v28, %v5808_v2 }
 0xc47   :  { %v5705_v36 = vld [vmem:[#allocation3 + $0x90] sm:$0xff]  ;;  %5261 = vst.msk [vmem:[#allocation3 + $0xa0] sm:$0xff] %vm5250_vm14, %v5223_v25 }
 0xc48   :  { %5830 = vmatmul.f32.gmra.mxu3 %v5705_v36  ;;  %5358 = vst.msk [vmem:[#allocation3 + $0xa0] sm:$0xff] %vm5347_vm10, %v5320_v60  ;;  %v5887_v36 = vpop.f32.mrf.mxu0 }
 0xc49   :  { %5455 = vst.msk [vmem:[#allocation3 + $0xa0] sm:$0xff] %vm5444_vm0, %v5417_v3  ;;  %v5805_v3 = vadd.f32 %v10976_v5, %v5804_v45 }
 0xc4b   :  { %v10988_v16 = vadd.f32 %v10952_v20, %v5805_v3 }
 0xc4d   :  { %v5611_v32 = vpop.permute.xlu0 %5610 }
 0xc4e   :  { %v5514_v49 = vpop.permute.xlu1 %5513  ;;  %v5227_v0 = vpop.permute.xlu2 %5226 }
 0xc4f   :  { %5552 = vst.msk [vmem:[#allocation3 + $0xa0] sm:$0xff] %vm5541_vm6, %v5514_v49 }
 0xc50   :  { %5649 = vst.msk [vmem:[#allocation3 + $0xa0] sm:$0xff] %vm5638_vm4, %v5611_v32  ;;  %v5890_v10 = vpop.f32.mrf.mxu0 }
 0xc54   :  { %v5810_v62 = vpop.f32.mrf.mxu3 }
 0xc55   :  { %v5225_v43 = vpop.permute.xlu0 %5224  ;;  %v5811_v12 = vadd.f32 %v10976_v5, %v5810_v62 }
 0xc56   :  { %v5128_v13 = vpop.permute.xlu1 %5127  ;;  %v5518_v4 = vpop.permute.xlu2 %5517 }
 0xc57   :  { %5165 = vst.msk [vmem:[#allocation3 + $0xb0] sm:$0xff] %vm11918_vm8, %v5128_v13  ;;  %v5707_v23 = vld [vmem:[#allocation3 + $0xa0] sm:$0xff]  ;;  %v10990_v60 = vadd.f32 %v5875_v22, %v5811_v12 }
 0xc58   :  { %5262 = vst.msk [vmem:[#allocation3 + $0xb0] sm:$0xff] %vm5250_vm14, %v5225_v43  ;;  %5833 = vmatmul.f32.gmra.mxu3 %v5707_v23 }
 0xc59   :  { %5359 = vst.msk [vmem:[#allocation3 + $0xb0] sm:$0xff] %vm5347_vm10, %v5322_v8 }
 0xc5d   :  { %v5516_v33 = vpop.permute.xlu0 %5515 }
 0xc5e   :  { %v5419_v63 = vpop.permute.xlu1 %5418  ;;  %v5132_v15 = vpop.permute.xlu2 %5131 }
 0xc5f   :  { %5456 = vst.msk [vmem:[#allocation3 + $0xb0] sm:$0xff] %vm5444_vm0, %v5419_v63 }
 0xc60   :  { %5553 = vst.msk [vmem:[#allocation3 + $0xb0] sm:$0xff] %vm5541_vm6, %v5516_v33  ;;  %v5920_v33 = vsel %vm11926_vm7, %v10990_v60, 0.0 }
 0xc61   :  { %5650 = vst.msk [vmem:[#allocation3 + $0xb0] sm:$0xff] %vm5638_vm4, %v5613_v14 }
 0xc65   :  { %v5130_v58 = vpop.permute.xlu0 %5129 }
 0xc66   :  { %v5033_v54 = vpop.permute.xlu1 %5032  ;;  %v5423_v9 = vpop.permute.xlu2 %5422 }
 0xc67   :  { %5069 = vst.msk [vmem:[#allocation3 + $0xc0] sm:$0xff] %vm5056_vm9, %v5033_v54 }
 0xc68   :  { %5166 = vst.msk [vmem:[#allocation3 + $0xc0] sm:$0xff] %vm11919_vm1, %v5130_v58  ;;  %v5709_v47 = vld [vmem:[#allocation3 + $0xb0] sm:$0xff] }
 0xc69   :  { %5263 = vst.msk [vmem:[#allocation3 + $0xc0] sm:$0xff] %vm5250_vm14, %v5227_v0  ;;  %5836 = vmatmul.f32.gmra.mxu3 %v5709_v47  ;;  %v5718_v47 = vld [vmem:[#allocation3 + $0xf8] sm:$0xff] }
 0xc6a   :  { %v5813_v21 = vpop.f32.mrf.mxu3  ;;  %6781 = vmatmul.msk.f32.gmra.mxu0 %vm11929_vm3, %v5718_v47 }
 0xc6b   :  { %v5814_v41 = vadd.f32 %v10976_v5, %v5813_v21 }
 0xc6d   :  { %v5421_v18 = vpop.permute.xlu0 %5420  ;;  %v10996_v14 = vadd.f32 %v5878_v35, %v5814_v41 }
 0xc6e   :  { %v5324_v11 = vpop.permute.xlu1 %5323  ;;  %v5037_v39 = vpop.permute.xlu2 %5036 }
 0xc6f   :  { %5360 = vst.msk [vmem:[#allocation3 + $0xc0] sm:$0xff] %vm5347_vm10, %v5324_v11 }
 0xc70   :  { %5457 = vst.msk [vmem:[#allocation3 + $0xc0] sm:$0xff] %vm5444_vm0, %v5421_v18 }
 0xc71   :  { %5554 = vst.msk [vmem:[#allocation3 + $0xc0] sm:$0xff] %vm5541_vm6, %v5518_v4 }
 0xc72   :  { %5071 = vst.msk [vmem:[#allocation3 + $0xe0] sm:$0xff] %vm5056_vm9, %v5037_v39 }
 0xc75   :  { %v5035_v17 = vpop.permute.xlu0 %5034 }
 0xc76   :  { %5070 = vst.msk [vmem:[#allocation3 + $0xd0] sm:$0xff] %vm5056_vm9, %v5035_v17  ;;  %v5615_v31 = vpop.permute.xlu1 %5614  ;;  %v5328_v29 = vpop.permute.xlu2 %5327 }
 0xc77   :  { %5167 = vst.msk [vmem:[#allocation3 + $0xd0] sm:$0xff] %vm11920_vm11, %v5132_v15  ;;  %v5922_v15 = vsel %vm11927_vm2, %v10996_v14, 0.0 }
 0xc78   :  { %5651 = vst.msk [vmem:[#allocation3 + $0xc0] sm:$0xff] %vm5638_vm4, %v5615_v31 }
 0xc7b   :  { %v5816_v1 = vpop.f32.mrf.mxu3 }
 0xc7c   :  { %v5817_v8 = vadd.f32 %v10976_v5, %v5816_v1 }
 0xc7d   :  { %v5326_v34 = vpop.permute.xlu0 %5325 }
 0xc7e   :  { %v5229_v38 = vpop.permute.xlu1 %5228  ;;  %v5619_v59 = vpop.permute.xlu2 %5618  ;;  %v11003_v23 = vadd.f32 %v5881_v44, %v5817_v8 }
 0xc7f   :  { %v5711_v19 = vld [vmem:[#allocation3 + $0xc0] sm:$0xff]  ;;  %5264 = vst.msk [vmem:[#allocation3 + $0xd0] sm:$0xff] %vm5250_vm14, %v5229_v38 }
 0xc80   :  { %5839 = vmatmul.f32.gmra.mxu3 %v5711_v19  ;;  %5361 = vst.msk [vmem:[#allocation3 + $0xd0] sm:$0xff] %vm5347_vm10, %v5326_v34  ;;  %v5924_v20 = vsel %vm11928_vm13, %v11003_v23, 0.0  ;;  %vm11944_vm13 = vcmask 1047556  }
 0xc81   :  { %5458 = vst.msk [vmem:[#allocation3 + $0xd0] sm:$0xff] %vm5444_vm0, %v5423_v9 }
 0xc85   :  { %v5617_v57 = vpop.permute.xlu0 %5616 }
 0xc86   :  { %v5520_v52 = vpop.permute.xlu1 %5519 }
 0xc87   :  { %5555 = vst.msk [vmem:[#allocation3 + $0xd0] sm:$0xff] %vm5541_vm6, %v5520_v52  ;;  %v5233_v27 = vpop.permute.xlu2 %5232 }
 0xc88   :  { %5652 = vst.msk [vmem:[#allocation3 + $0xd0] sm:$0xff] %vm5638_vm4, %v5617_v57 }
 0xc8c   :  { %v5819_v6 = vpop.f32.mrf.mxu3 }
 0xc8d   :  { %v5231_v50 = vpop.permute.xlu0 %5230  ;;  %v5820_v49 = vadd.f32 %v10976_v5, %v5819_v6 }
 0xc8e   :  { %v5134_v51 = vpop.permute.xlu1 %5133 }
 0xc8f   :  { %5168 = vst.msk [vmem:[#allocation3 + $0xe0] sm:$0xff] %vm11921_vm15, %v5134_v51  ;;  %v5713_v61 = vld [vmem:[#allocation3 + $0xd0] sm:$0xff]  ;;  %v5524_v0 = vpop.permute.xlu2 %5523  ;;  %v11010_v54 = vadd.f32 %v5884_v30, %v5820_v49 }
 0xc90   :  { %5265 = vst.msk [vmem:[#allocation3 + $0xe0] sm:$0xff] %vm5250_vm14, %v5231_v50  ;;  %5842 = vmatmul.f32.gmra.mxu3 %v5713_v61 }
 0xc91   :  { %5362 = vst.msk [vmem:[#allocation3 + $0xe0] sm:$0xff] %vm5347_vm10, %v5328_v29 }
 0xc95   :  { %v5522_v26 = vpop.permute.xlu0 %5521 }
 0xc96   :  { %v5425_v40 = vpop.permute.xlu1 %5424 }
 0xc97   :  { %5459 = vst.msk [vmem:[#allocation3 + $0xe0] sm:$0xff] %vm5444_vm0, %v5425_v40 }
 0xc98   :  { %5556 = vst.msk [vmem:[#allocation3 + $0xe0] sm:$0xff] %vm5541_vm6, %v5522_v26  ;;  %v5893_v26 = vpop.f32.mrf.mxu0 }
 0xc99   :  { %5653 = vst.msk [vmem:[#allocation3 + $0xe0] sm:$0xff] %vm5638_vm4, %v5619_v59 }
 0xc9d   :  { %v5136_v53 = vpop.permute.xlu0 %5135 }
 0xc9e   :  { %v5039_v42 = vpop.permute.xlu1 %5038 }
 0xc9f   :  { %5072 = vst.msk [vmem:[#allocation3 + $0xf0] sm:$0xff] %vm5056_vm9, %v5039_v42  ;;  %vm11924_vm9 = vmmov %vm11923_vm5 }
 0xca0   :  { %5169 = vst.msk [vmem:[#allocation3 + $0xf0] sm:$0xff] %vm11922_vm12, %v5136_v53  ;;  %v5715_v48 = vld [vmem:[#allocation3 + $0xe0] sm:$0xff]  ;;  %v5918_v32 = vsel %vm11924_vm9, %v10983_v37, 0.0  ;;  %v5896_v1 = vpop.f32.mrf.mxu0 }
 0xca1   :  { %5266 = vst.msk [vmem:[#allocation3 + $0xf0] sm:$0xff] %vm5250_vm14, %v5233_v27  ;;  %5845 = vmatmul.f32.gmra.mxu3 %v5715_v48  ;;  %vm11925_vm14 = vmmov %vm11923_vm5 }
 0xca2   :  { %v5822_v25 = vpop.f32.mrf.mxu3  ;;  %v5917_v13 = vsel %vm11925_vm14, %v10988_v16, 0.0  ;;  %vm11941_vm14 = vcmask 1041409  }
 0xca3   :  { %v5823_v63 = vadd.f32 %v10976_v5, %v5822_v25  ;;  %v5919_v58 = vadd.f32 %v5918_v32, %v5917_v13  ;;  %vm11942_vm7 = vmmov %vm11941_vm14 }
 0xca5   :  { %v5427_v4 = vpop.permute.xlu0 %5426  ;;  %v5921_v18 = vadd.f32 %v5920_v33, %v5919_v58  ;;  %v11015_v9 = vadd.f32 %v5887_v36, %v5823_v63 }
 0xca6   :  { %v5330_v43 = vpop.permute.xlu1 %5329 }
 0xca7   :  { %5363 = vst.msk [vmem:[#allocation3 + $0xf0] sm:$0xff] %vm5347_vm10, %v5330_v43  ;;  %v5923_v11 = vadd.f32 %v5922_v15, %v5921_v18  ;;  %vm11930_vm10 = vmmov %vm11927_vm2 }
 0xca8   :  { %5460 = vst.msk [vmem:[#allocation3 + $0xf0] sm:$0xff] %vm5444_vm0, %v5427_v4  ;;  %v5926_v17 = vsel %vm11930_vm10, %v11010_v54, 0.0  ;;  %vm11931_vm0 = vmmov %vm11927_vm2  ;;  %v5899_v30 = vpop.f32.mrf.mxu0 }
 0xca9   :  { %5557 = vst.msk [vmem:[#allocation3 + $0xf0] sm:$0xff] %vm5541_vm6, %v5524_v0  ;;  %v5925_v28 = vadd.f32 %v5924_v20, %v5923_v11  ;;  %v5928_v31 = vsel %vm11931_vm0, %v11015_v9, 0.0  ;;  %vm11932_vm6 = vmmov %vm11931_vm0 }
 0xcaa   :  { %vm11934_vm8 = vmmov %vm11931_vm0 }
 0xcab   :  { %v5927_v22 = vadd.f32 %v5926_v17, %v5925_v28  ;;  %vm11935_vm1 = vmmov %vm11931_vm0 }
 0xcac   :  { %vm11936_vm11 = vmmov %vm11931_vm0 }
 0xcad   :  { %v5929_v19 = vadd.f32 %v5928_v31, %v5927_v22  ;;  %vm11937_vm15 = vmmov %vm11931_vm0 }
 0xcae   :  { %v5621_v45 = vpop.permute.xlu1 %5620  ;;  %vm11938_vm12 = vmmov %vm11931_vm0 }
 0xcaf   :  { %v5825_v39 = vpop.f32.mrf.mxu3  ;;  %5654 = vst.msk [vmem:[#allocation3 + $0xf0] sm:$0xff] %vm5638_vm4, %v5621_v45  ;;  %vm11933_vm4 = vmmov %vm11931_vm0 }
 0xcb0   :  { %v5826_v34 = vadd.f32 %v10976_v5, %v5825_v39  ;;  %v5902_v2 = vpop.f32.mrf.mxu0  ;;  %vm11939_vm5 = vmmov %vm11931_vm0 }
 0xcb1   :  { %vm11940_vm9 = vmmov %vm11931_vm0 }
 0xcb2   :  { %v11024_v38 = vadd.f32 %v5890_v10, %v5826_v34  ;;  %vm11943_vm2 = vmmov %vm11942_vm7 }
 0xcb3   :  { %vm11945_vm3 = vmmov %vm11943_vm2 }
 0xcb4   :  { %v5930_v57 = vsel %vm11932_vm6, %v11024_v38, 0.0  ;;  %vm11946_vm10 = vmmov %vm11943_vm2 }
 0xcb5   :  { %v5931_v62 = vadd.f32 %v5930_v57, %v5929_v19  ;;  %vm11947_vm0 = vmmov %vm11944_vm13 }
 0xcb6   :  { %v5717_v35 = vld [vmem:[#allocation3 + $0xf0] sm:$0xff]  ;;  %vm11948_vm6 = vmmov %vm11943_vm2 }
 0xcb7   :  { %v5932_v52 = vrot.slane %v5931_v62, 4  ;;  %5848 = vmatmul.f32.gmra.mxu3 %v5717_v35  ;;  %v5828_v59 = vpop.f32.mrf.mxu3 }
 0xcb8   :  { %v5905_v27 = vpop.f32.mrf.mxu0  ;;  %v5829_v41 = vadd.f32 %v10976_v5, %v5828_v59 }
 0xcb9   :  { %v5933_v50 = vadd.f32 %v5932_v52, %v5931_v62 }
 0xcba   :  { %v11045_v36 = vadd.f32 %v5893_v26, %v5829_v41 }
 0xcbb   :  { %v5934_v29 = vrot.slane %v5933_v50, 2 }
 0xcbc   :  { %v5938_v63 = vsel %vm11934_vm8, %v11045_v36, 0.0  ;;  %vm11950_vm8 = vmmov %vm11943_vm2 }
 0xcbd   :  { %v5935_v21 = vadd.f32 %v5934_v29, %v5933_v50 }
 0xcbf   :  { %v5936_v51 = vrot.slane %v5935_v21, 1 }
 0xcc0   :  { %v5908_v3 = vpop.f32.mrf.mxu0 }
 0xcc1   :  { %v5937_v61 = vadd.f32 %v5936_v51, %v5935_v21 }
 0xcc3   :  { %v11029_v44 = vmul.f32 %v5937_v61, %v7985_v24 }
 0xcc5   :  { %5963 = vrot.lane.b32.xlu1 %v11029_v44, %s7043_s11  ;;  %5971 = vrot.lane.b32.xlu0 %v11029_v44, %s7044_s17 }
 0xcc8   :  { %v5911_v4 = vpop.f32.mrf.mxu0 }
 0xccb   :  { %v5831_v40 = vpop.f32.mrf.mxu3 }
 0xccc   :  { %v5832_v48 = vadd.f32 %v10976_v5, %v5831_v40 }
 0xccd   :  { %5967 = vrot.lane.b32.xlu0 %v11029_v44, %s7045_s29 }
 0xcce   :  { %v11042_v8 = vadd.f32 %v5896_v1, %v5832_v48 }
 0xcd0   :  { %v5939_v0 = vsel %vm11933_vm4, %v11042_v8, 0.0  ;;  %vm11949_vm4 = vmmov %vm11943_vm2 }
 0xcd1   :  { %v5940_v47 = vadd.f32 %v5939_v0, %v5938_v63 }
 0xcd5   :  { %5987 = vrot.lane.b32.xlu0 %v11029_v44, %s7046_s30 }
 0xcdb   :  { %v5834_v6 = vpop.f32.mrf.mxu3 }
 0xcdc   :  { %v5835_v56 = vadd.f32 %v10976_v5, %v5834_v6 }
 0xcde   :  { %v11047_v32 = vadd.f32 %v5899_v30, %v5835_v56 }
 0xce0   :  { %v5941_v58 = vsel %vm11935_vm1, %v11047_v32, 0.0  ;;  %vm11951_vm1 = vmmov %vm11947_vm0 }
 0xce1   :  { %v5942_v17 = vadd.f32 %v5941_v58, %v5940_v47 }
 0xce7   :  { %v5914_v22 = vpop.f32.mrf.mxu0 }
 0xcec   :  { %v5837_v53 = vpop.f32.mrf.mxu3 }
 0xced   :  { %v5838_v25 = vadd.f32 %v10976_v5, %v5837_v53 }
 0xcef   :  { %v11052_v13 = vadd.f32 %v5902_v2, %v5838_v25 }
 0xcf1   :  { %v5943_v20 = vsel %vm11936_vm11, %v11052_v13, 0.0  ;;  %vm11952_vm11 = vmmov %vm11947_vm0 }
 0xcf2   :  { %v5944_v39 = vadd.f32 %v5943_v20, %v5942_v17 }
 0xd03   :  { %v5840_v42 = vpop.f32.mrf.mxu3 }
 0xd04   :  { %v5841_v49 = vadd.f32 %v10976_v5, %v5840_v42 }
 0xd06   :  { %v11059_v15 = vadd.f32 %v5905_v27, %v5841_v49 }
 0xd08   :  { %v5945_v28 = vsel %vm11937_vm15, %v11059_v15, 0.0  ;;  %vm11953_vm15 = vmmov %vm11947_vm0 }
 0xd09   :  { %v5946_v34 = vadd.f32 %v5945_v28, %v5944_v39 }
 0xd13   :  { %v5843_v12 = vpop.f32.mrf.mxu3 }
 0xd14   :  { %v5844_v33 = vadd.f32 %v10976_v5, %v5843_v12 }
 0xd16   :  { %v11064_v11 = vadd.f32 %v5908_v3, %v5844_v33 }
 0xd18   :  { %v5947_v31 = vsel %vm11938_vm12, %v11064_v11, 0.0  ;;  %vm11954_vm12 = vmmov %vm11947_vm0 }
 0xd19   :  { %v5948_v62 = vadd.f32 %v5947_v31, %v5946_v34 }
 0xd24   :  { %v5846_v43 = vpop.f32.mrf.mxu3 }
 0xd25   :  { %v5847_v18 = vadd.f32 %v10976_v5, %v5846_v43 }
 0xd27   :  { %v11068_v45 = vadd.f32 %v5911_v4, %v5847_v18 }
 0xd29   :  { %v5949_v19 = vsel %vm11939_vm5, %v11068_v45, 0.0  ;;  %vm11955_vm5 = vmmov %vm11947_vm0 }
 0xd2a   :  { %v5950_v35 = vadd.f32 %v5949_v19, %v5948_v62 }
 0xd37   :  { %v5964_v53 = vpop.permute.xlu1 %5963 }
 0xd3a   :  { %v5849_v10 = vpop.f32.mrf.mxu3 }
 0xd3b   :  { %v5850_v57 = vadd.f32 %v10976_v5, %v5849_v10  ;;  %v5972_v5 = vpop.permute.xlu0 %5971 }
 0xd3d   :  { %v11075_v52 = vadd.f32 %v5914_v22, %v5850_v57 }
 0xd3f   :  { %v5951_v50 = vsel %vm11940_vm9, %v11075_v52, 0.0  ;;  %vm11956_vm9 = vcmask 15360  }
 0xd40   :  { %v5952_v29 = vadd.f32 %v5951_v50, %v5950_v35 }
 0xd42   :  { %v5953_v21 = vrot.slane %v5952_v29, 4 }
 0xd43   :  { %v5968_v6 = vpop.permute.xlu0 %5967 }
 0xd44   :  { %v5954_v51 = vadd.f32 %v5953_v21, %v5952_v29 }
 0xd46   :  { %v5955_v61 = vrot.slane %v5954_v51, 2 }
 0xd48   :  { %v5956_v26 = vadd.f32 %v5955_v61, %v5954_v51 }
 0xd4a   :  { %v5957_v1 = vrot.slane %v5956_v26, 1 }
 0xd4b   :  { %v5988_v27 = vpop.permute.xlu0 %5987 }
 0xd4c   :  { %v5958_v59 = vadd.f32 %v5957_v1, %v5956_v26 }
 0xd4e   :  { %v5960_v40 = vmul.f32 %v5958_v59, %v7985_v24 }
 0xd50   :  { %5969 = vrot.lane.b32.xlu1 %v5960_v40, %s7045_s29  ;;  %5965 = vrot.lane.b32.xlu2 %v5960_v40, %s7043_s11  ;;  %v5991_v4 = vrot.slane %v5960_v40, 7 }
 0xd51   :  { %5973 = vrot.lane.b32.xlu0 %v5960_v40, %s7044_s17 }
 0xd52   :  { %v5992_v39 = vsel %vm11945_vm3, %v5991_v4, %v11029_v44  ;;  %vm11961_vm3 = vmmov %vm11947_vm0 }
 0xd58   :  { %5985 = vrot.lane.b32.xlu1 %v5960_v40, %s7047_s18  ;;  %5989 = vrot.lane.b32.xlu2 %v5960_v40, %s7046_s30 }
 0xd59   :  { %5983 = vrot.lane.b32.xlu0 %v11029_v44, %s7047_s18 }
 0xd60   :  { %5979 = vrot.lane.b32.xlu1 %v11029_v44, %s7048_s19  ;;  %5981 = vrot.lane.b32.xlu2 %v5960_v40, %s7048_s19 }
 0xd68   :  { %5977 = vrot.lane.b32.xlu2 %v5960_v40, %s7032_s9 }
 0xd70   :  { %5975 = vrot.lane.b32.xlu2 %v11029_v44, %s7032_s9 }
 0xdaa   :  { %v5966_v30 = vpop.permute.xlu2 %5965 }
 0xdab   :  { %v5993_v41 = vrot.slane %v5966_v30, 7 }
 0xdad   :  { %v5994_v33 = vsel %vm11943_vm2, %v5993_v41, %v5964_v53  ;;  %vm11959_vm2 = vmmov %vm11947_vm0 }
 0xdb2   :  { %v5990_v2 = vpop.permute.xlu2 %5989 }
 0xdb3   :  { %v6005_v47 = vrot.slane %v5990_v2, 7 }
 0xdb5   :  { %v6006_v10 = vsel %vm11948_vm6, %v6005_v47, %v5988_v27  ;;  %vm11963_vm6 = vmmov %vm11947_vm0 }
 0xdb6   :  { %v6033_v29 = vrot.slane %v6006_v10, 4 }
 0xdba   :  { %v5982_v42 = vpop.permute.xlu2 %5981 }
 0xdbb   :  { %v6001_v62 = vrot.slane %v5982_v42, 7 }
 0xdc2   :  { %v5970_v3 = vpop.permute.xlu1 %5969  ;;  %v5978_v25 = vpop.permute.xlu2 %5977 }
 0xdc3   :  { %v5995_v12 = vrot.slane %v5970_v3, 7  ;;  %v5974_v48 = vpop.permute.xlu0 %5973  ;;  %v5999_v50 = vrot.slane %v5978_v25, 7 }
 0xdc4   :  { %v5997_v56 = vrot.slane %v5974_v48, 7 }
 0xdc5   :  { %v5996_v43 = vsel %vm11942_vm7, %v5995_v12, %v5968_v6  ;;  %vm11958_vm7 = vmmov %vm11956_vm9 }
 0xdc6   :  { %v5998_v49 = vsel %vm11941_vm14, %v5997_v56, %v5972_v5  ;;  %v6015_v58 = vrot.slane %v5996_v43, 4  ;;  %vm11957_vm14 = vmmov %vm11947_vm0 }
 0xdc7   :  { %v6021_v0 = vrot.slane %v5998_v49, 4 }
 0xdc8   :  { %v6016_v34 = vsel %vm11947_vm0, %v6015_v58, %v5992_v39 }
 0xdc9   :  { %v6022_v63 = vsel %vm11944_vm13, %v6021_v0, %v5994_v33  ;;  %v6020_v35 = vperm.slane %v6016_v34, %v9693_v7  ;;  %vm11960_vm13 = vmmov %vm11947_vm0 }
 0xdca   :  { %v5986_v18 = vpop.permute.xlu1 %5985  ;;  %v6026_v20 = vperm.slane %v6022_v63, %v9693_v7  ;;  %v5976_v19 = vpop.permute.xlu2 %5975 }
 0xdcb   :  { %v6003_v17 = vrot.slane %v5986_v18, 7  ;;  %v5984_v28 = vpop.permute.xlu0 %5983  ;;  %v6000_v51 = vsel %vm11949_vm4, %v5999_v50, %v5976_v19  ;;  %vm11964_vm4 = vmmov %vm11947_vm0 }
 0xdcc   :  { %v6039_v22 = vrot.slane %v6026_v20, 4 }
 0xdcd   :  { %v6004_v31 = vsel %vm11946_vm10, %v6003_v17, %v5984_v28  ;;  %vm11962_vm10 = vmmov %vm11947_vm0 }
 0xdce   :  { %v6027_v57 = vrot.slane %v6004_v31, 4  ;;  %v6040_v44 = vsel %vm11951_vm1, %v6039_v22, %v6020_v35  ;;  %vm11967_vm1 = vmmov %vm11947_vm0 }
 0xdcf   :  { %v6044_v40 = vperm.slane %v6040_v44, %v9705_v46 }
 0xdd0   :  { %v6028_v26 = vsel %vm11952_vm11, %v6027_v57, %v6000_v51  ;;  %vm11968_vm11 = vmmov %vm11947_vm0 }
 0xdd1   :  { %v6032_v5 = vperm.slane %v6028_v26, %v9693_v7  ;;  %v6053_v53 = vrot.slane %v6044_v40, 4 }
 0xdd2   :  { %v5980_v21 = vpop.permute.xlu1 %5979 }
 0xdd3   :  { %v6002_v61 = vsel %vm11950_vm8, %v6001_v62, %v5980_v21  ;;  %vm11965_vm8 = vmmov %vm11947_vm0 }
 0xdd4   :  { %v6034_v1 = vsel %vm11953_vm15, %v6033_v29, %v6002_v61  ;;  %vm11970_vm15 = vmmov %vm11947_vm0 }
 0xdd5   :  { %v6038_v59 = vperm.slane %v6034_v1, %v9693_v7 }
 0xdd7   :  { %v6045_v30 = vrot.slane %v6038_v59, 4 }
 0xdd9   :  { %v6046_v6 = vsel %vm11954_vm12, %v6045_v30, %v6032_v5  ;;  %vm11971_vm12 = vmmov %vm11947_vm0 }
 0xdda   :  { %v6050_v2 = vperm.slane %v6046_v6, %v9705_v46 }
 0xddc   :  { %v6054_v27 = vsel %vm11955_vm5, %v6050_v2, %v6053_v53  ;;  %v6051_v42 = vrot.slane %v6050_v2, 4  ;;  %vm11972_vm5 = vmmov %vm11947_vm0 }
 0xddd   :  { %v6058_v3 = vsel %vm11956_vm9, %v6054_v27, 0.0  ;;  %vm11973_vm9 = vmmov %vm11947_vm0 }
 0xdde   :  { %6059 = vadd.xlane.f32.xlu1 %v6058_v3  ;;  %v6052_v12 = vsel %vm11957_vm14, %v6051_v42, %v6044_v40  ;;  %vm11975_vm14 = vmmov %vm11958_vm7 }
 0xddf   :  { %v6055_v48 = vsel %vm11958_vm7, %v6052_v12, 0.0  ;;  %vm11976_vm7 = vcmask 31744  }
 0xde0   :  { %6056 = vadd.xlane.f32.xlu0 %v6055_v48 }
 0xe51   :  { %v6060_v41 = vpop.xlane.xlu1 %6059 }
 0xe52   :  { %v6062_v56 = vmul.f32 %v6060_v41, %v9719_v55 }
 0xe53   :  { %v6057_v25 = vpop.xlane.xlu0 %6056 }
 0xe54   :  { %v6101_v49 = vrot.slane %v6062_v56, 4  ;;  %v6106_v43 = vperm.slane %v6062_v56, %v9693_v7  ;;  %v6061_v0 = vmul.f32 %v6057_v25, %v9719_v55 }
 0xe56   :  { %v6102_v33 = vsel %vm11959_vm2, 0.0, %v6101_v49  ;;  %v6116_v4 = vperm.slane %v6106_v43, %v9705_v46  ;;  %v6063_v63 = vrot.slane %v6061_v0, 4  ;;  %v6068_v18 = vperm.slane %v6061_v0, %v9693_v7 }
 0xe57   :  { %v6110_v58 = vperm.slane %v6102_v33, %v9693_v7  ;;  %v6111_v39 = vrot.slane %v6106_v43, 4  ;;  %vm11977_vm2 = vcmask 48128  }
 0xe58   :  { %v6131_v47 = vrot.slane %v6116_v4, 4  ;;  %v6064_v17 = vsel %vm11960_vm13, 0.0, %v6063_v63  ;;  %v6073_v28 = vrot.slane %v6068_v18, 4  ;;  %v6078_v26 = vperm.slane %v6068_v18, %v9705_v46 }
 0xe59   :  { %v6121_v20 = vrot.slane %v6110_v58, 4  ;;  %v6126_v34 = vperm.slane %v6110_v58, %v9705_v46  ;;  %v6072_v19 = vperm.slane %v6064_v17, %v9693_v7  ;;  %v6112_v35 = vsel %vm11963_vm6, 0.0, %v6111_v39  ;;  %vm11982_vm6 = vmmov %vm11975_vm14 }
 0xe5a   :  { %v6132_v31 = vsel %vm11961_vm3, 0.0, %v6131_v47  ;;  %v6074_v10 = vsel %vm11962_vm10, 0.0, %v6073_v28  ;;  %v6120_v44 = vperm.slane %v6112_v35, %v9705_v46  ;;  %v6093_v5 = vrot.slane %v6078_v26, 4 }
 0xe5b   :  { %6143 = vrot.lane.b32.xlu2 %v6132_v31, %s7052_s2  ;;  %v6122_v22 = vsel %vm11947_vm0, 0.0, %v6121_v20  ;;  %6167 = vrot.lane.b32.xlu1 %v6126_v34, %s7034_s15  ;;  %v6082_v57 = vperm.slane %v6074_v10, %v9705_v46  ;;  %v6088_v51 = vperm.slane %v6072_v19, %v9705_v46  ;;  %v6083_v61 = vrot.slane %v6072_v19, 4 }
 0xe5c   :  { %v6130_v62 = vperm.slane %v6122_v22, %v9705_v46  ;;  %v6094_v2 = vsel %vm11970_vm15, 0.0, %v6093_v5  ;;  %v6133_v42 = vrot.slane %v6120_v44, 4  ;;  %v6135_v12 = vrot.slane %v6126_v34, 4 }
 0xe5d   :  { %v6095_v50 = vrot.slane %v6082_v57, 4  ;;  %v6097_v59 = vrot.slane %v6088_v51, 4  ;;  %v6084_v40 = vsel %vm11967_vm1, 0.0, %v6083_v61  ;;  %vm11978_vm13 = vcmask 64512  }
 0xe5e   :  { %v6137_v29 = vrot.slane %v6130_v62, 4  ;;  %v6092_v6 = vperm.slane %v6084_v40, %v9705_v46  ;;  %v6134_v3 = vsel %vm11972_vm5, 0.0, %v6133_v42  ;;  %v6136_v48 = vsel %vm11973_vm9, 0.0, %v6135_v12  ;;  %vm11985_vm1 = vmmov %vm11978_vm13 }
 0xe5f   :  { %v6096_v21 = vsel %vm11964_vm4, 0.0, %v6095_v50  ;;  %v6098_v30 = vsel %vm11968_vm11, 0.0, %v6097_v59  ;;  %vm11979_vm3 = vcmask 80896   ;;  %vm11980_vm10 = vcmask 97280   ;;  %vm11983_vm4 = vmmov %vm11976_vm7 }
 0xe60   :  { %6157 = vrot.lane.b32.xlu0 %v6096_v21, %s7053_s20  ;;  %v6138_v1 = vsel %vm11965_vm8, 0.0, %v6137_v29  ;;  %v6099_v53 = vrot.slane %v6092_v6, 4  ;;  %vm11981_vm0 = vcmask 113664   ;;  %vm11984_vm8 = vmmov %vm11977_vm2  ;;  %vm11986_vm11 = vcmask 130048  }
 0xe61   :  { %vm11987_vm15 = vmmov %vm11986_vm11 }
 0xe62   :  { %v6100_v27 = vsel %vm11971_vm12, 0.0, %v6099_v53  ;;  %vm11988_vm12 = vmmov %vm11979_vm3 }
 0xe63   :  { %6151 = vrot.lane.b32.xlu2 %v6120_v44, %s7054_s21  ;;  %6191 = vrot.lane.b32.xlu1 %v6138_v1, %s11966_s12  ;;  %vm11989_vm5 = vmmov %vm11986_vm11 }
 0xe64   :  { %vm11990_vm9 = vmmov %vm11980_vm10 }
 0xe68   :  { %6173 = vrot.lane.b32.xlu0 %v6098_v30, %s11969_s13 }
 0xe6b   :  { %6141 = vrot.lane.b32.xlu2 %v6094_v2, %s7052_s2 }
 0xe70   :  { %6189 = vrot.lane.b32.xlu0 %v6100_v27, %s11966_s12 }
 0xe73   :  { %6149 = vrot.lane.b32.xlu2 %v6082_v57, %s7054_s21 }
 0xe7b   :  { %6165 = vrot.lane.b32.xlu2 %v6088_v51, %s7034_s15 }
 0xe83   :  { %6159 = vrot.lane.b32.xlu2 %v6134_v3, %s7053_s20 }
 0xe8b   :  { %6175 = vrot.lane.b32.xlu2 %v6136_v48, %s11969_s13 }
 0xe93   :  { %6183 = vrot.lane.b32.xlu2 %v6130_v62, %s11974_s14 }
 0xe9b   :  { %6181 = vrot.lane.b32.xlu2 %v6092_v6, %s11974_s14 }
 0xeb5   :  { %v6144_v41 = vpop.permute.xlu2 %6143 }
 0xeb6   :  { %v6196_v18 = vsel %vm11975_vm14, %v6116_v4, %v6144_v41  ;;  %vm11991_vm14 = vmmov %vm11981_vm0 }
 0xebd   :  { %v6152_v56 = vpop.permute.xlu2 %6151 }
 0xebe   :  { %v6198_v47 = vsel %vm11976_vm7, %v6196_v18, %v6152_v56  ;;  %vm11992_vm7 = vmmov %vm11989_vm5 }
 0xec5   :  { %v6142_v25 = vpop.permute.xlu2 %6141 }
 0xec6   :  { %v6195_v50 = vsel %vm11982_vm6, %v6078_v26, %v6142_v25 }
 0xecd   :  { %v6150_v49 = vpop.permute.xlu2 %6149  ;;  %v6168_v33 = vpop.permute.xlu1 %6167 }
 0xece   :  { %v6197_v21 = vsel %vm11983_vm4, %v6195_v50, %v6150_v49 }
 0xed2   :  { %v6158_v63 = vpop.permute.xlu0 %6157 }
 0xed3   :  { %v6199_v51 = vsel %vm11984_vm8, %v6197_v21, %v6158_v63 }
 0xed5   :  { %v6166_v43 = vpop.permute.xlu2 %6165  ;;  %v6192_v31 = vpop.permute.xlu1 %6191 }
 0xeda   :  { %v6174_v34 = vpop.permute.xlu0 %6173 }
 0xedd   :  { %v6160_v0 = vpop.permute.xlu2 %6159 }
 0xede   :  { %v6200_v20 = vsel %vm11977_vm2, %v6198_v47, %v6160_v0  ;;  %vm11993_vm2 = vmmov %vm11989_vm5 }
 0xedf   :  { %v6202_v17 = vsel %vm11978_vm13, %v6200_v20, %v6168_v33  ;;  %vm11994_vm13 = vmmov %vm11993_vm2 }
 0xee2   :  { %v6190_v30 = vpop.permute.xlu0 %6189 }
 0xee5   :  { %v6176_v58 = vpop.permute.xlu2 %6175 }
 0xee6   :  { %v6204_v28 = vsel %vm11979_vm3, %v6202_v17, %v6176_v58  ;;  %vm11995_vm3 = vmmov %vm11993_vm2 }
 0xeed   :  { %v6184_v39 = vpop.permute.xlu2 %6183 }
 0xeee   :  { %v6206_v10 = vsel %vm11980_vm10, %v6204_v28, %v6184_v39  ;;  %vm11996_vm10 = vmmov %vm11993_vm2 }
 0xeef   :  { %v6208_v22 = vsel %vm11981_vm0, %v6206_v10, %v6192_v31  ;;  %vm11997_vm0 = vmmov %vm11993_vm2 }
 0xef0   :  { %v6210_v19 = vperm.slane %v6208_v22, 0  ;;  %vm11998_vm6 = vmmov %vm11997_vm0 }
 0xef1   :  { %vm11999_vm4 = vmmov %vm11997_vm0 }
 0xef2   :  { %v11168_v57 = vsub.f32 %v11045_v36, %v6210_v19  ;;  %v11171_v4 = vsub.f32 %v11042_v8, %v6210_v19  ;;  %v11174_v62 = vsub.f32 %v11047_v32, %v6210_v19  ;;  %v11177_v35 = vsub.f32 %v11052_v13, %v6210_v19  ;;  %vm12000_vm8 = vmmov %vm11997_vm0 }
 0xef3   :  { %v11181_v29 = vsub.f32 %v11059_v15, %v6210_v19  ;;  %v11192_v13 = vsub.f32 %v11064_v11, %v6210_v19  ;;  %v6201_v15 = vsel %vm11985_vm1, %v6199_v51, %v6166_v43  ;;  %v11201_v40 = vsub.f32 %v11068_v45, %v6210_v19  ;;  %vm12001_vm1 = vmmov %vm11997_vm0 }
 0xef4   :  { %v6235_v36 = vmul.f32 %v11168_v57, %v11168_v57  ;;  %v6236_v8 = vmul.f32 %v11171_v4, %v11171_v4  ;;  %v6237_v32 = vmul.f32 %v11174_v62, %v11174_v62  ;;  %v6238_v44 = vmul.f32 %v11177_v35, %v11177_v35 }
 0xef5   :  { %v6182_v61 = vpop.permute.xlu2 %6181  ;;  %v6203_v59 = vsel %vm11988_vm12, %v6201_v15, %v6174_v34  ;;  %v6239_v5 = vmul.f32 %v11181_v29, %v11181_v29  ;;  %v11208_v53 = vsub.f32 %v11075_v52, %v6210_v19  ;;  %v6240_v27 = vmul.f32 %v11192_v13, %v11192_v13  ;;  %vm12004_vm12 = vmmov %vm11997_vm0 }
 0xef6   :  { %v6264_v26 = vsel %vm11986_vm11, %v6235_v36, 0.0  ;;  %v6265_v1 = vsel %vm11987_vm15, %v6236_v8, 0.0  ;;  %v6267_v6 = vsel %vm11989_vm5, %v6237_v32, 0.0  ;;  %v6205_v2 = vsel %vm11990_vm9, %v6203_v59, %v6182_v61  ;;  %vm12002_vm11 = vmmov %vm11997_vm0 }
 0xef7   :  { %v6266_v11 = vadd.f32 %v6265_v1, %v6264_v26  ;;  %v6207_v3 = vsel %vm11991_vm14, %v6205_v2, %v6190_v30  ;;  %v6269_v45 = vsel %vm11992_vm7, %v6238_v44, 0.0  ;;  %v6241_v48 = vmul.f32 %v11201_v40, %v11201_v40  ;;  %vm12003_vm15 = vmmov %vm11997_vm0 }
 0xef8   :  { %v6209_v12 = vperm.slane %v6207_v3, 0  ;;  %v6271_v56 = vsel %vm11993_vm2, %v6239_v5, 0.0  ;;  %v6242_v0 = vmul.f32 %v11208_v53, %v11208_v53  ;;  %v6273_v63 = vsel %vm11994_vm13, %v6240_v27, 0.0 }
 0xef9   :  { %v6268_v42 = vadd.f32 %v6267_v6, %v6266_v11  ;;  %v6275_v18 = vsel %vm11995_vm3, %v6241_v48, 0.0  ;;  %vm12005_vm5 = vcmask 1041409   ;;  %vm12008_vm7 = vcmask 1047556  }
 0xefa   :  { %v11218_v25 = vsub.f32 %v10988_v16, %v6209_v12  ;;  %v11221_v52 = vsub.f32 %v10983_v37, %v6209_v12  ;;  %v11224_v49 = vsub.f32 %v10990_v60, %v6209_v12  ;;  %v11227_v43 = vsub.f32 %v10996_v14, %v6209_v12  ;;  %vm12006_vm9 = vmmov %vm12005_vm5 }
 0xefb   :  { %v6270_v41 = vadd.f32 %v6269_v45, %v6268_v42  ;;  %v11233_v58 = vsub.f32 %v11003_v23, %v6209_v12  ;;  %v11243_v47 = vsub.f32 %v11010_v54, %v6209_v12  ;;  %v6277_v31 = vsel %vm11998_vm6, %v6242_v0, 0.0  ;;  %vm12007_vm14 = vmmov %vm12005_vm5 }
 0xefc   :  { %v6227_v16 = vmul.f32 %v11218_v25, %v11218_v25  ;;  %v6228_v37 = vmul.f32 %v11221_v52, %v11221_v52  ;;  %v6229_v60 = vmul.f32 %v11224_v49, %v11224_v49  ;;  %v6230_v20 = vmul.f32 %v11227_v43, %v11227_v43  ;;  %vm12009_vm2 = vmmov %vm12005_vm5 }
 0xefd   :  { %v6272_v33 = vadd.f32 %v6271_v56, %v6270_v41  ;;  %v11251_v34 = vsub.f32 %v11015_v9, %v6209_v12  ;;  %v6231_v10 = vmul.f32 %v11233_v58, %v11233_v58  ;;  %v11257_v50 = vsub.f32 %v11024_v38, %v6209_v12  ;;  %vm12010_vm13 = vmmov %vm12009_vm2 }
 0xefe   :  { %v6243_v23 = vsel %vm11996_vm10, %v6227_v16, 0.0  ;;  %v6244_v17 = vsel %vm11997_vm0, %v6228_v37, 0.0  ;;  %v6246_v54 = vsel %vm11999_vm4, %v6229_v60, 0.0  ;;  %v6232_v21 = vmul.f32 %v11243_v47, %v11243_v47  ;;  %vm12011_vm3 = vmmov %vm12009_vm2 }
 0xeff   :  { %v6274_v14 = vadd.f32 %v6273_v63, %v6272_v33  ;;  %v6245_v39 = vadd.f32 %v6244_v17, %v6243_v23  ;;  %v6248_v36 = vsel %vm12000_vm8, %v6230_v20, 0.0  ;;  %v6233_v9 = vmul.f32 %v11251_v34, %v11251_v34  ;;  %v6635_v23 = vld [vmem:[%s11440_s6 + $0x18] sm:$0xff]  ;;  %v6634_v17 = vld [vmem:[%s11440_s6 + $0x10] sm:$0xff]  ;;  %vm12012_vm10 = vmmov %vm12008_vm7 }
 0xf00   :  { %v6250_v51 = vsel %vm12001_vm1, %v6231_v10, 0.0  ;;  %v6234_v44 = vmul.f32 %v11257_v50, %v11257_v50  ;;  %v6252_v38 = vsel %vm12002_vm11, %v6232_v21, 0.0  ;;  %6654 = vmatpush.msra.mxu1 %v6635_v23  ;;  %vm12013_vm0 = vmmov %vm12008_vm7 }
 0xf01   :  { %v6276_v28 = vadd.f32 %v6275_v18, %v6274_v14  ;;  %v6247_v22 = vadd.f32 %v6246_v54, %v6245_v39  ;;  %v6254_v59 = vsel %vm12003_vm15, %v6233_v9, 0.0  ;;  %vm12014_vm6 = vmmov %vm12009_vm2 }
 0xf02   :  { %v6256_v30 = vsel %vm12004_vm12, %v6234_v44, 0.0  ;;  %6655 = vmatpush.msra.mxu1 %v6634_v17  ;;  %vm12015_vm4 = vmmov %vm12013_vm0  ;;  %vm12020_vm12 = vcmask 15360  }
 0xf03   :  { %v6278_v19 = vadd.f32 %v6277_v31, %v6276_v28  ;;  %v6249_v8 = vadd.f32 %v6248_v36, %v6247_v22  ;;  %v6633_v31 = vld [vmem:[%s11440_s6 + $0x8] sm:$0xff]  ;;  %vm12016_vm8 = vmmov %vm12009_vm2 }
 0xf04   :  { %6656 = vmatpush.msra.mxu1 %v6633_v31  ;;  %vm12017_vm1 = vmmov %vm12013_vm0 }
 0xf05   :  { %v6279_v32 = vrot.slane %v6278_v19, 4  ;;  %v6251_v61 = vadd.f32 %v6250_v51, %v6249_v8  ;;  %vm12018_vm11 = vmmov %vm12013_vm0 }
 0xf06   :  { %vm12019_vm15 = vmmov %vm12013_vm0 }
 0xf07   :  { %v6280_v15 = vadd.f32 %v6279_v32, %v6278_v19  ;;  %v6253_v26 = vadd.f32 %v6252_v38, %v6251_v61 }
 0xf09   :  { %v6281_v1 = vrot.slane %v6280_v15, 2  ;;  %v6255_v5 = vadd.f32 %v6254_v59, %v6253_v26 }
 0xf0b   :  { %v6282_v11 = vadd.f32 %v6281_v1, %v6280_v15  ;;  %v6257_v2 = vadd.f32 %v6256_v30, %v6255_v5 }
 0xf0d   :  { %v6283_v6 = vrot.slane %v6282_v11, 1  ;;  %v6258_v42 = vrot.slane %v6257_v2, 4 }
 0xf0f   :  { %v6284_v27 = vadd.f32 %v6283_v6, %v6282_v11  ;;  %v6259_v45 = vadd.f32 %v6258_v42, %v6257_v2 }
 0xf11   :  { %v6286_v3 = vmul.f32 %v6284_v27, %v7985_v24  ;;  %v6260_v12 = vrot.slane %v6259_v45, 2 }
 0xf13   :  { %6299 = vrot.lane.b32.xlu1 %v6286_v3, %s7044_s17  ;;  %6315 = vrot.lane.b32.xlu2 %v6286_v3, %s7046_s30  ;;  %v6261_v48 = vadd.f32 %v6260_v12, %v6259_v45  ;;  %v6317_v33 = vrot.slane %v6286_v3, 7 }
 0xf14   :  { %6291 = vrot.lane.b32.xlu0 %v6286_v3, %s7043_s11 }
 0xf15   :  { %v6262_v41 = vrot.slane %v6261_v48, 1 }
 0xf17   :  { %v6263_v56 = vadd.f32 %v6262_v41, %v6261_v48 }
 0xf19   :  { %v6285_v0 = vmul.f32 %v6263_v56, %v7985_v24 }
 0xf1b   :  { %6295 = vrot.lane.b32.xlu1 %v6286_v3, %s7045_s29  ;;  %6297 = vrot.lane.b32.xlu2 %v6285_v0, %s7044_s17  ;;  %v6318_v63 = vsel %vm12005_vm5, %v6317_v33, %v6285_v0  ;;  %vm12021_vm5 = vmmov %vm12013_vm0 }
 0xf1c   :  { %6307 = vrot.lane.b32.xlu0 %v6286_v3, %s7048_s19 }
 0xf23   :  { %6311 = vrot.lane.b32.xlu1 %v6286_v3, %s7047_s18  ;;  %6313 = vrot.lane.b32.xlu2 %v6285_v0, %s7046_s30 }
 0xf24   :  { %6289 = vrot.lane.b32.xlu0 %v6285_v0, %s7043_s11 }
 0xf2b   :  { %6293 = vrot.lane.b32.xlu1 %v6285_v0, %s7045_s29  ;;  %6303 = vrot.lane.b32.xlu2 %v6286_v3, %s7032_s9 }
 0xf2c   :  { %6305 = vrot.lane.b32.xlu0 %v6285_v0, %s7048_s19 }
 0xf33   :  { %6309 = vrot.lane.b32.xlu1 %v6285_v0, %s7047_s18  ;;  %6301 = vrot.lane.b32.xlu2 %v6285_v0, %s7032_s9 }
 0xf6d   :  { %v6316_v24 = vpop.permute.xlu2 %6315 }
 0xf6e   :  { %v6331_v8 = vrot.slane %v6316_v24, 7 }
 0xf75   :  { %v6298_v60 = vpop.permute.xlu2 %6297 }
 0xf7d   :  { %v6314_v20 = vpop.permute.xlu2 %6313 }
 0xf7e   :  { %v6332_v61 = vsel %vm12009_vm2, %v6331_v8, %v6314_v20  ;;  %vm12025_vm2 = vmmov %vm12013_vm0 }
 0xf7f   :  { %v6359_v5 = vrot.slane %v6332_v61, 4 }
 0xf85   :  { %v6300_v16 = vpop.permute.xlu1 %6299  ;;  %v6304_v36 = vpop.permute.xlu2 %6303 }
 0xf86   :  { %v6292_v37 = vpop.permute.xlu0 %6291  ;;  %v6323_v28 = vrot.slane %v6300_v16, 7  ;;  %v6325_v45 = vrot.slane %v6304_v36, 7 }
 0xf87   :  { %v6319_v22 = vrot.slane %v6292_v37, 7 }
 0xf88   :  { %v6324_v54 = vsel %vm12006_vm9, %v6323_v28, %v6298_v60  ;;  %vm12022_vm9 = vmmov %vm12020_vm12 }
 0xf89   :  { %v6347_v21 = vrot.slane %v6324_v54, 4 }
 0xf8d   :  { %v6296_v14 = vpop.permute.xlu1 %6295  ;;  %v6302_v42 = vpop.permute.xlu2 %6301 }
 0xf8e   :  { %v6308_v18 = vpop.permute.xlu0 %6307  ;;  %v6321_v32 = vrot.slane %v6296_v14, 7  ;;  %v6326_v0 = vsel %vm12016_vm8, %v6325_v45, %v6302_v42  ;;  %vm12031_vm8 = vmmov %vm12013_vm0 }
 0xf8f   :  { %v6327_v15 = vrot.slane %v6308_v18, 7 }
 0xf95   :  { %v6312_v39 = vpop.permute.xlu1 %6311 }
 0xf96   :  { %v6290_v10 = vpop.permute.xlu0 %6289  ;;  %v6329_v2 = vrot.slane %v6312_v39, 7  ;;  %v6632_v39 = vld [vmem:[%s11440_s6] sm:$0xff] }
 0xf97   :  { %v6320_v19 = vsel %vm12007_vm14, %v6319_v22, %v6290_v10  ;;  %6657 = vmatpush.msra.mxu1 %v6632_v39  ;;  %vm12023_vm14 = vmmov %vm12013_vm0 }
 0xf98   :  { %v6348_v9 = vsel %vm12008_vm7, %v6347_v21, %v6320_v19  ;;  %vm12024_vm7 = vmmov %vm12013_vm0 }
 0xf99   :  { %v6352_v1 = vperm.slane %v6348_v9, %v9693_v7 }
 0xf9b   :  { %v6365_v27 = vrot.slane %v6352_v1, 4 }
 0xf9d   :  { %v6294_v51 = vpop.permute.xlu1 %6293 }
 0xf9e   :  { %v6322_v44 = vsel %vm12010_vm13, %v6321_v32, %v6294_v51  ;;  %v6306_v38 = vpop.permute.xlu0 %6305  ;;  %vm12026_vm13 = vmmov %vm12013_vm0 }
 0xf9f   :  { %v6341_v26 = vrot.slane %v6322_v44, 4  ;;  %v6328_v59 = vsel %vm12011_vm3, %v6327_v15, %v6306_v38  ;;  %vm12027_vm3 = vmmov %vm12013_vm0 }
 0xfa0   :  { %v6360_v6 = vsel %vm12013_vm0, %v6359_v5, %v6328_v59 }
 0xfa1   :  { %v6342_v11 = vsel %vm12012_vm10, %v6341_v26, %v6318_v63  ;;  %v6364_v12 = vperm.slane %v6360_v6, %v9693_v7  ;;  %vm12028_vm10 = vmmov %vm12013_vm0 }
 0xfa2   :  { %v6346_v30 = vperm.slane %v6342_v11, %v9693_v7 }
 0xfa3   :  { %v6371_v24 = vrot.slane %v6364_v12, 4 }
 0xfa4   :  { %v6366_v41 = vsel %vm12015_vm4, %v6365_v27, %v6346_v30  ;;  %vm12030_vm4 = vmmov %vm12013_vm0 }
 0xfa5   :  { %v6310_v3 = vpop.permute.xlu1 %6309  ;;  %v6370_v63 = vperm.slane %v6366_v41, %v9705_v46 }
 0xfa6   :  { %v6330_v48 = vsel %vm12014_vm6, %v6329_v2, %v6310_v3  ;;  %vm12029_vm6 = vmmov %vm12013_vm0 }
 0xfa7   :  { %v6353_v56 = vrot.slane %v6330_v48, 4  ;;  %v6379_v14 = vrot.slane %v6370_v63, 4 }
 0xfa9   :  { %v6354_v33 = vsel %vm12017_vm1, %v6353_v56, %v6326_v0  ;;  %vm12032_vm1 = vmmov %vm12013_vm0 }
 0xfaa   :  { %v6358_v16 = vperm.slane %v6354_v33, %v9693_v7  ;;  %v6611_v33 = vld [vmem:[%s11435_s1] sm:$0x3] }
 0xfac   :  { %v6372_v37 = vsel %vm12018_vm11, %v6371_v24, %v6358_v16 }
 0xfad   :  { %v6376_v60 = vperm.slane %v6372_v37, %v9705_v46 }
 0xfaf   :  { %v6380_v18 = vsel %vm12019_vm15, %v6376_v60, %v6379_v14  ;;  %v6377_v20 = vrot.slane %v6376_v60, 4 }
 0xfb0   :  { %v6384_v23 = vsel %vm12020_vm12, %v6380_v18, 0.0 }
 0xfb1   :  { %6385 = vadd.xlane.f32.xlu1 %v6384_v23  ;;  %v6378_v17 = vsel %vm12021_vm5, %v6377_v20, %v6370_v63  ;;  %v6612_v63 = vsub.f32 0.0, %v6611_v33 }
 0xfb2   :  { %v6381_v28 = vsel %vm12022_vm9, %v6378_v17, 0.0  ;;  %vm6638_vm9 = vcmask 261120  }
 0xfb3   :  { %6382 = vadd.xlane.f32.xlu0 %v6381_v28  ;;  %v6613_v16 = vmul.f32 1.442695, %v6612_v63 }
 0xfb5   :  { %6998 = vpow2.f32 %v6613_v16 }
 0xfbb   :  { %v6999_v18 = vpop.eup %6998 }
 0xfbc   :  { %v6615_v20 = vadd.f32 1.0, %v6999_v18 }
 0xfbe   :  { %7000 = vrcp.f32 %v6615_v20  ;;  %v6627_v28 = vand.u32 2147483648, %v6615_v20  ;;  %vm6621_vm11 = vweird.f32 %v6615_v20 }
 0xfc4   :  { %v7001_v23 = vpop.eup %7000 }
 0xfc5   :  { %v6617_v17 = vmul.f32 %v7001_v23, %v6615_v20  ;;  %vm6622_vm15 = vweird.f32 %v7001_v23 }
 0xfc6   :  { %vm6623_vm12 = vmor %vm6621_vm11, %vm6622_vm15  ;;  %vm12044_vm11 = vcmask 97280  }
 0xfc7   :  { %v6618_v39 = vsub.f32 1.0, %v6617_v17 }
0x1024   :  { %v6386_v31 = vpop.xlane.xlu1 %6385 }
0x1025   :  { %v6388_v10 = vmul.f32 %v6386_v31, %v9719_v55  ;;  %v6625_v31 = vand.u32 2147483647, %v6615_v20 }
0x1026   :  { %v6383_v54 = vpop.xlane.xlu0 %6382 }
0x1027   :  { %v6427_v22 = vrot.slane %v6388_v10, 4  ;;  %v6432_v19 = vperm.slane %v6388_v10, %v9693_v7  ;;  %v6387_v21 = vmul.f32 %v6383_v54, %v9719_v55  ;;  %v6628_v10 = vor.u32 1.1754944e-38, %v6627_v28 }
0x1028   :  { %vm6626_vm5 = vcmp.eq.f32.partialorder %v6625_v31, 8.507059e+37 }
0x1029   :  { %v6428_v36 = vsel %vm12023_vm14, 0.0, %v6427_v22  ;;  %v6437_v8 = vrot.slane %v6432_v19, 4  ;;  %v6389_v32 = vrot.slane %v6387_v21, 4  ;;  %v6394_v9 = vperm.slane %v6387_v21, %v9693_v7  ;;  %vm12033_vm14 = vmmov %vm12013_vm0 }
0x102a   :  { %v6436_v51 = vperm.slane %v6428_v36, %v9693_v7  ;;  %v11338_v11 = vperm.slane %v6432_v19, %v9705_v46 }
0x102b   :  { %v6438_v61 = vsel %vm12024_vm7, 0.0, %v6437_v8  ;;  %v6390_v15 = vsel %vm12025_vm2, 0.0, %v6389_v32  ;;  %v11332_v38 = vperm.slane %v6394_v9, %v9705_v46  ;;  %v6399_v48 = vrot.slane %v6394_v9, 4  ;;  %vm12034_vm7 = vmmov %vm12013_vm0 }
0x102c   :  { %v6398_v44 = vperm.slane %v6390_v15, %v9693_v7  ;;  %v6446_v26 = vperm.slane %v6438_v61, %v9705_v46  ;;  %v6447_v59 = vrot.slane %v6436_v51, 4  ;;  %v6452_v6 = vperm.slane %v6436_v51, %v9705_v46  ;;  %vm12035_vm2 = vmmov %vm12013_vm0 }
0x102d   :  { %v6419_v55 = vrot.slane %v11332_v38, 4  ;;  %v6457_v42 = vrot.slane %v11338_v11, 4  ;;  %v6400_v24 = vsel %vm12031_vm8, 0.0, %v6399_v48  ;;  %vm12042_vm8 = vcmask 80896  }
0x102e   :  { %v6414_v1 = vperm.slane %v6398_v44, %v9705_v46  ;;  %v6459_v5 = vrot.slane %v6446_v26, 4  ;;  %v6409_v2 = vrot.slane %v6398_v44, 4  ;;  %v6448_v27 = vsel %vm12028_vm10, 0.0, %v6447_v59 }
0x102f   :  { %v6420_v30 = vsel %vm12026_vm13, 0.0, %v6419_v55  ;;  %v6461_v3 = vrot.slane %v6452_v6, 4  ;;  %v6456_v45 = vperm.slane %v6448_v27, %v9705_v46  ;;  %v6458_v41 = vsel %vm12029_vm6, 0.0, %v6457_v42 }
0x1030   :  { %6491 = vrot.lane.b32.xlu1 %v6414_v1, %s7034_s15  ;;  %6467 = vrot.lane.b32.xlu2 %v6420_v30, %s7052_s2  ;;  %v6460_v7 = vsel %vm12027_vm3, 0.0, %v6459_v5  ;;  %v6410_v12 = vsel %vm12013_vm0, 0.0, %v6409_v2  ;;  %v6408_v60 = vperm.slane %v6400_v24, %v9705_v46  ;;  %v6423_v32 = vrot.slane %v6414_v1, 4 }
0x1031   :  { %6485 = vrot.lane.b32.xlu0 %v6460_v7, %s7053_s20  ;;  %v6462_v56 = vsel %vm12030_vm4, 0.0, %v6461_v3  ;;  %v6418_v0 = vperm.slane %v6410_v12, %v9705_v46  ;;  %v6619_v46 = vmul.f32 %v7001_v23, %v6618_v39  ;;  %v6463_v51 = vrot.slane %v6456_v45, 4 }
0x1032   :  { %v6421_v54 = vrot.slane %v6408_v60, 4  ;;  %v6424_v9 = vsel %vm12034_vm7, 0.0, %v6423_v32  ;;  %vm12036_vm13 = vcmask 15360   ;;  %vm12037_vm3 = vcmask 31744  }
0x1033   :  { %v6425_v37 = vrot.slane %v6418_v0, 4  ;;  %v6620_v22 = vadd.f32 %v7001_v23, %v6619_v46  ;;  %v6464_v61 = vsel %vm12035_vm2, 0.0, %v6463_v51  ;;  %vm12038_vm10 = vcmask 48128   ;;  %vm12039_vm0 = vmmov %vm12036_vm13 }
0x1034   :  { %v6422_v36 = vsel %vm12033_vm14, 0.0, %v6421_v54  ;;  %vm12040_vm6 = vmmov %vm12037_vm3  ;;  %vm12041_vm4 = vcmask 64512  }
0x1035   :  { %v6426_v14 = vsel %vm12032_vm1, 0.0, %v6425_v37  ;;  %v6624_v19 = vsel %vm6623_vm12, %v7001_v23, %v6620_v22  ;;  %vm12043_vm1 = vmmov %vm12038_vm10  ;;  %vm12046_vm12 = vcmask 113664  }
0x1036   :  { %v6629_v21 = vsel %vm6626_vm5, %v6628_v10, %v6624_v19  ;;  %vm12045_vm15 = vmmov %vm12041_vm4 }
0x1037   :  { %v6631_v8 = vmul.f32 %v6629_v21, %v6611_v33  ;;  %vm12047_vm5 = vmmov %vm12042_vm8 }
0x1038   :  { %6509 = vrot.lane.b32.xlu1 %v6456_v45, %s11974_s14  ;;  %6469 = vrot.lane.b32.xlu2 %v6458_v41, %s7052_s2  ;;  %vm12049_vm14 = vmmov %vm12046_vm12 }
0x1039   :  { %6501 = vrot.lane.b32.xlu0 %v6462_v56, %s11969_s13  ;;  %6782 = vmatmul.msk.f32.vlgmr.msra.gmra.mxu1 %vm6638_vm9, %v6631_v8  ;;  %vm12048_vm9 = vmmov %vm12044_vm11  ;;  %v6853_v8 = vld [vmem:[%s11441_s7 + $0xc] ss:$0 sm:$0xff] }
0x1040   :  { %6475 = vrot.lane.b32.xlu2 %v6408_v60, %s7054_s21 }
0x1041   :  { %6515 = vrot.lane.b32.xlu0 %v6426_v14, %s11966_s12 }
0x1048   :  { %6477 = vrot.lane.b32.xlu2 %v6446_v26, %s7054_s21 }
0x1050   :  { %6493 = vrot.lane.b32.xlu2 %v6452_v6, %s7034_s15 }
0x1058   :  { %6483 = vrot.lane.b32.xlu2 %v6422_v36, %s7053_s20 }
0x1060   :  { %6499 = vrot.lane.b32.xlu2 %v6424_v9, %s11969_s13 }
0x1068   :  { %6507 = vrot.lane.b32.xlu2 %v6418_v0, %s11974_s14 }
0x1070   :  { %6517 = vrot.lane.b32.xlu2 %v6464_v61, %s11966_s12  ;;  %v6851_v61 = vld [vmem:[%s11441_s7 + $0xa] ss:$0 sm:$0xff] }
0x108a   :  { %v6468_v15 = vpop.permute.xlu2 %6467 }
0x108b   :  { %v6521_v6 = vsel %vm12036_vm13, %v11332_v38, %v6468_v15 }
0x1092   :  { %v6470_v44 = vpop.permute.xlu2 %6469 }
0x1093   :  { %v6522_v42 = vsel %vm12039_vm0, %v11338_v11, %v6470_v44 }
0x109a   :  { %v6476_v26 = vpop.permute.xlu2 %6475 }
0x109b   :  { %v6523_v2 = vsel %vm12037_vm3, %v6521_v6, %v6476_v26  ;;  %v6852_v6 = vld [vmem:[%s11441_s7 + $0xb] ss:$0 sm:$0xff] }
0x10a2   :  { %v6478_v55 = vpop.permute.xlu2 %6477  ;;  %v6492_v3 = vpop.permute.xlu1 %6491 }
0x10a3   :  { %v6486_v5 = vpop.permute.xlu0 %6485  ;;  %v6524_v45 = vsel %vm12040_vm6, %v6522_v42, %v6478_v55  ;;  %vm12050_vm6 = vcmask 130048  }
0x10a4   :  { %v6526_v56 = vsel %vm12043_vm1, %v6524_v45, %v6486_v5 }
0x10aa   :  { %v6494_v59 = vpop.permute.xlu2 %6493  ;;  %v6510_v16 = vpop.permute.xlu1 %6509 }
0x10ab   :  { %v6502_v7 = vpop.permute.xlu0 %6501  ;;  %v6528_v33 = vsel %vm12045_vm15, %v6526_v56, %v6494_v59 }
0x10ac   :  { %v6530_v11 = vsel %vm12047_vm5, %v6528_v33, %v6502_v7 }
0x10ad   :  { %v6532_v60 = vsel %vm12048_vm9, %v6530_v11, %v6510_v16 }
0x10b2   :  { %v6484_v30 = vpop.permute.xlu2 %6483 }
0x10b3   :  { %v6525_v27 = vsel %vm12038_vm10, %v6523_v2, %v6484_v30  ;;  %v6516_v0 = vpop.permute.xlu0 %6515 }
0x10b4   :  { %v6527_v12 = vsel %vm12041_vm4, %v6525_v27, %v6492_v3  ;;  %vm12051_vm4 = vmmov %vm12050_vm6 }
0x10b5   :  { %vm12053_vm1 = vmmov %vm12051_vm4 }
0x10b6   :  { %v6659_v15 = vpop.f32.mrf.mxu1  ;;  %vm12055_vm15 = vmmov %vm12053_vm1 }
0x10b7   :  { %vm12057_vm5 = vmmov %vm12053_vm1 }
0x10b8   :  { %vm12058_vm9 = vmmov %vm12053_vm1 }
0x10ba   :  { %v6500_v1 = vpop.permute.xlu2 %6499 }
0x10bb   :  { %v6529_v48 = vsel %vm12042_vm8, %v6527_v12, %v6500_v1  ;;  %vm12052_vm8 = vmmov %vm12051_vm4 }
0x10c2   :  { %v6508_v41 = vpop.permute.xlu2 %6507 }
0x10c3   :  { %v6531_v38 = vsel %vm12044_vm11, %v6529_v48, %v6508_v41  ;;  %vm12054_vm11 = vmmov %vm12053_vm1 }
0x10c4   :  { %v6533_v63 = vsel %vm12046_vm12, %v6531_v38, %v6516_v0  ;;  %vm12056_vm12 = vmmov %vm12053_vm1 }
0x10c5   :  { %v6535_v24 = vadd.f32 1e-05, %v6533_v63 }
0x10c7   :  { %7002 = vrsqrt.f32 %v6535_v24  ;;  %vm6543_vm2 = vweird.f32 %v6535_v24 }
0x10ca   :  { %v6518_v37 = vpop.permute.xlu2 %6517 }
0x10cb   :  { %v6534_v14 = vsel %vm12049_vm14, %v6532_v60, %v6518_v37  ;;  %vm12059_vm14 = vmmov %vm12053_vm1 }
0x10cc   :  { %v6536_v18 = vadd.f32 1e-05, %v6534_v14 }
0x10cd   :  { %v7003_v20 = vpop.eup %7002 }
0x10ce   :  { %v6538_v23 = vmul.f32 %v7003_v20, %v6535_v24  ;;  %7004 = vrsqrt.f32 %v6536_v18  ;;  %vm6544_vm7 = vweird.f32 %v7003_v20  ;;  %vm6553_vm10 = vweird.f32 %v6536_v18 }
0x10cf   :  { %vm6545_vm13 = vmor %vm6543_vm2, %vm6544_vm7 }
0x10d0   :  { %v6539_v17 = vmul.f32 %v7003_v20, %v6538_v23  ;;  %vm12060_vm7 = vmmov %vm12053_vm1 }
0x10d1   :  { %vm12061_vm2 = vmmov %vm12053_vm1 }
0x10d2   :  { %v6540_v28 = vmul.f32 0.5, %v6539_v17 }
0x10d4   :  { %v7005_v39 = vpop.eup %7004  ;;  %v6541_v31 = vsub.f32 1.5, %v6540_v28 }
0x10d5   :  { %v6548_v46 = vmul.f32 %v7005_v39, %v6536_v18  ;;  %vm6554_vm3 = vweird.f32 %v7005_v39 }
0x10d6   :  { %v6542_v10 = vmul.f32 %v7003_v20, %v6541_v31  ;;  %vm6555_vm0 = vmor %vm6553_vm10, %vm6554_vm3 }
0x10d7   :  { %v6549_v54 = vmul.f32 %v7005_v39, %v6548_v46  ;;  %vm12063_vm3 = vmmov %vm12053_vm1 }
0x10d8   :  { %v6546_v22 = vsel %vm6545_vm13, %v7003_v20, %v6542_v10  ;;  %vm12062_vm13 = vmmov %vm12053_vm1 }
0x10d9   :  { %v6557_v19 = vperm.slane %v6546_v22, 0  ;;  %v6550_v21 = vmul.f32 0.5, %v6549_v54  ;;  %vm12064_vm10 = vmmov %vm12053_vm1 }
0x10db   :  { %v6551_v36 = vsub.f32 1.5, %v6550_v21  ;;  %v6559_v32 = vmul.f32 %v6557_v19, %v11218_v25  ;;  %v6560_v9 = vmul.f32 %v6557_v19, %v11221_v52  ;;  %v6561_v51 = vmul.f32 %v6557_v19, %v11224_v49 }
0x10dc   :  { %v6562_v26 = vmul.f32 %v6557_v19, %v11227_v43  ;;  %v6563_v55 = vmul.f32 %v6557_v19, %v11233_v58  ;;  %v6564_v59 = vmul.f32 %v6557_v19, %v11243_v47  ;;  %v6565_v25 = vmul.f32 %v6557_v19, %v11251_v34 }
0x10dd   :  { %v6552_v44 = vmul.f32 %v7005_v39, %v6551_v36  ;;  %v6660_v52 = vadd.f32 %v6853_v8, %v6659_v15  ;;  %v6577_v49 = vmul.f32 %v6851_v61, %v6559_v32  ;;  %v6578_v7 = vmul.f32 %v6851_v61, %v6560_v9 }
0x10de   :  { %v6579_v1 = vmul.f32 %v6851_v61, %v6561_v51  ;;  %v6566_v2 = vmul.f32 %v6557_v19, %v11257_v50  ;;  %v6580_v43 = vmul.f32 %v6851_v61, %v6562_v26  ;;  %v6581_v58 = vmul.f32 %v6851_v61, %v6563_v55 }
0x10df   :  { %v6556_v5 = vsel %vm6555_vm0, %v7005_v39, %v6552_v44  ;;  %v6582_v42 = vmul.f32 %v6851_v61, %v6564_v59  ;;  %v6583_v3 = vmul.f32 %v6851_v61, %v6565_v25  ;;  %v6664_v34 = vperm.slane %v6660_v52, 0  ;;  %vm12065_vm0 = vmmov %vm12053_vm1 }
0x10e0   :  { %v6558_v30 = vperm.slane %v6556_v5, 0  ;;  %v6595_v12 = vadd.f32 %v6852_v6, %v6577_v49  ;;  %v6596_v48 = vadd.f32 %v6852_v6, %v6578_v7  ;;  %v6597_v41 = vadd.f32 %v6852_v6, %v6579_v1 }
0x10e1   :  { %v6584_v0 = vmul.f32 %v6851_v61, %v6566_v2  ;;  %v6598_v38 = vadd.f32 %v6852_v6, %v6580_v43  ;;  %v6663_v33 = vrot.slane %v6660_v52, 1  ;;  %v6600_v24 = vadd.f32 %v6852_v6, %v6582_v42 }
0x10e2   :  { %v6567_v27 = vmul.f32 %v6558_v30, %v11168_v57  ;;  %v6568_v47 = vmul.f32 %v6558_v30, %v11171_v4  ;;  %v6569_v45 = vmul.f32 %v6558_v30, %v11174_v62  ;;  %v6570_v56 = vmul.f32 %v6558_v30, %v11177_v35 }
0x10e3   :  { %v6571_v50 = vmul.f32 %v6558_v30, %v11181_v29  ;;  %v6599_v57 = vadd.f32 %v6852_v6, %v6581_v58  ;;  %v6572_v11 = vmul.f32 %v6558_v30, %v11192_v13  ;;  %v6573_v4 = vmul.f32 %v6558_v30, %v11201_v40 }
0x10e4   :  { %v6585_v63 = vmul.f32 %v6851_v61, %v6567_v27  ;;  %v6586_v16 = vmul.f32 %v6851_v61, %v6568_v47  ;;  %v6601_v37 = vadd.f32 %v6852_v6, %v6583_v3  ;;  %v6587_v62 = vmul.f32 %v6851_v61, %v6569_v45 }
0x10e5   :  { %v6668_v60 = vadd.f32 %v6664_v34, %v6595_v12  ;;  %v6669_v14 = vadd.f32 %v6664_v34, %v6596_v48  ;;  %v6670_v18 = vadd.f32 %v6664_v34, %v6597_v41  ;;  %v6574_v35 = vmul.f32 %v6558_v30, %v11208_v53 }
0x10e6   :  { %v6588_v20 = vmul.f32 %v6851_v61, %v6570_v56  ;;  %v6602_v23 = vadd.f32 %v6852_v6, %v6584_v0  ;;  %v6671_v17 = vadd.f32 %v6664_v34, %v6598_v38  ;;  %v6589_v28 = vmul.f32 %v6851_v61, %v6571_v50 }
0x10e7   :  { %v6603_v29 = vadd.f32 %v6852_v6, %v6585_v63  ;;  %v6665_v39 = vperm.slane %v6663_v33, 0  ;;  %v6672_v31 = vadd.f32 %v6664_v34, %v6599_v57  ;;  %6684 = vst.msk [vmem:[#allocation4] sm:$0xff] %vm12050_vm6, %v6668_v60  ;;  %v6590_v13 = vmul.f32 %v6851_v61, %v6572_v11 }
0x10e8   :  { %v6604_v46 = vadd.f32 %v6852_v6, %v6586_v16  ;;  %v6673_v40 = vadd.f32 %v6664_v34, %v6600_v24  ;;  %6685 = vst.msk [vmem:[#allocation4 + $0x8] sm:$0xff] %vm12051_vm4, %v6669_v14  ;;  %v6591_v10 = vmul.f32 %v6851_v61, %v6573_v4  ;;  %v6605_v54 = vadd.f32 %v6852_v6, %v6587_v62 }
0x10e9   :  { %v6674_v22 = vadd.f32 %v6664_v34, %v6601_v37  ;;  %6686 = vst.msk [vmem:[#allocation4 + $0x10] sm:$0xff] %vm12052_vm8, %v6670_v18  ;;  %v6592_v53 = vmul.f32 %v6851_v61, %v6574_v35  ;;  %v6606_v19 = vadd.f32 %v6852_v6, %v6588_v20  ;;  %v6675_v21 = vadd.f32 %v6664_v34, %v6602_v23 }
0x10ea   :  { %6687 = vst.msk [vmem:[#allocation4 + $0x18] sm:$0xff] %vm12053_vm1, %v6671_v17  ;;  %v6607_v36 = vadd.f32 %v6852_v6, %v6589_v28  ;;  %v6676_v8 = vadd.f32 %v6665_v39, %v6603_v29  ;;  %v6608_v32 = vadd.f32 %v6852_v6, %v6590_v13  ;;  %v6677_v9 = vadd.f32 %v6665_v39, %v6604_v46 }
0x10eb   :  { %6688 = vst.msk [vmem:[#allocation4 + $0x20] sm:$0xff] %vm12054_vm11, %v6672_v31  ;;  %v6609_v51 = vadd.f32 %v6852_v6, %v6591_v10  ;;  %v6678_v15 = vadd.f32 %v6665_v39, %v6605_v54  ;;  %v6610_v44 = vadd.f32 %v6852_v6, %v6592_v53  ;;  %v6679_v26 = vadd.f32 %v6665_v39, %v6606_v19 }
0x10ec   :  { %6689 = vst.msk [vmem:[#allocation4 + $0x28] sm:$0xff] %vm12055_vm15, %v6673_v40  ;;  %v6680_v61 = vadd.f32 %v6665_v39, %v6607_v36  ;;  %v6681_v55 = vadd.f32 %v6665_v39, %v6608_v32 }
0x10ed   :  { %6690 = vst.msk [vmem:[#allocation4 + $0x30] sm:$0xff] %vm12056_vm12, %v6674_v22  ;;  %v6682_v59 = vadd.f32 %v6665_v39, %v6609_v51  ;;  %v6683_v5 = vadd.f32 %v6665_v39, %v6610_v44 }
0x10ee   :  { %6691 = vst.msk [vmem:[#allocation4 + $0x38] sm:$0xff] %vm12057_vm5, %v6675_v21 }
0x10ef   :  { %6692 = vst.msk [vmem:[#allocation4 + $0x40] sm:$0xff] %vm12058_vm9, %v6676_v8 }
0x10f0   :  { %6693 = vst.msk [vmem:[#allocation4 + $0x48] sm:$0xff] %vm12059_vm14, %v6677_v9 }
0x10f1   :  { %6694 = vst.msk [vmem:[#allocation4 + $0x50] sm:$0xff] %vm12060_vm7, %v6678_v15 }
0x10f2   :  { %6695 = vst.msk [vmem:[#allocation4 + $0x58] sm:$0xff] %vm12061_vm2, %v6679_v26 }
0x10f3   :  { %6696 = vst.msk [vmem:[#allocation4 + $0x60] sm:$0xff] %vm12062_vm13, %v6680_v61 }
0x10f4   :  { %6697 = vst.msk [vmem:[#allocation4 + $0x68] sm:$0xff] %vm12063_vm3, %v6681_v55 }
0x10f5   :  { %6698 = vst.msk [vmem:[#allocation4 + $0x70] sm:$0xff] %vm12064_vm10, %v6682_v59 }
0x10f6   :  { %6699 = vst.msk [vmem:[#allocation4 + $0x78] sm:$0xff] %vm12065_vm0, %v6683_v5 }
0x10f7   :  { %6712 = dma.vmem_to_hbm [thread:$0]  %s6705_s26, 2048, %s6707_s23, [#allocation5], %s7062_s27, %s7062_s27, %s7034_s15  }
0x10f8   :  { %7030 = dma.done.wait [#allocation5], 2048  }
0x10f9   :  { %7031 = vsyncadd [#allocation5], 4294965248 }
0x10fa   :  { %6717 = vsyncpa [#allocation5], 1 }

</bundles_post_ra>
